<compile_context>
chip_gen: v6e
topology: v6e:2x2x1
jax: 0.10.0
libtpu: 0.0.40
codegen_flags: <defaults>
</compile_context>

<pallas_src>
import jax
import jax.numpy as jnp
from jax import lax
from jax.experimental import pallas as pl
from jax.experimental.pallas import tpu as pltpu


def _sigmoid(v):
    # Written explicitly (exp + divide) so the Pallas kernel and the reference use
    # the exact same formula.
    return 1.0 / (1.0 + jnp.exp(-v))


# -----------------------------------------------------------------------------
# Fused Pallas kernel
# -----------------------------------------------------------------------------
def _make_kernel(C, H, W):
    HW = H * W

    def shift_lanes(a, k):
        """result[:, i] = a[:, i - k] along the flattened H*W lane axis, zero-filled."""
        if k == 0:
            return a
        rows = a.shape[0]
        if k > 0:
            pad = jnp.zeros((rows, k), a.dtype)
            return jnp.concatenate([pad, a[:, :HW - k]], axis=1)
        k = -k
        pad = jnp.zeros((rows, k), a.dtype)
        return jnp.concatenate([a[:, k:], pad], axis=1)

    def kernel(x_ref,
               ca_fc1t_ref, ca_fc2_ref, sa_w_ref,
               pw1_ref, dw1h_ref, dw1w_ref, bn1_s_ref, bn1_b_ref,
               dw2h_ref, dw2w_ref, pw2_ref, bn2_s_ref, bn2_b_ref,
               ca1_fc1t_ref, ca1_fc2_ref, sa1_w_ref,
               o_ref):
        # w-coordinate of every flattened lane position (shared by all rows).
        # Boundary masks are hoisted here so the iota/compare is built once and reused
        # by both depthwise (1,3) convs and both 7x7 spatial-attention convs.
        w_coord = lax.broadcasted_iota(jnp.int32, (1, HW), 1) % W
        lmask = {d: w_coord < d for d in (1, 2, 3)}          # invalid when reading w-d
        rmask = {d: w_coord >= W - d for d in (1, 2, 3)}     # invalid when reading w+d

        # ---- ChannelAttention: global avg/max pool -> 1x1 -> ReLU -> 1x1 -> sigmoid
        def channel_attention(x2, fc1_t, fc2):
            # fc1_t: (C, Ch)  (transposed PyTorch fc1),  fc2: (C, Ch)
            avg = jnp.mean(x2, axis=1, keepdims=True)            # (C, 1)
            mx = jnp.max(x2, axis=1, keepdims=True)              # (C, 1)
            pooled = jnp.concatenate([avg, mx], axis=1)          # (C, 2)
            ch = fc1_t.shape[1]
            o = jnp.zeros((C, 2), jnp.float32)
            # Tiny MLP done with broadcast-multiply-reduce (Ch = C // 16 is tiny), so no
            # awkward (2 x C) x (C x 2) micro-matmuls need to hit the MXU.
            for j in range(ch):
                hj = jnp.sum(fc1_t[:, j:j + 1] * pooled, axis=0, keepdims=True)  # (1, 2)
                hj = jnp.maximum(hj, 0.0)                        # ReLU
                o = o + fc2[:, j:j + 1] * hj                     # (C, 2)
            # ReLU is elementwise, so running avg & max columns together is identical
            # to the reference's two separate MLP passes followed by the add.
            return _sigmoid(o[:, 0:1] + o[:, 1:2])               # (C, 1)

        # ---- SpatialAttention: channel mean/max -> 7x7 conv (pad 3) -> sigmoid
        def spatial_attention(x2, sa_w):
            # sa_w: (2, 49) flattened (channel, kh*7+kw) weights of Conv2d(2, 1, 7, pad=3)
            avg_c = jnp.mean(x2, axis=0, keepdims=True)          # (1, HW)
            max_c = jnp.max(x2, axis=0, keepdims=True)           # (1, HW)
            maps = jnp.concatenate([avg_c, max_c], axis=0)       # (2, HW): both channels
            # Hoist the 7 width-shifted (and row-boundary masked) variants out of the
            # kh loop: 7 masked shifts + 49 height shifts instead of 98 masked shifts.
            wvals = []
            for kw in range(7):
                ws = kw - 3
                v = shift_lanes(maps, -ws)                       # value at (h, w+ws)
                if ws > 0:
                    v = jnp.where(rmask[ws], 0.0, v)
                elif ws < 0:
                    v = jnp.where(lmask[-ws], 0.0, v)
                wvals.append(v)
            acc = jnp.zeros((2, HW), jnp.float32)
            for kh in range(7):
                hs = kh - 3
                for kw in range(7):
                    val = shift_lanes(wvals[kw], -hs * W)        # value at (h+hs, w+ws)
                    tap = sa_w[:, kh * 7 + kw:kh * 7 + kw + 1]   # (2, 1)
                    acc = acc + tap * val
            # Sum the avg- and max-channel contributions, then sigmoid.
            return _sigmoid(jnp.sum(acc, axis=0, keepdims=True)) # (1, HW)

        # ---- depthwise (3,1) conv over H, pad 1, stride 1; w: (C, 3)
        def dw_conv_h(x2, w):
            up = shift_lanes(x2, W)        # value at h-1 (zero-fill handles h == 0)
            down = shift_lanes(x2, -W)     # value at h+1 (zero-fill handles h == H-1)
            return w[:, 0:1] * up + w[:, 1:2] * x2 + w[:, 2:3] * down

        # ---- depthwise (1,3) conv over W, pad 1, stride 1; w: (C, 3)
        def dw_conv_w(x2, w):
            left = jnp.where(lmask[1], 0.0, shift_lanes(x2, 1))    # value at w-1
            right = jnp.where(rmask[1], 0.0, shift_lanes(x2, -1))  # value at w+1
            return w[:, 0:1] * left + w[:, 1:2] * x2 + w[:, 2:3] * right

        x2 = x_ref[0]                                            # (C, HW), lane-dense

        # x = ca(x) * x ; x = sa(x) * x
        x2 = x2 * channel_attention(x2, ca_fc1t_ref[...], ca_fc2_ref[...])
        x2 = x2 * spatial_attention(x2, sa_w_ref[...])

        # self.op (inference): Dropout(=identity) -> ReLU -> 1x1 -> dw(3,1) -> dw(1,3)
        #                      -> BN -> ReLU -> dw(3,1) -> dw(1,3) -> 1x1 -> BN
        y = jnp.maximum(x2, 0.0)
        y = jnp.dot(pw1_ref[...], y, preferred_element_type=jnp.float32)   # MXU (C, HW)
        y = dw_conv_h(y, dw1h_ref[...])
        y = dw_conv_w(y, dw1w_ref[...])
        y = y * bn1_s_ref[...] + bn1_b_ref[...]                  # folded BN, (C, 1) params
        y = jnp.maximum(y, 0.0)
        y = dw_conv_h(y, dw2h_ref[...])
        y = dw_conv_w(y, dw2w_ref[...])
        y = jnp.dot(pw2_ref[...], y, preferred_element_type=jnp.float32)   # MXU
        y = y * bn2_s_ref[...] + bn2_b_ref[...]

        # x = ca1(x) * x ; x = sa1(x) * x
        y = y * channel_attention(y, ca1_fc1t_ref[...], ca1_fc2_ref[...])
        y = y * spatial_attention(y, sa1_w_ref[...])

        o_ref[0] = y.astype(o_ref.dtype)

    return kernel


# -----------------------------------------------------------------------------
# Wrapper
# -----------------------------------------------------------------------------
def mcs_sepconv1_forward(x, params, *, stride=1):
    """Fused inference forward of Mcs_sepConv1. x: (N, C, H, W) float32, NCHW."""
    if stride != 1:
        # TODO(synk): stride=2 (DARTS reduce cell) needs output subsampling of the
        # strided depthwise convs; only stride=1 is implemented here.
        raise NotImplementedError("only stride=1 is supported")

    N, C, H, W = x.shape
    HW = H * W
    assert H >= 4 and W >= 4, "7x7 spatial attention shifts assume H, W >= 4"
    assert params["pw1"].shape == (C, C) and params["pw2"].shape == (C, C), \
        "Mcs_sepConv1's op only type-checks when C_in == C_out"

    # Lane-dense I/O layout (N, C, H*W); free reshape for contiguous NCHW.
    x2 = x.reshape(N, C, HW).astype(jnp.float32)

    def full(a):
        # Full-array VMEM block, resident across the whole (batch) grid.
        return pl.BlockSpec(a.shape, lambda n, _nd=a.ndim: (0,) * _nd)

    weights = (
        params["ca_fc1"].T,                         # (C, Ch)
        params["ca_fc2"],                           # (C, Ch)
        params["sa_w"].reshape(2, 49),              # (2, 49)
        params["pw1"],                              # (C, C)
        params["dw1h"], params["dw1w"],             # (C, 3) each
        params["bn1_scale"].reshape(C, 1), params["bn1_shift"].reshape(C, 1),
        params["dw2h"], params["dw2w"],             # (C, 3) each
        params["pw2"],                              # (C, C)
        params["bn2_scale"].reshape(C, 1), params["bn2_shift"].reshape(C, 1),
        params["ca1_fc1"].T, params["ca1_fc2"],     # (C, Ch) each
        params["sa1_w"].reshape(2, 49),             # (2, 49)
    )
    weights = tuple(jnp.asarray(w, jnp.float32) for w in weights)

    out2 = pl.pallas_call(
        _make_kernel(C, H, W),
        out_shape=jax.ShapeDtypeStruct((N, C, HW), jnp.float32),
        grid=(N,),
        in_specs=[pl.BlockSpec((1, C, HW), lambda n: (n, 0, 0))]
                 + [full(w) for w in weights],
        out_specs=pl.BlockSpec((1, C, HW), lambda n: (n, 0, 0)),
        compiler_params=pltpu.CompilerParams(
            # Shard the batch across the two v7x TensorCores; no-op on v5e/v6e.
            dimension_semantics=("parallel",),
        ),
    )(x2, *weights)

    return out2.reshape(N, C, H, W)


# -----------------------------------------------------------------------------
# Pure-JAX reference (stand-in for the PyTorch module, inference mode)
# -----------------------------------------------------------------------------
def _conv2d_ref(x, w, stride=(1, 1), padding=(0, 0), groups=1):
    return lax.conv_general_dilated(
        x, w, window_strides=stride,
        padding=[(padding[0], padding[0]), (padding[1], padding[1])],
        dimension_numbers=("NCHW", "OIHW", "NCHW"),
        feature_group_count=groups,
        precision=lax.Precision.HIGHEST)


def _channel_attention_ref(x, fc1, fc2):
    avg = jnp.mean(x, axis=(2, 3), keepdims=True)
    mx = jnp.max(x, axis=(2, 3), keepdims=True)
    w1 = fc1[:, :, None, None]
    w2 = fc2[:, :, None, None]

    def mlp(v):
        return _conv2d_ref(jnp.maximum(_conv2d_ref(v, w1), 0.0), w2)

    return _sigmoid(mlp(avg) + mlp(mx))


def _spatial_attention_ref(x, w):
    avg = jnp.mean(x, axis=1, keepdims=True)
    mx = jnp.max(x, axis=1, keepdims=True)
    cat = jnp.concatenate([avg, mx], axis=1)
    return _sigmoid(_conv2d_ref(cat, w[None], padding=(3, 3)))


def mcs_sepconv1_reference(x, p):
    C = x.shape[1]
    x = _channel_attention_ref(x, p["ca_fc1"], p["ca_fc2"]) * x
    x = _spatial_attention_ref(x, p["sa_w"]) * x
    y = jnp.maximum(x, 0.0)                                          # Dropout(eval) + ReLU
    y = _conv2d_ref(y, p["pw1"][:, :, None, None])                   # 1x1
    y = _conv2d_ref(y, p["dw1h"][:, None, :, None], padding=(1, 0), groups=C)   # dw (3,1)
    y = _conv2d_ref(y, p["dw1w"][:, None, None, :], padding=(0, 1), groups=C)   # dw (1,3)
    y = y * p["bn1_scale"][None, :, None, None] + p["bn1_shift"][None, :, None, None]
    y = jnp.maximum(y, 0.0)
    y = _conv2d_ref(y, p["dw2h"][:, None, :, None], padding=(1, 0), groups=C)
    y = _conv2d_ref(y, p["dw2w"][:, None, None, :], padding=(0, 1), groups=C)
    y = _conv2d_ref(y, p["pw2"][:, :, None, None])                   # 1x1
    y = y * p["bn2_scale"][None, :, None, None] + p["bn2_shift"][None, :, None, None]
    y = _channel_attention_ref(y, p["ca1_fc1"], p["ca1_fc2"]) * y
    y = _spatial_attention_ref(y, p["sa1_w"]) * y
    return y


# -----------------------------------------------------------------------------
# Parameter construction (random, deterministic; BN folded to scale/shift)
# -----------------------------------------------------------------------------
def init_params(key, C):
    Ch = C // 16
    assert Ch >= 1, "ChannelAttention uses C // 16 hidden channels -> need C >= 16"
    keys = iter(jax.random.split(key, 24))

    def nrm(shape, scale):
        return scale * jax.random.normal(next(keys), shape, jnp.float32)

    def bn(c):
        gamma = 1.0 + 0.1 * jax.random.normal(next(keys), (c,), jnp.float32)
        beta = 0.1 * jax.random.normal(next(keys), (c,), jnp.float32)
        mean = 0.1 * jax.random.normal(next(keys), (c,), jnp.float32)
        var = jax.random.uniform(next(keys), (c,), jnp.float32, minval=0.5, maxval=1.5)
        scale = gamma * jax.lax.rsqrt(var + 1e-5)
        shift = beta - mean * scale
        return scale, shift

    p = {}
    p["ca_fc1"] = nrm((Ch, C), 0.4)           # Conv2d(C, C//16, 1) weight (squeezed)
    p["ca_fc2"] = nrm((C, Ch), 0.4)           # Conv2d(C//16, C, 1) weight (squeezed)
    p["sa_w"] = nrm((2, 7, 7), 0.15)          # Conv2d(2, 1, 7) weight (squeezed)
    p["pw1"] = nrm((C, C), C ** -0.5)         # 1x1 conv
    p["dw1h"] = nrm((C, 3), 0.5)              # depthwise (3,1)
    p["dw1w"] = nrm((C, 3), 0.5)              # depthwise (1,3)
    p["bn1_scale"], p["bn1_shift"] = bn(C)    # folded inference BatchNorm
    p["dw2h"] = nrm((C, 3), 0.5)
    p["dw2w"] = nrm((C, 3), 0.5)
    p["pw2"] = nrm((C, C), C ** -0.5)
    p["bn2_scale"], p["bn2_shift"] = bn(C)
    p["ca1_fc1"] = nrm((Ch, C), 0.4)
    p["ca1_fc2"] = nrm((C, Ch), 0.4)
    p["sa1_w"] = nrm((2, 7, 7), 0.15)
    return p


if __name__ == "__main__":
    root = jax.random.PRNGKey(0)
    k_x, k_p = jax.random.split(root)

    # Small but non-degenerate shapes: C must be >= 16 for ChannelAttention (C // 16).
    N, C, H, W = 2, 32, 16, 16
    x = jax.random.normal(k_x, (N, C, H, W), jnp.float32)
    params = init_params(k_p, C)

    fwd = jax.jit(mcs_sepconv1_forward)
    y = fwd(x, params)
    jax.block_until_ready(y)

    assert y.shape == (N, C, H, W)
    assert y.dtype == jnp.float32

    y_ref = mcs_sepconv1_reference(x, params)
    max_err = float(jnp.max(jnp.abs(y - y_ref)))
    assert jnp.allclose(y, y_ref, rtol=1e-2, atol=1e-2), f"max abs err = {max_err}"

    print("KERNEL_OK")
</pallas_src>

<mosaic_0001>
module attributes {stable_mosaic.version = 11 : i64} {
  func.func @kernel(%arg0: i32, %arg1: memref<1x32x256xf32, #tpu.memory_space<vmem>>, %arg2: memref<32x2xf32, #tpu.memory_space<vmem>>, %arg3: memref<32x2xf32, #tpu.memory_space<vmem>>, %arg4: memref<2x49xf32, #tpu.memory_space<vmem>>, %arg5: memref<32x32xf32, #tpu.memory_space<vmem>>, %arg6: memref<32x3xf32, #tpu.memory_space<vmem>>, %arg7: memref<32x3xf32, #tpu.memory_space<vmem>>, %arg8: memref<32x1xf32, #tpu.memory_space<vmem>>, %arg9: memref<32x1xf32, #tpu.memory_space<vmem>>, %arg10: memref<32x3xf32, #tpu.memory_space<vmem>>, %arg11: memref<32x3xf32, #tpu.memory_space<vmem>>, %arg12: memref<32x32xf32, #tpu.memory_space<vmem>>, %arg13: memref<32x1xf32, #tpu.memory_space<vmem>>, %arg14: memref<32x1xf32, #tpu.memory_space<vmem>>, %arg15: memref<32x2xf32, #tpu.memory_space<vmem>>, %arg16: memref<32x2xf32, #tpu.memory_space<vmem>>, %arg17: memref<2x49xf32, #tpu.memory_space<vmem>>, %arg18: memref<1x32x256xf32, #tpu.memory_space<vmem>>) attributes {dimension_semantics = [#tpu.dimension_semantics<parallel>], iteration_bounds = array<i64: 2>, scalar_prefetch = 0 : i64, scratch_operands = 0 : i64, tpu.core_type = #tpu.core_type<tc>, window_params = [{transform_indices = @transform_0, window_bounds = array<i64: 1, 32, 256>}, {pipeline_mode = #tpu.pipeline_mode<synchronous>, transform_indices = @transform_1, window_bounds = array<i64: 32, 2>}, {pipeline_mode = #tpu.pipeline_mode<synchronous>, transform_indices = @transform_2, window_bounds = array<i64: 32, 2>}, {pipeline_mode = #tpu.pipeline_mode<synchronous>, transform_indices = @transform_3, window_bounds = array<i64: 2, 49>}, {pipeline_mode = #tpu.pipeline_mode<synchronous>, transform_indices = @transform_4, window_bounds = array<i64: 32, 32>}, {pipeline_mode = #tpu.pipeline_mode<synchronous>, transform_indices = @transform_5, window_bounds = array<i64: 32, 3>}, {pipeline_mode = #tpu.pipeline_mode<synchronous>, transform_indices = @transform_6, window_bounds = array<i64: 32, 3>}, {pipeline_mode = #tpu.pipeline_mode<synchronous>, transform_indices = @transform_7, window_bounds = array<i64: 32, 1>}, {pipeline_mode = #tpu.pipeline_mode<synchronous>, transform_indices = @transform_8, window_bounds = array<i64: 32, 1>}, {pipeline_mode = #tpu.pipeline_mode<synchronous>, transform_indices = @transform_9, window_bounds = array<i64: 32, 3>}, {pipeline_mode = #tpu.pipeline_mode<synchronous>, transform_indices = @transform_10, window_bounds = array<i64: 32, 3>}, {pipeline_mode = #tpu.pipeline_mode<synchronous>, transform_indices = @transform_11, window_bounds = array<i64: 32, 32>}, {pipeline_mode = #tpu.pipeline_mode<synchronous>, transform_indices = @transform_12, window_bounds = array<i64: 32, 1>}, {pipeline_mode = #tpu.pipeline_mode<synchronous>, transform_indices = @transform_13, window_bounds = array<i64: 32, 1>}, {pipeline_mode = #tpu.pipeline_mode<synchronous>, transform_indices = @transform_14, window_bounds = array<i64: 32, 2>}, {pipeline_mode = #tpu.pipeline_mode<synchronous>, transform_indices = @transform_15, window_bounds = array<i64: 32, 2>}, {pipeline_mode = #tpu.pipeline_mode<synchronous>, transform_indices = @transform_16, window_bounds = array<i64: 2, 49>}, {transform_indices = @transform_17, window_bounds = array<i64: 1, 32, 256>}]} {
    %0 = tpu.iota {dimensions = array<i32: 1>} : vector<1x256xi32>
    %c16_i32 = arith.constant 16 : i32
    %c0_i32 = arith.constant 0 : i32
    %1 = arith.cmpi eq, %c16_i32, %c0_i32 : i32
    %c1_i32 = arith.constant 1 : i32
    %2 = arith.select %1, %c1_i32, %c16_i32 : i32
    %3 = vector.broadcast %2 : i32 to vector<1x256xi32>
    %4 = arith.remsi %0, %3 : vector<1x256xi32>
    %c0_i32_0 = arith.constant 0 : i32
    %5 = vector.broadcast %c0_i32_0 : i32 to vector<1x256xi32>
    %6 = arith.cmpi ne, %4, %5 : vector<1x256xi32>
    %c0_i32_1 = arith.constant 0 : i32
    %7 = vector.broadcast %c0_i32_1 : i32 to vector<1x256xi32>
    %8 = arith.cmpi slt, %4, %7 : vector<1x256xi32>
    %c0_i32_2 = arith.constant 0 : i32
    %9 = arith.cmpi slt, %2, %c0_i32_2 : i32
    %10 = vector.broadcast %9 : i1 to vector<1x256xi1>
    %11 = vector.broadcast %10 : vector<1x256xi1> to vector<1x256xi1>
    %12 = arith.xori %8, %11 : vector<1x256xi1>
    %13 = arith.andi %12, %6 : vector<1x256xi1>
    %14 = vector.broadcast %2 : i32 to vector<1x256xi32>
    %15 = arith.addi %4, %14 : vector<1x256xi32>
    %16 = arith.select %13, %15, %4 : vector<1x256xi1>, vector<1x256xi32>
    %c1_i32_3 = arith.constant 1 : i32
    %17 = vector.broadcast %c1_i32_3 : i32 to vector<1x256xi32>
    %18 = arith.cmpi slt, %16, %17 : vector<1x256xi32>
    %c2_i32 = arith.constant 2 : i32
    %19 = vector.broadcast %c2_i32 : i32 to vector<1x256xi32>
    %20 = arith.cmpi slt, %16, %19 : vector<1x256xi32>
    %c3_i32 = arith.constant 3 : i32
    %21 = vector.broadcast %c3_i32 : i32 to vector<1x256xi32>
    %22 = arith.cmpi slt, %16, %21 : vector<1x256xi32>
    %c15_i32 = arith.constant 15 : i32
    %23 = vector.broadcast %c15_i32 : i32 to vector<1x256xi32>
    %24 = arith.cmpi sge, %16, %23 : vector<1x256xi32>
    %c14_i32 = arith.constant 14 : i32
    %25 = vector.broadcast %c14_i32 : i32 to vector<1x256xi32>
    %26 = arith.cmpi sge, %16, %25 : vector<1x256xi32>
    %c13_i32 = arith.constant 13 : i32
    %27 = vector.broadcast %c13_i32 : i32 to vector<1x256xi32>
    %28 = arith.cmpi sge, %16, %27 : vector<1x256xi32>
    %c0 = arith.constant 0 : index
    %c0_4 = arith.constant 0 : index
    %c0_5 = arith.constant 0 : index
    %29 = vector.load %arg1[%c0, %c0_4, %c0_5] : memref<1x32x256xf32, #tpu.memory_space<vmem>>, vector<1x32x256xf32>
    %30 = vector.shape_cast %29 : vector<1x32x256xf32> to vector<32x256xf32>
    %c0_6 = arith.constant 0 : index
    %c0_7 = arith.constant 0 : index
    %31 = vector.load %arg2[%c0_6, %c0_7] : memref<32x2xf32, #tpu.memory_space<vmem>>, vector<32x2xf32>
    %c0_8 = arith.constant 0 : index
    %c0_9 = arith.constant 0 : index
    %32 = vector.load %arg3[%c0_8, %c0_9] : memref<32x2xf32, #tpu.memory_space<vmem>>, vector<32x2xf32>
    %cst = arith.constant dense<0.000000e+00> : vector<32xf32>
    %33 = vector.multi_reduction <add>, %30, %cst [1] : vector<32x256xf32> to vector<32xf32>
    %34 = vector.shape_cast %33 : vector<32xf32> to vector<32x1xf32>
    %cst_10 = arith.constant 2.560000e+02 : f32
    %35 = vector.broadcast %cst_10 : f32 to vector<32x1xf32>
    %36 = arith.divf %34, %35 : vector<32x1xf32>
    %cst_11 = arith.constant dense<0xFF800000> : vector<32xf32>
    %37 = vector.multi_reduction <maximumf>, %30, %cst_11 [1] : vector<32x256xf32> to vector<32xf32>
    %38 = vector.shape_cast %37 : vector<32xf32> to vector<32x1xf32>
    %39 = tpu.concatenate %36, %38 in 1 : vector<32x1xf32>, vector<32x1xf32> -> vector<32x2xf32>
    %cst_12 = arith.constant 0.000000e+00 : f32
    %40 = vector.broadcast %cst_12 : f32 to vector<32x2xf32>
    %41 = vector.extract_strided_slice %31 {offsets = [0, 0], sizes = [32, 1], strides = [1, 1]} : vector<32x2xf32> to vector<32x1xf32>
    %42 = vector.broadcast %41 : vector<32x1xf32> to vector<32x2xf32>
    %43 = arith.mulf %42, %39 : vector<32x2xf32>
    %cst_13 = arith.constant dense<0.000000e+00> : vector<2xf32>
    %44 = vector.multi_reduction <add>, %43, %cst_13 [0] : vector<32x2xf32> to vector<2xf32>
    %45 = vector.shape_cast %44 : vector<2xf32> to vector<1x2xf32>
    %cst_14 = arith.constant 0.000000e+00 : f32
    %46 = vector.broadcast %cst_14 : f32 to vector<1x2xf32>
    %47 = arith.maximumf %45, %46 : vector<1x2xf32>
    %48 = vector.extract_strided_slice %32 {offsets = [0, 0], sizes = [32, 1], strides = [1, 1]} : vector<32x2xf32> to vector<32x1xf32>
    %49 = vector.broadcast %48 : vector<32x1xf32> to vector<32x2xf32>
    %50 = vector.broadcast %47 : vector<1x2xf32> to vector<32x2xf32>
    %51 = arith.mulf %49, %50 : vector<32x2xf32>
    %52 = arith.addf %40, %51 : vector<32x2xf32>
    %53 = vector.extract_strided_slice %31 {offsets = [0, 1], sizes = [32, 1], strides = [1, 1]} : vector<32x2xf32> to vector<32x1xf32>
    %54 = vector.broadcast %53 : vector<32x1xf32> to vector<32x2xf32>
    %55 = arith.mulf %54, %39 : vector<32x2xf32>
    %cst_15 = arith.constant dense<0.000000e+00> : vector<2xf32>
    %56 = vector.multi_reduction <add>, %55, %cst_15 [0] : vector<32x2xf32> to vector<2xf32>
    %57 = vector.shape_cast %56 : vector<2xf32> to vector<1x2xf32>
    %cst_16 = arith.constant 0.000000e+00 : f32
    %58 = vector.broadcast %cst_16 : f32 to vector<1x2xf32>
    %59 = arith.maximumf %57, %58 : vector<1x2xf32>
    %60 = vector.extract_strided_slice %32 {offsets = [0, 1], sizes = [32, 1], strides = [1, 1]} : vector<32x2xf32> to vector<32x1xf32>
    %61 = vector.broadcast %60 : vector<32x1xf32> to vector<32x2xf32>
    %62 = vector.broadcast %59 : vector<1x2xf32> to vector<32x2xf32>
    %63 = arith.mulf %61, %62 : vector<32x2xf32>
    %64 = arith.addf %52, %63 : vector<32x2xf32>
    %65 = vector.extract_strided_slice %64 {offsets = [0, 0], sizes = [32, 1], strides = [1, 1]} : vector<32x2xf32> to vector<32x1xf32>
    %66 = vector.extract_strided_slice %64 {offsets = [0, 1], sizes = [32, 1], strides = [1, 1]} : vector<32x2xf32> to vector<32x1xf32>
    %67 = arith.addf %65, %66 : vector<32x1xf32>
    %cst_17 = arith.constant 0.000000e+00 : f32
    %68 = vector.broadcast %cst_17 : f32 to vector<32x1xf32>
    %69 = arith.subf %68, %67 : vector<32x1xf32>
    %70 = math.exp %69 : vector<32x1xf32>
    %cst_18 = arith.constant 1.000000e+00 : f32
    %71 = vector.broadcast %cst_18 : f32 to vector<32x1xf32>
    %72 = arith.addf %71, %70 : vector<32x1xf32>
    %cst_19 = arith.constant 1.000000e+00 : f32
    %73 = vector.broadcast %cst_19 : f32 to vector<32x1xf32>
    %74 = arith.divf %73, %72 : vector<32x1xf32>
    %75 = vector.broadcast %74 : vector<32x1xf32> to vector<32x256xf32>
    %76 = arith.mulf %30, %75 : vector<32x256xf32>
    %c0_20 = arith.constant 0 : index
    %c0_21 = arith.constant 0 : index
    %77 = vector.load %arg4[%c0_20, %c0_21] : memref<2x49xf32, #tpu.memory_space<vmem>>, vector<2x49xf32>
    %cst_22 = arith.constant dense<0.000000e+00> : vector<256xf32>
    %78 = vector.multi_reduction <add>, %76, %cst_22 [0] : vector<32x256xf32> to vector<256xf32>
    %79 = vector.shape_cast %78 : vector<256xf32> to vector<1x256xf32>
    %cst_23 = arith.constant 3.200000e+01 : f32
    %80 = vector.broadcast %cst_23 : f32 to vector<1x256xf32>
    %81 = arith.divf %79, %80 : vector<1x256xf32>
    %cst_24 = arith.constant dense<0xFF800000> : vector<256xf32>
    %82 = vector.multi_reduction <maximumf>, %76, %cst_24 [0] : vector<32x256xf32> to vector<256xf32>
    %83 = vector.shape_cast %82 : vector<256xf32> to vector<1x256xf32>
    %84 = tpu.concatenate %81, %83 in 0 : vector<1x256xf32>, vector<1x256xf32> -> vector<2x256xf32>
    %cst_25 = arith.constant 0.000000e+00 : f32
    %85 = vector.broadcast %cst_25 : f32 to vector<2x3xf32>
    %86 = vector.extract_strided_slice %84 {offsets = [0, 0], sizes = [2, 253], strides = [1, 1]} : vector<2x256xf32> to vector<2x253xf32>
    %87 = tpu.concatenate %85, %86 in 1 : vector<2x3xf32>, vector<2x253xf32> -> vector<2x256xf32>
    %cst_26 = arith.constant 0.000000e+00 : f32
    %88 = vector.shape_cast %22 : vector<1x256xi1> to vector<1x256xi1>
    %89 = vector.broadcast %88 : vector<1x256xi1> to vector<2x256xi1>
    %90 = vector.broadcast %cst_26 : f32 to vector<2x256xf32>
    %91 = arith.select %89, %90, %87 : vector<2x256xi1>, vector<2x256xf32>
    %cst_27 = arith.constant 0.000000e+00 : f32
    %92 = vector.broadcast %cst_27 : f32 to vector<2x2xf32>
    %93 = vector.extract_strided_slice %84 {offsets = [0, 0], sizes = [2, 254], strides = [1, 1]} : vector<2x256xf32> to vector<2x254xf32>
    %94 = tpu.concatenate %92, %93 in 1 : vector<2x2xf32>, vector<2x254xf32> -> vector<2x256xf32>
    %cst_28 = arith.constant 0.000000e+00 : f32
    %95 = vector.shape_cast %20 : vector<1x256xi1> to vector<1x256xi1>
    %96 = vector.broadcast %95 : vector<1x256xi1> to vector<2x256xi1>
    %97 = vector.broadcast %cst_28 : f32 to vector<2x256xf32>
    %98 = arith.select %96, %97, %94 : vector<2x256xi1>, vector<2x256xf32>
    %cst_29 = arith.constant 0.000000e+00 : f32
    %99 = vector.broadcast %cst_29 : f32 to vector<2x1xf32>
    %100 = vector.extract_strided_slice %84 {offsets = [0, 0], sizes = [2, 255], strides = [1, 1]} : vector<2x256xf32> to vector<2x255xf32>
    %101 = tpu.concatenate %99, %100 in 1 : vector<2x1xf32>, vector<2x255xf32> -> vector<2x256xf32>
    %cst_30 = arith.constant 0.000000e+00 : f32
    %102 = vector.shape_cast %18 : vector<1x256xi1> to vector<1x256xi1>
    %103 = vector.broadcast %102 : vector<1x256xi1> to vector<2x256xi1>
    %104 = vector.broadcast %cst_30 : f32 to vector<2x256xf32>
    %105 = arith.select %103, %104, %101 : vector<2x256xi1>, vector<2x256xf32>
    %cst_31 = arith.constant 0.000000e+00 : f32
    %106 = vector.broadcast %cst_31 : f32 to vector<2x1xf32>
    %107 = vector.extract_strided_slice %84 {offsets = [0, 1], sizes = [2, 255], strides = [1, 1]} : vector<2x256xf32> to vector<2x255xf32>
    %108 = tpu.concatenate %107, %106 in 1 : vector<2x255xf32>, vector<2x1xf32> -> vector<2x256xf32>
    %cst_32 = arith.constant 0.000000e+00 : f32
    %109 = vector.shape_cast %24 : vector<1x256xi1> to vector<1x256xi1>
    %110 = vector.broadcast %109 : vector<1x256xi1> to vector<2x256xi1>
    %111 = vector.broadcast %cst_32 : f32 to vector<2x256xf32>
    %112 = arith.select %110, %111, %108 : vector<2x256xi1>, vector<2x256xf32>
    %cst_33 = arith.constant 0.000000e+00 : f32
    %113 = vector.broadcast %cst_33 : f32 to vector<2x2xf32>
    %114 = vector.extract_strided_slice %84 {offsets = [0, 2], sizes = [2, 254], strides = [1, 1]} : vector<2x256xf32> to vector<2x254xf32>
    %115 = tpu.concatenate %114, %113 in 1 : vector<2x254xf32>, vector<2x2xf32> -> vector<2x256xf32>
    %cst_34 = arith.constant 0.000000e+00 : f32
    %116 = vector.shape_cast %26 : vector<1x256xi1> to vector<1x256xi1>
    %117 = vector.broadcast %116 : vector<1x256xi1> to vector<2x256xi1>
    %118 = vector.broadcast %cst_34 : f32 to vector<2x256xf32>
    %119 = arith.select %117, %118, %115 : vector<2x256xi1>, vector<2x256xf32>
    %cst_35 = arith.constant 0.000000e+00 : f32
    %120 = vector.broadcast %cst_35 : f32 to vector<2x3xf32>
    %121 = vector.extract_strided_slice %84 {offsets = [0, 3], sizes = [2, 253], strides = [1, 1]} : vector<2x256xf32> to vector<2x253xf32>
    %122 = tpu.concatenate %121, %120 in 1 : vector<2x253xf32>, vector<2x3xf32> -> vector<2x256xf32>
    %cst_36 = arith.constant 0.000000e+00 : f32
    %123 = vector.shape_cast %28 : vector<1x256xi1> to vector<1x256xi1>
    %124 = vector.broadcast %123 : vector<1x256xi1> to vector<2x256xi1>
    %125 = vector.broadcast %cst_36 : f32 to vector<2x256xf32>
    %126 = arith.select %124, %125, %122 : vector<2x256xi1>, vector<2x256xf32>
    %cst_37 = arith.constant 0.000000e+00 : f32
    %127 = vector.broadcast %cst_37 : f32 to vector<2x256xf32>
    %cst_38 = arith.constant 0.000000e+00 : f32
    %128 = vector.broadcast %cst_38 : f32 to vector<2x48xf32>
    %129 = vector.extract_strided_slice %91 {offsets = [0, 0], sizes = [2, 208], strides = [1, 1]} : vector<2x256xf32> to vector<2x208xf32>
    %130 = tpu.concatenate %128, %129 in 1 : vector<2x48xf32>, vector<2x208xf32> -> vector<2x256xf32>
    %131 = vector.extract_strided_slice %77 {offsets = [0, 0], sizes = [2, 1], strides = [1, 1]} : vector<2x49xf32> to vector<2x1xf32>
    %132 = vector.broadcast %131 : vector<2x1xf32> to vector<2x256xf32>
    %133 = arith.mulf %132, %130 : vector<2x256xf32>
    %134 = arith.addf %127, %133 : vector<2x256xf32>
    %cst_39 = arith.constant 0.000000e+00 : f32
    %135 = vector.broadcast %cst_39 : f32 to vector<2x48xf32>
    %136 = vector.extract_strided_slice %98 {offsets = [0, 0], sizes = [2, 208], strides = [1, 1]} : vector<2x256xf32> to vector<2x208xf32>
    %137 = tpu.concatenate %135, %136 in 1 : vector<2x48xf32>, vector<2x208xf32> -> vector<2x256xf32>
    %138 = vector.extract_strided_slice %77 {offsets = [0, 1], sizes = [2, 1], strides = [1, 1]} : vector<2x49xf32> to vector<2x1xf32>
    %139 = vector.broadcast %138 : vector<2x1xf32> to vector<2x256xf32>
    %140 = arith.mulf %139, %137 : vector<2x256xf32>
    %141 = arith.addf %134, %140 : vector<2x256xf32>
    %cst_40 = arith.constant 0.000000e+00 : f32
    %142 = vector.broadcast %cst_40 : f32 to vector<2x48xf32>
    %143 = vector.extract_strided_slice %105 {offsets = [0, 0], sizes = [2, 208], strides = [1, 1]} : vector<2x256xf32> to vector<2x208xf32>
    %144 = tpu.concatenate %142, %143 in 1 : vector<2x48xf32>, vector<2x208xf32> -> vector<2x256xf32>
    %145 = vector.extract_strided_slice %77 {offsets = [0, 2], sizes = [2, 1], strides = [1, 1]} : vector<2x49xf32> to vector<2x1xf32>
    %146 = vector.broadcast %145 : vector<2x1xf32> to vector<2x256xf32>
    %147 = arith.mulf %146, %144 : vector<2x256xf32>
    %148 = arith.addf %141, %147 : vector<2x256xf32>
    %cst_41 = arith.constant 0.000000e+00 : f32
    %149 = vector.broadcast %cst_41 : f32 to vector<2x48xf32>
    %150 = vector.extract_strided_slice %84 {offsets = [0, 0], sizes = [2, 208], strides = [1, 1]} : vector<2x256xf32> to vector<2x208xf32>
    %151 = tpu.concatenate %149, %150 in 1 : vector<2x48xf32>, vector<2x208xf32> -> vector<2x256xf32>
    %152 = vector.extract_strided_slice %77 {offsets = [0, 3], sizes = [2, 1], strides = [1, 1]} : vector<2x49xf32> to vector<2x1xf32>
    %153 = vector.broadcast %152 : vector<2x1xf32> to vector<2x256xf32>
    %154 = arith.mulf %153, %151 : vector<2x256xf32>
    %155 = arith.addf %148, %154 : vector<2x256xf32>
    %cst_42 = arith.constant 0.000000e+00 : f32
    %156 = vector.broadcast %cst_42 : f32 to vector<2x48xf32>
    %157 = vector.extract_strided_slice %112 {offsets = [0, 0], sizes = [2, 208], strides = [1, 1]} : vector<2x256xf32> to vector<2x208xf32>
    %158 = tpu.concatenate %156, %157 in 1 : vector<2x48xf32>, vector<2x208xf32> -> vector<2x256xf32>
    %159 = vector.extract_strided_slice %77 {offsets = [0, 4], sizes = [2, 1], strides = [1, 1]} : vector<2x49xf32> to vector<2x1xf32>
    %160 = vector.broadcast %159 : vector<2x1xf32> to vector<2x256xf32>
    %161 = arith.mulf %160, %158 : vector<2x256xf32>
    %162 = arith.addf %155, %161 : vector<2x256xf32>
    %cst_43 = arith.constant 0.000000e+00 : f32
    %163 = vector.broadcast %cst_43 : f32 to vector<2x48xf32>
    %164 = vector.extract_strided_slice %119 {offsets = [0, 0], sizes = [2, 208], strides = [1, 1]} : vector<2x256xf32> to vector<2x208xf32>
    %165 = tpu.concatenate %163, %164 in 1 : vector<2x48xf32>, vector<2x208xf32> -> vector<2x256xf32>
    %166 = vector.extract_strided_slice %77 {offsets = [0, 5], sizes = [2, 1], strides = [1, 1]} : vector<2x49xf32> to vector<2x1xf32>
    %167 = vector.broadcast %166 : vector<2x1xf32> to vector<2x256xf32>
    %168 = arith.mulf %167, %165 : vector<2x256xf32>
    %169 = arith.addf %162, %168 : vector<2x256xf32>
    %cst_44 = arith.constant 0.000000e+00 : f32
    %170 = vector.broadcast %cst_44 : f32 to vector<2x48xf32>
    %171 = vector.extract_strided_slice %126 {offsets = [0, 0], sizes = [2, 208], strides = [1, 1]} : vector<2x256xf32> to vector<2x208xf32>
    %172 = tpu.concatenate %170, %171 in 1 : vector<2x48xf32>, vector<2x208xf32> -> vector<2x256xf32>
    %173 = vector.extract_strided_slice %77 {offsets = [0, 6], sizes = [2, 1], strides = [1, 1]} : vector<2x49xf32> to vector<2x1xf32>
    %174 = vector.broadcast %173 : vector<2x1xf32> to vector<2x256xf32>
    %175 = arith.mulf %174, %172 : vector<2x256xf32>
    %176 = arith.addf %169, %175 : vector<2x256xf32>
    %cst_45 = arith.constant 0.000000e+00 : f32
    %177 = vector.broadcast %cst_45 : f32 to vector<2x32xf32>
    %178 = vector.extract_strided_slice %91 {offsets = [0, 0], sizes = [2, 224], strides = [1, 1]} : vector<2x256xf32> to vector<2x224xf32>
    %179 = tpu.concatenate %177, %178 in 1 : vector<2x32xf32>, vector<2x224xf32> -> vector<2x256xf32>
    %180 = vector.extract_strided_slice %77 {offsets = [0, 7], sizes = [2, 1], strides = [1, 1]} : vector<2x49xf32> to vector<2x1xf32>
    %181 = vector.broadcast %180 : vector<2x1xf32> to vector<2x256xf32>
    %182 = arith.mulf %181, %179 : vector<2x256xf32>
    %183 = arith.addf %176, %182 : vector<2x256xf32>
    %cst_46 = arith.constant 0.000000e+00 : f32
    %184 = vector.broadcast %cst_46 : f32 to vector<2x32xf32>
    %185 = vector.extract_strided_slice %98 {offsets = [0, 0], sizes = [2, 224], strides = [1, 1]} : vector<2x256xf32> to vector<2x224xf32>
    %186 = tpu.concatenate %184, %185 in 1 : vector<2x32xf32>, vector<2x224xf32> -> vector<2x256xf32>
    %187 = vector.extract_strided_slice %77 {offsets = [0, 8], sizes = [2, 1], strides = [1, 1]} : vector<2x49xf32> to vector<2x1xf32>
    %188 = vector.broadcast %187 : vector<2x1xf32> to vector<2x256xf32>
    %189 = arith.mulf %188, %186 : vector<2x256xf32>
    %190 = arith.addf %183, %189 : vector<2x256xf32>
    %cst_47 = arith.constant 0.000000e+00 : f32
    %191 = vector.broadcast %cst_47 : f32 to vector<2x32xf32>
    %192 = vector.extract_strided_slice %105 {offsets = [0, 0], sizes = [2, 224], strides = [1, 1]} : vector<2x256xf32> to vector<2x224xf32>
    %193 = tpu.concatenate %191, %192 in 1 : vector<2x32xf32>, vector<2x224xf32> -> vector<2x256xf32>
    %194 = vector.extract_strided_slice %77 {offsets = [0, 9], sizes = [2, 1], strides = [1, 1]} : vector<2x49xf32> to vector<2x1xf32>
    %195 = vector.broadcast %194 : vector<2x1xf32> to vector<2x256xf32>
    %196 = arith.mulf %195, %193 : vector<2x256xf32>
    %197 = arith.addf %190, %196 : vector<2x256xf32>
    %cst_48 = arith.constant 0.000000e+00 : f32
    %198 = vector.broadcast %cst_48 : f32 to vector<2x32xf32>
    %199 = vector.extract_strided_slice %84 {offsets = [0, 0], sizes = [2, 224], strides = [1, 1]} : vector<2x256xf32> to vector<2x224xf32>
    %200 = tpu.concatenate %198, %199 in 1 : vector<2x32xf32>, vector<2x224xf32> -> vector<2x256xf32>
    %201 = vector.extract_strided_slice %77 {offsets = [0, 10], sizes = [2, 1], strides = [1, 1]} : vector<2x49xf32> to vector<2x1xf32>
    %202 = vector.broadcast %201 : vector<2x1xf32> to vector<2x256xf32>
    %203 = arith.mulf %202, %200 : vector<2x256xf32>
    %204 = arith.addf %197, %203 : vector<2x256xf32>
    %cst_49 = arith.constant 0.000000e+00 : f32
    %205 = vector.broadcast %cst_49 : f32 to vector<2x32xf32>
    %206 = vector.extract_strided_slice %112 {offsets = [0, 0], sizes = [2, 224], strides = [1, 1]} : vector<2x256xf32> to vector<2x224xf32>
    %207 = tpu.concatenate %205, %206 in 1 : vector<2x32xf32>, vector<2x224xf32> -> vector<2x256xf32>
    %208 = vector.extract_strided_slice %77 {offsets = [0, 11], sizes = [2, 1], strides = [1, 1]} : vector<2x49xf32> to vector<2x1xf32>
    %209 = vector.broadcast %208 : vector<2x1xf32> to vector<2x256xf32>
    %210 = arith.mulf %209, %207 : vector<2x256xf32>
    %211 = arith.addf %204, %210 : vector<2x256xf32>
    %cst_50 = arith.constant 0.000000e+00 : f32
    %212 = vector.broadcast %cst_50 : f32 to vector<2x32xf32>
    %213 = vector.extract_strided_slice %119 {offsets = [0, 0], sizes = [2, 224], strides = [1, 1]} : vector<2x256xf32> to vector<2x224xf32>
    %214 = tpu.concatenate %212, %213 in 1 : vector<2x32xf32>, vector<2x224xf32> -> vector<2x256xf32>
    %215 = vector.extract_strided_slice %77 {offsets = [0, 12], sizes = [2, 1], strides = [1, 1]} : vector<2x49xf32> to vector<2x1xf32>
    %216 = vector.broadcast %215 : vector<2x1xf32> to vector<2x256xf32>
    %217 = arith.mulf %216, %214 : vector<2x256xf32>
    %218 = arith.addf %211, %217 : vector<2x256xf32>
    %cst_51 = arith.constant 0.000000e+00 : f32
    %219 = vector.broadcast %cst_51 : f32 to vector<2x32xf32>
    %220 = vector.extract_strided_slice %126 {offsets = [0, 0], sizes = [2, 224], strides = [1, 1]} : vector<2x256xf32> to vector<2x224xf32>
    %221 = tpu.concatenate %219, %220 in 1 : vector<2x32xf32>, vector<2x224xf32> -> vector<2x256xf32>
    %222 = vector.extract_strided_slice %77 {offsets = [0, 13], sizes = [2, 1], strides = [1, 1]} : vector<2x49xf32> to vector<2x1xf32>
    %223 = vector.broadcast %222 : vector<2x1xf32> to vector<2x256xf32>
    %224 = arith.mulf %223, %221 : vector<2x256xf32>
    %225 = arith.addf %218, %224 : vector<2x256xf32>
    %cst_52 = arith.constant 0.000000e+00 : f32
    %226 = vector.broadcast %cst_52 : f32 to vector<2x16xf32>
    %227 = vector.extract_strided_slice %91 {offsets = [0, 0], sizes = [2, 240], strides = [1, 1]} : vector<2x256xf32> to vector<2x240xf32>
    %228 = tpu.concatenate %226, %227 in 1 : vector<2x16xf32>, vector<2x240xf32> -> vector<2x256xf32>
    %229 = vector.extract_strided_slice %77 {offsets = [0, 14], sizes = [2, 1], strides = [1, 1]} : vector<2x49xf32> to vector<2x1xf32>
    %230 = vector.broadcast %229 : vector<2x1xf32> to vector<2x256xf32>
    %231 = arith.mulf %230, %228 : vector<2x256xf32>
    %232 = arith.addf %225, %231 : vector<2x256xf32>
    %cst_53 = arith.constant 0.000000e+00 : f32
    %233 = vector.broadcast %cst_53 : f32 to vector<2x16xf32>
    %234 = vector.extract_strided_slice %98 {offsets = [0, 0], sizes = [2, 240], strides = [1, 1]} : vector<2x256xf32> to vector<2x240xf32>
    %235 = tpu.concatenate %233, %234 in 1 : vector<2x16xf32>, vector<2x240xf32> -> vector<2x256xf32>
    %236 = vector.extract_strided_slice %77 {offsets = [0, 15], sizes = [2, 1], strides = [1, 1]} : vector<2x49xf32> to vector<2x1xf32>
    %237 = vector.broadcast %236 : vector<2x1xf32> to vector<2x256xf32>
    %238 = arith.mulf %237, %235 : vector<2x256xf32>
    %239 = arith.addf %232, %238 : vector<2x256xf32>
    %cst_54 = arith.constant 0.000000e+00 : f32
    %240 = vector.broadcast %cst_54 : f32 to vector<2x16xf32>
    %241 = vector.extract_strided_slice %105 {offsets = [0, 0], sizes = [2, 240], strides = [1, 1]} : vector<2x256xf32> to vector<2x240xf32>
    %242 = tpu.concatenate %240, %241 in 1 : vector<2x16xf32>, vector<2x240xf32> -> vector<2x256xf32>
    %243 = vector.extract_strided_slice %77 {offsets = [0, 16], sizes = [2, 1], strides = [1, 1]} : vector<2x49xf32> to vector<2x1xf32>
    %244 = vector.broadcast %243 : vector<2x1xf32> to vector<2x256xf32>
    %245 = arith.mulf %244, %242 : vector<2x256xf32>
    %246 = arith.addf %239, %245 : vector<2x256xf32>
    %cst_55 = arith.constant 0.000000e+00 : f32
    %247 = vector.broadcast %cst_55 : f32 to vector<2x16xf32>
    %248 = vector.extract_strided_slice %84 {offsets = [0, 0], sizes = [2, 240], strides = [1, 1]} : vector<2x256xf32> to vector<2x240xf32>
    %249 = tpu.concatenate %247, %248 in 1 : vector<2x16xf32>, vector<2x240xf32> -> vector<2x256xf32>
    %250 = vector.extract_strided_slice %77 {offsets = [0, 17], sizes = [2, 1], strides = [1, 1]} : vector<2x49xf32> to vector<2x1xf32>
    %251 = vector.broadcast %250 : vector<2x1xf32> to vector<2x256xf32>
    %252 = arith.mulf %251, %249 : vector<2x256xf32>
    %253 = arith.addf %246, %252 : vector<2x256xf32>
    %cst_56 = arith.constant 0.000000e+00 : f32
    %254 = vector.broadcast %cst_56 : f32 to vector<2x16xf32>
    %255 = vector.extract_strided_slice %112 {offsets = [0, 0], sizes = [2, 240], strides = [1, 1]} : vector<2x256xf32> to vector<2x240xf32>
    %256 = tpu.concatenate %254, %255 in 1 : vector<2x16xf32>, vector<2x240xf32> -> vector<2x256xf32>
    %257 = vector.extract_strided_slice %77 {offsets = [0, 18], sizes = [2, 1], strides = [1, 1]} : vector<2x49xf32> to vector<2x1xf32>
    %258 = vector.broadcast %257 : vector<2x1xf32> to vector<2x256xf32>
    %259 = arith.mulf %258, %256 : vector<2x256xf32>
    %260 = arith.addf %253, %259 : vector<2x256xf32>
    %cst_57 = arith.constant 0.000000e+00 : f32
    %261 = vector.broadcast %cst_57 : f32 to vector<2x16xf32>
    %262 = vector.extract_strided_slice %119 {offsets = [0, 0], sizes = [2, 240], strides = [1, 1]} : vector<2x256xf32> to vector<2x240xf32>
    %263 = tpu.concatenate %261, %262 in 1 : vector<2x16xf32>, vector<2x240xf32> -> vector<2x256xf32>
    %264 = vector.extract_strided_slice %77 {offsets = [0, 19], sizes = [2, 1], strides = [1, 1]} : vector<2x49xf32> to vector<2x1xf32>
    %265 = vector.broadcast %264 : vector<2x1xf32> to vector<2x256xf32>
    %266 = arith.mulf %265, %263 : vector<2x256xf32>
    %267 = arith.addf %260, %266 : vector<2x256xf32>
    %cst_58 = arith.constant 0.000000e+00 : f32
    %268 = vector.broadcast %cst_58 : f32 to vector<2x16xf32>
    %269 = vector.extract_strided_slice %126 {offsets = [0, 0], sizes = [2, 240], strides = [1, 1]} : vector<2x256xf32> to vector<2x240xf32>
    %270 = tpu.concatenate %268, %269 in 1 : vector<2x16xf32>, vector<2x240xf32> -> vector<2x256xf32>
    %271 = vector.extract_strided_slice %77 {offsets = [0, 20], sizes = [2, 1], strides = [1, 1]} : vector<2x49xf32> to vector<2x1xf32>
    %272 = vector.broadcast %271 : vector<2x1xf32> to vector<2x256xf32>
    %273 = arith.mulf %272, %270 : vector<2x256xf32>
    %274 = arith.addf %267, %273 : vector<2x256xf32>
    %275 = vector.extract_strided_slice %77 {offsets = [0, 21], sizes = [2, 1], strides = [1, 1]} : vector<2x49xf32> to vector<2x1xf32>
    %276 = vector.broadcast %275 : vector<2x1xf32> to vector<2x256xf32>
    %277 = arith.mulf %276, %91 : vector<2x256xf32>
    %278 = arith.addf %274, %277 : vector<2x256xf32>
    %279 = vector.extract_strided_slice %77 {offsets = [0, 22], sizes = [2, 1], strides = [1, 1]} : vector<2x49xf32> to vector<2x1xf32>
    %280 = vector.broadcast %279 : vector<2x1xf32> to vector<2x256xf32>
    %281 = arith.mulf %280, %98 : vector<2x256xf32>
    %282 = arith.addf %278, %281 : vector<2x256xf32>
    %283 = vector.extract_strided_slice %77 {offsets = [0, 23], sizes = [2, 1], strides = [1, 1]} : vector<2x49xf32> to vector<2x1xf32>
    %284 = vector.broadcast %283 : vector<2x1xf32> to vector<2x256xf32>
    %285 = arith.mulf %284, %105 : vector<2x256xf32>
    %286 = arith.addf %282, %285 : vector<2x256xf32>
    %287 = vector.extract_strided_slice %77 {offsets = [0, 24], sizes = [2, 1], strides = [1, 1]} : vector<2x49xf32> to vector<2x1xf32>
    %288 = vector.broadcast %287 : vector<2x1xf32> to vector<2x256xf32>
    %289 = arith.mulf %288, %84 : vector<2x256xf32>
    %290 = arith.addf %286, %289 : vector<2x256xf32>
    %291 = vector.extract_strided_slice %77 {offsets = [0, 25], sizes = [2, 1], strides = [1, 1]} : vector<2x49xf32> to vector<2x1xf32>
    %292 = vector.broadcast %291 : vector<2x1xf32> to vector<2x256xf32>
    %293 = arith.mulf %292, %112 : vector<2x256xf32>
    %294 = arith.addf %290, %293 : vector<2x256xf32>
    %295 = vector.extract_strided_slice %77 {offsets = [0, 26], sizes = [2, 1], strides = [1, 1]} : vector<2x49xf32> to vector<2x1xf32>
    %296 = vector.broadcast %295 : vector<2x1xf32> to vector<2x256xf32>
    %297 = arith.mulf %296, %119 : vector<2x256xf32>
    %298 = arith.addf %294, %297 : vector<2x256xf32>
    %299 = vector.extract_strided_slice %77 {offsets = [0, 27], sizes = [2, 1], strides = [1, 1]} : vector<2x49xf32> to vector<2x1xf32>
    %300 = vector.broadcast %299 : vector<2x1xf32> to vector<2x256xf32>
    %301 = arith.mulf %300, %126 : vector<2x256xf32>
    %302 = arith.addf %298, %301 : vector<2x256xf32>
    %cst_59 = arith.constant 0.000000e+00 : f32
    %303 = vector.broadcast %cst_59 : f32 to vector<2x16xf32>
    %304 = vector.extract_strided_slice %91 {offsets = [0, 16], sizes = [2, 240], strides = [1, 1]} : vector<2x256xf32> to vector<2x240xf32>
    %305 = tpu.concatenate %304, %303 in 1 : vector<2x240xf32>, vector<2x16xf32> -> vector<2x256xf32>
    %306 = vector.extract_strided_slice %77 {offsets = [0, 28], sizes = [2, 1], strides = [1, 1]} : vector<2x49xf32> to vector<2x1xf32>
    %307 = vector.broadcast %306 : vector<2x1xf32> to vector<2x256xf32>
    %308 = arith.mulf %307, %305 : vector<2x256xf32>
    %309 = arith.addf %302, %308 : vector<2x256xf32>
    %cst_60 = arith.constant 0.000000e+00 : f32
    %310 = vector.broadcast %cst_60 : f32 to vector<2x16xf32>
    %311 = vector.extract_strided_slice %98 {offsets = [0, 16], sizes = [2, 240], strides = [1, 1]} : vector<2x256xf32> to vector<2x240xf32>
    %312 = tpu.concatenate %311, %310 in 1 : vector<2x240xf32>, vector<2x16xf32> -> vector<2x256xf32>
    %313 = vector.extract_strided_slice %77 {offsets = [0, 29], sizes = [2, 1], strides = [1, 1]} : vector<2x49xf32> to vector<2x1xf32>
    %314 = vector.broadcast %313 : vector<2x1xf32> to vector<2x256xf32>
    %315 = arith.mulf %314, %312 : vector<2x256xf32>
    %316 = arith.addf %309, %315 : vector<2x256xf32>
    %cst_61 = arith.constant 0.000000e+00 : f32
    %317 = vector.broadcast %cst_61 : f32 to vector<2x16xf32>
    %318 = vector.extract_strided_slice %105 {offsets = [0, 16], sizes = [2, 240], strides = [1, 1]} : vector<2x256xf32> to vector<2x240xf32>
    %319 = tpu.concatenate %318, %317 in 1 : vector<2x240xf32>, vector<2x16xf32> -> vector<2x256xf32>
    %320 = vector.extract_strided_slice %77 {offsets = [0, 30], sizes = [2, 1], strides = [1, 1]} : vector<2x49xf32> to vector<2x1xf32>
    %321 = vector.broadcast %320 : vector<2x1xf32> to vector<2x256xf32>
    %322 = arith.mulf %321, %319 : vector<2x256xf32>
    %323 = arith.addf %316, %322 : vector<2x256xf32>
    %cst_62 = arith.constant 0.000000e+00 : f32
    %324 = vector.broadcast %cst_62 : f32 to vector<2x16xf32>
    %325 = vector.extract_strided_slice %84 {offsets = [0, 16], sizes = [2, 240], strides = [1, 1]} : vector<2x256xf32> to vector<2x240xf32>
    %326 = tpu.concatenate %325, %324 in 1 : vector<2x240xf32>, vector<2x16xf32> -> vector<2x256xf32>
    %327 = vector.extract_strided_slice %77 {offsets = [0, 31], sizes = [2, 1], strides = [1, 1]} : vector<2x49xf32> to vector<2x1xf32>
    %328 = vector.broadcast %327 : vector<2x1xf32> to vector<2x256xf32>
    %329 = arith.mulf %328, %326 : vector<2x256xf32>
    %330 = arith.addf %323, %329 : vector<2x256xf32>
    %cst_63 = arith.constant 0.000000e+00 : f32
    %331 = vector.broadcast %cst_63 : f32 to vector<2x16xf32>
    %332 = vector.extract_strided_slice %112 {offsets = [0, 16], sizes = [2, 240], strides = [1, 1]} : vector<2x256xf32> to vector<2x240xf32>
    %333 = tpu.concatenate %332, %331 in 1 : vector<2x240xf32>, vector<2x16xf32> -> vector<2x256xf32>
    %334 = vector.extract_strided_slice %77 {offsets = [0, 32], sizes = [2, 1], strides = [1, 1]} : vector<2x49xf32> to vector<2x1xf32>
    %335 = vector.broadcast %334 : vector<2x1xf32> to vector<2x256xf32>
    %336 = arith.mulf %335, %333 : vector<2x256xf32>
    %337 = arith.addf %330, %336 : vector<2x256xf32>
    %cst_64 = arith.constant 0.000000e+00 : f32
    %338 = vector.broadcast %cst_64 : f32 to vector<2x16xf32>
    %339 = vector.extract_strided_slice %119 {offsets = [0, 16], sizes = [2, 240], strides = [1, 1]} : vector<2x256xf32> to vector<2x240xf32>
    %340 = tpu.concatenate %339, %338 in 1 : vector<2x240xf32>, vector<2x16xf32> -> vector<2x256xf32>
    %341 = vector.extract_strided_slice %77 {offsets = [0, 33], sizes = [2, 1], strides = [1, 1]} : vector<2x49xf32> to vector<2x1xf32>
    %342 = vector.broadcast %341 : vector<2x1xf32> to vector<2x256xf32>
    %343 = arith.mulf %342, %340 : vector<2x256xf32>
    %344 = arith.addf %337, %343 : vector<2x256xf32>
    %cst_65 = arith.constant 0.000000e+00 : f32
    %345 = vector.broadcast %cst_65 : f32 to vector<2x16xf32>
    %346 = vector.extract_strided_slice %126 {offsets = [0, 16], sizes = [2, 240], strides = [1, 1]} : vector<2x256xf32> to vector<2x240xf32>
    %347 = tpu.concatenate %346, %345 in 1 : vector<2x240xf32>, vector<2x16xf32> -> vector<2x256xf32>
    %348 = vector.extract_strided_slice %77 {offsets = [0, 34], sizes = [2, 1], strides = [1, 1]} : vector<2x49xf32> to vector<2x1xf32>
    %349 = vector.broadcast %348 : vector<2x1xf32> to vector<2x256xf32>
    %350 = arith.mulf %349, %347 : vector<2x256xf32>
    %351 = arith.addf %344, %350 : vector<2x256xf32>
    %cst_66 = arith.constant 0.000000e+00 : f32
    %352 = vector.broadcast %cst_66 : f32 to vector<2x32xf32>
    %353 = vector.extract_strided_slice %91 {offsets = [0, 32], sizes = [2, 224], strides = [1, 1]} : vector<2x256xf32> to vector<2x224xf32>
    %354 = tpu.concatenate %353, %352 in 1 : vector<2x224xf32>, vector<2x32xf32> -> vector<2x256xf32>
    %355 = vector.extract_strided_slice %77 {offsets = [0, 35], sizes = [2, 1], strides = [1, 1]} : vector<2x49xf32> to vector<2x1xf32>
    %356 = vector.broadcast %355 : vector<2x1xf32> to vector<2x256xf32>
    %357 = arith.mulf %356, %354 : vector<2x256xf32>
    %358 = arith.addf %351, %357 : vector<2x256xf32>
    %cst_67 = arith.constant 0.000000e+00 : f32
    %359 = vector.broadcast %cst_67 : f32 to vector<2x32xf32>
    %360 = vector.extract_strided_slice %98 {offsets = [0, 32], sizes = [2, 224], strides = [1, 1]} : vector<2x256xf32> to vector<2x224xf32>
    %361 = tpu.concatenate %360, %359 in 1 : vector<2x224xf32>, vector<2x32xf32> -> vector<2x256xf32>
    %362 = vector.extract_strided_slice %77 {offsets = [0, 36], sizes = [2, 1], strides = [1, 1]} : vector<2x49xf32> to vector<2x1xf32>
    %363 = vector.broadcast %362 : vector<2x1xf32> to vector<2x256xf32>
    %364 = arith.mulf %363, %361 : vector<2x256xf32>
    %365 = arith.addf %358, %364 : vector<2x256xf32>
    %cst_68 = arith.constant 0.000000e+00 : f32
    %366 = vector.broadcast %cst_68 : f32 to vector<2x32xf32>
    %367 = vector.extract_strided_slice %105 {offsets = [0, 32], sizes = [2, 224], strides = [1, 1]} : vector<2x256xf32> to vector<2x224xf32>
    %368 = tpu.concatenate %367, %366 in 1 : vector<2x224xf32>, vector<2x32xf32> -> vector<2x256xf32>
    %369 = vector.extract_strided_slice %77 {offsets = [0, 37], sizes = [2, 1], strides = [1, 1]} : vector<2x49xf32> to vector<2x1xf32>
    %370 = vector.broadcast %369 : vector<2x1xf32> to vector<2x256xf32>
    %371 = arith.mulf %370, %368 : vector<2x256xf32>
    %372 = arith.addf %365, %371 : vector<2x256xf32>
    %cst_69 = arith.constant 0.000000e+00 : f32
    %373 = vector.broadcast %cst_69 : f32 to vector<2x32xf32>
    %374 = vector.extract_strided_slice %84 {offsets = [0, 32], sizes = [2, 224], strides = [1, 1]} : vector<2x256xf32> to vector<2x224xf32>
    %375 = tpu.concatenate %374, %373 in 1 : vector<2x224xf32>, vector<2x32xf32> -> vector<2x256xf32>
    %376 = vector.extract_strided_slice %77 {offsets = [0, 38], sizes = [2, 1], strides = [1, 1]} : vector<2x49xf32> to vector<2x1xf32>
    %377 = vector.broadcast %376 : vector<2x1xf32> to vector<2x256xf32>
    %378 = arith.mulf %377, %375 : vector<2x256xf32>
    %379 = arith.addf %372, %378 : vector<2x256xf32>
    %cst_70 = arith.constant 0.000000e+00 : f32
    %380 = vector.broadcast %cst_70 : f32 to vector<2x32xf32>
    %381 = vector.extract_strided_slice %112 {offsets = [0, 32], sizes = [2, 224], strides = [1, 1]} : vector<2x256xf32> to vector<2x224xf32>
    %382 = tpu.concatenate %381, %380 in 1 : vector<2x224xf32>, vector<2x32xf32> -> vector<2x256xf32>
    %383 = vector.extract_strided_slice %77 {offsets = [0, 39], sizes = [2, 1], strides = [1, 1]} : vector<2x49xf32> to vector<2x1xf32>
    %384 = vector.broadcast %383 : vector<2x1xf32> to vector<2x256xf32>
    %385 = arith.mulf %384, %382 : vector<2x256xf32>
    %386 = arith.addf %379, %385 : vector<2x256xf32>
    %cst_71 = arith.constant 0.000000e+00 : f32
    %387 = vector.broadcast %cst_71 : f32 to vector<2x32xf32>
    %388 = vector.extract_strided_slice %119 {offsets = [0, 32], sizes = [2, 224], strides = [1, 1]} : vector<2x256xf32> to vector<2x224xf32>
    %389 = tpu.concatenate %388, %387 in 1 : vector<2x224xf32>, vector<2x32xf32> -> vector<2x256xf32>
    %390 = vector.extract_strided_slice %77 {offsets = [0, 40], sizes = [2, 1], strides = [1, 1]} : vector<2x49xf32> to vector<2x1xf32>
    %391 = vector.broadcast %390 : vector<2x1xf32> to vector<2x256xf32>
    %392 = arith.mulf %391, %389 : vector<2x256xf32>
    %393 = arith.addf %386, %392 : vector<2x256xf32>
    %cst_72 = arith.constant 0.000000e+00 : f32
    %394 = vector.broadcast %cst_72 : f32 to vector<2x32xf32>
    %395 = vector.extract_strided_slice %126 {offsets = [0, 32], sizes = [2, 224], strides = [1, 1]} : vector<2x256xf32> to vector<2x224xf32>
    %396 = tpu.concatenate %395, %394 in 1 : vector<2x224xf32>, vector<2x32xf32> -> vector<2x256xf32>
    %397 = vector.extract_strided_slice %77 {offsets = [0, 41], sizes = [2, 1], strides = [1, 1]} : vector<2x49xf32> to vector<2x1xf32>
    %398 = vector.broadcast %397 : vector<2x1xf32> to vector<2x256xf32>
    %399 = arith.mulf %398, %396 : vector<2x256xf32>
    %400 = arith.addf %393, %399 : vector<2x256xf32>
    %cst_73 = arith.constant 0.000000e+00 : f32
    %401 = vector.broadcast %cst_73 : f32 to vector<2x48xf32>
    %402 = vector.extract_strided_slice %91 {offsets = [0, 48], sizes = [2, 208], strides = [1, 1]} : vector<2x256xf32> to vector<2x208xf32>
    %403 = tpu.concatenate %402, %401 in 1 : vector<2x208xf32>, vector<2x48xf32> -> vector<2x256xf32>
    %404 = vector.extract_strided_slice %77 {offsets = [0, 42], sizes = [2, 1], strides = [1, 1]} : vector<2x49xf32> to vector<2x1xf32>
    %405 = vector.broadcast %404 : vector<2x1xf32> to vector<2x256xf32>
    %406 = arith.mulf %405, %403 : vector<2x256xf32>
    %407 = arith.addf %400, %406 : vector<2x256xf32>
    %cst_74 = arith.constant 0.000000e+00 : f32
    %408 = vector.broadcast %cst_74 : f32 to vector<2x48xf32>
    %409 = vector.extract_strided_slice %98 {offsets = [0, 48], sizes = [2, 208], strides = [1, 1]} : vector<2x256xf32> to vector<2x208xf32>
    %410 = tpu.concatenate %409, %408 in 1 : vector<2x208xf32>, vector<2x48xf32> -> vector<2x256xf32>
    %411 = vector.extract_strided_slice %77 {offsets = [0, 43], sizes = [2, 1], strides = [1, 1]} : vector<2x49xf32> to vector<2x1xf32>
    %412 = vector.broadcast %411 : vector<2x1xf32> to vector<2x256xf32>
    %413 = arith.mulf %412, %410 : vector<2x256xf32>
    %414 = arith.addf %407, %413 : vector<2x256xf32>
    %cst_75 = arith.constant 0.000000e+00 : f32
    %415 = vector.broadcast %cst_75 : f32 to vector<2x48xf32>
    %416 = vector.extract_strided_slice %105 {offsets = [0, 48], sizes = [2, 208], strides = [1, 1]} : vector<2x256xf32> to vector<2x208xf32>
    %417 = tpu.concatenate %416, %415 in 1 : vector<2x208xf32>, vector<2x48xf32> -> vector<2x256xf32>
    %418 = vector.extract_strided_slice %77 {offsets = [0, 44], sizes = [2, 1], strides = [1, 1]} : vector<2x49xf32> to vector<2x1xf32>
    %419 = vector.broadcast %418 : vector<2x1xf32> to vector<2x256xf32>
    %420 = arith.mulf %419, %417 : vector<2x256xf32>
    %421 = arith.addf %414, %420 : vector<2x256xf32>
    %cst_76 = arith.constant 0.000000e+00 : f32
    %422 = vector.broadcast %cst_76 : f32 to vector<2x48xf32>
    %423 = vector.extract_strided_slice %84 {offsets = [0, 48], sizes = [2, 208], strides = [1, 1]} : vector<2x256xf32> to vector<2x208xf32>
    %424 = tpu.concatenate %423, %422 in 1 : vector<2x208xf32>, vector<2x48xf32> -> vector<2x256xf32>
    %425 = vector.extract_strided_slice %77 {offsets = [0, 45], sizes = [2, 1], strides = [1, 1]} : vector<2x49xf32> to vector<2x1xf32>
    %426 = vector.broadcast %425 : vector<2x1xf32> to vector<2x256xf32>
    %427 = arith.mulf %426, %424 : vector<2x256xf32>
    %428 = arith.addf %421, %427 : vector<2x256xf32>
    %cst_77 = arith.constant 0.000000e+00 : f32
    %429 = vector.broadcast %cst_77 : f32 to vector<2x48xf32>
    %430 = vector.extract_strided_slice %112 {offsets = [0, 48], sizes = [2, 208], strides = [1, 1]} : vector<2x256xf32> to vector<2x208xf32>
    %431 = tpu.concatenate %430, %429 in 1 : vector<2x208xf32>, vector<2x48xf32> -> vector<2x256xf32>
    %432 = vector.extract_strided_slice %77 {offsets = [0, 46], sizes = [2, 1], strides = [1, 1]} : vector<2x49xf32> to vector<2x1xf32>
    %433 = vector.broadcast %432 : vector<2x1xf32> to vector<2x256xf32>
    %434 = arith.mulf %433, %431 : vector<2x256xf32>
    %435 = arith.addf %428, %434 : vector<2x256xf32>
    %cst_78 = arith.constant 0.000000e+00 : f32
    %436 = vector.broadcast %cst_78 : f32 to vector<2x48xf32>
    %437 = vector.extract_strided_slice %119 {offsets = [0, 48], sizes = [2, 208], strides = [1, 1]} : vector<2x256xf32> to vector<2x208xf32>
    %438 = tpu.concatenate %437, %436 in 1 : vector<2x208xf32>, vector<2x48xf32> -> vector<2x256xf32>
    %439 = vector.extract_strided_slice %77 {offsets = [0, 47], sizes = [2, 1], strides = [1, 1]} : vector<2x49xf32> to vector<2x1xf32>
    %440 = vector.broadcast %439 : vector<2x1xf32> to vector<2x256xf32>
    %441 = arith.mulf %440, %438 : vector<2x256xf32>
    %442 = arith.addf %435, %441 : vector<2x256xf32>
    %cst_79 = arith.constant 0.000000e+00 : f32
    %443 = vector.broadcast %cst_79 : f32 to vector<2x48xf32>
    %444 = vector.extract_strided_slice %126 {offsets = [0, 48], sizes = [2, 208], strides = [1, 1]} : vector<2x256xf32> to vector<2x208xf32>
    %445 = tpu.concatenate %444, %443 in 1 : vector<2x208xf32>, vector<2x48xf32> -> vector<2x256xf32>
    %446 = vector.extract_strided_slice %77 {offsets = [0, 48], sizes = [2, 1], strides = [1, 1]} : vector<2x49xf32> to vector<2x1xf32>
    %447 = vector.broadcast %446 : vector<2x1xf32> to vector<2x256xf32>
    %448 = arith.mulf %447, %445 : vector<2x256xf32>
    %449 = arith.addf %442, %448 : vector<2x256xf32>
    %cst_80 = arith.constant dense<0.000000e+00> : vector<256xf32>
    %450 = vector.multi_reduction <add>, %449, %cst_80 [0] : vector<2x256xf32> to vector<256xf32>
    %451 = vector.shape_cast %450 : vector<256xf32> to vector<1x256xf32>
    %cst_81 = arith.constant 0.000000e+00 : f32
    %452 = vector.broadcast %cst_81 : f32 to vector<1x256xf32>
    %453 = arith.subf %452, %451 : vector<1x256xf32>
    %454 = math.exp %453 : vector<1x256xf32>
    %cst_82 = arith.constant 1.000000e+00 : f32
    %455 = vector.broadcast %cst_82 : f32 to vector<1x256xf32>
    %456 = arith.addf %455, %454 : vector<1x256xf32>
    %cst_83 = arith.constant 1.000000e+00 : f32
    %457 = vector.broadcast %cst_83 : f32 to vector<1x256xf32>
    %458 = arith.divf %457, %456 : vector<1x256xf32>
    %459 = vector.broadcast %458 : vector<1x256xf32> to vector<32x256xf32>
    %460 = arith.mulf %76, %459 : vector<32x256xf32>
    %cst_84 = arith.constant 0.000000e+00 : f32
    %461 = vector.broadcast %cst_84 : f32 to vector<32x256xf32>
    %462 = arith.maximumf %460, %461 : vector<32x256xf32>
    %c0_85 = arith.constant 0 : index
    %c0_86 = arith.constant 0 : index
    %463 = vector.load %arg5[%c0_85, %c0_86] : memref<32x32xf32, #tpu.memory_space<vmem>>, vector<32x32xf32>
    %cst_87 = arith.constant dense<0.000000e+00> : vector<32x256xf32>
    %464 = tpu.matmul %463, %462, %cst_87 {dimension_numbers = #tpu.dot_dimension_numbers<[1], [0], [0], [1], [0, 0, 1, 1], [], []>} : vector<32x32xf32>, vector<32x256xf32>, vector<32x256xf32> -> vector<32x256xf32>
    %c0_88 = arith.constant 0 : index
    %c0_89 = arith.constant 0 : index
    %465 = vector.load %arg6[%c0_88, %c0_89] : memref<32x3xf32, #tpu.memory_space<vmem>>, vector<32x3xf32>
    %cst_90 = arith.constant 0.000000e+00 : f32
    %466 = vector.broadcast %cst_90 : f32 to vector<32x16xf32>
    %467 = vector.extract_strided_slice %464 {offsets = [0, 0], sizes = [32, 240], strides = [1, 1]} : vector<32x256xf32> to vector<32x240xf32>
    %468 = tpu.concatenate %466, %467 in 1 : vector<32x16xf32>, vector<32x240xf32> -> vector<32x256xf32>
    %cst_91 = arith.constant 0.000000e+00 : f32
    %469 = vector.broadcast %cst_91 : f32 to vector<32x16xf32>
    %470 = vector.extract_strided_slice %464 {offsets = [0, 16], sizes = [32, 240], strides = [1, 1]} : vector<32x256xf32> to vector<32x240xf32>
    %471 = tpu.concatenate %470, %469 in 1 : vector<32x240xf32>, vector<32x16xf32> -> vector<32x256xf32>
    %472 = vector.extract_strided_slice %465 {offsets = [0, 0], sizes = [32, 1], strides = [1, 1]} : vector<32x3xf32> to vector<32x1xf32>
    %473 = vector.broadcast %472 : vector<32x1xf32> to vector<32x256xf32>
    %474 = arith.mulf %473, %468 : vector<32x256xf32>
    %475 = vector.extract_strided_slice %465 {offsets = [0, 1], sizes = [32, 1], strides = [1, 1]} : vector<32x3xf32> to vector<32x1xf32>
    %476 = vector.broadcast %475 : vector<32x1xf32> to vector<32x256xf32>
    %477 = arith.mulf %476, %464 : vector<32x256xf32>
    %478 = arith.addf %474, %477 : vector<32x256xf32>
    %479 = vector.extract_strided_slice %465 {offsets = [0, 2], sizes = [32, 1], strides = [1, 1]} : vector<32x3xf32> to vector<32x1xf32>
    %480 = vector.broadcast %479 : vector<32x1xf32> to vector<32x256xf32>
    %481 = arith.mulf %480, %471 : vector<32x256xf32>
    %482 = arith.addf %478, %481 : vector<32x256xf32>
    %c0_92 = arith.constant 0 : index
    %c0_93 = arith.constant 0 : index
    %483 = vector.load %arg7[%c0_92, %c0_93] : memref<32x3xf32, #tpu.memory_space<vmem>>, vector<32x3xf32>
    %cst_94 = arith.constant 0.000000e+00 : f32
    %484 = vector.broadcast %cst_94 : f32 to vector<32x1xf32>
    %485 = vector.extract_strided_slice %482 {offsets = [0, 0], sizes = [32, 255], strides = [1, 1]} : vector<32x256xf32> to vector<32x255xf32>
    %486 = tpu.concatenate %484, %485 in 1 : vector<32x1xf32>, vector<32x255xf32> -> vector<32x256xf32>
    %cst_95 = arith.constant 0.000000e+00 : f32
    %487 = vector.shape_cast %18 : vector<1x256xi1> to vector<1x256xi1>
    %488 = vector.broadcast %487 : vector<1x256xi1> to vector<32x256xi1>
    %489 = vector.broadcast %cst_95 : f32 to vector<32x256xf32>
    %490 = arith.select %488, %489, %486 : vector<32x256xi1>, vector<32x256xf32>
    %cst_96 = arith.constant 0.000000e+00 : f32
    %491 = vector.broadcast %cst_96 : f32 to vector<32x1xf32>
    %492 = vector.extract_strided_slice %482 {offsets = [0, 1], sizes = [32, 255], strides = [1, 1]} : vector<32x256xf32> to vector<32x255xf32>
    %493 = tpu.concatenate %492, %491 in 1 : vector<32x255xf32>, vector<32x1xf32> -> vector<32x256xf32>
    %cst_97 = arith.constant 0.000000e+00 : f32
    %494 = vector.shape_cast %24 : vector<1x256xi1> to vector<1x256xi1>
    %495 = vector.broadcast %494 : vector<1x256xi1> to vector<32x256xi1>
    %496 = vector.broadcast %cst_97 : f32 to vector<32x256xf32>
    %497 = arith.select %495, %496, %493 : vector<32x256xi1>, vector<32x256xf32>
    %498 = vector.extract_strided_slice %483 {offsets = [0, 0], sizes = [32, 1], strides = [1, 1]} : vector<32x3xf32> to vector<32x1xf32>
    %499 = vector.broadcast %498 : vector<32x1xf32> to vector<32x256xf32>
    %500 = arith.mulf %499, %490 : vector<32x256xf32>
    %501 = vector.extract_strided_slice %483 {offsets = [0, 1], sizes = [32, 1], strides = [1, 1]} : vector<32x3xf32> to vector<32x1xf32>
    %502 = vector.broadcast %501 : vector<32x1xf32> to vector<32x256xf32>
    %503 = arith.mulf %502, %482 : vector<32x256xf32>
    %504 = arith.addf %500, %503 : vector<32x256xf32>
    %505 = vector.extract_strided_slice %483 {offsets = [0, 2], sizes = [32, 1], strides = [1, 1]} : vector<32x3xf32> to vector<32x1xf32>
    %506 = vector.broadcast %505 : vector<32x1xf32> to vector<32x256xf32>
    %507 = arith.mulf %506, %497 : vector<32x256xf32>
    %508 = arith.addf %504, %507 : vector<32x256xf32>
    %c0_98 = arith.constant 0 : index
    %c0_99 = arith.constant 0 : index
    %509 = vector.load %arg8[%c0_98, %c0_99] : memref<32x1xf32, #tpu.memory_space<vmem>>, vector<32x1xf32>
    %510 = vector.broadcast %509 : vector<32x1xf32> to vector<32x256xf32>
    %511 = arith.mulf %508, %510 : vector<32x256xf32>
    %c0_100 = arith.constant 0 : index
    %c0_101 = arith.constant 0 : index
    %512 = vector.load %arg9[%c0_100, %c0_101] : memref<32x1xf32, #tpu.memory_space<vmem>>, vector<32x1xf32>
    %513 = vector.broadcast %512 : vector<32x1xf32> to vector<32x256xf32>
    %514 = arith.addf %511, %513 : vector<32x256xf32>
    %cst_102 = arith.constant 0.000000e+00 : f32
    %515 = vector.broadcast %cst_102 : f32 to vector<32x256xf32>
    %516 = arith.maximumf %514, %515 : vector<32x256xf32>
    %c0_103 = arith.constant 0 : index
    %c0_104 = arith.constant 0 : index
    %517 = vector.load %arg10[%c0_103, %c0_104] : memref<32x3xf32, #tpu.memory_space<vmem>>, vector<32x3xf32>
    %cst_105 = arith.constant 0.000000e+00 : f32
    %518 = vector.broadcast %cst_105 : f32 to vector<32x16xf32>
    %519 = vector.extract_strided_slice %516 {offsets = [0, 0], sizes = [32, 240], strides = [1, 1]} : vector<32x256xf32> to vector<32x240xf32>
    %520 = tpu.concatenate %518, %519 in 1 : vector<32x16xf32>, vector<32x240xf32> -> vector<32x256xf32>
    %cst_106 = arith.constant 0.000000e+00 : f32
    %521 = vector.broadcast %cst_106 : f32 to vector<32x16xf32>
    %522 = vector.extract_strided_slice %516 {offsets = [0, 16], sizes = [32, 240], strides = [1, 1]} : vector<32x256xf32> to vector<32x240xf32>
    %523 = tpu.concatenate %522, %521 in 1 : vector<32x240xf32>, vector<32x16xf32> -> vector<32x256xf32>
    %524 = vector.extract_strided_slice %517 {offsets = [0, 0], sizes = [32, 1], strides = [1, 1]} : vector<32x3xf32> to vector<32x1xf32>
    %525 = vector.broadcast %524 : vector<32x1xf32> to vector<32x256xf32>
    %526 = arith.mulf %525, %520 : vector<32x256xf32>
    %527 = vector.extract_strided_slice %517 {offsets = [0, 1], sizes = [32, 1], strides = [1, 1]} : vector<32x3xf32> to vector<32x1xf32>
    %528 = vector.broadcast %527 : vector<32x1xf32> to vector<32x256xf32>
    %529 = arith.mulf %528, %516 : vector<32x256xf32>
    %530 = arith.addf %526, %529 : vector<32x256xf32>
    %531 = vector.extract_strided_slice %517 {offsets = [0, 2], sizes = [32, 1], strides = [1, 1]} : vector<32x3xf32> to vector<32x1xf32>
    %532 = vector.broadcast %531 : vector<32x1xf32> to vector<32x256xf32>
    %533 = arith.mulf %532, %523 : vector<32x256xf32>
    %534 = arith.addf %530, %533 : vector<32x256xf32>
    %c0_107 = arith.constant 0 : index
    %c0_108 = arith.constant 0 : index
    %535 = vector.load %arg11[%c0_107, %c0_108] : memref<32x3xf32, #tpu.memory_space<vmem>>, vector<32x3xf32>
    %cst_109 = arith.constant 0.000000e+00 : f32
    %536 = vector.broadcast %cst_109 : f32 to vector<32x1xf32>
    %537 = vector.extract_strided_slice %534 {offsets = [0, 0], sizes = [32, 255], strides = [1, 1]} : vector<32x256xf32> to vector<32x255xf32>
    %538 = tpu.concatenate %536, %537 in 1 : vector<32x1xf32>, vector<32x255xf32> -> vector<32x256xf32>
    %cst_110 = arith.constant 0.000000e+00 : f32
    %539 = vector.shape_cast %18 : vector<1x256xi1> to vector<1x256xi1>
    %540 = vector.broadcast %539 : vector<1x256xi1> to vector<32x256xi1>
    %541 = vector.broadcast %cst_110 : f32 to vector<32x256xf32>
    %542 = arith.select %540, %541, %538 : vector<32x256xi1>, vector<32x256xf32>
    %cst_111 = arith.constant 0.000000e+00 : f32
    %543 = vector.broadcast %cst_111 : f32 to vector<32x1xf32>
    %544 = vector.extract_strided_slice %534 {offsets = [0, 1], sizes = [32, 255], strides = [1, 1]} : vector<32x256xf32> to vector<32x255xf32>
    %545 = tpu.concatenate %544, %543 in 1 : vector<32x255xf32>, vector<32x1xf32> -> vector<32x256xf32>
    %cst_112 = arith.constant 0.000000e+00 : f32
    %546 = vector.shape_cast %24 : vector<1x256xi1> to vector<1x256xi1>
    %547 = vector.broadcast %546 : vector<1x256xi1> to vector<32x256xi1>
    %548 = vector.broadcast %cst_112 : f32 to vector<32x256xf32>
    %549 = arith.select %547, %548, %545 : vector<32x256xi1>, vector<32x256xf32>
    %550 = vector.extract_strided_slice %535 {offsets = [0, 0], sizes = [32, 1], strides = [1, 1]} : vector<32x3xf32> to vector<32x1xf32>
    %551 = vector.broadcast %550 : vector<32x1xf32> to vector<32x256xf32>
    %552 = arith.mulf %551, %542 : vector<32x256xf32>
    %553 = vector.extract_strided_slice %535 {offsets = [0, 1], sizes = [32, 1], strides = [1, 1]} : vector<32x3xf32> to vector<32x1xf32>
    %554 = vector.broadcast %553 : vector<32x1xf32> to vector<32x256xf32>
    %555 = arith.mulf %554, %534 : vector<32x256xf32>
    %556 = arith.addf %552, %555 : vector<32x256xf32>
    %557 = vector.extract_strided_slice %535 {offsets = [0, 2], sizes = [32, 1], strides = [1, 1]} : vector<32x3xf32> to vector<32x1xf32>
    %558 = vector.broadcast %557 : vector<32x1xf32> to vector<32x256xf32>
    %559 = arith.mulf %558, %549 : vector<32x256xf32>
    %560 = arith.addf %556, %559 : vector<32x256xf32>
    %c0_113 = arith.constant 0 : index
    %c0_114 = arith.constant 0 : index
    %561 = vector.load %arg12[%c0_113, %c0_114] : memref<32x32xf32, #tpu.memory_space<vmem>>, vector<32x32xf32>
    %cst_115 = arith.constant dense<0.000000e+00> : vector<32x256xf32>
    %562 = tpu.matmul %561, %560, %cst_115 {dimension_numbers = #tpu.dot_dimension_numbers<[1], [0], [0], [1], [0, 0, 1, 1], [], []>} : vector<32x32xf32>, vector<32x256xf32>, vector<32x256xf32> -> vector<32x256xf32>
    %c0_116 = arith.constant 0 : index
    %c0_117 = arith.constant 0 : index
    %563 = vector.load %arg13[%c0_116, %c0_117] : memref<32x1xf32, #tpu.memory_space<vmem>>, vector<32x1xf32>
    %564 = vector.broadcast %563 : vector<32x1xf32> to vector<32x256xf32>
    %565 = arith.mulf %562, %564 : vector<32x256xf32>
    %c0_118 = arith.constant 0 : index
    %c0_119 = arith.constant 0 : index
    %566 = vector.load %arg14[%c0_118, %c0_119] : memref<32x1xf32, #tpu.memory_space<vmem>>, vector<32x1xf32>
    %567 = vector.broadcast %566 : vector<32x1xf32> to vector<32x256xf32>
    %568 = arith.addf %565, %567 : vector<32x256xf32>
    %c0_120 = arith.constant 0 : index
    %c0_121 = arith.constant 0 : index
    %569 = vector.load %arg15[%c0_120, %c0_121] : memref<32x2xf32, #tpu.memory_space<vmem>>, vector<32x2xf32>
    %c0_122 = arith.constant 0 : index
    %c0_123 = arith.constant 0 : index
    %570 = vector.load %arg16[%c0_122, %c0_123] : memref<32x2xf32, #tpu.memory_space<vmem>>, vector<32x2xf32>
    %cst_124 = arith.constant dense<0.000000e+00> : vector<32xf32>
    %571 = vector.multi_reduction <add>, %568, %cst_124 [1] : vector<32x256xf32> to vector<32xf32>
    %572 = vector.shape_cast %571 : vector<32xf32> to vector<32x1xf32>
    %cst_125 = arith.constant 2.560000e+02 : f32
    %573 = vector.broadcast %cst_125 : f32 to vector<32x1xf32>
    %574 = arith.divf %572, %573 : vector<32x1xf32>
    %cst_126 = arith.constant dense<0xFF800000> : vector<32xf32>
    %575 = vector.multi_reduction <maximumf>, %568, %cst_126 [1] : vector<32x256xf32> to vector<32xf32>
    %576 = vector.shape_cast %575 : vector<32xf32> to vector<32x1xf32>
    %577 = tpu.concatenate %574, %576 in 1 : vector<32x1xf32>, vector<32x1xf32> -> vector<32x2xf32>
    %cst_127 = arith.constant 0.000000e+00 : f32
    %578 = vector.broadcast %cst_127 : f32 to vector<32x2xf32>
    %579 = vector.extract_strided_slice %569 {offsets = [0, 0], sizes = [32, 1], strides = [1, 1]} : vector<32x2xf32> to vector<32x1xf32>
    %580 = vector.broadcast %579 : vector<32x1xf32> to vector<32x2xf32>
    %581 = arith.mulf %580, %577 : vector<32x2xf32>
    %cst_128 = arith.constant dense<0.000000e+00> : vector<2xf32>
    %582 = vector.multi_reduction <add>, %581, %cst_128 [0] : vector<32x2xf32> to vector<2xf32>
    %583 = vector.shape_cast %582 : vector<2xf32> to vector<1x2xf32>
    %cst_129 = arith.constant 0.000000e+00 : f32
    %584 = vector.broadcast %cst_129 : f32 to vector<1x2xf32>
    %585 = arith.maximumf %583, %584 : vector<1x2xf32>
    %586 = vector.extract_strided_slice %570 {offsets = [0, 0], sizes = [32, 1], strides = [1, 1]} : vector<32x2xf32> to vector<32x1xf32>
    %587 = vector.broadcast %586 : vector<32x1xf32> to vector<32x2xf32>
    %588 = vector.broadcast %585 : vector<1x2xf32> to vector<32x2xf32>
    %589 = arith.mulf %587, %588 : vector<32x2xf32>
    %590 = arith.addf %578, %589 : vector<32x2xf32>
    %591 = vector.extract_strided_slice %569 {offsets = [0, 1], sizes = [32, 1], strides = [1, 1]} : vector<32x2xf32> to vector<32x1xf32>
    %592 = vector.broadcast %591 : vector<32x1xf32> to vector<32x2xf32>
    %593 = arith.mulf %592, %577 : vector<32x2xf32>
    %cst_130 = arith.constant dense<0.000000e+00> : vector<2xf32>
    %594 = vector.multi_reduction <add>, %593, %cst_130 [0] : vector<32x2xf32> to vector<2xf32>
    %595 = vector.shape_cast %594 : vector<2xf32> to vector<1x2xf32>
    %cst_131 = arith.constant 0.000000e+00 : f32
    %596 = vector.broadcast %cst_131 : f32 to vector<1x2xf32>
    %597 = arith.maximumf %595, %596 : vector<1x2xf32>
    %598 = vector.extract_strided_slice %570 {offsets = [0, 1], sizes = [32, 1], strides = [1, 1]} : vector<32x2xf32> to vector<32x1xf32>
    %599 = vector.broadcast %598 : vector<32x1xf32> to vector<32x2xf32>
    %600 = vector.broadcast %597 : vector<1x2xf32> to vector<32x2xf32>
    %601 = arith.mulf %599, %600 : vector<32x2xf32>
    %602 = arith.addf %590, %601 : vector<32x2xf32>
    %603 = vector.extract_strided_slice %602 {offsets = [0, 0], sizes = [32, 1], strides = [1, 1]} : vector<32x2xf32> to vector<32x1xf32>
    %604 = vector.extract_strided_slice %602 {offsets = [0, 1], sizes = [32, 1], strides = [1, 1]} : vector<32x2xf32> to vector<32x1xf32>
    %605 = arith.addf %603, %604 : vector<32x1xf32>
    %cst_132 = arith.constant 0.000000e+00 : f32
    %606 = vector.broadcast %cst_132 : f32 to vector<32x1xf32>
    %607 = arith.subf %606, %605 : vector<32x1xf32>
    %608 = math.exp %607 : vector<32x1xf32>
    %cst_133 = arith.constant 1.000000e+00 : f32
    %609 = vector.broadcast %cst_133 : f32 to vector<32x1xf32>
    %610 = arith.addf %609, %608 : vector<32x1xf32>
    %cst_134 = arith.constant 1.000000e+00 : f32
    %611 = vector.broadcast %cst_134 : f32 to vector<32x1xf32>
    %612 = arith.divf %611, %610 : vector<32x1xf32>
    %613 = vector.broadcast %612 : vector<32x1xf32> to vector<32x256xf32>
    %614 = arith.mulf %568, %613 : vector<32x256xf32>
    %c0_135 = arith.constant 0 : index
    %c0_136 = arith.constant 0 : index
    %615 = vector.load %arg17[%c0_135, %c0_136] : memref<2x49xf32, #tpu.memory_space<vmem>>, vector<2x49xf32>
    %cst_137 = arith.constant dense<0.000000e+00> : vector<256xf32>
    %616 = vector.multi_reduction <add>, %614, %cst_137 [0] : vector<32x256xf32> to vector<256xf32>
    %617 = vector.shape_cast %616 : vector<256xf32> to vector<1x256xf32>
    %cst_138 = arith.constant 3.200000e+01 : f32
    %618 = vector.broadcast %cst_138 : f32 to vector<1x256xf32>
    %619 = arith.divf %617, %618 : vector<1x256xf32>
    %cst_139 = arith.constant dense<0xFF800000> : vector<256xf32>
    %620 = vector.multi_reduction <maximumf>, %614, %cst_139 [0] : vector<32x256xf32> to vector<256xf32>
    %621 = vector.shape_cast %620 : vector<256xf32> to vector<1x256xf32>
    %622 = tpu.concatenate %619, %621 in 0 : vector<1x256xf32>, vector<1x256xf32> -> vector<2x256xf32>
    %cst_140 = arith.constant 0.000000e+00 : f32
    %623 = vector.broadcast %cst_140 : f32 to vector<2x3xf32>
    %624 = vector.extract_strided_slice %622 {offsets = [0, 0], sizes = [2, 253], strides = [1, 1]} : vector<2x256xf32> to vector<2x253xf32>
    %625 = tpu.concatenate %623, %624 in 1 : vector<2x3xf32>, vector<2x253xf32> -> vector<2x256xf32>
    %cst_141 = arith.constant 0.000000e+00 : f32
    %626 = vector.shape_cast %22 : vector<1x256xi1> to vector<1x256xi1>
    %627 = vector.broadcast %626 : vector<1x256xi1> to vector<2x256xi1>
    %628 = vector.broadcast %cst_141 : f32 to vector<2x256xf32>
    %629 = arith.select %627, %628, %625 : vector<2x256xi1>, vector<2x256xf32>
    %cst_142 = arith.constant 0.000000e+00 : f32
    %630 = vector.broadcast %cst_142 : f32 to vector<2x2xf32>
    %631 = vector.extract_strided_slice %622 {offsets = [0, 0], sizes = [2, 254], strides = [1, 1]} : vector<2x256xf32> to vector<2x254xf32>
    %632 = tpu.concatenate %630, %631 in 1 : vector<2x2xf32>, vector<2x254xf32> -> vector<2x256xf32>
    %cst_143 = arith.constant 0.000000e+00 : f32
    %633 = vector.shape_cast %20 : vector<1x256xi1> to vector<1x256xi1>
    %634 = vector.broadcast %633 : vector<1x256xi1> to vector<2x256xi1>
    %635 = vector.broadcast %cst_143 : f32 to vector<2x256xf32>
    %636 = arith.select %634, %635, %632 : vector<2x256xi1>, vector<2x256xf32>
    %cst_144 = arith.constant 0.000000e+00 : f32
    %637 = vector.broadcast %cst_144 : f32 to vector<2x1xf32>
    %638 = vector.extract_strided_slice %622 {offsets = [0, 0], sizes = [2, 255], strides = [1, 1]} : vector<2x256xf32> to vector<2x255xf32>
    %639 = tpu.concatenate %637, %638 in 1 : vector<2x1xf32>, vector<2x255xf32> -> vector<2x256xf32>
    %cst_145 = arith.constant 0.000000e+00 : f32
    %640 = vector.shape_cast %18 : vector<1x256xi1> to vector<1x256xi1>
    %641 = vector.broadcast %640 : vector<1x256xi1> to vector<2x256xi1>
    %642 = vector.broadcast %cst_145 : f32 to vector<2x256xf32>
    %643 = arith.select %641, %642, %639 : vector<2x256xi1>, vector<2x256xf32>
    %cst_146 = arith.constant 0.000000e+00 : f32
    %644 = vector.broadcast %cst_146 : f32 to vector<2x1xf32>
    %645 = vector.extract_strided_slice %622 {offsets = [0, 1], sizes = [2, 255], strides = [1, 1]} : vector<2x256xf32> to vector<2x255xf32>
    %646 = tpu.concatenate %645, %644 in 1 : vector<2x255xf32>, vector<2x1xf32> -> vector<2x256xf32>
    %cst_147 = arith.constant 0.000000e+00 : f32
    %647 = vector.shape_cast %24 : vector<1x256xi1> to vector<1x256xi1>
    %648 = vector.broadcast %647 : vector<1x256xi1> to vector<2x256xi1>
    %649 = vector.broadcast %cst_147 : f32 to vector<2x256xf32>
    %650 = arith.select %648, %649, %646 : vector<2x256xi1>, vector<2x256xf32>
    %cst_148 = arith.constant 0.000000e+00 : f32
    %651 = vector.broadcast %cst_148 : f32 to vector<2x2xf32>
    %652 = vector.extract_strided_slice %622 {offsets = [0, 2], sizes = [2, 254], strides = [1, 1]} : vector<2x256xf32> to vector<2x254xf32>
    %653 = tpu.concatenate %652, %651 in 1 : vector<2x254xf32>, vector<2x2xf32> -> vector<2x256xf32>
    %cst_149 = arith.constant 0.000000e+00 : f32
    %654 = vector.shape_cast %26 : vector<1x256xi1> to vector<1x256xi1>
    %655 = vector.broadcast %654 : vector<1x256xi1> to vector<2x256xi1>
    %656 = vector.broadcast %cst_149 : f32 to vector<2x256xf32>
    %657 = arith.select %655, %656, %653 : vector<2x256xi1>, vector<2x256xf32>
    %cst_150 = arith.constant 0.000000e+00 : f32
    %658 = vector.broadcast %cst_150 : f32 to vector<2x3xf32>
    %659 = vector.extract_strided_slice %622 {offsets = [0, 3], sizes = [2, 253], strides = [1, 1]} : vector<2x256xf32> to vector<2x253xf32>
    %660 = tpu.concatenate %659, %658 in 1 : vector<2x253xf32>, vector<2x3xf32> -> vector<2x256xf32>
    %cst_151 = arith.constant 0.000000e+00 : f32
    %661 = vector.shape_cast %28 : vector<1x256xi1> to vector<1x256xi1>
    %662 = vector.broadcast %661 : vector<1x256xi1> to vector<2x256xi1>
    %663 = vector.broadcast %cst_151 : f32 to vector<2x256xf32>
    %664 = arith.select %662, %663, %660 : vector<2x256xi1>, vector<2x256xf32>
    %cst_152 = arith.constant 0.000000e+00 : f32
    %665 = vector.broadcast %cst_152 : f32 to vector<2x256xf32>
    %cst_153 = arith.constant 0.000000e+00 : f32
    %666 = vector.broadcast %cst_153 : f32 to vector<2x48xf32>
    %667 = vector.extract_strided_slice %629 {offsets = [0, 0], sizes = [2, 208], strides = [1, 1]} : vector<2x256xf32> to vector<2x208xf32>
    %668 = tpu.concatenate %666, %667 in 1 : vector<2x48xf32>, vector<2x208xf32> -> vector<2x256xf32>
    %669 = vector.extract_strided_slice %615 {offsets = [0, 0], sizes = [2, 1], strides = [1, 1]} : vector<2x49xf32> to vector<2x1xf32>
    %670 = vector.broadcast %669 : vector<2x1xf32> to vector<2x256xf32>
    %671 = arith.mulf %670, %668 : vector<2x256xf32>
    %672 = arith.addf %665, %671 : vector<2x256xf32>
    %cst_154 = arith.constant 0.000000e+00 : f32
    %673 = vector.broadcast %cst_154 : f32 to vector<2x48xf32>
    %674 = vector.extract_strided_slice %636 {offsets = [0, 0], sizes = [2, 208], strides = [1, 1]} : vector<2x256xf32> to vector<2x208xf32>
    %675 = tpu.concatenate %673, %674 in 1 : vector<2x48xf32>, vector<2x208xf32> -> vector<2x256xf32>
    %676 = vector.extract_strided_slice %615 {offsets = [0, 1], sizes = [2, 1], strides = [1, 1]} : vector<2x49xf32> to vector<2x1xf32>
    %677 = vector.broadcast %676 : vector<2x1xf32> to vector<2x256xf32>
    %678 = arith.mulf %677, %675 : vector<2x256xf32>
    %679 = arith.addf %672, %678 : vector<2x256xf32>
    %cst_155 = arith.constant 0.000000e+00 : f32
    %680 = vector.broadcast %cst_155 : f32 to vector<2x48xf32>
    %681 = vector.extract_strided_slice %643 {offsets = [0, 0], sizes = [2, 208], strides = [1, 1]} : vector<2x256xf32> to vector<2x208xf32>
    %682 = tpu.concatenate %680, %681 in 1 : vector<2x48xf32>, vector<2x208xf32> -> vector<2x256xf32>
    %683 = vector.extract_strided_slice %615 {offsets = [0, 2], sizes = [2, 1], strides = [1, 1]} : vector<2x49xf32> to vector<2x1xf32>
    %684 = vector.broadcast %683 : vector<2x1xf32> to vector<2x256xf32>
    %685 = arith.mulf %684, %682 : vector<2x256xf32>
    %686 = arith.addf %679, %685 : vector<2x256xf32>
    %cst_156 = arith.constant 0.000000e+00 : f32
    %687 = vector.broadcast %cst_156 : f32 to vector<2x48xf32>
    %688 = vector.extract_strided_slice %622 {offsets = [0, 0], sizes = [2, 208], strides = [1, 1]} : vector<2x256xf32> to vector<2x208xf32>
    %689 = tpu.concatenate %687, %688 in 1 : vector<2x48xf32>, vector<2x208xf32> -> vector<2x256xf32>
    %690 = vector.extract_strided_slice %615 {offsets = [0, 3], sizes = [2, 1], strides = [1, 1]} : vector<2x49xf32> to vector<2x1xf32>
    %691 = vector.broadcast %690 : vector<2x1xf32> to vector<2x256xf32>
    %692 = arith.mulf %691, %689 : vector<2x256xf32>
    %693 = arith.addf %686, %692 : vector<2x256xf32>
    %cst_157 = arith.constant 0.000000e+00 : f32
    %694 = vector.broadcast %cst_157 : f32 to vector<2x48xf32>
    %695 = vector.extract_strided_slice %650 {offsets = [0, 0], sizes = [2, 208], strides = [1, 1]} : vector<2x256xf32> to vector<2x208xf32>
    %696 = tpu.concatenate %694, %695 in 1 : vector<2x48xf32>, vector<2x208xf32> -> vector<2x256xf32>
    %697 = vector.extract_strided_slice %615 {offsets = [0, 4], sizes = [2, 1], strides = [1, 1]} : vector<2x49xf32> to vector<2x1xf32>
    %698 = vector.broadcast %697 : vector<2x1xf32> to vector<2x256xf32>
    %699 = arith.mulf %698, %696 : vector<2x256xf32>
    %700 = arith.addf %693, %699 : vector<2x256xf32>
    %cst_158 = arith.constant 0.000000e+00 : f32
    %701 = vector.broadcast %cst_158 : f32 to vector<2x48xf32>
    %702 = vector.extract_strided_slice %657 {offsets = [0, 0], sizes = [2, 208], strides = [1, 1]} : vector<2x256xf32> to vector<2x208xf32>
    %703 = tpu.concatenate %701, %702 in 1 : vector<2x48xf32>, vector<2x208xf32> -> vector<2x256xf32>
    %704 = vector.extract_strided_slice %615 {offsets = [0, 5], sizes = [2, 1], strides = [1, 1]} : vector<2x49xf32> to vector<2x1xf32>
    %705 = vector.broadcast %704 : vector<2x1xf32> to vector<2x256xf32>
    %706 = arith.mulf %705, %703 : vector<2x256xf32>
    %707 = arith.addf %700, %706 : vector<2x256xf32>
    %cst_159 = arith.constant 0.000000e+00 : f32
    %708 = vector.broadcast %cst_159 : f32 to vector<2x48xf32>
    %709 = vector.extract_strided_slice %664 {offsets = [0, 0], sizes = [2, 208], strides = [1, 1]} : vector<2x256xf32> to vector<2x208xf32>
    %710 = tpu.concatenate %708, %709 in 1 : vector<2x48xf32>, vector<2x208xf32> -> vector<2x256xf32>
    %711 = vector.extract_strided_slice %615 {offsets = [0, 6], sizes = [2, 1], strides = [1, 1]} : vector<2x49xf32> to vector<2x1xf32>
    %712 = vector.broadcast %711 : vector<2x1xf32> to vector<2x256xf32>
    %713 = arith.mulf %712, %710 : vector<2x256xf32>
    %714 = arith.addf %707, %713 : vector<2x256xf32>
    %cst_160 = arith.constant 0.000000e+00 : f32
    %715 = vector.broadcast %cst_160 : f32 to vector<2x32xf32>
    %716 = vector.extract_strided_slice %629 {offsets = [0, 0], sizes = [2, 224], strides = [1, 1]} : vector<2x256xf32> to vector<2x224xf32>
    %717 = tpu.concatenate %715, %716 in 1 : vector<2x32xf32>, vector<2x224xf32> -> vector<2x256xf32>
    %718 = vector.extract_strided_slice %615 {offsets = [0, 7], sizes = [2, 1], strides = [1, 1]} : vector<2x49xf32> to vector<2x1xf32>
    %719 = vector.broadcast %718 : vector<2x1xf32> to vector<2x256xf32>
    %720 = arith.mulf %719, %717 : vector<2x256xf32>
    %721 = arith.addf %714, %720 : vector<2x256xf32>
    %cst_161 = arith.constant 0.000000e+00 : f32
    %722 = vector.broadcast %cst_161 : f32 to vector<2x32xf32>
    %723 = vector.extract_strided_slice %636 {offsets = [0, 0], sizes = [2, 224], strides = [1, 1]} : vector<2x256xf32> to vector<2x224xf32>
    %724 = tpu.concatenate %722, %723 in 1 : vector<2x32xf32>, vector<2x224xf32> -> vector<2x256xf32>
    %725 = vector.extract_strided_slice %615 {offsets = [0, 8], sizes = [2, 1], strides = [1, 1]} : vector<2x49xf32> to vector<2x1xf32>
    %726 = vector.broadcast %725 : vector<2x1xf32> to vector<2x256xf32>
    %727 = arith.mulf %726, %724 : vector<2x256xf32>
    %728 = arith.addf %721, %727 : vector<2x256xf32>
    %cst_162 = arith.constant 0.000000e+00 : f32
    %729 = vector.broadcast %cst_162 : f32 to vector<2x32xf32>
    %730 = vector.extract_strided_slice %643 {offsets = [0, 0], sizes = [2, 224], strides = [1, 1]} : vector<2x256xf32> to vector<2x224xf32>
    %731 = tpu.concatenate %729, %730 in 1 : vector<2x32xf32>, vector<2x224xf32> -> vector<2x256xf32>
    %732 = vector.extract_strided_slice %615 {offsets = [0, 9], sizes = [2, 1], strides = [1, 1]} : vector<2x49xf32> to vector<2x1xf32>
    %733 = vector.broadcast %732 : vector<2x1xf32> to vector<2x256xf32>
    %734 = arith.mulf %733, %731 : vector<2x256xf32>
    %735 = arith.addf %728, %734 : vector<2x256xf32>
    %cst_163 = arith.constant 0.000000e+00 : f32
    %736 = vector.broadcast %cst_163 : f32 to vector<2x32xf32>
    %737 = vector.extract_strided_slice %622 {offsets = [0, 0], sizes = [2, 224], strides = [1, 1]} : vector<2x256xf32> to vector<2x224xf32>
    %738 = tpu.concatenate %736, %737 in 1 : vector<2x32xf32>, vector<2x224xf32> -> vector<2x256xf32>
    %739 = vector.extract_strided_slice %615 {offsets = [0, 10], sizes = [2, 1], strides = [1, 1]} : vector<2x49xf32> to vector<2x1xf32>
    %740 = vector.broadcast %739 : vector<2x1xf32> to vector<2x256xf32>
    %741 = arith.mulf %740, %738 : vector<2x256xf32>
    %742 = arith.addf %735, %741 : vector<2x256xf32>
    %cst_164 = arith.constant 0.000000e+00 : f32
    %743 = vector.broadcast %cst_164 : f32 to vector<2x32xf32>
    %744 = vector.extract_strided_slice %650 {offsets = [0, 0], sizes = [2, 224], strides = [1, 1]} : vector<2x256xf32> to vector<2x224xf32>
    %745 = tpu.concatenate %743, %744 in 1 : vector<2x32xf32>, vector<2x224xf32> -> vector<2x256xf32>
    %746 = vector.extract_strided_slice %615 {offsets = [0, 11], sizes = [2, 1], strides = [1, 1]} : vector<2x49xf32> to vector<2x1xf32>
    %747 = vector.broadcast %746 : vector<2x1xf32> to vector<2x256xf32>
    %748 = arith.mulf %747, %745 : vector<2x256xf32>
    %749 = arith.addf %742, %748 : vector<2x256xf32>
    %cst_165 = arith.constant 0.000000e+00 : f32
    %750 = vector.broadcast %cst_165 : f32 to vector<2x32xf32>
    %751 = vector.extract_strided_slice %657 {offsets = [0, 0], sizes = [2, 224], strides = [1, 1]} : vector<2x256xf32> to vector<2x224xf32>
    %752 = tpu.concatenate %750, %751 in 1 : vector<2x32xf32>, vector<2x224xf32> -> vector<2x256xf32>
    %753 = vector.extract_strided_slice %615 {offsets = [0, 12], sizes = [2, 1], strides = [1, 1]} : vector<2x49xf32> to vector<2x1xf32>
    %754 = vector.broadcast %753 : vector<2x1xf32> to vector<2x256xf32>
    %755 = arith.mulf %754, %752 : vector<2x256xf32>
    %756 = arith.addf %749, %755 : vector<2x256xf32>
    %cst_166 = arith.constant 0.000000e+00 : f32
    %757 = vector.broadcast %cst_166 : f32 to vector<2x32xf32>
    %758 = vector.extract_strided_slice %664 {offsets = [0, 0], sizes = [2, 224], strides = [1, 1]} : vector<2x256xf32> to vector<2x224xf32>
    %759 = tpu.concatenate %757, %758 in 1 : vector<2x32xf32>, vector<2x224xf32> -> vector<2x256xf32>
    %760 = vector.extract_strided_slice %615 {offsets = [0, 13], sizes = [2, 1], strides = [1, 1]} : vector<2x49xf32> to vector<2x1xf32>
    %761 = vector.broadcast %760 : vector<2x1xf32> to vector<2x256xf32>
    %762 = arith.mulf %761, %759 : vector<2x256xf32>
    %763 = arith.addf %756, %762 : vector<2x256xf32>
    %cst_167 = arith.constant 0.000000e+00 : f32
    %764 = vector.broadcast %cst_167 : f32 to vector<2x16xf32>
    %765 = vector.extract_strided_slice %629 {offsets = [0, 0], sizes = [2, 240], strides = [1, 1]} : vector<2x256xf32> to vector<2x240xf32>
    %766 = tpu.concatenate %764, %765 in 1 : vector<2x16xf32>, vector<2x240xf32> -> vector<2x256xf32>
    %767 = vector.extract_strided_slice %615 {offsets = [0, 14], sizes = [2, 1], strides = [1, 1]} : vector<2x49xf32> to vector<2x1xf32>
    %768 = vector.broadcast %767 : vector<2x1xf32> to vector<2x256xf32>
    %769 = arith.mulf %768, %766 : vector<2x256xf32>
    %770 = arith.addf %763, %769 : vector<2x256xf32>
    %cst_168 = arith.constant 0.000000e+00 : f32
    %771 = vector.broadcast %cst_168 : f32 to vector<2x16xf32>
    %772 = vector.extract_strided_slice %636 {offsets = [0, 0], sizes = [2, 240], strides = [1, 1]} : vector<2x256xf32> to vector<2x240xf32>
    %773 = tpu.concatenate %771, %772 in 1 : vector<2x16xf32>, vector<2x240xf32> -> vector<2x256xf32>
    %774 = vector.extract_strided_slice %615 {offsets = [0, 15], sizes = [2, 1], strides = [1, 1]} : vector<2x49xf32> to vector<2x1xf32>
    %775 = vector.broadcast %774 : vector<2x1xf32> to vector<2x256xf32>
    %776 = arith.mulf %775, %773 : vector<2x256xf32>
    %777 = arith.addf %770, %776 : vector<2x256xf32>
    %cst_169 = arith.constant 0.000000e+00 : f32
    %778 = vector.broadcast %cst_169 : f32 to vector<2x16xf32>
    %779 = vector.extract_strided_slice %643 {offsets = [0, 0], sizes = [2, 240], strides = [1, 1]} : vector<2x256xf32> to vector<2x240xf32>
    %780 = tpu.concatenate %778, %779 in 1 : vector<2x16xf32>, vector<2x240xf32> -> vector<2x256xf32>
    %781 = vector.extract_strided_slice %615 {offsets = [0, 16], sizes = [2, 1], strides = [1, 1]} : vector<2x49xf32> to vector<2x1xf32>
    %782 = vector.broadcast %781 : vector<2x1xf32> to vector<2x256xf32>
    %783 = arith.mulf %782, %780 : vector<2x256xf32>
    %784 = arith.addf %777, %783 : vector<2x256xf32>
    %cst_170 = arith.constant 0.000000e+00 : f32
    %785 = vector.broadcast %cst_170 : f32 to vector<2x16xf32>
    %786 = vector.extract_strided_slice %622 {offsets = [0, 0], sizes = [2, 240], strides = [1, 1]} : vector<2x256xf32> to vector<2x240xf32>
    %787 = tpu.concatenate %785, %786 in 1 : vector<2x16xf32>, vector<2x240xf32> -> vector<2x256xf32>
    %788 = vector.extract_strided_slice %615 {offsets = [0, 17], sizes = [2, 1], strides = [1, 1]} : vector<2x49xf32> to vector<2x1xf32>
    %789 = vector.broadcast %788 : vector<2x1xf32> to vector<2x256xf32>
    %790 = arith.mulf %789, %787 : vector<2x256xf32>
    %791 = arith.addf %784, %790 : vector<2x256xf32>
    %cst_171 = arith.constant 0.000000e+00 : f32
    %792 = vector.broadcast %cst_171 : f32 to vector<2x16xf32>
    %793 = vector.extract_strided_slice %650 {offsets = [0, 0], sizes = [2, 240], strides = [1, 1]} : vector<2x256xf32> to vector<2x240xf32>
    %794 = tpu.concatenate %792, %793 in 1 : vector<2x16xf32>, vector<2x240xf32> -> vector<2x256xf32>
    %795 = vector.extract_strided_slice %615 {offsets = [0, 18], sizes = [2, 1], strides = [1, 1]} : vector<2x49xf32> to vector<2x1xf32>
    %796 = vector.broadcast %795 : vector<2x1xf32> to vector<2x256xf32>
    %797 = arith.mulf %796, %794 : vector<2x256xf32>
    %798 = arith.addf %791, %797 : vector<2x256xf32>
    %cst_172 = arith.constant 0.000000e+00 : f32
    %799 = vector.broadcast %cst_172 : f32 to vector<2x16xf32>
    %800 = vector.extract_strided_slice %657 {offsets = [0, 0], sizes = [2, 240], strides = [1, 1]} : vector<2x256xf32> to vector<2x240xf32>
    %801 = tpu.concatenate %799, %800 in 1 : vector<2x16xf32>, vector<2x240xf32> -> vector<2x256xf32>
    %802 = vector.extract_strided_slice %615 {offsets = [0, 19], sizes = [2, 1], strides = [1, 1]} : vector<2x49xf32> to vector<2x1xf32>
    %803 = vector.broadcast %802 : vector<2x1xf32> to vector<2x256xf32>
    %804 = arith.mulf %803, %801 : vector<2x256xf32>
    %805 = arith.addf %798, %804 : vector<2x256xf32>
    %cst_173 = arith.constant 0.000000e+00 : f32
    %806 = vector.broadcast %cst_173 : f32 to vector<2x16xf32>
    %807 = vector.extract_strided_slice %664 {offsets = [0, 0], sizes = [2, 240], strides = [1, 1]} : vector<2x256xf32> to vector<2x240xf32>
    %808 = tpu.concatenate %806, %807 in 1 : vector<2x16xf32>, vector<2x240xf32> -> vector<2x256xf32>
    %809 = vector.extract_strided_slice %615 {offsets = [0, 20], sizes = [2, 1], strides = [1, 1]} : vector<2x49xf32> to vector<2x1xf32>
    %810 = vector.broadcast %809 : vector<2x1xf32> to vector<2x256xf32>
    %811 = arith.mulf %810, %808 : vector<2x256xf32>
    %812 = arith.addf %805, %811 : vector<2x256xf32>
    %813 = vector.extract_strided_slice %615 {offsets = [0, 21], sizes = [2, 1], strides = [1, 1]} : vector<2x49xf32> to vector<2x1xf32>
    %814 = vector.broadcast %813 : vector<2x1xf32> to vector<2x256xf32>
    %815 = arith.mulf %814, %629 : vector<2x256xf32>
    %816 = arith.addf %812, %815 : vector<2x256xf32>
    %817 = vector.extract_strided_slice %615 {offsets = [0, 22], sizes = [2, 1], strides = [1, 1]} : vector<2x49xf32> to vector<2x1xf32>
    %818 = vector.broadcast %817 : vector<2x1xf32> to vector<2x256xf32>
    %819 = arith.mulf %818, %636 : vector<2x256xf32>
    %820 = arith.addf %816, %819 : vector<2x256xf32>
    %821 = vector.extract_strided_slice %615 {offsets = [0, 23], sizes = [2, 1], strides = [1, 1]} : vector<2x49xf32> to vector<2x1xf32>
    %822 = vector.broadcast %821 : vector<2x1xf32> to vector<2x256xf32>
    %823 = arith.mulf %822, %643 : vector<2x256xf32>
    %824 = arith.addf %820, %823 : vector<2x256xf32>
    %825 = vector.extract_strided_slice %615 {offsets = [0, 24], sizes = [2, 1], strides = [1, 1]} : vector<2x49xf32> to vector<2x1xf32>
    %826 = vector.broadcast %825 : vector<2x1xf32> to vector<2x256xf32>
    %827 = arith.mulf %826, %622 : vector<2x256xf32>
    %828 = arith.addf %824, %827 : vector<2x256xf32>
    %829 = vector.extract_strided_slice %615 {offsets = [0, 25], sizes = [2, 1], strides = [1, 1]} : vector<2x49xf32> to vector<2x1xf32>
    %830 = vector.broadcast %829 : vector<2x1xf32> to vector<2x256xf32>
    %831 = arith.mulf %830, %650 : vector<2x256xf32>
    %832 = arith.addf %828, %831 : vector<2x256xf32>
    %833 = vector.extract_strided_slice %615 {offsets = [0, 26], sizes = [2, 1], strides = [1, 1]} : vector<2x49xf32> to vector<2x1xf32>
    %834 = vector.broadcast %833 : vector<2x1xf32> to vector<2x256xf32>
    %835 = arith.mulf %834, %657 : vector<2x256xf32>
    %836 = arith.addf %832, %835 : vector<2x256xf32>
    %837 = vector.extract_strided_slice %615 {offsets = [0, 27], sizes = [2, 1], strides = [1, 1]} : vector<2x49xf32> to vector<2x1xf32>
    %838 = vector.broadcast %837 : vector<2x1xf32> to vector<2x256xf32>
    %839 = arith.mulf %838, %664 : vector<2x256xf32>
    %840 = arith.addf %836, %839 : vector<2x256xf32>
    %cst_174 = arith.constant 0.000000e+00 : f32
    %841 = vector.broadcast %cst_174 : f32 to vector<2x16xf32>
    %842 = vector.extract_strided_slice %629 {offsets = [0, 16], sizes = [2, 240], strides = [1, 1]} : vector<2x256xf32> to vector<2x240xf32>
    %843 = tpu.concatenate %842, %841 in 1 : vector<2x240xf32>, vector<2x16xf32> -> vector<2x256xf32>
    %844 = vector.extract_strided_slice %615 {offsets = [0, 28], sizes = [2, 1], strides = [1, 1]} : vector<2x49xf32> to vector<2x1xf32>
    %845 = vector.broadcast %844 : vector<2x1xf32> to vector<2x256xf32>
    %846 = arith.mulf %845, %843 : vector<2x256xf32>
    %847 = arith.addf %840, %846 : vector<2x256xf32>
    %cst_175 = arith.constant 0.000000e+00 : f32
    %848 = vector.broadcast %cst_175 : f32 to vector<2x16xf32>
    %849 = vector.extract_strided_slice %636 {offsets = [0, 16], sizes = [2, 240], strides = [1, 1]} : vector<2x256xf32> to vector<2x240xf32>
    %850 = tpu.concatenate %849, %848 in 1 : vector<2x240xf32>, vector<2x16xf32> -> vector<2x256xf32>
    %851 = vector.extract_strided_slice %615 {offsets = [0, 29], sizes = [2, 1], strides = [1, 1]} : vector<2x49xf32> to vector<2x1xf32>
    %852 = vector.broadcast %851 : vector<2x1xf32> to vector<2x256xf32>
    %853 = arith.mulf %852, %850 : vector<2x256xf32>
    %854 = arith.addf %847, %853 : vector<2x256xf32>
    %cst_176 = arith.constant 0.000000e+00 : f32
    %855 = vector.broadcast %cst_176 : f32 to vector<2x16xf32>
    %856 = vector.extract_strided_slice %643 {offsets = [0, 16], sizes = [2, 240], strides = [1, 1]} : vector<2x256xf32> to vector<2x240xf32>
    %857 = tpu.concatenate %856, %855 in 1 : vector<2x240xf32>, vector<2x16xf32> -> vector<2x256xf32>
    %858 = vector.extract_strided_slice %615 {offsets = [0, 30], sizes = [2, 1], strides = [1, 1]} : vector<2x49xf32> to vector<2x1xf32>
    %859 = vector.broadcast %858 : vector<2x1xf32> to vector<2x256xf32>
    %860 = arith.mulf %859, %857 : vector<2x256xf32>
    %861 = arith.addf %854, %860 : vector<2x256xf32>
    %cst_177 = arith.constant 0.000000e+00 : f32
    %862 = vector.broadcast %cst_177 : f32 to vector<2x16xf32>
    %863 = vector.extract_strided_slice %622 {offsets = [0, 16], sizes = [2, 240], strides = [1, 1]} : vector<2x256xf32> to vector<2x240xf32>
    %864 = tpu.concatenate %863, %862 in 1 : vector<2x240xf32>, vector<2x16xf32> -> vector<2x256xf32>
    %865 = vector.extract_strided_slice %615 {offsets = [0, 31], sizes = [2, 1], strides = [1, 1]} : vector<2x49xf32> to vector<2x1xf32>
    %866 = vector.broadcast %865 : vector<2x1xf32> to vector<2x256xf32>
    %867 = arith.mulf %866, %864 : vector<2x256xf32>
    %868 = arith.addf %861, %867 : vector<2x256xf32>
    %cst_178 = arith.constant 0.000000e+00 : f32
    %869 = vector.broadcast %cst_178 : f32 to vector<2x16xf32>
    %870 = vector.extract_strided_slice %650 {offsets = [0, 16], sizes = [2, 240], strides = [1, 1]} : vector<2x256xf32> to vector<2x240xf32>
    %871 = tpu.concatenate %870, %869 in 1 : vector<2x240xf32>, vector<2x16xf32> -> vector<2x256xf32>
    %872 = vector.extract_strided_slice %615 {offsets = [0, 32], sizes = [2, 1], strides = [1, 1]} : vector<2x49xf32> to vector<2x1xf32>
    %873 = vector.broadcast %872 : vector<2x1xf32> to vector<2x256xf32>
    %874 = arith.mulf %873, %871 : vector<2x256xf32>
    %875 = arith.addf %868, %874 : vector<2x256xf32>
    %cst_179 = arith.constant 0.000000e+00 : f32
    %876 = vector.broadcast %cst_179 : f32 to vector<2x16xf32>
    %877 = vector.extract_strided_slice %657 {offsets = [0, 16], sizes = [2, 240], strides = [1, 1]} : vector<2x256xf32> to vector<2x240xf32>
    %878 = tpu.concatenate %877, %876 in 1 : vector<2x240xf32>, vector<2x16xf32> -> vector<2x256xf32>
    %879 = vector.extract_strided_slice %615 {offsets = [0, 33], sizes = [2, 1], strides = [1, 1]} : vector<2x49xf32> to vector<2x1xf32>
    %880 = vector.broadcast %879 : vector<2x1xf32> to vector<2x256xf32>
    %881 = arith.mulf %880, %878 : vector<2x256xf32>
    %882 = arith.addf %875, %881 : vector<2x256xf32>
    %cst_180 = arith.constant 0.000000e+00 : f32
    %883 = vector.broadcast %cst_180 : f32 to vector<2x16xf32>
    %884 = vector.extract_strided_slice %664 {offsets = [0, 16], sizes = [2, 240], strides = [1, 1]} : vector<2x256xf32> to vector<2x240xf32>
    %885 = tpu.concatenate %884, %883 in 1 : vector<2x240xf32>, vector<2x16xf32> -> vector<2x256xf32>
    %886 = vector.extract_strided_slice %615 {offsets = [0, 34], sizes = [2, 1], strides = [1, 1]} : vector<2x49xf32> to vector<2x1xf32>
    %887 = vector.broadcast %886 : vector<2x1xf32> to vector<2x256xf32>
    %888 = arith.mulf %887, %885 : vector<2x256xf32>
    %889 = arith.addf %882, %888 : vector<2x256xf32>
    %cst_181 = arith.constant 0.000000e+00 : f32
    %890 = vector.broadcast %cst_181 : f32 to vector<2x32xf32>
    %891 = vector.extract_strided_slice %629 {offsets = [0, 32], sizes = [2, 224], strides = [1, 1]} : vector<2x256xf32> to vector<2x224xf32>
    %892 = tpu.concatenate %891, %890 in 1 : vector<2x224xf32>, vector<2x32xf32> -> vector<2x256xf32>
    %893 = vector.extract_strided_slice %615 {offsets = [0, 35], sizes = [2, 1], strides = [1, 1]} : vector<2x49xf32> to vector<2x1xf32>
    %894 = vector.broadcast %893 : vector<2x1xf32> to vector<2x256xf32>
    %895 = arith.mulf %894, %892 : vector<2x256xf32>
    %896 = arith.addf %889, %895 : vector<2x256xf32>
    %cst_182 = arith.constant 0.000000e+00 : f32
    %897 = vector.broadcast %cst_182 : f32 to vector<2x32xf32>
    %898 = vector.extract_strided_slice %636 {offsets = [0, 32], sizes = [2, 224], strides = [1, 1]} : vector<2x256xf32> to vector<2x224xf32>
    %899 = tpu.concatenate %898, %897 in 1 : vector<2x224xf32>, vector<2x32xf32> -> vector<2x256xf32>
    %900 = vector.extract_strided_slice %615 {offsets = [0, 36], sizes = [2, 1], strides = [1, 1]} : vector<2x49xf32> to vector<2x1xf32>
    %901 = vector.broadcast %900 : vector<2x1xf32> to vector<2x256xf32>
    %902 = arith.mulf %901, %899 : vector<2x256xf32>
    %903 = arith.addf %896, %902 : vector<2x256xf32>
    %cst_183 = arith.constant 0.000000e+00 : f32
    %904 = vector.broadcast %cst_183 : f32 to vector<2x32xf32>
    %905 = vector.extract_strided_slice %643 {offsets = [0, 32], sizes = [2, 224], strides = [1, 1]} : vector<2x256xf32> to vector<2x224xf32>
    %906 = tpu.concatenate %905, %904 in 1 : vector<2x224xf32>, vector<2x32xf32> -> vector<2x256xf32>
    %907 = vector.extract_strided_slice %615 {offsets = [0, 37], sizes = [2, 1], strides = [1, 1]} : vector<2x49xf32> to vector<2x1xf32>
    %908 = vector.broadcast %907 : vector<2x1xf32> to vector<2x256xf32>
    %909 = arith.mulf %908, %906 : vector<2x256xf32>
    %910 = arith.addf %903, %909 : vector<2x256xf32>
    %cst_184 = arith.constant 0.000000e+00 : f32
    %911 = vector.broadcast %cst_184 : f32 to vector<2x32xf32>
    %912 = vector.extract_strided_slice %622 {offsets = [0, 32], sizes = [2, 224], strides = [1, 1]} : vector<2x256xf32> to vector<2x224xf32>
    %913 = tpu.concatenate %912, %911 in 1 : vector<2x224xf32>, vector<2x32xf32> -> vector<2x256xf32>
    %914 = vector.extract_strided_slice %615 {offsets = [0, 38], sizes = [2, 1], strides = [1, 1]} : vector<2x49xf32> to vector<2x1xf32>
    %915 = vector.broadcast %914 : vector<2x1xf32> to vector<2x256xf32>
    %916 = arith.mulf %915, %913 : vector<2x256xf32>
    %917 = arith.addf %910, %916 : vector<2x256xf32>
    %cst_185 = arith.constant 0.000000e+00 : f32
    %918 = vector.broadcast %cst_185 : f32 to vector<2x32xf32>
    %919 = vector.extract_strided_slice %650 {offsets = [0, 32], sizes = [2, 224], strides = [1, 1]} : vector<2x256xf32> to vector<2x224xf32>
    %920 = tpu.concatenate %919, %918 in 1 : vector<2x224xf32>, vector<2x32xf32> -> vector<2x256xf32>
    %921 = vector.extract_strided_slice %615 {offsets = [0, 39], sizes = [2, 1], strides = [1, 1]} : vector<2x49xf32> to vector<2x1xf32>
    %922 = vector.broadcast %921 : vector<2x1xf32> to vector<2x256xf32>
    %923 = arith.mulf %922, %920 : vector<2x256xf32>
    %924 = arith.addf %917, %923 : vector<2x256xf32>
    %cst_186 = arith.constant 0.000000e+00 : f32
    %925 = vector.broadcast %cst_186 : f32 to vector<2x32xf32>
    %926 = vector.extract_strided_slice %657 {offsets = [0, 32], sizes = [2, 224], strides = [1, 1]} : vector<2x256xf32> to vector<2x224xf32>
    %927 = tpu.concatenate %926, %925 in 1 : vector<2x224xf32>, vector<2x32xf32> -> vector<2x256xf32>
    %928 = vector.extract_strided_slice %615 {offsets = [0, 40], sizes = [2, 1], strides = [1, 1]} : vector<2x49xf32> to vector<2x1xf32>
    %929 = vector.broadcast %928 : vector<2x1xf32> to vector<2x256xf32>
    %930 = arith.mulf %929, %927 : vector<2x256xf32>
    %931 = arith.addf %924, %930 : vector<2x256xf32>
    %cst_187 = arith.constant 0.000000e+00 : f32
    %932 = vector.broadcast %cst_187 : f32 to vector<2x32xf32>
    %933 = vector.extract_strided_slice %664 {offsets = [0, 32], sizes = [2, 224], strides = [1, 1]} : vector<2x256xf32> to vector<2x224xf32>
    %934 = tpu.concatenate %933, %932 in 1 : vector<2x224xf32>, vector<2x32xf32> -> vector<2x256xf32>
    %935 = vector.extract_strided_slice %615 {offsets = [0, 41], sizes = [2, 1], strides = [1, 1]} : vector<2x49xf32> to vector<2x1xf32>
    %936 = vector.broadcast %935 : vector<2x1xf32> to vector<2x256xf32>
    %937 = arith.mulf %936, %934 : vector<2x256xf32>
    %938 = arith.addf %931, %937 : vector<2x256xf32>
    %cst_188 = arith.constant 0.000000e+00 : f32
    %939 = vector.broadcast %cst_188 : f32 to vector<2x48xf32>
    %940 = vector.extract_strided_slice %629 {offsets = [0, 48], sizes = [2, 208], strides = [1, 1]} : vector<2x256xf32> to vector<2x208xf32>
    %941 = tpu.concatenate %940, %939 in 1 : vector<2x208xf32>, vector<2x48xf32> -> vector<2x256xf32>
    %942 = vector.extract_strided_slice %615 {offsets = [0, 42], sizes = [2, 1], strides = [1, 1]} : vector<2x49xf32> to vector<2x1xf32>
    %943 = vector.broadcast %942 : vector<2x1xf32> to vector<2x256xf32>
    %944 = arith.mulf %943, %941 : vector<2x256xf32>
    %945 = arith.addf %938, %944 : vector<2x256xf32>
    %cst_189 = arith.constant 0.000000e+00 : f32
    %946 = vector.broadcast %cst_189 : f32 to vector<2x48xf32>
    %947 = vector.extract_strided_slice %636 {offsets = [0, 48], sizes = [2, 208], strides = [1, 1]} : vector<2x256xf32> to vector<2x208xf32>
    %948 = tpu.concatenate %947, %946 in 1 : vector<2x208xf32>, vector<2x48xf32> -> vector<2x256xf32>
    %949 = vector.extract_strided_slice %615 {offsets = [0, 43], sizes = [2, 1], strides = [1, 1]} : vector<2x49xf32> to vector<2x1xf32>
    %950 = vector.broadcast %949 : vector<2x1xf32> to vector<2x256xf32>
    %951 = arith.mulf %950, %948 : vector<2x256xf32>
    %952 = arith.addf %945, %951 : vector<2x256xf32>
    %cst_190 = arith.constant 0.000000e+00 : f32
    %953 = vector.broadcast %cst_190 : f32 to vector<2x48xf32>
    %954 = vector.extract_strided_slice %643 {offsets = [0, 48], sizes = [2, 208], strides = [1, 1]} : vector<2x256xf32> to vector<2x208xf32>
    %955 = tpu.concatenate %954, %953 in 1 : vector<2x208xf32>, vector<2x48xf32> -> vector<2x256xf32>
    %956 = vector.extract_strided_slice %615 {offsets = [0, 44], sizes = [2, 1], strides = [1, 1]} : vector<2x49xf32> to vector<2x1xf32>
    %957 = vector.broadcast %956 : vector<2x1xf32> to vector<2x256xf32>
    %958 = arith.mulf %957, %955 : vector<2x256xf32>
    %959 = arith.addf %952, %958 : vector<2x256xf32>
    %cst_191 = arith.constant 0.000000e+00 : f32
    %960 = vector.broadcast %cst_191 : f32 to vector<2x48xf32>
    %961 = vector.extract_strided_slice %622 {offsets = [0, 48], sizes = [2, 208], strides = [1, 1]} : vector<2x256xf32> to vector<2x208xf32>
    %962 = tpu.concatenate %961, %960 in 1 : vector<2x208xf32>, vector<2x48xf32> -> vector<2x256xf32>
    %963 = vector.extract_strided_slice %615 {offsets = [0, 45], sizes = [2, 1], strides = [1, 1]} : vector<2x49xf32> to vector<2x1xf32>
    %964 = vector.broadcast %963 : vector<2x1xf32> to vector<2x256xf32>
    %965 = arith.mulf %964, %962 : vector<2x256xf32>
    %966 = arith.addf %959, %965 : vector<2x256xf32>
    %cst_192 = arith.constant 0.000000e+00 : f32
    %967 = vector.broadcast %cst_192 : f32 to vector<2x48xf32>
    %968 = vector.extract_strided_slice %650 {offsets = [0, 48], sizes = [2, 208], strides = [1, 1]} : vector<2x256xf32> to vector<2x208xf32>
    %969 = tpu.concatenate %968, %967 in 1 : vector<2x208xf32>, vector<2x48xf32> -> vector<2x256xf32>
    %970 = vector.extract_strided_slice %615 {offsets = [0, 46], sizes = [2, 1], strides = [1, 1]} : vector<2x49xf32> to vector<2x1xf32>
    %971 = vector.broadcast %970 : vector<2x1xf32> to vector<2x256xf32>
    %972 = arith.mulf %971, %969 : vector<2x256xf32>
    %973 = arith.addf %966, %972 : vector<2x256xf32>
    %cst_193 = arith.constant 0.000000e+00 : f32
    %974 = vector.broadcast %cst_193 : f32 to vector<2x48xf32>
    %975 = vector.extract_strided_slice %657 {offsets = [0, 48], sizes = [2, 208], strides = [1, 1]} : vector<2x256xf32> to vector<2x208xf32>
    %976 = tpu.concatenate %975, %974 in 1 : vector<2x208xf32>, vector<2x48xf32> -> vector<2x256xf32>
    %977 = vector.extract_strided_slice %615 {offsets = [0, 47], sizes = [2, 1], strides = [1, 1]} : vector<2x49xf32> to vector<2x1xf32>
    %978 = vector.broadcast %977 : vector<2x1xf32> to vector<2x256xf32>
    %979 = arith.mulf %978, %976 : vector<2x256xf32>
    %980 = arith.addf %973, %979 : vector<2x256xf32>
    %cst_194 = arith.constant 0.000000e+00 : f32
    %981 = vector.broadcast %cst_194 : f32 to vector<2x48xf32>
    %982 = vector.extract_strided_slice %664 {offsets = [0, 48], sizes = [2, 208], strides = [1, 1]} : vector<2x256xf32> to vector<2x208xf32>
    %983 = tpu.concatenate %982, %981 in 1 : vector<2x208xf32>, vector<2x48xf32> -> vector<2x256xf32>
    %984 = vector.extract_strided_slice %615 {offsets = [0, 48], sizes = [2, 1], strides = [1, 1]} : vector<2x49xf32> to vector<2x1xf32>
    %985 = vector.broadcast %984 : vector<2x1xf32> to vector<2x256xf32>
    %986 = arith.mulf %985, %983 : vector<2x256xf32>
    %987 = arith.addf %980, %986 : vector<2x256xf32>
    %cst_195 = arith.constant dense<0.000000e+00> : vector<256xf32>
    %988 = vector.multi_reduction <add>, %987, %cst_195 [0] : vector<2x256xf32> to vector<256xf32>
    %989 = vector.shape_cast %988 : vector<256xf32> to vector<1x256xf32>
    %cst_196 = arith.constant 0.000000e+00 : f32
    %990 = vector.broadcast %cst_196 : f32 to vector<1x256xf32>
    %991 = arith.subf %990, %989 : vector<1x256xf32>
    %992 = math.exp %991 : vector<1x256xf32>
    %cst_197 = arith.constant 1.000000e+00 : f32
    %993 = vector.broadcast %cst_197 : f32 to vector<1x256xf32>
    %994 = arith.addf %993, %992 : vector<1x256xf32>
    %cst_198 = arith.constant 1.000000e+00 : f32
    %995 = vector.broadcast %cst_198 : f32 to vector<1x256xf32>
    %996 = arith.divf %995, %994 : vector<1x256xf32>
    %997 = vector.broadcast %996 : vector<1x256xf32> to vector<32x256xf32>
    %998 = arith.mulf %614, %997 : vector<32x256xf32>
    %c0_199 = arith.constant 0 : index
    %c0_200 = arith.constant 0 : index
    %c0_201 = arith.constant 0 : index
    %999 = vector.load %arg18[%c0_199, %c0_200, %c0_201] : memref<1x32x256xf32, #tpu.memory_space<vmem>>, vector<1x32x256xf32>
    %1000 = vector.shape_cast %999 : vector<1x32x256xf32> to vector<32x256xf32>
    %1001 = vector.shape_cast %998 : vector<32x256xf32> to vector<1x32x256xf32>
    tpu.vector_store %arg18[%c0_199, %c0_200, %c0_201], %1001 {strides = array<i32>} : memref<1x32x256xf32, #tpu.memory_space<vmem>>, vector<1x32x256xf32>,
    return
  }
  func.func @transform_0(%arg0: i32) -> (i32, i32, i32) {
    %c0_i32 = arith.constant 0 : i32
    %c0_i32_0 = arith.constant 0 : i32
    %c0_i32_1 = arith.constant 0 : i32
    return %arg0, %c0_i32, %c0_i32_0 : i32, i32, i32
  }
  func.func @transform_1(%arg0: i32) -> (i32, i32) {
    %c0_i32 = arith.constant 0 : i32
    %c0_i32_0 = arith.constant 0 : i32
    %c0_i32_1 = arith.constant 0 : i32
    return %c0_i32, %c0_i32_0 : i32, i32
  }
  func.func @transform_2(%arg0: i32) -> (i32, i32) {
    %c0_i32 = arith.constant 0 : i32
    %c0_i32_0 = arith.constant 0 : i32
    %c0_i32_1 = arith.constant 0 : i32
    return %c0_i32, %c0_i32_0 : i32, i32
  }
  func.func @transform_3(%arg0: i32) -> (i32, i32) {
    %c0_i32 = arith.constant 0 : i32
    %c0_i32_0 = arith.constant 0 : i32
    %c0_i32_1 = arith.constant 0 : i32
    return %c0_i32, %c0_i32_0 : i32, i32
  }
  func.func @transform_4(%arg0: i32) -> (i32, i32) {
    %c0_i32 = arith.constant 0 : i32
    %c0_i32_0 = arith.constant 0 : i32
    %c0_i32_1 = arith.constant 0 : i32
    return %c0_i32, %c0_i32_0 : i32, i32
  }
  func.func @transform_5(%arg0: i32) -> (i32, i32) {
    %c0_i32 = arith.constant 0 : i32
    %c0_i32_0 = arith.constant 0 : i32
    %c0_i32_1 = arith.constant 0 : i32
    return %c0_i32, %c0_i32_0 : i32, i32
  }
  func.func @transform_6(%arg0: i32) -> (i32, i32) {
    %c0_i32 = arith.constant 0 : i32
    %c0_i32_0 = arith.constant 0 : i32
    %c0_i32_1 = arith.constant 0 : i32
    return %c0_i32, %c0_i32_0 : i32, i32
  }
  func.func @transform_7(%arg0: i32) -> (i32, i32) {
    %c0_i32 = arith.constant 0 : i32
    %c0_i32_0 = arith.constant 0 : i32
    %c0_i32_1 = arith.constant 0 : i32
    return %c0_i32, %c0_i32_0 : i32, i32
  }
  func.func @transform_8(%arg0: i32) -> (i32, i32) {
    %c0_i32 = arith.constant 0 : i32
    %c0_i32_0 = arith.constant 0 : i32
    %c0_i32_1 = arith.constant 0 : i32
    return %c0_i32, %c0_i32_0 : i32, i32
  }
  func.func @transform_9(%arg0: i32) -> (i32, i32) {
    %c0_i32 = arith.constant 0 : i32
    %c0_i32_0 = arith.constant 0 : i32
    %c0_i32_1 = arith.constant 0 : i32
    return %c0_i32, %c0_i32_0 : i32, i32
  }
  func.func @transform_10(%arg0: i32) -> (i32, i32) {
    %c0_i32 = arith.constant 0 : i32
    %c0_i32_0 = arith.constant 0 : i32
    %c0_i32_1 = arith.constant 0 : i32
    return %c0_i32, %c0_i32_0 : i32, i32
  }
  func.func @transform_11(%arg0: i32) -> (i32, i32) {
    %c0_i32 = arith.constant 0 : i32
    %c0_i32_0 = arith.constant 0 : i32
    %c0_i32_1 = arith.constant 0 : i32
    return %c0_i32, %c0_i32_0 : i32, i32
  }
  func.func @transform_12(%arg0: i32) -> (i32, i32) {
    %c0_i32 = arith.constant 0 : i32
    %c0_i32_0 = arith.constant 0 : i32
    %c0_i32_1 = arith.constant 0 : i32
    return %c0_i32, %c0_i32_0 : i32, i32
  }
  func.func @transform_13(%arg0: i32) -> (i32, i32) {
    %c0_i32 = arith.constant 0 : i32
    %c0_i32_0 = arith.constant 0 : i32
    %c0_i32_1 = arith.constant 0 : i32
    return %c0_i32, %c0_i32_0 : i32, i32
  }
  func.func @transform_14(%arg0: i32) -> (i32, i32) {
    %c0_i32 = arith.constant 0 : i32
    %c0_i32_0 = arith.constant 0 : i32
    %c0_i32_1 = arith.constant 0 : i32
    return %c0_i32, %c0_i32_0 : i32, i32
  }
  func.func @transform_15(%arg0: i32) -> (i32, i32) {
    %c0_i32 = arith.constant 0 : i32
    %c0_i32_0 = arith.constant 0 : i32
    %c0_i32_1 = arith.constant 0 : i32
    return %c0_i32, %c0_i32_0 : i32, i32
  }
  func.func @transform_16(%arg0: i32) -> (i32, i32) {
    %c0_i32 = arith.constant 0 : i32
    %c0_i32_0 = arith.constant 0 : i32
    %c0_i32_1 = arith.constant 0 : i32
    return %c0_i32, %c0_i32_0 : i32, i32
  }
  func.func @transform_17(%arg0: i32) -> (i32, i32, i32) {
    %c0_i32 = arith.constant 0 : i32
    %c0_i32_0 = arith.constant 0 : i32
    %c0_i32_1 = arith.constant 0 : i32
    return %arg0, %c0_i32, %c0_i32_0 : i32, i32, i32
  }
}

</mosaic_0001>

<bundles_post_ra>
// kernel: mcs_sepconv1_forward.1
= control target key start
LH: loop header
LB: loop body
LE: loop exit
PB: predicated region body
PF: predicated region fallthrough
CT: control target
= control target key end

     0   :  { %s4432_s24 = smov 0   ;;  %s6987_s0 = inlined_call_operand.vmem [shape: f32[2,32,256], index: 0, kind: input, shape index: {}]   ;;  %s6988_s1 = inlined_call_operand.vmem [shape: f32[32,2], index: 1, kind: input, shape index: {}]   ;;  %s6989_s2 = inlined_call_operand.vmem [shape: f32[32,2], index: 2, kind: input, shape index: {}]   ;;  %s6990_s3 = inlined_call_operand.vmem [shape: f32[2,49], index: 3, kind: input, shape index: {}]   ;;  %s6991_s4 = inlined_call_operand.vmem [shape: f32[32,32], index: 4, kind: input, shape index: {}]   ;;  %s6992_s5 = inlined_call_operand.vmem [shape: f32[32,3], index: 5, kind: input, shape index: {}]   ;;  %s6993_s6 = inlined_call_operand.vmem [shape: f32[32,3], index: 6, kind: input, shape index: {}]   ;;  %s6994_s7 = inlined_call_operand.vmem [shape: f32[32,1], index: 7, kind: input, shape index: {}]   ;;  %s6995_s8 = inlined_call_operand.vmem [shape: f32[32,1], index: 8, kind: input, shape index: {}]   ;;  %s6996_s9 = inlined_call_operand.vmem [shape: f32[32,3], index: 9, kind: input, shape index: {}]   ;;  %s6997_s10 = inlined_call_operand.vmem [shape: f32[32,3], index: 10, kind: input, shape index: {}]   ;;  %s6998_s11 = inlined_call_operand.vmem [shape: f32[32,32], index: 11, kind: input, shape index: {}]   ;;  %s6999_s12 = inlined_call_operand.vmem [shape: f32[32,1], index: 12, kind: input, shape index: {}]   ;;  %s7000_s13 = inlined_call_operand.vmem [shape: f32[32,1], index: 13, kind: input, shape index: {}]   ;;  %s7001_s14 = inlined_call_operand.vmem [shape: f32[32,2], index: 14, kind: input, shape index: {}]   ;;  %s7002_s15 = inlined_call_operand.vmem [shape: f32[32,2], index: 15, kind: input, shape index: {}]   ;;  %s7003_s16 = inlined_call_operand.vmem [shape: f32[2,49], index: 16, kind: input, shape index: {}]   ;;  %s7004_s17 = inlined_call_operand.vmem [shape: f32[2,32,256], index: 17, kind: output, shape index: {}]  }
   0x1   :  { %7178 = sst [smem:[#allocation59_spill]] %s6987_s0 }
   0x2   :  { %7179 = sst [smem:[#allocation60_spill]] %s6988_s1 }
   0x3 LB: > { %s3985_s25 = sadd.s32 4294967295, %s4278_s24   ;;  %p3989_p0 = scmp.ge.s32.totalorder %s4278_s24, 1  ;;  %s4278_s24 = sphi %s4432_s24, %s27_s24  }
   0x4   : > { %p487_p1 = scmp.lt.s32.totalorder %s4278_s24, 3 }
   0x6   : > { %p488_p2 = pnand %p3989_p0, %p487_p1 }
   0x8   : > { %491 = sbr.rel (%p488_p2) target bundleno = 3220 (0xc94), region = 88 }
   0xd   : > { %p539_p3 = scmp.lt.s32.totalorder %s3985_s25, 1  ;;  %v7060_v0 = vmov 0   ;;  %s7180_s29 = sld [smem:[#allocation59_spill]]  ;;  %v7053_v19 = vmov 1   ;;  %v601_v20 = vld [vmem:[%s6989_s2 + $0x8] sm:$0xff]  ;;  %v603_v22 = vld [vmem:[%s6989_s2 + $0x18] sm:$0xff] }
   0xe   : > { %4077 = vset.pattern.permute.xlu1 %v7060_v0  ;;  %4076 = vset.pattern.permute.xlu0 %v7060_v0  ;;  %s7181_s19 = sld [smem:[#allocation60_spill]]  ;;  %v4508_v24 = vld [vmem:[%s6990_s3] sm:$0x3]  ;;  %v7043_v25 = vmov 4   ;;  %v7041_v27 = vmov 5   ;;  %v7039_v28 = vmov 6  }
   0xf   : > { %s7465_s25 = smov (!%p539_p3, %s3985_s25), 1  ;;  %v600_v26 = vld [vmem:[%s6989_s2] sm:$0xff]  ;;  %v602_v29 = vld [vmem:[%s6989_s2 + $0x10] sm:$0xff]  ;;  %v7038_v30 = vmov 7   ;;  %v7031_v31 = vmov 8   ;;  %v7030_v32 = vmov 9  }
  0x10   : > { %s7037_s26 = sshll.u32 %s7465_s25, 6  ;;  %v7048_v33 = vmov 2   ;;  %v7045_v34 = vmov 3   ;;  %vm633_vm0 = vcmask 7168   ;;  %vm662_vm1 = vcmask 15360   ;;  %s7138_s27 = smov 127  }
  0x11   : > { %vm875_vm2 = vcmask 1040384   ;;  %s7136_s28 = smov 3   ;;  %s7132_s30 = smov 126   ;;  %vm884_vm3 = vcmask 23552   ;;  %vm927_vm10 = vcmask 1039360   ;;  %vm7052_vm13 = vcmask 1031168  }
  0x12   : > { %s7130_s18 = smov 125   ;;  %s7125_s1 = smov 48  }
  0x13   : > { %s543_s0 = scalar_lea.vmem %s7180_s29, %s7037_s26  ;;  %s7134_s29 = smov 2  }
  0x14   : > { %v4450_v1 = vld [vmem:[%s543_s0 + $0x20] sm:$0xff]  ;;  %v4452_v2 = vld [vmem:[%s543_s0 + $0x28] sm:$0xff]  ;;  %v4460_v6 = vld [vmem:[%s543_s0 + $0x10] sm:$0xff]  ;;  %s7123_s20 = smov 32   ;;  %s7144_s21 = smov 16  }
  0x15   : > { %v4454_v3 = vld [vmem:[%s543_s0] sm:$0xff]  ;;  %v610_v4 = vadd.f32 %v4452_v2, %v4450_v1  ;;  %v4458_v5 = vld [vmem:[%s543_s0 + $0x8] sm:$0xff]  ;;  %v4462_v7 = vld [vmem:[%s543_s0 + $0x18] sm:$0xff]  ;;  %v627_v16 = vmax.f32 %v4450_v1, %v4452_v2  ;;  %s7142_s22 = smov 112   ;;  %s7121_s23 = smov 96  }
  0x16   : > { %v604_v8 = vadd.f32 %v4458_v5, %v4454_v3  ;;  %v621_v9 = vmax.f32 %v4454_v3, %v4458_v5  ;;  %v607_v10 = vadd.f32 %v4462_v7, %v4460_v6  ;;  %v4470_v11 = vld [vmem:[%s543_s0 + $0x30] sm:$0xff]  ;;  %v4472_v12 = vld [vmem:[%s543_s0 + $0x38] sm:$0xff]  ;;  %v624_v14 = vmax.f32 %v4460_v6, %v4462_v7  ;;  %v597_v17 = vld [vmem:[%s7181_s19 + $0x8] sm:$0xff]  ;;  %s7140_s0 = smov 1   ;;  %s7119_s26 = smov 80  }
  0x17   : > { %611 = vadd.xlane.f32.xlu1 %v610_v4  ;;  %v613_v13 = vadd.f32 %v4472_v12, %v4470_v11  ;;  %v630_v15 = vmax.f32 %v4470_v11, %v4472_v12  ;;  %v596_v18 = vld [vmem:[%s7181_s19] sm:$0xff]  ;;  %v598_v21 = vld [vmem:[%s7181_s19 + $0x10] sm:$0xff]  ;;  %v599_v23 = vld [vmem:[%s7181_s19 + $0x18] sm:$0xff] }
  0x18   : > { %605 = vadd.xlane.f32.xlu0 %v604_v8 }
  0x1b   : > { %622 = vmax.xlane.f32.xlu1 %v621_v9 }
  0x1c   : > { %608 = vadd.xlane.f32.xlu0 %v607_v10 }
  0x1f   : > { %614 = vadd.xlane.f32.xlu1 %v613_v13 }
  0x20   : > { %625 = vmax.xlane.f32.xlu0 %v624_v14 }
  0x23   : > { %631 = vmax.xlane.f32.xlu1 %v630_v15 }
  0x24   : > { %628 = vmax.xlane.f32.xlu0 %v627_v16 }
  0x34   : > { %645 = vperm.xlu1 %4077, %v597_v17  }
  0x38   : > { %4078 = vset.pattern.permute.xlu1 %v7053_v19 }
  0x39   : > { %706 = vperm.xlu1 %4078, %v596_v18  }
  0x3a   : > { %640 = vperm.xlu0 %4076, %v596_v18  }
  0x3d   : > { %710 = vperm.xlu1 %4078, %v597_v17  }
  0x3e   : > { %4085 = vset.pattern.permute.xlu0 %v7053_v19 }
  0x3f   : > { %744 = vperm.xlu0 %4085, %v601_v20  }
  0x41   : > { %4079 = vset.pattern.permute.xlu1 %v7060_v0 }
  0x42   : > { %650 = vperm.xlu1 %4079, %v598_v21  }
  0x43   : > { %4086 = vset.pattern.permute.xlu0 %v7060_v0 }
  0x44   : > { %684 = vperm.xlu0 %4086, %v601_v20  }
  0x46   : > { %4080 = vset.pattern.permute.xlu1 %v7053_v19 }
  0x47   : > { %714 = vperm.xlu1 %4080, %v598_v21  }
  0x48   : > { %694 = vperm.xlu0 %4086, %v603_v22  }
  0x4b   : > { %4081 = vset.pattern.permute.xlu1 %v7060_v0 }
  0x4c   : > { %655 = vperm.xlu1 %4081, %v599_v23   ;;  %4090 = vset.pattern.permute.xlu0 %v7053_v19 }
  0x4d   : > { %999 = vperm.xlu0 %4090, %v4508_v24  }
  0x50   : > { %4082 = vset.pattern.permute.xlu1 %v7053_v19 }
  0x51   : > { %718 = vperm.xlu1 %4082, %v599_v23   ;;  %4093 = vset.pattern.permute.xlu0 %v7043_v25 }
  0x52   : > { %1051 = vperm.xlu0 %4093, %v4508_v24  }
  0x55   : > { %4083 = vset.pattern.permute.xlu1 %v7060_v0 }
  0x56   : > { %679 = vperm.xlu1 %4083, %v600_v26   ;;  %4094 = vset.pattern.permute.xlu0 %v7041_v27 }
  0x57   : > { %1069 = vperm.xlu0 %4094, %v4508_v24  }
  0x5a   : > { %4084 = vset.pattern.permute.xlu1 %v7053_v19 }
  0x5b   : > { %740 = vperm.xlu1 %4084, %v600_v26   ;;  %4095 = vset.pattern.permute.xlu0 %v7039_v28  ;;  %v7042_v28 = vmov 40  }
  0x5c   : > { %1087 = vperm.xlu0 %4095, %v4508_v24  }
  0x5f   : > { %4087 = vset.pattern.permute.xlu1 %v7060_v0 }
  0x60   : > { %689 = vperm.xlu1 %4087, %v602_v29   ;;  %4096 = vset.pattern.permute.xlu0 %v7038_v30 }
  0x61   : > { %1104 = vperm.xlu0 %4096, %v4508_v24  }
  0x64   : > { %4088 = vset.pattern.permute.xlu1 %v7053_v19 }
  0x65   : > { %748 = vperm.xlu1 %4088, %v602_v29   ;;  %4097 = vset.pattern.permute.xlu0 %v7031_v31 }
  0x66   : > { %1120 = vperm.xlu0 %4097, %v4508_v24  }
  0x69   : > { %752 = vperm.xlu1 %4088, %v603_v22  }
  0x6a   : > { %4098 = vset.pattern.permute.xlu0 %v7030_v32 }
  0x6d   : > { %4089 = vset.pattern.permute.xlu1 %v7060_v0 }
  0x6e   : > { %981 = vperm.xlu1 %4089, %v4508_v24  }
  0x72   : > { %4091 = vset.pattern.permute.xlu1 %v7048_v33 }
  0x73   : > { %1017 = vperm.xlu1 %4091, %v4508_v24  }
  0x77   : > { %4092 = vset.pattern.permute.xlu1 %v7045_v34  ;;  %v7051_v34 = vmov 43  }
  0x78   : > { %1033 = vperm.xlu1 %4092, %v4508_v24  }
  0x7c   : > { %4109 = vset.pattern.permute.xlu1 %v7060_v0 }
  0xa0   : > { %v612_v35 = vpop.xlane.xlu1 %611 }
  0xa1   : > { %v606_v37 = vpop.xlane.xlu0 %605  ;;  %v619_v50 = vmul.f32 0.00390625, %v612_v35 }
  0xa2   : > { %v617_v46 = vmul.f32 0.00390625, %v606_v37 }
  0xa4   : > { %v623_v36 = vpop.xlane.xlu1 %622 }
  0xa5   : > { %v609_v40 = vpop.xlane.xlu0 %608  ;;  %v634_v51 = vsel %vm633_vm0, %v617_v46, %v623_v36 }
  0xa6   : > { %v618_v47 = vmul.f32 0.00390625, %v609_v40 }
  0xa8   : > { %v615_v38 = vpop.xlane.xlu1 %614 }
  0xa9   : > { %v626_v42 = vpop.xlane.xlu0 %625  ;;  %v620_v59 = vmul.f32 0.00390625, %v615_v38 }
  0xaa   : > { %v635_v52 = vsel %vm633_vm0, %v618_v47, %v626_v42 }
  0xac   : > { %v632_v39 = vpop.xlane.xlu1 %631 }
  0xad   : > { %v629_v45 = vpop.xlane.xlu0 %628  ;;  %v637_v63 = vsel %vm633_vm0, %v620_v59, %v632_v39 }
  0xae   : > { %v636_v54 = vsel %vm633_vm0, %v619_v50, %v629_v45 }
  0xb0   : > { %v646_v41 = vpop.permute.xlu1 %645 }
  0xb1   : > { %v659_v55 = vmul.f32 %v646_v41, %v635_v52 }
  0xb3   : > { %v664_v61 = vsel %vm662_vm1, %v659_v55, 0.0 }
  0xb4   : > { %v707_v43 = vpop.permute.xlu1 %706 }
  0xb5   : > { %v641_v48 = vpop.permute.xlu0 %640  ;;  %v721_v4 = vmul.f32 %v707_v43, %v634_v51 }
  0xb6   : > { %v658_v53 = vmul.f32 %v641_v48, %v634_v51 }
  0xb7   : > { %v725_v17 = vsel %vm662_vm1, %v721_v4, 0.0 }
  0xb8   : > { %v711_v44 = vpop.permute.xlu1 %710  ;;  %v663_v58 = vsel %vm662_vm1, %v658_v53, 0.0 }
  0xb9   : > { %v722_v60 = vmul.f32 %v711_v44, %v635_v52  ;;  %v665_v8 = vadd.f32 %v664_v61, %v663_v58 }
  0xba   : > { %v745_v45 = vpop.permute.xlu0 %744 }
  0xbb   : > { %v726_v14 = vsel %vm662_vm1, %v722_v60, 0.0 }
  0xbc   : > { %v727_v21 = vadd.f32 %v726_v14, %v725_v17  ;;  %v7027_v17 = vmov 12  }
  0xbd   : > { %v651_v49 = vpop.permute.xlu1 %650 }
  0xbe   : > { %v660_v56 = vmul.f32 %v651_v49, %v636_v54 }
  0xbf   : > { %v685_v53 = vpop.permute.xlu0 %684 }
  0xc0   : > { %v666_v62 = vsel %vm662_vm1, %v660_v56, 0.0 }
  0xc1   : > { %v667_v15 = vadd.f32 %v666_v62, %v665_v8 }
  0xc2   : > { %v715_v57 = vpop.permute.xlu1 %714 }
  0xc3   : > { %v723_v9 = vmul.f32 %v715_v57, %v636_v54  ;;  %v695_v62 = vpop.permute.xlu0 %694 }
  0xc5   : > { %v728_v18 = vsel %vm662_vm1, %v723_v9, 0.0 }
  0xc6   : > { %v729_v29 = vadd.f32 %v728_v18, %v727_v21  ;;  %v7026_v18 = vmov 13   ;;  %v7024_v21 = vmov 15  }
  0xc7   : > { %v656_v10 = vpop.permute.xlu1 %655 }
  0xc8   : > { %v661_v13 = vmul.f32 %v656_v10, %v637_v63 }
  0xca   : > { %v668_v16 = vsel %vm662_vm1, %v661_v13, 0.0 }
  0xcb   : > { %v669_v20 = vadd.f32 %v668_v16, %v667_v15  ;;  %v7029_v15 = vmov 10   ;;  %v7028_v16 = vmov 11  }
  0xcc   : > { %v719_v22 = vpop.permute.xlu1 %718 }
  0xcd   : > { %v670_v23 = vrot.slane %v669_v20, 4  ;;  %v724_v26 = vmul.f32 %v719_v22, %v637_v63  ;;  %v7023_v22 = vmov 16  }
  0xcf   : > { %v671_v35 = vadd.f32 %v670_v23, %v669_v20  ;;  %v730_v36 = vsel %vm662_vm1, %v724_v26, 0.0  ;;  %v7025_v20 = vmov 14   ;;  %v7022_v23 = vmov 17  }
  0xd0   : > { %v731_v37 = vadd.f32 %v730_v36, %v729_v29  ;;  %v7021_v26 = vmov 18   ;;  %v7019_v29 = vmov 19  }
  0xd1   : > { %v672_v38 = vrot.slane %v671_v35, 2  ;;  %v680_v39 = vpop.permute.xlu1 %679 }
  0xd2   : > { %v732_v40 = vrot.slane %v731_v37, 4 }
  0xd3   : > { %v673_v41 = vadd.f32 %v672_v38, %v671_v35  ;;  %v4580_v35 = vpop.permute.xlu0 %999 }
  0xd4   : > { %v733_v42 = vadd.f32 %v732_v40, %v731_v37 }
  0xd5   : > { %v674_v43 = vrot.slane %v673_v41, 1 }
  0xd6   : > { %v734_v44 = vrot.slane %v733_v42, 2  ;;  %v741_v46 = vpop.permute.xlu1 %740 }
  0xd7   : > { %v675_v48 = vadd.f32 %v674_v43, %v673_v41  ;;  %v4582_v36 = vpop.permute.xlu0 %1051 }
  0xd8   : > { %v735_v47 = vadd.f32 %v734_v44, %v733_v42 }
  0xd9   : > { %v676_v51 = vmax.f32 %v675_v48, 0.0 }
  0xda   : > { %v736_v49 = vrot.slane %v735_v47, 1 }
  0xdb   : > { %v690_v50 = vpop.permute.xlu1 %689  ;;  %v697_v55 = vmul.f32 %v680_v39, %v676_v51  ;;  %v698_v57 = vmul.f32 %v685_v53, %v676_v51  ;;  %v700_v9 = vmul.f32 %v695_v62, %v676_v51  ;;  %v4584_v37 = vpop.permute.xlu0 %1069 }
  0xdc   : > { %v737_v52 = vadd.f32 %v736_v49, %v735_v47  ;;  %v699_v4 = vmul.f32 %v690_v50, %v676_v51 }
  0xde   : > { %v738_v54 = vmax.f32 %v737_v52, 0.0 }
  0xdf   : > { %v4588_v39 = vpop.permute.xlu0 %1087 }
  0xe0   : > { %v756_v56 = vmul.f32 %v745_v45, %v738_v54  ;;  %v755_v58 = vmul.f32 %v741_v46, %v738_v54  ;;  %v749_v59 = vpop.permute.xlu1 %748 }
  0xe1   : > { %v757_v63 = vmul.f32 %v749_v59, %v738_v54 }
  0xe2   : > { %v760_v60 = vadd.f32 %v756_v56, %v698_v57  ;;  %v759_v61 = vadd.f32 %v755_v58, %v697_v55 }
  0xe3   : > { %v761_v13 = vadd.f32 %v757_v63, %v699_v4  ;;  %v4592_v41 = vpop.permute.xlu0 %1104 }
  0xe4   : > { %v753_v8 = vpop.permute.xlu1 %752  ;;  %767 = vrot.lane.b32.xlu1 %v759_v61, %s7138_s27  ;;  %769 = vrot.lane.b32.xlu0 %v760_v60, %s7138_s27 }
  0xe5   : > { %v758_v10 = vmul.f32 %v753_v8, %v738_v54 }
  0xe7   : > { %v762_v14 = vadd.f32 %v758_v10, %v700_v9  ;;  %v4596_v43 = vpop.permute.xlu0 %1120 }
  0xe8   : > { %771 = vrot.lane.b32.xlu1 %v761_v13, %s7138_s27 }
  0xe9   : > { %773 = vrot.lane.b32.xlu0 %v762_v14, %s7138_s27  ;;  %v4586_v38 = vpop.permute.xlu1 %981 }
  0xed   : > { %1136 = vperm.xlu0 %4098, %v4508_v24  }
  0xee   : > { %v4590_v40 = vpop.permute.xlu1 %1017 }
  0xf1   : > { %4099 = vset.pattern.permute.xlu0 %v7029_v15 }
  0xf2   : > { %1152 = vperm.xlu0 %4099, %v4508_v24  }
  0xf3   : > { %v4594_v42 = vpop.permute.xlu1 %1033 }
  0xf6   : > { %4100 = vset.pattern.permute.xlu0 %v7028_v16 }
  0xf7   : > { %1168 = vperm.xlu0 %4100, %v4508_v24  }
  0xfb   : > { %4101 = vset.pattern.permute.xlu0 %v7027_v17 }
  0xfc   : > { %1184 = vperm.xlu0 %4101, %v4508_v24  }
 0x100   : > { %4102 = vset.pattern.permute.xlu0 %v7026_v18 }
 0x101   : > { %1200 = vperm.xlu0 %4102, %v4508_v24  }
 0x105   : > { %4103 = vset.pattern.permute.xlu0 %v7025_v20 }
 0x106   : > { %1217 = vperm.xlu0 %4103, %v4508_v24  }
 0x10a   : > { %4104 = vset.pattern.permute.xlu0 %v7024_v21 }
 0x10b   : > { %1233 = vperm.xlu0 %4104, %v4508_v24  }
 0x10f   : > { %4105 = vset.pattern.permute.xlu0 %v7023_v22 }
 0x110   : > { %1249 = vperm.xlu0 %4105, %v4508_v24  }
 0x114   : > { %4106 = vset.pattern.permute.xlu0 %v7022_v23 }
 0x115   : > { %1265 = vperm.xlu0 %4106, %v4508_v24  }
 0x119   : > { %4107 = vset.pattern.permute.xlu0 %v7021_v26 }
 0x11a   : > { %1281 = vperm.xlu0 %4107, %v4508_v24  }
 0x11e   : > { %4108 = vset.pattern.permute.xlu0 %v7019_v29 }
 0x11f   : > { %1297 = vperm.xlu0 %4108, %v4508_v24  }
 0x123   : > { %4110 = vset.pattern.permute.xlu0 %v7060_v0 }
 0x156   : > { %v768_v44 = vpop.permute.xlu1 %767  ;;  %v770_v45 = vpop.permute.xlu0 %769 }
 0x157   : > { %v779_v46 = vadd.f32 %v768_v44, %v759_v61  ;;  %v780_v47 = vadd.f32 %v770_v45, %v760_v60 }
 0x159   : > { %v783_v48 = vsub.f32 0.0, %v779_v46  ;;  %v784_v49 = vsub.f32 0.0, %v780_v47  ;;  %v7015_v46 = vmov 23   ;;  %v7017_v47 = vmov 20  }
 0x15a   : > { %v772_v50 = vpop.permute.xlu1 %771 }
 0x15b   : > { %v787_v51 = vmul.f32 1.442695, %v783_v48  ;;  %v789_v52 = vmul.f32 1.442695, %v784_v49  ;;  %v781_v53 = vadd.f32 %v772_v50, %v761_v13  ;;  %v774_v54 = vpop.permute.xlu0 %773  ;;  %v7016_v48 = vmov 24  }
 0x15c   : > { %v782_v55 = vadd.f32 %v774_v54, %v762_v14  ;;  %v7020_v49 = vmov 21   ;;  %v7013_v50 = vmov 26   ;;  %v7011_v54 = vmov 29  }
 0x15d   : > { %4224 = vpow2.f32 %v787_v51  ;;  %v785_v56 = vsub.f32 0.0, %v781_v53  ;;  %v7018_v51 = vmov 22   ;;  %v7014_v53 = vmov 25  }
 0x15e   : > { %4226 = vpow2.f32 %v789_v52  ;;  %v786_v57 = vsub.f32 0.0, %v782_v55  ;;  %v7012_v52 = vmov 27   ;;  %v7010_v55 = vmov 28  }
 0x15f   : > { %v791_v58 = vmul.f32 1.442695, %v785_v56  ;;  %v7008_v56 = vmov 30  }
 0x160   : > { %v793_v59 = vmul.f32 1.442695, %v786_v57  ;;  %v7006_v57 = vmov 31  }
 0x161   : > { %4228 = vpow2.f32 %v791_v58  ;;  %v7009_v58 = vmov 32  }
 0x162   : > { %4230 = vpow2.f32 %v793_v59 }
 0x168   : > { %v4625_v59 = vpop.permute.xlu0 %1136 }
 0x16a   : > { %v4225_v62 = vpop.eup %4224 }
 0x16b   : > { %v4227_v63 = vpop.eup %4226  ;;  %v795_v61 = vadd.f32 1.0, %v4225_v62 }
 0x16c   : > { %v796_v60 = vadd.f32 1.0, %v4227_v63 }
 0x16d   : > { %4232 = vrcp.f32 %v795_v61  ;;  %v4627_v62 = vpop.permute.xlu0 %1152  ;;  %v7007_v61 = vmov 33  }
 0x16e   : > { %v4229_v4 = vpop.eup %4228  ;;  %4234 = vrcp.f32 %v796_v60 }
 0x16f   : > { %v4231_v8 = vpop.eup %4230  ;;  %v797_v9 = vadd.f32 1.0, %v4229_v4 }
 0x170   : > { %v798_v10 = vadd.f32 1.0, %v4231_v8 }
 0x171   : > { %4236 = vrcp.f32 %v797_v9 }
 0x172   : > { %4238 = vrcp.f32 %v798_v10  ;;  %v4629_v63 = vpop.permute.xlu0 %1168 }
 0x177   : > { %v4632_v60 = vpop.permute.xlu0 %1184 }
 0x17a   : > { %v4233_v13 = vpop.eup %4232 }
 0x17b   : > { %v4235_v14 = vpop.eup %4234  ;;  %809 = vperm.xlu1 %4109, %v4233_v13  }
 0x17c   : > { %814 = vperm.xlu0 %4110, %v4235_v14   ;;  %v4634_v4 = vpop.permute.xlu0 %1200 }
 0x17e   : > { %v4237_v44 = vpop.eup %4236 }
 0x17f   : > { %v4239_v45 = vpop.eup %4238  ;;  %819 = vperm.xlu1 %4109, %v4237_v44  }
 0x180   : > { %824 = vperm.xlu0 %4110, %v4239_v45  }
 0x181   : > { %v4636_v8 = vpop.permute.xlu0 %1217 }
 0x183   : > { %4114 = vset.pattern.permute.xlu1 %v7015_v46 }
 0x184   : > { %1337 = vperm.xlu1 %4114, %v4508_v24   ;;  %4111 = vset.pattern.permute.xlu0 %v7017_v47 }
 0x185   : > { %1313 = vperm.xlu0 %4111, %v4508_v24  }
 0x186   : > { %v4638_v9 = vpop.permute.xlu0 %1233 }
 0x188   : > { %4115 = vset.pattern.permute.xlu1 %v7016_v48 }
 0x189   : > { %1345 = vperm.xlu1 %4115, %v4508_v24   ;;  %4112 = vset.pattern.permute.xlu0 %v7020_v49 }
 0x18a   : > { %1321 = vperm.xlu0 %4112, %v4508_v24  }
 0x18b   : > { %v4640_v10 = vpop.permute.xlu0 %1249 }
 0x18c   : > { %7182 = vst [vmem:[#allocation2_spill] sm:$0xff] %v4640_v10 }
 0x18d   : > { %4117 = vset.pattern.permute.xlu1 %v7013_v50 }
 0x18e   : > { %4113 = vset.pattern.permute.xlu0 %v7018_v51  ;;  %1361 = vperm.xlu1 %4117, %v4508_v24  }
 0x18f   : > { %1329 = vperm.xlu0 %4113, %v4508_v24  }
 0x190   : > { %v4642_v13 = vpop.permute.xlu0 %1265 }
 0x191   : > { %7183 = vst [vmem:[#allocation3_spill] sm:$0xff] %v4642_v13 }
 0x192   : > { %4118 = vset.pattern.permute.xlu1 %v7012_v52 }
 0x193   : > { %4116 = vset.pattern.permute.xlu0 %v7014_v53  ;;  %1369 = vperm.xlu1 %4118, %v4508_v24  }
 0x194   : > { %1353 = vperm.xlu0 %4116, %v4508_v24  }
 0x195   : > { %v4644_v14 = vpop.permute.xlu0 %1281 }
 0x196   : > { %7184 = vst [vmem:[#allocation4_spill] sm:$0xff] %v4644_v14 }
 0x197   : > { %4120 = vset.pattern.permute.xlu1 %v7011_v54 }
 0x198   : > { %4119 = vset.pattern.permute.xlu0 %v7010_v55  ;;  %1402 = vperm.xlu1 %4120, %v4508_v24  }
 0x199   : > { %1386 = vperm.xlu0 %4119, %v4508_v24  }
 0x19a   : > { %v4646_v44 = vpop.permute.xlu0 %1297 }
 0x19b   : > { %7185 = vst [vmem:[#allocation5_spill] sm:$0xff] %v4646_v44 }
 0x19c   : > { %4140 = vset.pattern.permute.xlu1 %v7060_v0 }
 0x19d   : > { %4121 = vset.pattern.permute.xlu0 %v7008_v56 }
 0x19e   : > { %1418 = vperm.xlu0 %4121, %v4508_v24  }
 0x1a2   : > { %4122 = vset.pattern.permute.xlu0 %v7006_v57 }
 0x1a3   : > { %1434 = vperm.xlu0 %4122, %v4508_v24  }
 0x1a7   : > { %4123 = vset.pattern.permute.xlu0 %v7009_v58 }
 0x1a8   : > { %1450 = vperm.xlu0 %4123, %v4508_v24  }
 0x1ac   : > { %4124 = vset.pattern.permute.xlu0 %v7007_v61 }
 0x1f6   : > { %v810_v45 = vpop.permute.xlu1 %809 }
 0x1f7   : > { %v4649_v57 = vmul.f32 %v810_v45, %v4454_v3  ;;  %v4652_v61 = vmul.f32 %v810_v45, %v4458_v5  ;;  %v815_v56 = vpop.permute.xlu0 %814 }
 0x1f8   : > { %v4655_v58 = vmul.f32 %v815_v56, %v4460_v6  ;;  %v4658_v55 = vmul.f32 %v815_v56, %v4462_v7 }
 0x1f9   : > { %7186 = vst [vmem:[#allocation6_spill] sm:$0xff] %v4649_v57  ;;  %7187 = vst [vmem:[#allocation7_spill] sm:$0xff] %v4652_v61 }
 0x1fa   : > { %7188 = vst [vmem:[#allocation8_spill] sm:$0xff] %v4655_v58  ;;  %7189 = vst [vmem:[#allocation9_spill] sm:$0xff] %v4658_v55  ;;  %v820_v54 = vpop.permute.xlu1 %819  ;;  %v836_v52 = vadd.f32 %v4655_v58, %v4649_v57  ;;  %v845_v50 = vadd.f32 %v4658_v55, %v4652_v61 }
 0x1fb   : > { %v4665_v3 = vmul.f32 %v820_v54, %v4450_v1  ;;  %v4668_v5 = vmul.f32 %v820_v54, %v4452_v2  ;;  %v825_v45 = vpop.permute.xlu0 %824 }
 0x1fc   : > { %v4671_v6 = vmul.f32 %v825_v45, %v4470_v11  ;;  %v4674_v7 = vmul.f32 %v825_v45, %v4472_v12 }
 0x1fd   : > { %7190 = vst [vmem:[#allocation10_spill] sm:$0xff] %v4665_v3  ;;  %7191 = vst [vmem:[#allocation11_spill] sm:$0xff] %v4668_v5  ;;  %v837_v56 = vadd.f32 %v836_v52, %v4665_v3  ;;  %v846_v53 = vadd.f32 %v845_v50, %v4668_v5  ;;  %v857_v46 = vmax.f32 %v4649_v57, %v4665_v3 }
 0x1fe   : > { %7192 = vst [vmem:[#allocation12_spill] sm:$0xff] %v4671_v6  ;;  %7193 = vst [vmem:[#allocation13_spill] sm:$0xff] %v4674_v7  ;;  %v866_v1 = vmax.f32 %v4652_v61, %v4668_v5  ;;  %v858_v2 = vmax.f32 %v4655_v58, %v4671_v6  ;;  %v867_v11 = vmax.f32 %v4658_v55, %v4674_v7 }
 0x1ff   : > { %v838_v54 = vadd.f32 %v837_v56, %v4671_v6  ;;  %v847_v12 = vadd.f32 %v846_v53, %v4674_v7 }
 0x200   : > { %v859_v45 = vmax.f32 %v857_v46, %v858_v2  ;;  %v868_v52 = vmax.f32 %v866_v1, %v867_v11 }
 0x201   : > { %v839_v48 = vrot.slane %v838_v54, 4  ;;  %v848_v50 = vrot.slane %v847_v12, 4 }
 0x202   : > { %v860_v47 = vrot.slane %v859_v45, 4  ;;  %v869_v51 = vrot.slane %v868_v52, 4 }
 0x203   : > { %v840_v29 = vadd.f32 %v839_v48, %v838_v54  ;;  %v849_v49 = vadd.f32 %v848_v50, %v847_v12 }
 0x204   : > { %v861_v26 = vmax.f32 %v859_v45, %v860_v47  ;;  %v870_v23 = vmax.f32 %v868_v52, %v869_v51  ;;  %v549_v52 = vlaneseq }
 0x205   : > { %v841_v22 = vrot.slane %v840_v29, 2  ;;  %v850_v21 = vrot.slane %v849_v49, 2 }
 0x206   : > { %v862_v20 = vrot.slane %v861_v26, 2  ;;  %v871_v18 = vrot.slane %v870_v23, 2  ;;  %v550_v50 = vand.u32 127, %v549_v52 }
 0x207   : > { %v842_v17 = vadd.f32 %v841_v22, %v840_v29  ;;  %v851_v16 = vadd.f32 %v850_v21, %v849_v49 }
 0x208   : > { %v863_v15 = vmax.f32 %v861_v26, %v862_v20  ;;  %v872_v56 = vmax.f32 %v870_v23, %v871_v18  ;;  %v4744_v18 = vpop.permute.xlu0 %1313  ;;  %v4752_v23 = vpop.permute.xlu1 %1337 }
 0x209   : > { %v843_v32 = vrot.slane %v842_v17, 1  ;;  %v852_v53 = vrot.slane %v851_v16, 1  ;;  %7196 = vst [vmem:[#allocation16_spill] sm:$0xff] %v4744_v18  ;;  %7200 = vst [vmem:[#allocation20_spill] sm:$0xff] %v4752_v23 }
 0x20a   : > { %v864_v46 = vrot.slane %v863_v15, 1  ;;  %v873_v1 = vrot.slane %v872_v56, 1 }
 0x20b   : > { %v844_v2 = vadd.f32 %v843_v32, %v842_v17  ;;  %v853_v11 = vadd.f32 %v852_v53, %v851_v16  ;;  %v7035_v32 = vmov 35   ;;  %v7033_v16 = vmov 37  }
 0x20c   : > { %v865_v31 = vmax.f32 %v863_v15, %v864_v46  ;;  %v874_v48 = vmax.f32 %v872_v56, %v873_v1  ;;  %v7034_v15 = vmov 36   ;;  %v7032_v17 = vmov 38   ;;  %v4746_v20 = vpop.permute.xlu0 %1321  ;;  %v4756_v29 = vpop.permute.xlu1 %1345 }
 0x20d   : > { %v855_v54 = vmul.f32 0.03125, %v844_v2  ;;  %v856_v47 = vmul.f32 0.03125, %v853_v11  ;;  %7197 = vst [vmem:[#allocation17_spill] sm:$0xff] %v4746_v20  ;;  %7202 = vst [vmem:[#allocation22_spill] sm:$0xff] %v4756_v29  ;;  %v551_v46 = vadd.s32 128, %v550_v50  ;;  %v4770_v11 = vand.u32 15, %v550_v50 }
 0x20f   : > { %v4689_v51 = vsel %vm875_vm2, %v855_v54, %v865_v31  ;;  %v4692_v12 = vsel %vm875_vm2, %v856_v47, %v874_v48  ;;  %v7036_v31 = vmov 34   ;;  %7209 = vst [vmem:[#allocation29_spill] sm:$0xff] %v4770_v11  ;;  %v4772_v48 = vand.u32 15, %v551_v46 }
 0x210   : > { %7194 = vst [vmem:[#allocation14_spill] sm:$0xff] %v4689_v51  ;;  %7195 = vst [vmem:[#allocation15_spill] sm:$0xff] %v4692_v12  ;;  %882 = vrot.lane.b32.xlu0 %v4692_v12, %s7136_s28  ;;  %880 = vrot.lane.b32.xlu1 %v4689_v51, %s7136_s28  ;;  %v4748_v21 = vpop.permute.xlu0 %1329  ;;  %v4758_v49 = vpop.permute.xlu1 %1361  ;;  %vm580_vm4 = vcmp.lt.s32.totalorder %v4770_v11, 3  ;;  %vm7128_vm6 = vcmp.lt.s32.totalorder %v4770_v11, 2  ;;  %vm576_vm8 = vcmp.lt.s32.totalorder %v4770_v11, 1  ;;  %vm582_vm11 = vcmp.ge.s32.totalorder %v4770_v11, 15 }
 0x211   : > { %7198 = vst [vmem:[#allocation18_spill] sm:$0xff] %v4748_v21  ;;  %7203 = vst [vmem:[#allocation23_spill] sm:$0xff] %v4758_v49  ;;  %vm581_vm5 = vcmp.lt.s32.totalorder %v4772_v48, 3  ;;  %vm7046_vm7 = vcmp.lt.s32.totalorder %v4772_v48, 2  ;;  %vm577_vm9 = vcmp.lt.s32.totalorder %v4772_v48, 1  ;;  %vm583_vm12 = vcmp.ge.s32.totalorder %v4772_v48, 15 }
 0x212   : > { %7210 = vst [vmem:[#allocation30_spill] sm:$0xff] %v4772_v48  ;;  %vm7050_vm14 = vcmp.ge.s32.totalorder %v4770_v11, 14  ;;  %vm7127_vm15 = vcmp.ge.s32.totalorder %v4772_v48, 14  ;;  %s7362_s28 = smov 112  }
 0x214   : > { %897 = vrot.lane.b32.xlu0 %v4692_v12, %s7134_s29  ;;  %895 = vrot.lane.b32.xlu1 %v4689_v51, %s7134_s29  ;;  %v4750_v22 = vpop.permute.xlu0 %1353  ;;  %v4762_v56 = vpop.permute.xlu1 %1369  ;;  %s7455_s29 = sshll.u32 %s7465_s25, 6 }
 0x215   : > { %7199 = vst [vmem:[#allocation19_spill] sm:$0xff] %v4750_v22  ;;  %7205 = vst [vmem:[#allocation25_spill] sm:$0xff] %v4762_v56 }
 0x218   : > { %911 = vrot.lane.b32.xlu0 %v4692_v12, %s7140_s0  ;;  %909 = vrot.lane.b32.xlu1 %v4689_v51, %s7140_s0  ;;  %v4754_v26 = vpop.permute.xlu0 %1386  ;;  %v4766_v1 = vpop.permute.xlu1 %1402 }
 0x219   : > { %7201 = vst [vmem:[#allocation21_spill] sm:$0xff] %v4754_v26  ;;  %7207 = vst [vmem:[#allocation27_spill] sm:$0xff] %v4766_v1 }
 0x21c   : > { %925 = vrot.lane.b32.xlu0 %v4692_v12, %s7138_s27  ;;  %923 = vrot.lane.b32.xlu1 %v4689_v51, %s7138_s27  ;;  %v4760_v45 = vpop.permute.xlu0 %1418 }
 0x21d   : > { %7204 = vst [vmem:[#allocation24_spill] sm:$0xff] %v4760_v45 }
 0x220   : > { %940 = vrot.lane.b32.xlu0 %v4692_v12, %s7132_s30  ;;  %938 = vrot.lane.b32.xlu1 %v4689_v51, %s7132_s30  ;;  %v4764_v53 = vpop.permute.xlu0 %1434  ;;  %s7353_s30 = smov 126  }
 0x221   : > { %7206 = vst [vmem:[#allocation26_spill] sm:$0xff] %v4764_v53 }
 0x224   : > { %955 = vrot.lane.b32.xlu0 %v4692_v12, %s7130_s18  ;;  %953 = vrot.lane.b32.xlu1 %v4689_v51, %s7130_s18  ;;  %v4768_v2 = vpop.permute.xlu0 %1450  ;;  %s7354_s18 = smov 125  }
 0x225   : > { %7208 = vst [vmem:[#allocation28_spill] sm:$0xff] %v4768_v2 }
 0x228   : > { %1024 = vrot.lane.b32.xlu1 %v4689_v51, %s7125_s1  ;;  %1466 = vperm.xlu0 %4124, %v4508_v24  }
 0x22c   : > { %1026 = vrot.lane.b32.xlu1 %v4692_v12, %s7125_s1  ;;  %4125 = vset.pattern.permute.xlu0 %v7036_v31 }
 0x22d   : > { %1482 = vperm.xlu0 %4125, %v4508_v24  }
 0x230   : > { %1143 = vrot.lane.b32.xlu1 %v4689_v51, %s7123_s20 }
 0x231   : > { %4126 = vset.pattern.permute.xlu0 %v7035_v32 }
 0x232   : > { %1499 = vperm.xlu0 %4126, %v4508_v24  }
 0x234   : > { %1145 = vrot.lane.b32.xlu1 %v4692_v12, %s7123_s20 }
 0x236   : > { %4127 = vset.pattern.permute.xlu0 %v7034_v15 }
 0x237   : > { %1515 = vperm.xlu0 %4127, %v4508_v24  }
 0x238   : > { %1256 = vrot.lane.b32.xlu1 %v4689_v51, %s7144_s21 }
 0x23b   : > { %4128 = vset.pattern.permute.xlu0 %v7033_v16 }
 0x23c   : > { %1258 = vrot.lane.b32.xlu1 %v4692_v12, %s7144_s21  ;;  %1531 = vperm.xlu0 %4128, %v4508_v24  }
 0x240   : > { %1427 = vrot.lane.b32.xlu1 %v4692_v12, %s7142_s22  ;;  %4129 = vset.pattern.permute.xlu0 %v7032_v17 }
 0x244   : > { %1425 = vrot.lane.b32.xlu1 %v4689_v51, %s7142_s22 }
 0x282   : > { %v881_v54 = vpop.permute.xlu1 %880  ;;  %v883_v47 = vpop.permute.xlu0 %882 }
 0x283   : > { %v888_v52 = vsel %vm884_vm3, 0.0, %v881_v54  ;;  %v885_v17 = vsel %vm884_vm3, %v881_v54, %v883_v47 }
 0x284   : > { %v4780_v16 = vsel %vm580_vm4, 0.0, %v888_v52  ;;  %v4784_v50 = vsel %vm581_vm5, 0.0, %v885_v17 }
 0x285   : > { %7211 = vst [vmem:[#allocation31_spill] sm:$0xff] %v4780_v16  ;;  %7212 = vst [vmem:[#allocation32_spill] sm:$0xff] %v4784_v50  ;;  %970 = vrot.lane.b32.xlu1 %v4780_v16, %s7125_s1  ;;  %972 = vrot.lane.b32.xlu0 %v4784_v50, %s7125_s1 }
 0x286   : > { %v896_v46 = vpop.permute.xlu1 %895  ;;  %v898_v54 = vpop.permute.xlu0 %897 }
 0x287   : > { %v902_v47 = vsel %vm662_vm1, 0.0, %v896_v46  ;;  %v899_v52 = vsel %vm662_vm1, %v896_v46, %v898_v54 }
 0x288   : > { %v4796_v17 = vsel %vm7128_vm6, 0.0, %v902_v47  ;;  %v4800_v15 = vsel %vm7046_vm7, 0.0, %v899_v52  ;;  %v7040_v47 = vmov 39   ;;  %vm7118_vm7 = vcmask 1022976  }
 0x289   : > { %7213 = vst [vmem:[#allocation33_spill] sm:$0xff] %v4796_v17  ;;  %7214 = vst [vmem:[#allocation34_spill] sm:$0xff] %v4800_v15  ;;  %990 = vrot.lane.b32.xlu1 %v4796_v17, %s7125_s1  ;;  %992 = vrot.lane.b32.xlu0 %v4800_v15, %s7125_s1  ;;  %vm1606_vm6 = vcmask 654336  }
 0x28a   : > { %v910_v32 = vpop.permute.xlu1 %909  ;;  %v912_v54 = vpop.permute.xlu0 %911 }
 0x28b   : > { %v916_v31 = vsel %vm633_vm0, 0.0, %v910_v32 }
 0x28c   : > { %v4810_v46 = vsel %vm576_vm8, 0.0, %v916_v31  ;;  %v913_v31 = vsel %vm633_vm0, %v910_v32, %v912_v54  ;;  %v7044_v32 = vmov 41  }
 0x28d   : > { %7215 = vst [vmem:[#allocation35_spill] sm:$0xff] %v4810_v46  ;;  %1540 = vrot.lane.b32.xlu1 %v4692_v12, %s7121_s23  ;;  %1008 = vrot.lane.b32.xlu0 %v4810_v46, %s7125_s1 }
 0x28e   : > { %v924_v52 = vpop.permute.xlu1 %923  ;;  %v926_v30 = vpop.permute.xlu0 %925 }
 0x28f   : > { %v928_v27 = vsel %vm927_vm10, %v924_v52, %v926_v30 }
 0x290   : > { %v4840_v54 = vsel %vm582_vm11, 0.0, %v928_v27 }
 0x291   : > { %1538 = vrot.lane.b32.xlu1 %v4689_v51, %s7121_s23  ;;  %1547 = vperm.xlu0 %4129, %v4508_v24  }
 0x292   : > { %v939_v52 = vpop.permute.xlu1 %938 }
 0x295   : > { %1653 = vrot.lane.b32.xlu1 %v4692_v12, %s7119_s26  ;;  %4130 = vset.pattern.permute.xlu0 %v7040_v47  ;;  %v4831_v47 = vsel %vm577_vm9, 0.0, %v913_v31  ;;  %v931_v31 = vsel %vm927_vm10, %v926_v30, 0.0 }
 0x296   : > { %1563 = vperm.xlu0 %4130, %v4508_v24   ;;  %7216 = vst [vmem:[#allocation36_spill] sm:$0xff] %v4831_v47  ;;  %v4849_v25 = vsel %vm583_vm12, 0.0, %v931_v31 }
 0x297   : > { %7217 = vst [vmem:[#allocation37_spill] sm:$0xff] %v4849_v25 }
 0x299   : > { %1651 = vrot.lane.b32.xlu1 %v4689_v51, %s7119_s26 }
 0x29a   : > { %4131 = vset.pattern.permute.xlu0 %v7042_v28  ;;  %v941_v28 = vpop.permute.xlu0 %940 }
 0x29b   : > { %1579 = vperm.xlu0 %4131, %v4508_v24   ;;  %v943_v27 = vsel %vm7052_vm13, %v939_v52, %v941_v28  ;;  %v946_v31 = vsel %vm7052_vm13, %v941_v28, 0.0  ;;  %v954_v52 = vpop.permute.xlu1 %953  ;;  %v7059_v28 = vmov 44   ;;  %vm7106_vm13 = vcmp.ge.s32.totalorder %v4772_v48, 13 }
 0x29c   : > { %v4859_v30 = vsel %vm7050_vm14, 0.0, %v943_v27  ;;  %v4869_v33 = vsel %vm7127_vm15, 0.0, %v946_v31  ;;  %vm7116_vm14 = vcmp.ge.s32.totalorder %v4770_v11, 13  ;;  %vm7129_vm15 = vcmask 785408  }
 0x29d   : > { %1010 = vrot.lane.b32.xlu1 %v4831_v47, %s7125_s1  ;;  %7218 = vst [vmem:[#allocation38_spill] sm:$0xff] %v4859_v30 }
 0x29f   : > { %4132 = vset.pattern.permute.xlu0 %v7044_v32  ;;  %v7047_v32 = vmov 42  }
 0x2a0   : > { %1595 = vperm.xlu0 %4132, %v4508_v24  }
 0x2a1   : > { %1042 = vrot.lane.b32.xlu1 %v4840_v54, %s7125_s1 }
 0x2a4   : > { %4133 = vset.pattern.permute.xlu0 %v7047_v32  ;;  %v956_v32 = vpop.permute.xlu0 %955 }
 0x2a5   : > { %1612 = vperm.xlu0 %4133, %v4508_v24   ;;  %1044 = vrot.lane.b32.xlu1 %v4849_v25, %s7125_s1  ;;  %v958_v27 = vsel %vm7118_vm7, %v954_v52, %v956_v32  ;;  %v961_v31 = vsel %vm7118_vm7, %v956_v32, 0.0  ;;  %v7058_v52 = vmov 45   ;;  %v7055_v32 = vmov 47  }
 0x2a6   : > { %v4888_v19 = vsel %vm7106_vm13, 0.0, %v961_v31  ;;  %v7056_v31 = vmov 48   ;;  %vm7117_vm13 = vcmask 392192   ;;  %vm1380_vm7 = vcmask 916480  }
 0x2a8   : > { %v5062_v20 = vpop.permute.xlu0 %1466 }
 0x2a9   : > { %4134 = vset.pattern.permute.xlu0 %v7051_v34  ;;  %1060 = vrot.lane.b32.xlu1 %v4859_v30, %s7125_s1  ;;  %v4879_v34 = vsel %vm7116_vm14, 0.0, %v958_v27  ;;  %v7057_v27 = vmov 46   ;;  %7228 = vst [vmem:[#allocation48_spill] sm:$0xff] %v5062_v20  ;;  %vm1098_vm14 = vcmask 261120  }
 0x2aa   : > { %1628 = vperm.xlu0 %4134, %v4508_v24   ;;  %7219 = vst [vmem:[#allocation39_spill] sm:$0xff] %v4879_v34 }
 0x2ac   : > { %v5070_v44 = vpop.permute.xlu0 %1482 }
 0x2ad   : > { %1062 = vrot.lane.b32.xlu1 %v4869_v33, %s7125_s1  ;;  %7229 = vst [vmem:[#allocation49_spill] sm:$0xff] %v5070_v44 }
 0x2ae   : > { %4135 = vset.pattern.permute.xlu0 %v7059_v28 }
 0x2af   : > { %1644 = vperm.xlu0 %4135, %v4508_v24  }
 0x2b1   : > { %1078 = vrot.lane.b32.xlu1 %v4879_v34, %s7125_s1 }
 0x2b3   : > { %4136 = vset.pattern.permute.xlu0 %v7058_v52 }
 0x2b4   : > { %1660 = vperm.xlu0 %4136, %v4508_v24  }
 0x2b5   : > { %1080 = vrot.lane.b32.xlu1 %v4888_v19, %s7125_s1  ;;  %s7299_s1 = smov 1  }
 0x2b8   : > { %4137 = vset.pattern.permute.xlu0 %v7057_v27 }
 0x2b9   : > { %1676 = vperm.xlu0 %4137, %v4508_v24   ;;  %1094 = vrot.lane.b32.xlu1 %v4780_v16, %s7123_s20 }
 0x2bd   : > { %4138 = vset.pattern.permute.xlu0 %v7055_v32  ;;  %1096 = vrot.lane.b32.xlu1 %v4784_v50, %s7123_s20  ;;  %v4910_v32 = vpop.permute.xlu1 %1024 }
 0x2be   : > { %1692 = vperm.xlu0 %4138, %v4508_v24  }
 0x2c1   : > { %1111 = vrot.lane.b32.xlu1 %v4796_v17, %s7123_s20 }
 0x2c2   : > { %4139 = vset.pattern.permute.xlu0 %v7056_v31 }
 0x2c3   : > { %1708 = vperm.xlu0 %4139, %v4508_v24   ;;  %v4918_v24 = vpop.permute.xlu1 %1026 }
 0x2c5   : > { %1113 = vrot.lane.b32.xlu1 %v4800_v15, %s7123_s20 }
 0x2c7   : > { %1683 = vrot.lane.b32.xlu0 %v4859_v30, %s7119_s26  ;;  %v4922_v31 = vpop.permute.xlu1 %1143 }
 0x2c8   : > { %4142 = vset.pattern.permute.xlu0 %v7060_v0 }
 0x2c9   : > { %1127 = vrot.lane.b32.xlu1 %v4810_v46, %s7123_s20 }
 0x2cb   : > { %1699 = vrot.lane.b32.xlu0 %v4879_v34, %s7119_s26  ;;  %v4928_v27 = vpop.permute.xlu1 %1145 }
 0x2cd   : > { %1129 = vrot.lane.b32.xlu1 %v4831_v47, %s7123_s20 }
 0x2cf   : > { %v4932_v52 = vpop.permute.xlu1 %1256 }
 0x2d0   : > { %7220 = vst [vmem:[#allocation40_spill] sm:$0xff] %v4932_v52  ;;  %v5078_v52 = vpop.permute.xlu0 %1499 }
 0x2d1   : > { %1159 = vrot.lane.b32.xlu1 %v4840_v54, %s7123_s20  ;;  %7230 = vst [vmem:[#allocation50_spill] sm:$0xff] %v5078_v52 }
 0x2d3   : > { %v4938_v28 = vpop.permute.xlu1 %1258 }
 0x2d4   : > { %7221 = vst [vmem:[#allocation41_spill] sm:$0xff] %v4938_v28  ;;  %v5086_v28 = vpop.permute.xlu0 %1515 }
 0x2d5   : > { %1161 = vrot.lane.b32.xlu1 %v4849_v25, %s7123_s20  ;;  %7232 = vst [vmem:[#allocation52_spill] sm:$0xff] %v5086_v28 }
 0x2d7   : > { %v4942_v0 = vpop.permute.xlu1 %1427 }
 0x2d8   : > { %7222 = vst [vmem:[#allocation42_spill] sm:$0xff] %v4942_v0  ;;  %v5094_v10 = vpop.permute.xlu0 %1531 }
 0x2d9   : > { %1175 = vrot.lane.b32.xlu1 %v4859_v30, %s7123_s20  ;;  %7234 = vst [vmem:[#allocation54_spill] sm:$0xff] %v5094_v10 }
 0x2db   : > { %v4948_v48 = vpop.permute.xlu1 %1425 }
 0x2dc   : > { %7223 = vst [vmem:[#allocation43_spill] sm:$0xff] %v4948_v48 }
 0x2dd   : > { %1177 = vrot.lane.b32.xlu1 %v4869_v33, %s7123_s20 }
 0x2e1   : > { %1191 = vrot.lane.b32.xlu1 %v4879_v34, %s7123_s20 }
 0x2e5   : > { %1193 = vrot.lane.b32.xlu1 %v4888_v19, %s7123_s20  ;;  %s7300_s20 = smov 127  }
 0x2e9   : > { %1207 = vrot.lane.b32.xlu1 %v4780_v16, %s7144_s21 }
 0x2ed   : > { %1209 = vrot.lane.b32.xlu1 %v4784_v50, %s7144_s21 }
 0x2f1   : > { %1224 = vrot.lane.b32.xlu1 %v4796_v17, %s7144_s21 }
 0x2f5   : > { %1226 = vrot.lane.b32.xlu1 %v4800_v15, %s7144_s21 }
 0x2f7   : > { %v4952_v11 = vpop.permute.xlu1 %970 }
 0x2f9   : > { %1240 = vrot.lane.b32.xlu1 %v4810_v46, %s7144_s21 }
 0x2fb   : > { %v4956_v57 = vpop.permute.xlu1 %990 }
 0x2fd   : > { %1242 = vrot.lane.b32.xlu1 %v4831_v47, %s7144_s21 }
 0x2ff   : > { %v4960_v61 = vpop.permute.xlu1 %1540 }
 0x300   : > { %7224 = vst [vmem:[#allocation44_spill] sm:$0xff] %v4960_v61 }
 0x301   : > { %1272 = vrot.lane.b32.xlu1 %v4840_v54, %s7144_s21 }
 0x303   : > { %v4964_v58 = vpop.permute.xlu1 %1538 }
 0x304   : > { %7225 = vst [vmem:[#allocation45_spill] sm:$0xff] %v4964_v58 }
 0x305   : > { %1274 = vrot.lane.b32.xlu1 %v4849_v25, %s7144_s21 }
 0x307   : > { %v4968_v55 = vpop.permute.xlu1 %1653 }
 0x308   : > { %7226 = vst [vmem:[#allocation46_spill] sm:$0xff] %v4968_v55 }
 0x309   : > { %1288 = vrot.lane.b32.xlu1 %v4859_v30, %s7144_s21 }
 0x30b   : > { %v4972_v3 = vpop.permute.xlu1 %1651 }
 0x30c   : > { %7227 = vst [vmem:[#allocation47_spill] sm:$0xff] %v4972_v3 }
 0x30d   : > { %1290 = vrot.lane.b32.xlu1 %v4869_v33, %s7144_s21 }
 0x30f   : > { %v4976_v5 = vpop.permute.xlu1 %1010 }
 0x311   : > { %1304 = vrot.lane.b32.xlu1 %v4879_v34, %s7144_s21 }
 0x313   : > { %v4980_v7 = vpop.permute.xlu1 %1042 }
 0x315   : > { %1306 = vrot.lane.b32.xlu1 %v4888_v19, %s7144_s21 }
 0x317   : > { %v4984_v6 = vpop.permute.xlu1 %1044 }
 0x319   : > { %1378 = vrot.lane.b32.xlu1 %v4784_v50, %s7142_s22 }
 0x31b   : > { %v4988_v55 = vpop.permute.xlu1 %1060 }
 0x31d   : > { %1376 = vrot.lane.b32.xlu1 %v4780_v16, %s7142_s22 }
 0x31f   : > { %v4992_v3 = vpop.permute.xlu1 %1062 }
 0x321   : > { %1395 = vrot.lane.b32.xlu1 %v4800_v15, %s7142_s22 }
 0x323   : > { %v4996_v58 = vpop.permute.xlu1 %1078 }
 0x325   : > { %1393 = vrot.lane.b32.xlu1 %v4796_v17, %s7142_s22 }
 0x327   : > { %v5000_v61 = vpop.permute.xlu1 %1080 }
 0x329   : > { %1411 = vrot.lane.b32.xlu1 %v4831_v47, %s7142_s22 }
 0x32b   : > { %v5004_v2 = vpop.permute.xlu1 %1094 }
 0x32d   : > { %1409 = vrot.lane.b32.xlu1 %v4810_v46, %s7142_s22 }
 0x32f   : > { %v5008_v53 = vpop.permute.xlu1 %1096 }
 0x331   : > { %1443 = vrot.lane.b32.xlu1 %v4849_v25, %s7142_s22 }
 0x333   : > { %v5012_v48 = vpop.permute.xlu1 %1111 }
 0x335   : > { %1441 = vrot.lane.b32.xlu1 %v4840_v54, %s7142_s22 }
 0x337   : > { %v5016_v0 = vpop.permute.xlu1 %1113 }
 0x339   : > { %1459 = vrot.lane.b32.xlu1 %v4869_v33, %s7142_s22 }
 0x33b   : > { %v5020_v45 = vpop.permute.xlu1 %1127 }
 0x33d   : > { %1457 = vrot.lane.b32.xlu1 %v4859_v30, %s7142_s22 }
 0x33f   : > { %v5024_v1 = vpop.permute.xlu1 %1129 }
 0x341   : > { %1475 = vrot.lane.b32.xlu1 %v4888_v19, %s7142_s22 }
 0x343   : > { %v5028_v26 = vpop.permute.xlu1 %1159 }
 0x345   : > { %1473 = vrot.lane.b32.xlu1 %v4879_v34, %s7142_s22 }
 0x347   : > { %v5032_v56 = vpop.permute.xlu1 %1161 }
 0x349   : > { %1491 = vrot.lane.b32.xlu1 %v4784_v50, %s7121_s23 }
 0x34b   : > { %v5036_v49 = vpop.permute.xlu1 %1175 }
 0x34d   : > { %1489 = vrot.lane.b32.xlu1 %v4780_v16, %s7121_s23 }
 0x34f   : > { %v5040_v51 = vpop.permute.xlu1 %1177 }
 0x351   : > { %1508 = vrot.lane.b32.xlu1 %v4800_v15, %s7121_s23 }
 0x353   : > { %v5044_v22 = vpop.permute.xlu1 %1191 }
 0x355   : > { %1506 = vrot.lane.b32.xlu1 %v4796_v17, %s7121_s23 }
 0x357   : > { %v5048_v29 = vpop.permute.xlu1 %1193 }
 0x359   : > { %1524 = vrot.lane.b32.xlu1 %v4831_v47, %s7121_s23 }
 0x35b   : > { %v5052_v12 = vpop.permute.xlu1 %1207 }
 0x35d   : > { %1522 = vrot.lane.b32.xlu1 %v4810_v46, %s7121_s23 }
 0x35f   : > { %v5056_v23 = vpop.permute.xlu1 %1209 }
 0x361   : > { %1556 = vrot.lane.b32.xlu1 %v4849_v25, %s7121_s23 }
 0x363   : > { %v5060_v21 = vpop.permute.xlu1 %1224 }
 0x365   : > { %1554 = vrot.lane.b32.xlu1 %v4840_v54, %s7121_s23 }
 0x367   : > { %v5066_v18 = vpop.permute.xlu1 %1226 }
 0x369   : > { %1572 = vrot.lane.b32.xlu1 %v4869_v33, %s7121_s23 }
 0x36b   : > { %v5072_v14 = vpop.permute.xlu1 %1240 }
 0x36d   : > { %1570 = vrot.lane.b32.xlu1 %v4859_v30, %s7121_s23 }
 0x36f   : > { %v5076_v13 = vpop.permute.xlu1 %1242 }
 0x371   : > { %1588 = vrot.lane.b32.xlu1 %v4888_v19, %s7121_s23 }
 0x373   : > { %v5082_v20 = vpop.permute.xlu1 %1272 }
 0x374   : > { %7231 = vst [vmem:[#allocation51_spill] sm:$0xff] %v5082_v20 }
 0x375   : > { %1586 = vrot.lane.b32.xlu1 %v4879_v34, %s7121_s23  ;;  %v973_v34 = vpop.permute.xlu0 %972  ;;  %s7352_s23 = smov 2  }
 0x377   : > { %v5088_v44 = vpop.permute.xlu1 %1274 }
 0x379   : > { %1604 = vrot.lane.b32.xlu1 %v4784_v50, %s7119_s26  ;;  %v993_v50 = vpop.permute.xlu0 %992 }
 0x37b   : > { %v5092_v30 = vpop.permute.xlu1 %1288 }
 0x37c   : > { %7233 = vst [vmem:[#allocation53_spill] sm:$0xff] %v5092_v30 }
 0x37d   : > { %1602 = vrot.lane.b32.xlu1 %v4780_v16, %s7119_s26  ;;  %v994_v16 = vsel %vm7117_vm13, %v4956_v57, %v993_v50  ;;  %v997_v50 = vsel %vm7117_vm13, 0.0, %v4956_v57  ;;  %v1046_v57 = vsel %vm7117_vm13, %v4980_v7, %v4984_v6 }
 0x37f   : > { %v5098_v52 = vpop.permute.xlu1 %1290 }
 0x381   : > { %1621 = vrot.lane.b32.xlu1 %v4800_v15, %s7119_s26  ;;  %v1009_v15 = vpop.permute.xlu0 %1008 }
 0x383   : > { %v5102_v20 = vpop.permute.xlu1 %1304 }
 0x384   : > { %7235 = vst [vmem:[#allocation55_spill] sm:$0xff] %v5102_v20  ;;  %v975_v20 = vsel %vm7117_vm13, %v4952_v11, %v973_v34  ;;  %v978_v34 = vsel %vm7117_vm13, 0.0, %v4952_v11 }
 0x385   : > { %1619 = vrot.lane.b32.xlu1 %v4796_v17, %s7119_s26  ;;  %v1012_v17 = vsel %vm7117_vm13, %v1009_v15, %v4976_v5 }
 0x387   : > { %v5106_v28 = vpop.permute.xlu1 %1306 }
 0x388   : > { %7236 = vst [vmem:[#allocation56_spill] sm:$0xff] %v5106_v28 }
 0x389   : > { %1637 = vrot.lane.b32.xlu1 %v4831_v47, %s7119_s26  ;;  %v1003_v47 = vmul.f32 %v4580_v35, %v994_v16  ;;  %v1028_v16 = vsel %vm7117_vm13, %v4910_v32, %v4918_v24 }
 0x38b   : > { %v5110_v10 = vpop.permute.xlu1 %1378 }
 0x38c   : > { %7237 = vst [vmem:[#allocation57_spill] sm:$0xff] %v5110_v10  ;;  %v985_v10 = vmul.f32 %v4586_v38, %v975_v20 }
 0x38d   : > { %1635 = vrot.lane.b32.xlu1 %v4810_v46, %s7119_s26  ;;  %v1021_v46 = vmul.f32 %v4590_v40, %v1012_v17  ;;  %v984_v17 = vmul.f32 %v4586_v38, %v978_v34  ;;  %v1031_v38 = vsel %vm7117_vm13, 0.0, %v4910_v32  ;;  %v1067_v34 = vsel %vm7117_vm13, 0.0, %v4988_v55 }
 0x38e   : > { %v1005_v5 = vadd.f32 %v1003_v47, %v985_v10  ;;  %v1055_v47 = vmul.f32 %v4582_v36, %v1046_v57  ;;  %v1036_v32 = vmul.f32 %v4594_v42, %v1031_v38  ;;  %v1085_v57 = vsel %vm7117_vm13, 0.0, %v4996_v58 }
 0x38f   : > { %v5120_v28 = vpop.permute.xlu1 %1376 }
 0x390   : > { %7238 = vst [vmem:[#allocation58_spill] sm:$0xff] %v5120_v28  ;;  %v1015_v28 = vsel %vm7117_vm13, 0.0, %v1009_v15  ;;  %v1023_v20 = vadd.f32 %v1021_v46, %v1005_v5  ;;  %v1064_v15 = vsel %vm7117_vm13, %v4988_v55, %v4992_v3  ;;  %v1082_v46 = vsel %vm7117_vm13, %v4996_v58, %v5000_v61 }
 0x391   : > { %1669 = vrot.lane.b32.xlu1 %v4849_v25, %s7119_s26  ;;  %v1002_v25 = vmul.f32 %v4580_v35, %v997_v50  ;;  %v1020_v10 = vmul.f32 %v4590_v40, %v1015_v28  ;;  %v1037_v35 = vmul.f32 %v4594_v42, %v1028_v16  ;;  %v1049_v40 = vsel %vm7117_vm13, 0.0, %v4980_v7 }
 0x392   : > { %v1073_v28 = vmul.f32 %v4584_v37, %v1064_v15  ;;  %v1091_v5 = vmul.f32 %v4588_v39, %v1082_v46  ;;  %v1054_v7 = vmul.f32 %v4582_v36, %v1049_v40  ;;  %v1115_v16 = vsel %vm1098_vm14, %v5012_v48, %v5016_v0 }
 0x393   : > { %v5129_v30 = vpop.permute.xlu1 %1395  ;;  %v1004_v6 = vadd.f32 %v1002_v25, %v984_v17  ;;  %v1039_v3 = vadd.f32 %v1037_v35, %v1023_v20  ;;  %v1099_v25 = vsel %vm1098_vm14, %v5004_v2, %v5008_v53  ;;  %v1072_v17 = vmul.f32 %v4584_v37, %v1067_v34 }
 0x394   : > { %v1108_v20 = vmul.f32 %v4592_v41, %v1099_v25  ;;  %v1131_v36 = vsel %vm1098_vm14, %v5020_v45, %v5024_v1  ;;  %v1102_v0 = vsel %vm1098_vm14, 0.0, %v5004_v2  ;;  %v1124_v15 = vmul.f32 %v4596_v43, %v1115_v16 }
 0x395   : > { %1667 = vrot.lane.b32.xlu1 %v4840_v54, %s7119_s26  ;;  %v1022_v24 = vadd.f32 %v1020_v10, %v1004_v6  ;;  %v1057_v61 = vadd.f32 %v1055_v47, %v1039_v3  ;;  %v1090_v58 = vmul.f32 %v4588_v39, %v1085_v57  ;;  %v1118_v6 = vsel %vm1098_vm14, 0.0, %v5012_v48 }
 0x396   : > { %v1140_v37 = vmul.f32 %v4625_v59, %v1131_v36  ;;  %v1107_v1 = vmul.f32 %v4592_v41, %v1102_v0  ;;  %v1134_v2 = vsel %vm1098_vm14, 0.0, %v5020_v45  ;;  %v1147_v3 = vsel %vm1098_vm14, %v4922_v31, %v4928_v27 }
 0x397   : > { %v5148_v11 = vpop.permute.xlu1 %1393  ;;  %v1075_v53 = vadd.f32 %v1073_v28, %v1057_v61  ;;  %v1038_v55 = vadd.f32 %v1036_v32, %v1022_v24  ;;  %v1123_v28 = vmul.f32 %v4596_v43, %v1118_v6  ;;  %v1163_v48 = vsel %vm1098_vm14, %v5028_v26, %v5032_v56 }
 0x398   : > { %v1139_v41 = vmul.f32 %v4625_v59, %v1134_v2  ;;  %v1179_v61 = vsel %vm1098_vm14, %v5036_v49, %v5040_v51  ;;  %v1156_v34 = vmul.f32 %v4627_v62, %v1147_v3  ;;  %v1172_v27 = vmul.f32 %v4629_v63, %v1163_v48  ;;  %v7241_v2 = vld [vmem:[#allocation40_spill] sm:$0xff] }
 0x399   : > { %1685 = vrot.lane.b32.xlu1 %v4869_v33, %s7119_s26  ;;  %v1093_v10 = vadd.f32 %v1091_v5, %v1075_v53  ;;  %v1056_v35 = vadd.f32 %v1054_v7, %v1038_v55  ;;  %vm1211_vm13 = vcmask 130048   ;;  %v1195_v56 = vsel %vm1098_vm14, %v5044_v22, %v5048_v29 }
 0x39a   : > { %v1150_v5 = vsel %vm1098_vm14, 0.0, %v4922_v31  ;;  %v1166_v59 = vsel %vm1098_vm14, 0.0, %v5028_v26  ;;  %v1188_v51 = vmul.f32 %v4632_v60, %v1179_v61  ;;  %v1212_v16 = vsel %vm1211_vm13, %v5052_v12, %v5056_v23  ;;  %v7244_v61 = vld [vmem:[#allocation3_spill] sm:$0xff] }
 0x39b   : > { %v5165_v50 = vpop.permute.xlu1 %1411  ;;  %v1110_v47 = vadd.f32 %v1108_v20, %v1093_v10  ;;  %v1074_v46 = vadd.f32 %v1072_v17, %v1056_v35  ;;  %v1182_v29 = vsel %vm1098_vm14, 0.0, %v5036_v49  ;;  %v1204_v20 = vmul.f32 %v4634_v4, %v1195_v56 }
 0x39c   : > { %v1155_v31 = vmul.f32 %v4627_v62, %v1150_v5  ;;  %v1171_v26 = vmul.f32 %v4629_v63, %v1166_v59  ;;  %v1228_v55 = vsel %vm1211_vm13, %v5060_v21, %v5066_v18  ;;  %v1198_v23 = vsel %vm1098_vm14, 0.0, %v5044_v22  ;;  %v7247_v5 = vld [vmem:[#allocation55_spill] sm:$0xff] }
 0x39d   : > { %1701 = vrot.lane.b32.xlu1 %v4888_v19, %s7119_s26  ;;  %v1126_v40 = vadd.f32 %v1124_v15, %v1110_v47  ;;  %v1092_v39 = vadd.f32 %v1090_v58, %v1074_v46  ;;  %v1221_v36 = vmul.f32 %v4636_v8, %v1212_v16  ;;  %v1187_v0 = vmul.f32 %v4632_v60, %v1182_v29  ;;  %v7239_v60 = vld [vmem:[#allocation2_spill] sm:$0xff]  ;;  %s7351_s26 = smov 3  }
 0x39e   : > { %v1244_v49 = vsel %vm1211_vm13, %v5072_v14, %v5076_v13  ;;  %v1215_v15 = vsel %vm1211_vm13, 0.0, %v5052_v12  ;;  %v1237_v18 = vmul.f32 %v4638_v9, %v1228_v55  ;;  %v1203_v22 = vmul.f32 %v4634_v4, %v1198_v23 }
 0x39f   : > { %v5184_v42 = vpop.permute.xlu1 %1409  ;;  %v1142_v24 = vadd.f32 %v1140_v37, %v1126_v40  ;;  %v1109_v25 = vadd.f32 %v1107_v1, %v1092_v39  ;;  %v1231_v47 = vsel %vm1211_vm13, 0.0, %v5060_v21  ;;  %v1253_v6 = vmul.f32 %v7239_v60, %v1244_v49  ;;  %v7240_v40 = vld [vmem:[#allocation41_spill] sm:$0xff]  ;;  %v7242_v21 = vld [vmem:[#allocation51_spill] sm:$0xff] }
 0x3a0   : > { %v1220_v13 = vmul.f32 %v4636_v8, %v1215_v15  ;;  %v1247_v12 = vsel %vm1211_vm13, 0.0, %v5072_v14  ;;  %v1260_v3 = vsel %vm1211_vm13, %v7241_v2, %v7240_v40  ;;  %v1236_v39 = vmul.f32 %v4638_v9, %v1231_v47  ;;  %v7246_v9 = vld [vmem:[#allocation56_spill] sm:$0xff]  ;;  %v7254_v40 = vld [vmem:[#allocation31_spill] sm:$0xff] }
 0x3a1   : > { %v1125_v43 = vadd.f32 %v1123_v28, %v1109_v25  ;;  %v1158_v32 = vadd.f32 %v1156_v34, %v1142_v24  ;;  %v1276_v28 = vsel %vm1211_vm13, %v7242_v21, %v5088_v44  ;;  %v1252_v8 = vmul.f32 %v7239_v60, %v1247_v12  ;;  %v7243_v25 = vld [vmem:[#allocation53_spill] sm:$0xff] }
 0x3a2   : > { %v1269_v34 = vmul.f32 %v7244_v61, %v1260_v3  ;;  %v1308_v59 = vsel %vm1211_vm13, %v7247_v5, %v7246_v9  ;;  %v1263_v44 = vsel %vm1211_vm13, 0.0, %v7241_v2 }
 0x3a3   : > { %v5194_v38 = vpop.permute.xlu1 %1443  ;;  %v1141_v7 = vadd.f32 %v1139_v41, %v1125_v43  ;;  %v1174_v57 = vadd.f32 %v1172_v27, %v1158_v32  ;;  %v1292_v41 = vsel %vm1211_vm13, %v7243_v25, %v5098_v52  ;;  %v7245_v27 = vld [vmem:[#allocation4_spill] sm:$0xff]  ;;  %v1279_v32 = vsel %vm1211_vm13, 0.0, %v7242_v21 }
 0x3a4   : > { %v1285_v43 = vmul.f32 %v7245_v27, %v1276_v28  ;;  %v1268_v55 = vmul.f32 %v7244_v61, %v1263_v44  ;;  %v7255_v21 = vld [vmem:[#allocation36_spill] sm:$0xff] }
 0x3a5   : > { %v1190_v17 = vadd.f32 %v1188_v51, %v1174_v57  ;;  %v1157_v10 = vadd.f32 %v1155_v31, %v1141_v7  ;;  %v7248_v7 = vld [vmem:[#allocation5_spill] sm:$0xff]  ;;  %v7249_v31 = vld [vmem:[#allocation16_spill] sm:$0xff] }
 0x3a6   : > { %v1301_v52 = vmul.f32 %v7248_v7, %v1292_v41  ;;  %v7256_v28 = vld [vmem:[#allocation20_spill] sm:$0xff] }
 0x3a7   : > { %v5209_v45 = vpop.permute.xlu1 %1441  ;;  %v1206_v63 = vadd.f32 %v1204_v20, %v1190_v17  ;;  %v1173_v35 = vadd.f32 %v1171_v26, %v1157_v10  ;;  %v1295_v20 = vsel %vm1211_vm13, 0.0, %v7243_v25  ;;  %v1317_v26 = vmul.f32 %v7249_v31, %v1308_v59 }
 0x3a8   : > { %v1284_v17 = vmul.f32 %v7245_v27, %v1279_v32  ;;  %v7258_v27 = vld [vmem:[#allocation15_spill] sm:$0xff] }
 0x3a9   : > { %v1223_v58 = vadd.f32 %v1221_v36, %v1206_v63  ;;  %v1189_v37 = vadd.f32 %v1187_v0, %v1173_v35  ;;  %v1311_v36 = vsel %vm1211_vm13, 0.0, %v7247_v5  ;;  %v1300_v0 = vmul.f32 %v7248_v7, %v1295_v20  ;;  %v7250_v35 = vld [vmem:[#allocation32_spill] sm:$0xff]  ;;  %v7260_v5 = vld [vmem:[#allocation35_spill] sm:$0xff]  ;;  %v7263_v20 = vld [vmem:[#allocation14_spill] sm:$0xff] }
 0x3aa   : > { %v1340_v59 = vmul.f32 %v7256_v28, %v7260_v5  ;;  %v5375_v5 = vld [vmem:[%s6992_s5] sm:$0xff] }
 0x3ab   : > { %v5224_v53 = vpop.permute.xlu1 %1459  ;;  %v1239_v1 = vadd.f32 %v1237_v18, %v1223_v58  ;;  %v1205_v4 = vadd.f32 %v1203_v22, %v1189_v37  ;;  %v1316_v18 = vmul.f32 %v7249_v31, %v1311_v36  ;;  %v7251_v22 = vld [vmem:[#allocation17_spill] sm:$0xff]  ;;  %v7264_v36 = vld [vmem:[#allocation23_spill] sm:$0xff] }
 0x3ac   : > { %v1325_v58 = vmul.f32 %v7251_v22, %v7250_v35  ;;  %v1324_v2 = vmul.f32 %v7251_v22, %v7254_v40  ;;  %v7265_v35 = vld [vmem:[#allocation25_spill] sm:$0xff] }
 0x3ad   : > { %v1255_v48 = vadd.f32 %v1253_v6, %v1239_v1  ;;  %v1222_v24 = vadd.f32 %v1220_v13, %v1205_v4  ;;  %v7252_v13 = vld [vmem:[#allocation34_spill] sm:$0xff]  ;;  %v1373_v22 = vmul.f32 %v7265_v35, %v4888_v19  ;;  %v1864_v19 = vld [vmem:[%s6992_s5 + $0x8] sm:$0xff]  ;;  %v7268_v40 = vld [vmem:[#allocation21_spill] sm:$0xff] }
 0x3ae   : > { %v7253_v1 = vld [vmem:[#allocation18_spill] sm:$0xff]  ;;  %1946 = vperm.xlu0 %4142, %v1864_v19  }
 0x3af   : > { %v5241_v62 = vpop.permute.xlu1 %1457  ;;  %v1238_v56 = vadd.f32 %v1236_v39, %v1222_v24  ;;  %v1271_v51 = vadd.f32 %v1269_v34, %v1255_v48  ;;  %v1333_v12 = vmul.f32 %v7253_v1, %v7252_v13  ;;  %v1341_v48 = vmul.f32 %v7256_v28, %v7255_v21  ;;  %v5303_v24 = vpop.permute.xlu0 %1547 }
 0x3b0   : > { %v1400_v21 = vsel %vm1380_vm7, %v5129_v30, 0.0 }
 0x3b1   : > { %v1254_v16 = vadd.f32 %v1252_v8, %v1238_v56  ;;  %v1287_v29 = vadd.f32 %v1285_v43, %v1271_v51  ;;  %v7257_v8 = vld [vmem:[#allocation33_spill] sm:$0xff]  ;;  %v7259_v43 = vld [vmem:[#allocation22_spill] sm:$0xff]  ;;  %v4341_v51 = vmov 0.0  }
 0x3b2   : > { %v1332_v25 = vmul.f32 %v7253_v1, %v7257_v8  ;;  %v1349_v56 = vmul.f32 %v7259_v43, %v7258_v27  ;;  %1838 = vmatprep.mubr.f32.mxu0 %v4341_v51  ;;  %2719 = vmatprep.mubr.f32.mxu1 %v4341_v51  ;;  %v1348_v31 = vmul.f32 %v7259_v43, %v7263_v20 }
 0x3b3   : > { %v5251_v46 = vpop.permute.xlu1 %1475  ;;  %v1303_v23 = vadd.f32 %v1301_v52, %v1287_v29  ;;  %v1270_v10 = vadd.f32 %v1268_v55, %v1254_v16  ;;  %v5311_v9 = vpop.permute.xlu0 %1563  ;;  %v7261_v52 = vld [vmem:[#allocation37_spill] sm:$0xff]  ;;  %v7262_v16 = vld [vmem:[#allocation19_spill] sm:$0xff]  ;;  %1941 = vperm.xlu0 %4142, %v5375_v5  }
 0x3b4   : > { %v1357_v29 = vmul.f32 %v7262_v16, %v7261_v52 }
 0x3b5   : > { %v1319_v63 = vadd.f32 %v1317_v26, %v1303_v23  ;;  %v1286_v15 = vadd.f32 %v1284_v17, %v1270_v10  ;;  %v1365_v10 = vmul.f32 %v7264_v36, %v4869_v33 }
 0x3b7   : > { %v5266_v14 = vpop.permute.xlu1 %1473  ;;  %v1302_v47 = vadd.f32 %v1300_v0, %v1286_v15  ;;  %v1327_v6 = vadd.f32 %v1325_v58, %v1319_v63  ;;  %v5325_v17 = vpop.permute.xlu0 %1579  ;;  %v1356_v0 = vmul.f32 %v7262_v16, %v4840_v54 }
 0x3b9   : > { %v1318_v37 = vadd.f32 %v1316_v18, %v1302_v47  ;;  %v1335_v4 = vadd.f32 %v1333_v12, %v1327_v6  ;;  %v7266_v47 = vld [vmem:[#allocation57_spill] sm:$0xff] }
 0x3ba   : > { %v1384_v6 = vsel %vm1380_vm7, %v7266_v47, 0.0  ;;  %v5346_v12 = vld [vmem:[%s6992_s5 + $0x18] sm:$0xff] }
 0x3bb   : > { %v5278_v57 = vpop.permute.xlu1 %1491  ;;  %v1326_v39 = vadd.f32 %v1324_v2, %v1318_v37  ;;  %v1343_v61 = vadd.f32 %v1341_v48, %v1335_v4  ;;  %v5335_v58 = vpop.permute.xlu0 %1595  ;;  %v7267_v37 = vld [vmem:[#allocation38_spill] sm:$0xff]  ;;  %v1390_v2 = vmul.f32 %v7268_v40, %v1384_v6  ;;  %1956 = vperm.xlu1 %4140, %v5346_v12   ;;  %v7269_v4 = vld [vmem:[#allocation39_spill] sm:$0xff]  ;;  %v1865_v48 = vld [vmem:[%s6992_s5 + $0x10] sm:$0xff]  ;;  %v1445_v6 = vsel %vm1380_vm7, %v5209_v45, %v5194_v38 }
 0x3bc   : > { %v1364_v13 = vmul.f32 %v7264_v36, %v7267_v37  ;;  %v7274_v36 = vmov 2   ;;  %v1480_v45 = vsel %vm1380_vm7, %v5251_v46, 0.0 }
 0x3bd   : > { %v1334_v34 = vadd.f32 %v1332_v25, %v1326_v39  ;;  %v1351_v32 = vadd.f32 %v1349_v56, %v1343_v61  ;;  %v1372_v39 = vmul.f32 %v7265_v35, %v7269_v4  ;;  %v7270_v25 = vld [vmem:[#allocation58_spill] sm:$0xff]  ;;  %v1416_v56 = vsel %vm1380_vm7, %v5165_v50, 0.0  ;;  %4144 = vset.pattern.permute.xlu0 %v7274_v36  ;;  %v7276_v35 = vld [vmem:[#allocation43_spill] sm:$0xff] }
 0x3be   : > { %v1381_v61 = vsel %vm1380_vm7, %v7270_v25, %v7266_v47  ;;  %2012 = vperm.xlu0 %4144, %v5346_v12   ;;  %v1461_v4 = vsel %vm1380_vm7, %v5241_v62, %v5224_v53  ;;  %v1477_v25 = vsel %vm1380_vm7, %v5266_v14, %v5251_v46  ;;  %v7279_v62 = vld [vmem:[#allocation48_spill] sm:$0xff] }
 0x3bf   : > { %v5288_v49 = vpop.permute.xlu1 %1489  ;;  %v1342_v7 = vadd.f32 %v1340_v59, %v1334_v34  ;;  %v1359_v55 = vadd.f32 %v1357_v29, %v1351_v32  ;;  %v1397_v34 = vsel %vm1380_vm7, %v5148_v11, %v5129_v30  ;;  %v5368_v27 = vpop.permute.xlu0 %1612  ;;  %v7271_v59 = vld [vmem:[#allocation27_spill] sm:$0xff]  ;;  %1951 = vperm.xlu1 %4140, %v1865_v48   ;;  %v1389_v30 = vmul.f32 %v7268_v40, %v1381_v61  ;;  %v7272_v29 = vld [vmem:[#allocation24_spill] sm:$0xff] }
 0x3c0   : > { %v1406_v32 = vmul.f32 %v7271_v59, %v1400_v21  ;;  %v1405_v11 = vmul.f32 %v7271_v59, %v1397_v34  ;;  %v1422_v20 = vmul.f32 %v7272_v29, %v1416_v56  ;;  %v1494_v59 = vsel %vm7129_vm15, %v5288_v49, %v5278_v57  ;;  %v7281_v49 = vld [vmem:[#allocation50_spill] sm:$0xff] }
 0x3c1   : > { %v1350_v23 = vadd.f32 %v1348_v31, %v1342_v7  ;;  %v1367_v15 = vadd.f32 %v1365_v10, %v1359_v55  ;;  %v1413_v7 = vsel %vm1380_vm7, %v5184_v42, %v5165_v50  ;;  %v7275_v50 = vld [vmem:[#allocation42_spill] sm:$0xff] }
 0x3c2   : > { %v1421_v55 = vmul.f32 %v7272_v29, %v1413_v7  ;;  %v1432_v42 = vsel %vm1380_vm7, %v7275_v50, 0.0  ;;  %2004 = vperm.xlu0 %4144, %v1864_v19   ;;  %v7280_v7 = vld [vmem:[#allocation49_spill] sm:$0xff] }
 0x3c3   : > { %v5293_v60 = vpop.permute.xlu1 %1508  ;;  %v1358_v18 = vadd.f32 %v1356_v0, %v1350_v23  ;;  %v1375_v1 = vadd.f32 %v1373_v22, %v1367_v15  ;;  %v7273_v23 = vmov 1   ;;  %v5392_v10 = vpop.permute.xlu0 %1628  ;;  %v1448_v15 = vsel %vm1380_vm7, %v5194_v38, 0.0 }
 0x3c4   : > { %4141 = vset.pattern.permute.xlu1 %v7273_v23  ;;  %v1429_v22 = vsel %vm1380_vm7, %v7276_v35, %v7275_v50  ;;  %v1485_v46 = vmul.f32 %v7280_v7, %v1477_v25  ;;  %v7282_v35 = vld [vmem:[#allocation52_spill] sm:$0xff] }
 0x3c5   : > { %v1366_v54 = vadd.f32 %v1364_v13, %v1358_v18  ;;  %v1392_v8 = vadd.f32 %v1390_v2, %v1375_v1  ;;  %1976 = vperm.xlu1 %4141, %v1865_v48   ;;  %v7277_v13 = vld [vmem:[#allocation26_spill] sm:$0xff]  ;;  %v1464_v2 = vsel %vm1380_vm7, %v5224_v53, 0.0 }
 0x3c6   : > { %v1438_v1 = vmul.f32 %v7277_v13, %v1432_v42  ;;  %v1470_v34 = vmul.f32 %v7279_v62, %v1464_v2  ;;  %2000 = vperm.xlu0 %4144, %v5375_v5  }
 0x3c7   : > { %v5299_v3 = vpop.permute.xlu1 %1506  ;;  %v1374_v43 = vadd.f32 %v1372_v39, %v1366_v54  ;;  %v1408_v16 = vadd.f32 %v1406_v32, %v1392_v8  ;;  %v7278_v54 = vld [vmem:[#allocation28_spill] sm:$0xff]  ;;  %v1437_v39 = vmul.f32 %v7277_v13, %v1429_v22  ;;  %v5421_v61 = vpop.permute.xlu0 %1644 }
 0x3c8   : > { %v1454_v40 = vmul.f32 %v7278_v54, %v1448_v15  ;;  %v1453_v21 = vmul.f32 %v7278_v54, %v1445_v6  ;;  %v7283_v6 = vld [vmem:[#allocation54_spill] sm:$0xff] }
 0x3c9   : > { %v1391_v31 = vadd.f32 %v1389_v30, %v1374_v43  ;;  %v1424_v47 = vadd.f32 %v1422_v20, %v1408_v16  ;;  %1972 = vperm.xlu1 %4141, %v1864_v19   ;;  %v1469_v43 = vmul.f32 %v7279_v62, %v1461_v4  ;;  %v1497_v19 = vsel %vm7129_vm15, %v5278_v57, 0.0 }
 0x3ca   : > { %v1486_v30 = vmul.f32 %v7280_v7, %v1480_v45  ;;  %v1510_v16 = vsel %vm7129_vm15, %v5299_v3, %v5293_v60  ;;  %v1503_v20 = vmul.f32 %v7281_v49, %v1497_v19  ;;  %4146 = vset.pattern.permute.xlu0 %v7273_v23 }
 0x3cb   : > { %v5307_v41 = vpop.permute.xlu1 %1524  ;;  %v1407_v0 = vadd.f32 %v1405_v11, %v1391_v31  ;;  %v1440_v38 = vadd.f32 %v1438_v1, %v1424_v47  ;;  %v1513_v11 = vsel %vm7129_vm15, %v5293_v60, 0.0  ;;  %v1502_v31 = vmul.f32 %v7281_v49, %v1494_v59  ;;  %v5446_v42 = vpop.permute.xlu0 %1660  ;;  %1980 = vperm.xlu0 %4146, %v5346_v12  }
 0x3cc   : > { %v1519_v60 = vmul.f32 %v7282_v35, %v1513_v11  ;;  %v1518_v3 = vmul.f32 %v7282_v35, %v1510_v16 }
 0x3cd   : > { %v1423_v37 = vadd.f32 %v1421_v55, %v1407_v0  ;;  %v1456_v56 = vadd.f32 %v1454_v40, %v1440_v38  ;;  %4143 = vset.pattern.permute.xlu1 %v7274_v36  ;;  %v1529_v55 = vsel %vm7129_vm15, %v5307_v41, 0.0 }
 0x3ce   : > { %2008 = vperm.xlu1 %4143, %v1865_v48  }
 0x3cf   : > { %v5315_v44 = vpop.permute.xlu1 %1522  ;;  %v1439_v53 = vadd.f32 %v1437_v39, %v1423_v37  ;;  %v1472_v29 = vadd.f32 %v1470_v34, %v1456_v56  ;;  %v1535_v37 = vmul.f32 %v7283_v6, %v1529_v55  ;;  %v7284_v39 = vmov 0  }
 0x3d0   : > { %v1526_v50 = vsel %vm7129_vm15, %v5315_v44, %v5307_v41  ;;  %v5456_v44 = vpop.permute.xlu0 %1676 }
 0x3d1   : > { %v1455_v32 = vadd.f32 %v1453_v21, %v1439_v53  ;;  %v1488_v0 = vadd.f32 %v1486_v30, %v1472_v29  ;;  %v1534_v41 = vmul.f32 %v7283_v6, %v1526_v50  ;;  %v7285_v21 = vld [vmem:[#allocation44_spill] sm:$0xff] }
 0x3d2   : > { %4145 = vset.pattern.permute.xlu1 %v7273_v23  ;;  %v1545_v38 = vsel %vm7129_vm15, %v7285_v21, 0.0 }
 0x3d3   : > { %v5323_v26 = vpop.permute.xlu1 %1556  ;;  %v1471_v57 = vadd.f32 %v1469_v43, %v1455_v32  ;;  %v1505_v22 = vadd.f32 %v1503_v20, %v1488_v0  ;;  %1968 = vperm.xlu1 %4145, %v5375_v5   ;;  %v7286_v5 = vld [vmem:[#allocation45_spill] sm:$0xff] }
 0x3d4   : > { %v1561_v40 = vsel %vm7129_vm15, %v5323_v26, 0.0  ;;  %v1542_v45 = vsel %vm7129_vm15, %v7286_v5, %v7285_v21  ;;  %v1693_v59 = vpop.permute.xlu0 %1692 }
 0x3d5   : > { %v1487_v15 = vadd.f32 %v1485_v46, %v1471_v57  ;;  %v1521_v13 = vadd.f32 %v1519_v60, %v1505_v22  ;;  %v1567_v62 = vmul.f32 %v5311_v9, %v1561_v40  ;;  %v7288_v40 = vld [vmem:[#allocation47_spill] sm:$0xff] }
 0x3d7   : > { %v5331_v63 = vpop.permute.xlu1 %1554  ;;  %v1504_v47 = vadd.f32 %v1502_v31, %v1487_v15  ;;  %v1537_v2 = vadd.f32 %v1535_v37, %v1521_v13  ;;  %4147 = vset.pattern.permute.xlu1 %v7284_v39 }
 0x3d8   : > { %v1558_v12 = vsel %vm7129_vm15, %v5331_v63, %v5323_v26  ;;  %v1550_v26 = vmul.f32 %v5303_v24, %v1542_v45  ;;  %v1551_v63 = vmul.f32 %v5303_v24, %v1545_v38 }
 0x3d9   : > { %v1520_v1 = vadd.f32 %v1518_v3, %v1504_v47  ;;  %v1566_v34 = vmul.f32 %v5311_v9, %v1558_v12 }
 0x3da   : > { %v1553_v32 = vadd.f32 %v1551_v63, %v1537_v2 }
 0x3db   : > { %v5341_v33 = vpop.permute.xlu1 %1572  ;;  %v1536_v4 = vadd.f32 %v1534_v41, %v1520_v1 }
 0x3dc   : > { %v1577_v25 = vsel %vm7129_vm15, %v5341_v33, 0.0  ;;  %v1569_v30 = vadd.f32 %v1567_v62, %v1553_v32 }
 0x3df   : > { %v5357_v28 = vpop.permute.xlu1 %1570 }
 0x3e0   : > { %v1574_v53 = vsel %vm7129_vm15, %v5357_v28, %v5341_v33  ;;  %v1552_v33 = vadd.f32 %v1550_v26, %v1536_v4  ;;  %v1583_v28 = vmul.f32 %v5325_v17, %v1577_v25 }
 0x3e1   : > { %v1582_v24 = vmul.f32 %v5325_v17, %v1574_v53 }
 0x3e2   : > { %v1568_v46 = vadd.f32 %v1566_v34, %v1552_v33  ;;  %v1585_v57 = vadd.f32 %v1583_v28, %v1569_v30 }
 0x3e3   : > { %v5384_v52 = vpop.permute.xlu1 %1588 }
 0x3e4   : > { %v1593_v56 = vsel %vm7129_vm15, %v5384_v52, 0.0  ;;  %v1584_v49 = vadd.f32 %v1582_v24, %v1568_v46 }
 0x3e5   : > { %v1599_v11 = vmul.f32 %v5335_v58, %v1593_v56 }
 0x3e7   : > { %v5396_v18 = vpop.permute.xlu1 %1586  ;;  %v1601_v55 = vadd.f32 %v1599_v11, %v1585_v57 }
 0x3e8   : > { %v1590_v19 = vsel %vm7129_vm15, %v5396_v18, %v5384_v52  ;;  %vm1715_vm15 = vcmask 1041408  }
 0x3e9   : > { %v1598_v16 = vmul.f32 %v5335_v58, %v1590_v19 }
 0x3eb   : > { %v5414_v8 = vpop.permute.xlu1 %1604  ;;  %v1600_v50 = vadd.f32 %v1598_v16, %v1584_v49 }
 0x3ec   : > { %v1610_v7 = vsel %vm1606_vm6, %v5414_v8, 0.0 }
 0x3ed   : > { %v1616_v17 = vmul.f32 %v5368_v27, %v1610_v7 }
 0x3ef   : > { %v1603_v14 = vpop.permute.xlu1 %1602  ;;  %v1618_v35 = vadd.f32 %v1616_v17, %v1601_v55 }
 0x3f0   : > { %v1607_v9 = vsel %vm1606_vm6, %v1603_v14, %v5414_v8  ;;  %v1709_v14 = vpop.permute.xlu0 %1708 }
 0x3f1   : > { %v1615_v20 = vmul.f32 %v5368_v27, %v1607_v9 }
 0x3f3   : > { %v1622_v48 = vpop.permute.xlu1 %1621  ;;  %v1617_v60 = vadd.f32 %v1615_v20, %v1600_v50 }
 0x3f4   : > { %v1626_v18 = vsel %vm1606_vm6, %v1622_v48, 0.0  ;;  %v1684_v41 = vpop.permute.xlu0 %1683 }
 0x3f5   : > { %v1632_v58 = vmul.f32 %v5392_v10, %v1626_v18 }
 0x3f7   : > { %v1620_v54 = vpop.permute.xlu1 %1619  ;;  %v1634_v22 = vadd.f32 %v1632_v58, %v1618_v35 }
 0x3f8   : > { %v1623_v29 = vsel %vm1606_vm6, %v1620_v54, %v1622_v48  ;;  %v7287_v54 = vld [vmem:[#allocation46_spill] sm:$0xff]  ;;  %v1700_v62 = vpop.permute.xlu0 %1699 }
 0x3f9   : > { %v1631_v0 = vmul.f32 %v5392_v10, %v1623_v29  ;;  %v1658_v10 = vsel %vm1606_vm6, %v7287_v54, 0.0  ;;  %v1655_v12 = vsel %vm1606_vm6, %v7288_v40, %v7287_v54 }
 0x3fa   : > { %v1663_v2 = vmul.f32 %v5446_v42, %v1655_v12  ;;  %v7294_v12 = vld [vmem:[#allocation8_spill] sm:$0xff] }
 0x3fb   : > { %v1638_v43 = vpop.permute.xlu1 %1637  ;;  %v1633_v27 = vadd.f32 %v1631_v0, %v1617_v60 }
 0x3fc   : > { %v1642_v31 = vsel %vm1606_vm6, %v1638_v43, 0.0 }
 0x3fd   : > { %v1648_v3 = vmul.f32 %v5421_v61, %v1642_v31 }
 0x3ff   : > { %v1636_v52 = vpop.permute.xlu1 %1635  ;;  %v1650_v13 = vadd.f32 %v1648_v3, %v1634_v22 }
 0x400   : > { %v1639_v8 = vsel %vm1606_vm6, %v1636_v52, %v1638_v43 }
 0x401   : > { %v1647_v48 = vmul.f32 %v5421_v61, %v1639_v8  ;;  %v1664_v61 = vmul.f32 %v5446_v42, %v1658_v10  ;;  %v7293_v10 = vld [vmem:[#allocation9_spill] sm:$0xff] }
 0x403   : > { %v1670_v15 = vpop.permute.xlu1 %1669  ;;  %v1649_v1 = vadd.f32 %v1647_v48, %v1633_v27  ;;  %v1666_v25 = vadd.f32 %v1664_v61, %v1650_v13  ;;  %v7289_v48 = vld [vmem:[#allocation12_spill] sm:$0xff]  ;;  %v7290_v27 = vld [vmem:[#allocation13_spill] sm:$0xff]  ;;  %v7292_v13 = vld [vmem:[#allocation10_spill] sm:$0xff] }
 0x404   : > { %v1674_v6 = vsel %vm1606_vm6, %v1670_v15, 0.0 }
 0x405   : > { %v1680_v4 = vmul.f32 %v5456_v44, %v1674_v6  ;;  %v1665_v53 = vadd.f32 %v1663_v2, %v1649_v1  ;;  %v7291_v6 = vld [vmem:[#allocation11_spill] sm:$0xff] }
 0x407   : > { %v1668_v47 = vpop.permute.xlu1 %1667  ;;  %v1682_v34 = vadd.f32 %v1680_v4, %v1666_v25  ;;  %v7295_v4 = vld [vmem:[#allocation7_spill] sm:$0xff] }
 0x408   : > { %v1671_v37 = vsel %vm1606_vm6, %v1668_v47, %v1670_v15 }
 0x409   : > { %v1679_v21 = vmul.f32 %v5456_v44, %v1671_v37 }
 0x40b   : > { %v1686_v38 = vpop.permute.xlu1 %1685  ;;  %v1681_v43 = vadd.f32 %v1679_v21, %v1665_v53 }
 0x40c   : > { %v1687_v5 = vsel %vm1606_vm6, %v1684_v41, %v1686_v38  ;;  %v1690_v45 = vsel %vm1606_vm6, %v1686_v38, 0.0 }
 0x40d   : > { %v1695_v26 = vmul.f32 %v1693_v59, %v1687_v5  ;;  %v1696_v63 = vmul.f32 %v1693_v59, %v1690_v45  ;;  %v7296_v5 = vld [vmem:[#allocation6_spill] sm:$0xff] }
 0x40f   : > { %v1702_v56 = vpop.permute.xlu1 %1701  ;;  %v1697_v32 = vadd.f32 %v1695_v26, %v1681_v43  ;;  %v1698_v33 = vadd.f32 %v1696_v63, %v1682_v34  ;;  %v1759_v34 = vld [vmem:[%s6991_s4 + $0x8] sm:$0xff]  ;;  %v1760_v43 = vld [vmem:[%s6991_s4 + $0x10] sm:$0xff] }
 0x410   : > { %v1703_v19 = vsel %vm1606_vm6, %v1700_v62, %v1702_v56  ;;  %v1706_v42 = vsel %vm1606_vm6, %v1702_v56, 0.0  ;;  %v1758_v62 = vld [vmem:[%s6991_s4] sm:$0xff]  ;;  %v1761_v56 = vld [vmem:[%s6991_s4 + $0x18] sm:$0xff] }
 0x411   : > { %v1711_v44 = vmul.f32 %v1709_v14, %v1703_v19  ;;  %v1712_v28 = vmul.f32 %v1709_v14, %v1706_v42 }
 0x413   : > { %v1713_v24 = vadd.f32 %v1711_v44, %v1697_v32  ;;  %v1714_v7 = vadd.f32 %v1712_v28, %v1698_v33 }
 0x415   : > { %v1716_v9 = vsel %vm1715_vm15, %v1713_v24, 0.0  ;;  %v1723_v30 = vsel %vm1715_vm15, %v1714_v7, 0.0  ;;  %v2034_v7 = vld [vmem:[%s6993_s6 + $0x18] sm:$0xff] }
 0x416   : > { %v1717_v59 = vrot.slane %v1716_v9, 4  ;;  %v1724_v46 = vrot.slane %v1723_v30, 4 }
 0x418   : > { %v1718_v11 = vadd.f32 %v1717_v59, %v1716_v9  ;;  %v1725_v16 = vadd.f32 %v1724_v46, %v1723_v30  ;;  %v2033_v9 = vld [vmem:[%s6993_s6 + $0x10] sm:$0xff]  ;;  %v2032_v30 = vld [vmem:[%s6993_s6 + $0x8] sm:$0xff]  ;;  %v2031_v46 = vld [vmem:[%s6993_s6] sm:$0xff] }
 0x41a   : > { %v1719_v52 = vrot.slane %v1718_v11, 2  ;;  %v1726_v18 = vrot.slane %v1725_v16, 2 }
 0x41c   : > { %v1720_v29 = vadd.f32 %v1719_v52, %v1718_v11  ;;  %v1727_v57 = vadd.f32 %v1726_v18, %v1725_v16  ;;  %v2217_v11 = vld [vmem:[%s6994_s7 + $0x10] sm:$0xff]  ;;  %v2218_v52 = vld [vmem:[%s6994_s7 + $0x18] sm:$0xff] }
 0x41d   : > { %v2249_v16 = vld [vmem:[%s6995_s8 + $0x10] sm:$0xff]  ;;  %v2250_v18 = vld [vmem:[%s6995_s8 + $0x18] sm:$0xff] }
 0x41e   : > { %v1721_v49 = vrot.slane %v1720_v29, 1  ;;  %v1728_v17 = vrot.slane %v1727_v57, 1 }
 0x420   : > { %v1722_v20 = vadd.f32 %v1721_v49, %v1720_v29  ;;  %v1729_v31 = vadd.f32 %v1728_v17, %v1727_v57  ;;  %v2216_v29 = vld [vmem:[%s6994_s7 + $0x8] sm:$0xff] }
 0x422   : > { %v1730_v8 = vsub.f32 0.0, %v1722_v20  ;;  %v1731_v14 = vsub.f32 0.0, %v1729_v31 }
 0x424   : > { %v1732_v55 = vmul.f32 1.442695, %v1730_v8  ;;  %v1734_v50 = vmul.f32 1.442695, %v1731_v14 }
 0x426   : > { %4240 = vpow2.f32 %v1732_v55 }
 0x427   : > { %4242 = vpow2.f32 %v1734_v50 }
 0x429   : > { %v1947_v49 = vpop.permute.xlu0 %1946 }
 0x42e   : > { %v1942_v20 = vpop.permute.xlu0 %1941 }
 0x433   : > { %v4241_v58 = vpop.eup %4240 }
 0x434   : > { %v4243_v0 = vpop.eup %4242  ;;  %v1736_v15 = vadd.f32 1.0, %v4241_v58 }
 0x435   : > { %v1737_v35 = vadd.f32 1.0, %v4243_v0 }
 0x436   : > { %4244 = vrcp.f32 %v1736_v15  ;;  %v5628_v57 = vpop.permute.xlu1 %1956 }
 0x437   : > { %4246 = vrcp.f32 %v1737_v35 }
 0x439   : > { %v5634_v8 = vpop.permute.xlu0 %2012 }
 0x43a   : > { %v5630_v17 = vpop.permute.xlu1 %1951 }
 0x43d   : > { %v2005_v55 = vpop.permute.xlu0 %2004 }
 0x440   : > { %v5632_v31 = vpop.permute.xlu1 %1976 }
 0x441   : > { %v2001_v58 = vpop.permute.xlu0 %2000 }
 0x443   : > { %v4245_v60 = vpop.eup %4244 }
 0x444   : > { %v4247_v3 = vpop.eup %4246  ;;  %v1748_v22 = vmul.f32 %v4245_v60, %v7289_v48  ;;  %v1746_v1 = vmul.f32 %v4245_v60, %v7292_v13  ;;  %v1744_v2 = vmul.f32 %v4245_v60, %v7294_v12  ;;  %v1742_v45 = vmul.f32 %v4245_v60, %v7296_v5  ;;  %v1973_v14 = vpop.permute.xlu1 %1972 }
 0x445   : > { %v1749_v47 = vmul.f32 %v4247_v3, %v7290_v27  ;;  %v1747_v37 = vmul.f32 %v4247_v3, %v7291_v6  ;;  %v1745_v40 = vmul.f32 %v4247_v3, %v7293_v10  ;;  %v1743_v21 = vmul.f32 %v4247_v3, %v7295_v4 }
 0x446   : > { %v1756_v41 = vmax.f32 %v1748_v22, 0.0  ;;  %v1754_v38 = vmax.f32 %v1746_v1, 0.0  ;;  %v1752_v53 = vmax.f32 %v1744_v2, 0.0  ;;  %v1750_v63 = vmax.f32 %v1742_v45, 0.0  ;;  %v5636_v15 = vpop.permute.xlu0 %1980 }
 0x447   : > { %v1757_v54 = vmax.f32 %v1749_v47, 0.0  ;;  %v1755_v61 = vmax.f32 %v1747_v37, 0.0  ;;  %v1753_v25 = vmax.f32 %v1745_v40, 0.0  ;;  %v1751_v26 = vmax.f32 %v1743_v21, 0.0 }
 0x449   : > { %1798 = vmatprep.subr.mxu0 %v1757_v54  ;;  %v2009_v50 = vpop.permute.xlu1 %2008 }
 0x44a   : > { %1799 = vmatpush1.msra.mxu0 %v1756_v41 }
 0x44b   : > { %1800 = vmatprep.subr.mxu0 %v1755_v61 }
 0x44c   : > { %1801 = vmatpush1.msra.mxu0 %v1754_v38 }
 0x44d   : > { %1802 = vmatprep.subr.mxu0 %v1753_v25 }
 0x44e   : > { %1803 = vmatpush1.msra.mxu0 %v1752_v53  ;;  %v1969_v0 = vpop.permute.xlu1 %1968 }
 0x44f   : > { %1804 = vmatprep.subr.mxu0 %v1751_v26 }
 0x450   : > { %1805 = vmatpush1.msra.mxu0 %v1750_v63 }
 0x451   : > { %3994 = vmatmul.mubr.msk.f32.vlgmr.msra.gmra.mxu0 %vm1098_vm14, %v1758_v62 }
 0x452   : > { %1844 = vmatprep.mubr.f32.mxu0 %v4341_v51 }
 0x455   : > { %3995 = vmatmul.mubr.msk.f32.gmra.mxu0 %vm1098_vm14, %v1759_v34 }
 0x456   : > { %1850 = vmatprep.mubr.f32.mxu0 %v4341_v51 }
 0x459   : > { %3996 = vmatmul.mubr.msk.f32.gmra.mxu0 %vm1098_vm14, %v1760_v43 }
 0x45a   : > { %1856 = vmatprep.mubr.f32.mxu0 %v4341_v51 }
 0x45d   : > { %3997 = vmatmul.mubr.msk.f32.gmra.mxu0 %vm1098_vm14, %v1761_v56 }
 0x511   : > { %v5545_v19 = vpop.f32.mrf.mxu0 }
 0x512   : > { %1875 = vrot.lane.b32.xlu1 %v5545_v19, %s7144_s21  ;;  %v1983_v12 = vmul.f32 %v1969_v0, %v5545_v19 }
 0x513   : > { %v5549_v42 = vpop.f32.mrf.mxu0 }
 0x514   : > { %1877 = vrot.lane.b32.xlu0 %v5549_v42, %s7144_s21  ;;  %v1984_v61 = vmul.f32 %v1969_v0, %v5549_v42 }
 0x515   : > { %v5553_v32 = vpop.f32.mrf.mxu0 }
 0x516   : > { %1907 = vrot.lane.b32.xlu1 %v5545_v19, %s7142_s22  ;;  %v1985_v56 = vmul.f32 %v1973_v14, %v5553_v32 }
 0x517   : > { %v5557_v33 = vpop.f32.mrf.mxu0 }
 0x518   : > { %1913 = vrot.lane.b32.xlu0 %v5557_v33, %s7142_s22  ;;  %v1986_v4 = vmul.f32 %v1973_v14, %v5557_v33 }
 0x519   : > { %v5561_v44 = vpop.f32.mrf.mxu0 }
 0x51a   : > { %1879 = vrot.lane.b32.xlu1 %v5553_v32, %s7144_s21 }
 0x51b   : > { %v5567_v28 = vpop.f32.mrf.mxu0 }
 0x51c   : > { %1883 = vrot.lane.b32.xlu0 %v5561_v44, %s7144_s21 }
 0x51d   : > { %v5573_v24 = vpop.f32.mrf.mxu0 }
 0x51e   : > { %1911 = vrot.lane.b32.xlu1 %v5553_v32, %s7142_s22 }
 0x51f   : > { %v5597_v59 = vpop.f32.mrf.mxu0 }
 0x520   : > { %1915 = vrot.lane.b32.xlu0 %v5561_v44, %s7142_s22 }
 0x522   : > { %1881 = vrot.lane.b32.xlu1 %v5557_v33, %s7144_s21 }
 0x524   : > { %1919 = vrot.lane.b32.xlu0 %v5573_v24, %s7142_s22 }
 0x526   : > { %1885 = vrot.lane.b32.xlu1 %v5567_v28, %s7144_s21 }
 0x528   : > { %1909 = vrot.lane.b32.xlu0 %v5549_v42, %s7142_s22 }
 0x52a   : > { %1917 = vrot.lane.b32.xlu1 %v5567_v28, %s7142_s22 }
 0x52c   : > { %2164 = vperm.xlu0 %4146, %v2034_v7  }
 0x52e   : > { %1887 = vrot.lane.b32.xlu1 %v5573_v24, %s7144_s21 }
 0x530   : > { %4149 = vset.pattern.permute.xlu0 %v7274_v36 }
 0x531   : > { %2196 = vperm.xlu0 %4149, %v2034_v7  }
 0x532   : > { %2140 = vperm.xlu1 %4147, %v2034_v7  }
 0x535   : > { %2188 = vperm.xlu0 %4149, %v2032_v30  }
 0x536   : > { %2135 = vperm.xlu1 %4147, %v2033_v9  }
 0x539   : > { %4152 = vset.pattern.permute.xlu0 %v7284_v39 }
 0x53a   : > { %1889 = vrot.lane.b32.xlu1 %v5597_v59, %s7144_s21  ;;  %2130 = vperm.xlu0 %4152, %v2032_v30  }
 0x53b   : > { %4148 = vset.pattern.permute.xlu1 %v7273_v23 }
 0x53e   : > { %1921 = vrot.lane.b32.xlu1 %v5597_v59, %s7142_s22  ;;  %2125 = vperm.xlu0 %4152, %v2031_v46  }
 0x542   : > { %2160 = vperm.xlu1 %4148, %v2033_v9   ;;  %2231 = vperm.xlu0 %4152, %v2217_v11  }
 0x546   : > { %2156 = vperm.xlu1 %4148, %v2032_v30   ;;  %2263 = vperm.xlu0 %4152, %v2249_v16  }
 0x54a   : > { %4150 = vset.pattern.permute.xlu1 %v7274_v36 }
 0x54b   : > { %2192 = vperm.xlu1 %4150, %v2033_v9  }
 0x54f   : > { %4151 = vset.pattern.permute.xlu1 %v7273_v23 }
 0x550   : > { %2152 = vperm.xlu1 %4151, %v2031_v46  }
 0x554   : > { %4153 = vset.pattern.permute.xlu1 %v7284_v39 }
 0x555   : > { %2236 = vperm.xlu1 %4153, %v2218_v52  }
 0x559   : > { %4154 = vset.pattern.permute.xlu1 %v7274_v36 }
 0x55a   : > { %2184 = vperm.xlu1 %4154, %v2031_v46  }
 0x55e   : > { %4155 = vset.pattern.permute.xlu1 %v7284_v39 }
 0x55f   : > { %2268 = vperm.xlu1 %4155, %v2250_v18  }
 0x563   : > { %2226 = vperm.xlu1 %4155, %v2216_v29  }
 0x584   : > { %v1876_v35 = vpop.permute.xlu1 %1875 }
 0x585   : > { %v1903_v37 = vsel %vm1211_vm13, 0.0, %v1876_v35 }
 0x586   : > { %v1878_v60 = vpop.permute.xlu0 %1877  ;;  %v1959_v54 = vmul.f32 %v1942_v20, %v1903_v37 }
 0x587   : > { %v1891_v13 = vsel %vm1211_vm13, %v1876_v35, %v1878_v60  ;;  %v1988_v60 = vmul.f32 %v5632_v31, %v5567_v28 }
 0x588   : > { %v1908_v3 = vpop.permute.xlu1 %1907  ;;  %v1960_v40 = vmul.f32 %v1942_v20, %v1891_v13  ;;  %v1991_v45 = vadd.f32 %v1983_v12, %v1959_v54  ;;  %v1987_v20 = vmul.f32 %v5632_v31, %v5561_v44  ;;  %v1990_v12 = vmul.f32 %v5636_v15, %v5597_v59  ;;  %v2248_v59 = vld [vmem:[%s6995_s8 + $0x8] sm:$0xff] }
 0x58a   : > { %v1914_v48 = vpop.permute.xlu0 %1913  ;;  %v1992_v63 = vadd.f32 %v1984_v61, %v1960_v40 }
 0x58b   : > { %v1936_v19 = vsel %vm1380_vm7, %v1914_v48, 0.0 }
 0x58c   : > { %v1880_v22 = vpop.permute.xlu1 %1879  ;;  %v2018_v30 = vmul.f32 %v2005_v55, %v1936_v19 }
 0x58d   : > { %v1904_v2 = vsel %vm1211_vm13, 0.0, %v1880_v22 }
 0x58e   : > { %v1884_v27 = vpop.permute.xlu0 %1883  ;;  %v1961_v62 = vmul.f32 %v1947_v49, %v1904_v2 }
 0x58f   : > { %v1905_v16 = vsel %vm1211_vm13, 0.0, %v1884_v27 }
 0x590   : > { %v1912_v47 = vpop.permute.xlu1 %1911  ;;  %v1993_v46 = vadd.f32 %v1985_v56, %v1961_v62  ;;  %v1963_v29 = vmul.f32 %v5630_v17, %v1905_v16 }
 0x591   : > { %v1924_v25 = vsel %vm1380_vm7, %v1912_v47, %v1914_v48 }
 0x592   : > { %v1916_v6 = vpop.permute.xlu0 %1915  ;;  %v2017_v42 = vmul.f32 %v2005_v55, %v1924_v25 }
 0x594   : > { %v1882_v41 = vpop.permute.xlu1 %1881  ;;  %v5661_v32 = vadd.f32 %v2017_v42, %v1993_v46 }
 0x595   : > { %v1892_v10 = vsel %vm1211_vm13, %v1880_v22, %v1882_v41 }
 0x596   : > { %v5640_v1 = vpop.permute.xlu0 %1919  ;;  %v1962_v21 = vmul.f32 %v1947_v49, %v1892_v10 }
 0x598   : > { %v1886_v38 = vpop.permute.xlu1 %1885  ;;  %v1994_v33 = vadd.f32 %v1986_v4, %v1962_v21  ;;  %v2247_v21 = vld [vmem:[%s6995_s8] sm:$0xff] }
 0x599   : > { %v1893_v49 = vsel %vm1211_vm13, %v1884_v27, %v1886_v38  ;;  %v2287_v38 = vld [vmem:[%s6996_s9] sm:$0xff] }
 0x59a   : > { %v1910_v5 = vpop.permute.xlu0 %1909  ;;  %v5663_v52 = vadd.f32 %v2018_v30, %v1994_v33  ;;  %v1964_v0 = vmul.f32 %v5630_v17, %v1893_v49 }
 0x59b   : > { %v1923_v53 = vsel %vm1380_vm7, %v1908_v3, %v1910_v5  ;;  %v1935_v26 = vsel %vm1380_vm7, %v1910_v5, 0.0 }
 0x59c   : > { %v2015_v34 = vmul.f32 %v2001_v58, %v1923_v53  ;;  %v2016_v43 = vmul.f32 %v2001_v58, %v1935_v26  ;;  %v1918_v11 = vpop.permute.xlu1 %1917  ;;  %v1995_v58 = vadd.f32 %v1987_v20, %v1963_v29  ;;  %v1996_v44 = vadd.f32 %v1988_v60, %v1964_v0 }
 0x59d   : > { %v1925_v18 = vsel %vm1380_vm7, %v1916_v6, %v1918_v11  ;;  %v1937_v55 = vsel %vm1380_vm7, %v1918_v11, 0.0  ;;  %v1989_v6 = vmul.f32 %v5636_v15, %v5573_v24  ;;  %v2215_v15 = vld [vmem:[%s6994_s7] sm:$0xff] }
 0x59e   : > { %v5652_v7 = vadd.f32 %v2015_v34, %v1991_v45  ;;  %v5654_v9 = vadd.f32 %v2016_v43, %v1992_v63  ;;  %v2019_v14 = vmul.f32 %v2009_v50, %v1925_v18  ;;  %v2020_v3 = vmul.f32 %v2009_v50, %v1937_v55 }
 0x5a0   : > { %2045 = vrot.lane.b32.xlu0 %v5654_v9, %s7140_s0  ;;  %2043 = vrot.lane.b32.xlu1 %v5652_v7, %s7140_s0  ;;  %v1888_v35 = vpop.permute.xlu1 %1887  ;;  %v5682_v48 = vadd.f32 %v2019_v14, %v1995_v58  ;;  %v5690_v22 = vadd.f32 %v2020_v3, %v1996_v44 }
 0x5a1   : > { %v1906_v31 = vsel %vm1211_vm13, 0.0, %v1888_v35 }
 0x5a2   : > { %v1965_v27 = vmul.f32 %v5628_v57, %v1906_v31 }
 0x5a4   : > { %2049 = vrot.lane.b32.xlu0 %v5663_v52, %s7140_s0  ;;  %2047 = vrot.lane.b32.xlu1 %v5661_v32, %s7140_s0  ;;  %v1997_v54 = vadd.f32 %v1989_v6, %v1965_v27 }
 0x5a7   : > { %v5760_v53 = vpop.permute.xlu0 %2164 }
 0x5a8   : > { %2089 = vrot.lane.b32.xlu0 %v5663_v52, %s7138_s27  ;;  %2087 = vrot.lane.b32.xlu1 %v5661_v32, %s7138_s27 }
 0x5ac   : > { %2051 = vrot.lane.b32.xlu0 %v5682_v48, %s7140_s0  ;;  %2091 = vrot.lane.b32.xlu1 %v5682_v48, %s7138_s27  ;;  %v5762_v26 = vpop.permute.xlu0 %2196 }
 0x5ad   : > { %v5688_v17 = vpop.permute.xlu1 %2140 }
 0x5b0   : > { %2093 = vrot.lane.b32.xlu0 %v5690_v22, %s7138_s27  ;;  %2053 = vrot.lane.b32.xlu1 %v5690_v22, %s7140_s0  ;;  %v5766_v34 = vpop.permute.xlu0 %2188 }
 0x5b1   : > { %v5696_v28 = vpop.permute.xlu1 %2135 }
 0x5b5   : > { %v1890_v50 = vpop.permute.xlu1 %1889  ;;  %v2131_v56 = vpop.permute.xlu0 %2130 }
 0x5b6   : > { %v1894_v47 = vsel %vm1211_vm13, %v1888_v35, %v1890_v50 }
 0x5b7   : > { %v1966_v10 = vmul.f32 %v5628_v57, %v1894_v47  ;;  %v2290_v57 = vld [vmem:[%s6996_s9 + $0x18] sm:$0xff] }
 0x5b9   : > { %v1922_v37 = vpop.permute.xlu1 %1921  ;;  %v1998_v4 = vadd.f32 %v1990_v12, %v1966_v10  ;;  %v2126_v42 = vpop.permute.xlu0 %2125 }
 0x5ba   : > { %v1926_v41 = vsel %vm1380_vm7, %v5640_v1, %v1922_v37  ;;  %v1938_v13 = vsel %vm1380_vm7, %v1922_v37, 0.0  ;;  %v2288_v1 = vld [vmem:[%s6996_s9 + $0x8] sm:$0xff] }
 0x5bb   : > { %v2021_v40 = vmul.f32 %v5634_v8, %v1926_v41  ;;  %v2022_v2 = vmul.f32 %v5634_v8, %v1938_v13  ;;  %v2289_v8 = vld [vmem:[%s6996_s9 + $0x10] sm:$0xff]  ;;  %v7297_v13 = vld [vmem:[#allocation29_spill] sm:$0xff] }
 0x5bd   : > { %v5711_v61 = vadd.f32 %v2021_v40, %v1997_v54  ;;  %v5717_v24 = vadd.f32 %v2022_v2, %v1998_v4  ;;  %v5752_v5 = vpop.permute.xlu1 %2160  ;;  %v5772_v30 = vpop.permute.xlu0 %2231 }
 0x5be   : > { %v2171_v40 = vmul.f32 %v5752_v5, %v5682_v48 }
 0x5bf   : > { %2095 = vrot.lane.b32.xlu0 %v5711_v61, %s7138_s27  ;;  %2055 = vrot.lane.b32.xlu1 %v5711_v61, %s7140_s0 }
 0x5c1   : > { %v5756_v45 = vpop.permute.xlu1 %2156  ;;  %v5774_v11 = vpop.permute.xlu0 %2263 }
 0x5c2   : > { %v2169_v12 = vmul.f32 %v5756_v45, %v5661_v32 }
 0x5c3   : > { %2085 = vrot.lane.b32.xlu0 %v5654_v9, %s7138_s27  ;;  %2057 = vrot.lane.b32.xlu1 %v5717_v24, %s7140_s0 }
 0x5c6   : > { %v5758_v25 = vpop.permute.xlu1 %2192 }
 0x5c7   : > { %2258 = vperm.xlu0 %4152, %v2248_v59   ;;  %2097 = vrot.lane.b32.xlu1 %v5717_v24, %s7138_s27 }
 0x5cb   : > { %2380 = vperm.xlu0 %4152, %v2290_v57   ;;  %2083 = vrot.lane.b32.xlu1 %v5652_v7, %s7138_s27  ;;  %v2153_v63 = vpop.permute.xlu1 %2152  ;;  %s7355_s27 = smov 48  }
 0x5cf   : > { %2375 = vperm.xlu0 %4152, %v2289_v8   ;;  %2221 = vperm.xlu1 %4155, %v2215_v15  }
 0x5d0   : > { %v5764_v62 = vpop.permute.xlu1 %2236 }
 0x5d3   : > { %2370 = vperm.xlu0 %4152, %v2288_v1   ;;  %2253 = vperm.xlu1 %4155, %v2247_v21  }
 0x5d5   : > { %v2185_v43 = vpop.permute.xlu1 %2184 }
 0x5d7   : > { %2365 = vperm.xlu0 %4152, %v2287_v38   ;;  %4156 = vset.pattern.permute.xlu1 %v7273_v23 }
 0x5d8   : > { %2404 = vperm.xlu1 %4156, %v2290_v57  }
 0x5da   : > { %v5768_v19 = vpop.permute.xlu1 %2268 }
 0x5db   : > { %4158 = vset.pattern.permute.xlu0 %v7274_v36 }
 0x5dc   : > { %2400 = vperm.xlu1 %4156, %v2289_v8   ;;  %2436 = vperm.xlu0 %4158, %v2290_v57  }
 0x5de   : > { %v5770_v33 = vpop.permute.xlu1 %2226 }
 0x5e0   : > { %2396 = vperm.xlu1 %4156, %v2288_v1   ;;  %2428 = vperm.xlu0 %4158, %v2288_v1   ;;  %v7298_v1 = vld [vmem:[#allocation30_spill] sm:$0xff] }
 0x5e4   : > { %4157 = vset.pattern.permute.xlu1 %v7274_v36  ;;  %2424 = vperm.xlu0 %4158, %v2287_v38  }
 0x5e5   : > { %2432 = vperm.xlu1 %4157, %v2289_v8  }
 0x5e8   : > { %4161 = vset.pattern.permute.xlu0 %v7273_v23 }
 0x5e9   : > { %4159 = vset.pattern.permute.xlu1 %v7273_v23 }
 0x5ea   : > { %2392 = vperm.xlu1 %4159, %v2287_v38  }
 0x5ee   : > { %4160 = vset.pattern.permute.xlu1 %v7284_v39 }
 0x612   : > { %v2044_v46 = vpop.permute.xlu1 %2043  ;;  %v2046_v18 = vpop.permute.xlu0 %2045 }
 0x613   : > { %v2071_v27 = vsel %vm633_vm0, 0.0, %v2044_v46  ;;  %v2059_v41 = vsel %vm633_vm0, %v2044_v46, %v2046_v18  ;;  %v2167_v46 = vmul.f32 %v2153_v63, %v5652_v7 }
 0x614   : > { %v2075_v59 = vsel %vm576_vm8, 0.0, %v2071_v27  ;;  %v2076_v48 = vsel %vm577_vm9, 0.0, %v2059_v41 }
 0x615   : > { %v2144_v7 = vmul.f32 %v2126_v42, %v2076_v48 }
 0x616   : > { %v2048_v16 = vpop.permute.xlu1 %2047  ;;  %v2050_v49 = vpop.permute.xlu0 %2049 }
 0x617   : > { %v2072_v31 = vsel %vm633_vm0, 0.0, %v2048_v16  ;;  %v2060_v2 = vsel %vm633_vm0, %v2048_v16, %v2050_v49  ;;  %v2168_v16 = vmul.f32 %v2153_v63, %v5654_v9 }
 0x618   : > { %v2077_v54 = vsel %vm576_vm8, 0.0, %v2072_v31  ;;  %v2078_v18 = vsel %vm577_vm9, 0.0, %v2060_v2 }
 0x619   : > { %v2145_v21 = vmul.f32 %v2131_v56, %v2077_v54  ;;  %v2146_v27 = vmul.f32 %v2131_v56, %v2078_v18  ;;  %v2172_v56 = vmul.f32 %v5752_v5, %v5690_v22 }
 0x61a   : > { %v2088_v29 = vpop.permute.xlu1 %2087  ;;  %v2090_v14 = vpop.permute.xlu0 %2089 }
 0x61b   : > { %v2100_v4 = vsel %vm927_vm10, %v2088_v29, %v2090_v14  ;;  %v2112_v49 = vsel %vm927_vm10, %v2090_v14, 0.0 }
 0x61c   : > { %v2117_v29 = vsel %vm582_vm11, 0.0, %v2100_v4 }
 0x61d   : > { %v2201_v14 = vmul.f32 %v5766_v34, %v2117_v29 }
 0x61e   : > { %v2092_v20 = vpop.permute.xlu1 %2091  ;;  %v2052_v58 = vpop.permute.xlu0 %2051 }
 0x61f   : > { %v2073_v50 = vsel %vm633_vm0, 0.0, %v2052_v58 }
 0x620   : > { %v2079_v10 = vsel %vm576_vm8, 0.0, %v2073_v50  ;;  %v2177_v50 = vadd.f32 %v2169_v12, %v2145_v21 }
 0x621   : > { %v2147_v32 = vmul.f32 %v5696_v28, %v2079_v10 }
 0x622   : > { %v2054_v55 = vpop.permute.xlu1 %2053  ;;  %v2094_v35 = vpop.permute.xlu0 %2093 }
 0x623   : > { %v2101_v47 = vsel %vm927_vm10, %v2092_v20, %v2094_v35  ;;  %v2061_v38 = vsel %vm633_vm0, %v2052_v58, %v2054_v55  ;;  %v2143_v58 = vmul.f32 %v2126_v42, %v2075_v59  ;;  %v2113_v10 = vsel %vm927_vm10, %v2094_v35, 0.0 }
 0x624   : > { %v2119_v57 = vsel %vm582_vm11, 0.0, %v2101_v47  ;;  %v2080_v9 = vsel %vm577_vm9, 0.0, %v2061_v38  ;;  %v2179_v47 = vadd.f32 %v2171_v40, %v2147_v32  ;;  %v2176_v40 = vadd.f32 %v2168_v16, %v2144_v7 }
 0x625   : > { %v2203_v20 = vmul.f32 %v5758_v25, %v2119_v57  ;;  %v2148_v42 = vmul.f32 %v5696_v28, %v2080_v9  ;;  %v2175_v4 = vadd.f32 %v2167_v46, %v2143_v58  ;;  %v2170_v59 = vmul.f32 %v5756_v45, %v5663_v52 }
 0x626   : > { %v2209_v28 = vadd.f32 %v2201_v14, %v2177_v50  ;;  %v2120_v35 = vsel %vm583_vm12, 0.0, %v2113_v10  ;;  %v2173_v52 = vmul.f32 %v5760_v53, %v5711_v61 }
 0x627   : > { %v2211_v2 = vadd.f32 %v2203_v20, %v2179_v47  ;;  %v2178_v22 = vadd.f32 %v2170_v59, %v2146_v27  ;;  %v2180_v5 = vadd.f32 %v2172_v56, %v2148_v42  ;;  %v2204_v38 = vmul.f32 %v5758_v25, %v2120_v35 }
 0x629   : > { %v2243_v21 = vmul.f32 %v5772_v30, %v2211_v2 }
 0x62b   : > { %v2275_v61 = vadd.f32 %v5774_v11, %v2243_v21 }
 0x631   : > { %v5776_v0 = vpop.permute.xlu1 %2055  ;;  %v2096_v3 = vpop.permute.xlu0 %2095 }
 0x632   : > { %v2074_v63 = vsel %vm633_vm0, 0.0, %v5776_v0 }
 0x633   : > { %v2081_v12 = vsel %vm576_vm8, 0.0, %v2074_v63 }
 0x635   : > { %v5778_v60 = vpop.permute.xlu1 %2057  ;;  %v2086_v6 = vpop.permute.xlu0 %2085 }
 0x636   : > { %v2111_v8 = vsel %vm927_vm10, %v2086_v6, 0.0  ;;  %v2062_v58 = vsel %vm633_vm0, %v5776_v0, %v5778_v60 }
 0x637   : > { %v2116_v31 = vsel %vm583_vm12, 0.0, %v2111_v8  ;;  %v2149_v8 = vmul.f32 %v5688_v17, %v2081_v12  ;;  %v2082_v60 = vsel %vm577_vm9, 0.0, %v2062_v58 }
 0x639   : > { %v5780_v44 = vpop.permute.xlu1 %2097  ;;  %v2181_v29 = vadd.f32 %v2173_v52, %v2149_v8 }
 0x63a   : > { %v2102_v41 = vsel %vm927_vm10, %v2096_v3, %v5780_v44  ;;  %v2114_v50 = vsel %vm927_vm10, %v5780_v44, 0.0  ;;  %v2150_v44 = vmul.f32 %v5688_v17, %v2082_v60 }
 0x63d   : > { %v2084_v37 = vpop.permute.xlu1 %2083 }
 0x63e   : > { %v2099_v15 = vsel %vm927_vm10, %v2084_v37, %v2086_v6  ;;  %v2118_v6 = vsel %vm583_vm12, 0.0, %v2112_v49  ;;  %v2200_v37 = vmul.f32 %v2185_v43, %v2116_v31  ;;  %v2241_v49 = vmul.f32 %v5770_v33, %v2209_v28 }
 0x63f   : > { %v2115_v55 = vsel %vm582_vm11, 0.0, %v2099_v15  ;;  %v2202_v57 = vmul.f32 %v5766_v34, %v2118_v6 }
 0x640   : > { %v2199_v54 = vmul.f32 %v2185_v43, %v2115_v55  ;;  %v2121_v43 = vsel %vm582_vm11, 0.0, %v2102_v41  ;;  %v2208_v48 = vadd.f32 %v2200_v37, %v2176_v40  ;;  %v2212_v55 = vadd.f32 %v2204_v38, %v2180_v5  ;;  %v2457_v40 = vld [vmem:[%s6997_s10 + $0x10] sm:$0xff] }
 0x641   : > { %v2205_v45 = vmul.f32 %v5762_v26, %v2121_v43  ;;  %v2210_v46 = vadd.f32 %v2202_v57, %v2178_v22  ;;  %v5869_v37 = vmax.f32 %v2275_v61, 0.0 }
 0x642   : > { %v2207_v15 = vadd.f32 %v2199_v54, %v2175_v4  ;;  %v2259_v16 = vpop.permute.xlu0 %2258  ;;  %v2244_v0 = vmul.f32 %v5772_v30, %v2212_v55  ;;  %v2174_v30 = vmul.f32 %v5760_v53, %v5717_v24 }
 0x643   : > { %v2213_v7 = vadd.f32 %v2205_v45, %v2181_v29  ;;  %v2273_v9 = vadd.f32 %v2259_v16, %v2241_v49  ;;  %v2242_v27 = vmul.f32 %v5770_v33, %v2210_v46  ;;  %v2122_v33 = vsel %vm583_vm12, 0.0, %v2114_v50 }
 0x644   : > { %v2206_v41 = vmul.f32 %v5762_v26, %v2122_v33  ;;  %v2276_v10 = vadd.f32 %v5774_v11, %v2244_v0  ;;  %v2182_v2 = vadd.f32 %v2174_v30, %v2150_v44  ;;  %v2458_v26 = vld [vmem:[%s6997_s10 + $0x18] sm:$0xff] }
 0x645   : > { %v2245_v14 = vmul.f32 %v5764_v62, %v2213_v7  ;;  %v2274_v47 = vadd.f32 %v2259_v16, %v2242_v27  ;;  %v5867_v6 = vmax.f32 %v2273_v9, 0.0 }
 0x646   : > { %v2214_v17 = vadd.f32 %v2206_v41, %v2182_v2  ;;  %v5891_v56 = vmax.f32 %v2276_v10, 0.0  ;;  %v5935_v4 = vpop.permute.xlu0 %2380 }
 0x647   : > { %v5881_v54 = vmax.f32 %v2274_v47, 0.0  ;;  %v2277_v42 = vadd.f32 %v5768_v19, %v2245_v14 }
 0x648   : > { %v2246_v24 = vmul.f32 %v5764_v62, %v2214_v17  ;;  %v2456_v62 = vld [vmem:[%s6997_s10 + $0x8] sm:$0xff] }
 0x649   : > { %v5889_v12 = vmax.f32 %v2277_v42, 0.0 }
 0x64a   : > { %v2222_v3 = vpop.permute.xlu1 %2221  ;;  %v2278_v53 = vadd.f32 %v5768_v19, %v2246_v24  ;;  %v2455_v19 = vld [vmem:[%s6997_s10] sm:$0xff]  ;;  %v2376_v59 = vpop.permute.xlu0 %2375 }
 0x64b   : > { %v2239_v34 = vmul.f32 %v2222_v3, %v2207_v15  ;;  %v2240_v32 = vmul.f32 %v2222_v3, %v2208_v48 }
 0x64c   : > { %v5910_v11 = vmax.f32 %v2278_v53, 0.0 }
 0x64e   : > { %v2254_v18 = vpop.permute.xlu1 %2253  ;;  %v5937_v57 = vpop.permute.xlu0 %2370 }
 0x64f   : > { %v2271_v20 = vadd.f32 %v2254_v18, %v2239_v34  ;;  %v2272_v31 = vadd.f32 %v2254_v18, %v2240_v32 }
 0x651   : > { %v5852_v63 = vmax.f32 %v2271_v20, 0.0  ;;  %v5854_v25 = vmax.f32 %v2272_v31, 0.0 }
 0x652   : > { %v2366_v28 = vpop.permute.xlu0 %2365 }
 0x653   : > { %2301 = vrot.lane.b32.xlu0 %v5854_v25, %s7144_s21  ;;  %2299 = vrot.lane.b32.xlu1 %v5852_v63, %s7144_s21  ;;  %v5939_v43 = vpop.permute.xlu1 %2404 }
 0x657   : > { %2307 = vrot.lane.b32.xlu0 %v5869_v37, %s7144_s21  ;;  %2303 = vrot.lane.b32.xlu1 %v5867_v6, %s7144_s21  ;;  %v2401_v3 = vpop.permute.xlu1 %2400  ;;  %v5941_v35 = vpop.permute.xlu0 %2436 }
 0x658   : > { %v2411_v14 = vmul.f32 %v2401_v3, %v5869_v37  ;;  %v2412_v10 = vmul.f32 %v2401_v3, %v5891_v56 }
 0x65b   : > { %2339 = vrot.lane.b32.xlu0 %v5869_v37, %s7142_s22  ;;  %2305 = vrot.lane.b32.xlu1 %v5881_v54, %s7144_s21  ;;  %v5943_v8 = vpop.permute.xlu1 %2396  ;;  %v5945_v15 = vpop.permute.xlu0 %2428 }
 0x65f   : > { %2343 = vrot.lane.b32.xlu0 %v5889_v12, %s7142_s22  ;;  %2309 = vrot.lane.b32.xlu1 %v5891_v56, %s7144_s21  ;;  %v2425_v22 = vpop.permute.xlu0 %2424 }
 0x660   : > { %v2433_v48 = vpop.permute.xlu1 %2432 }
 0x663   : > { %2337 = vrot.lane.b32.xlu0 %v5881_v54, %s7142_s22  ;;  %2341 = vrot.lane.b32.xlu1 %v5891_v56, %s7142_s22 }
 0x665   : > { %v2393_v5 = vpop.permute.xlu1 %2392 }
 0x666   : > { %v2408_v55 = vmul.f32 %v2393_v5, %v5854_v25 }
 0x667   : > { %2333 = vrot.lane.b32.xlu0 %v5854_v25, %s7142_s22  ;;  %2311 = vrot.lane.b32.xlu1 %v5889_v12, %s7144_s21 }
 0x66b   : > { %2588 = vperm.xlu0 %4161, %v2458_v26   ;;  %2313 = vrot.lane.b32.xlu1 %v5910_v11, %s7144_s21  ;;  %s7373_s21 = smov 96  }
 0x66f   : > { %2345 = vrot.lane.b32.xlu1 %v5910_v11, %s7142_s22  ;;  %4163 = vset.pattern.permute.xlu0 %v7274_v36 }
 0x670   : > { %2620 = vperm.xlu0 %4163, %v2458_v26  }
 0x673   : > { %2335 = vrot.lane.b32.xlu1 %v5867_v6, %s7142_s22 }
 0x674   : > { %2612 = vperm.xlu0 %4163, %v2456_v62  }
 0x677   : > { %2331 = vrot.lane.b32.xlu1 %v5852_v63, %s7142_s22  ;;  %s7391_s22 = smov 80  }
 0x678   : > { %2608 = vperm.xlu0 %4163, %v2455_v19  }
 0x67b   : > { %2564 = vperm.xlu1 %4160, %v2458_v26  }
 0x67c   : > { %4166 = vset.pattern.permute.xlu0 %v7284_v39 }
 0x67d   : > { %2554 = vperm.xlu0 %4166, %v2456_v62  }
 0x67f   : > { %2559 = vperm.xlu1 %4160, %v2457_v40  }
 0x681   : > { %2549 = vperm.xlu0 %4166, %v2455_v19  }
 0x683   : > { %4162 = vset.pattern.permute.xlu1 %v7273_v23 }
 0x684   : > { %2584 = vperm.xlu1 %4162, %v2457_v40  }
 0x688   : > { %2580 = vperm.xlu1 %4162, %v2456_v62  }
 0x68c   : > { %4164 = vset.pattern.permute.xlu1 %v7274_v36 }
 0x68d   : > { %2616 = vperm.xlu1 %4164, %v2457_v40   ;;  %v2414_v40 = vmul.f32 %v5939_v43, %v5910_v11 }
 0x691   : > { %4165 = vset.pattern.permute.xlu1 %v7273_v23 }
 0x692   : > { %2576 = vperm.xlu1 %4165, %v2455_v19  }
 0x696   : > { %4167 = vset.pattern.permute.xlu1 %v7284_v39 }
 0x6c5   : > { %v2300_v21 = vpop.permute.xlu1 %2299  ;;  %v2302_v52 = vpop.permute.xlu0 %2301 }
 0x6c6   : > { %v2315_v18 = vsel %vm1211_vm13, %v2300_v21, %v2302_v52  ;;  %v2327_v62 = vsel %vm1211_vm13, 0.0, %v2300_v21  ;;  %v2409_v21 = vmul.f32 %v5943_v8, %v5867_v6 }
 0x6c7   : > { %v2384_v20 = vmul.f32 %v2366_v28, %v2315_v18  ;;  %v2383_v52 = vmul.f32 %v2366_v28, %v2327_v62 }
 0x6c9   : > { %v2304_v45 = vpop.permute.xlu1 %2303  ;;  %v2308_v34 = vpop.permute.xlu0 %2307  ;;  %v2416_v50 = vadd.f32 %v2408_v55, %v2384_v20 }
 0x6ca   : > { %v2329_v31 = vsel %vm1211_vm13, 0.0, %v2308_v34  ;;  %v2328_v19 = vsel %vm1211_vm13, 0.0, %v2304_v45 }
 0x6cb   : > { %v2387_v27 = vmul.f32 %v2376_v59, %v2329_v31 }
 0x6cd   : > { %v2306_v32 = vpop.permute.xlu1 %2305  ;;  %v2340_v38 = vpop.permute.xlu0 %2339  ;;  %v2419_v25 = vadd.f32 %v2411_v14, %v2387_v27  ;;  %v2746_v14 = vld [vmem:[%s6999_s12 + $0x10] sm:$0xff] }
 0x6d1   : > { %v2310_v46 = vpop.permute.xlu1 %2309  ;;  %v5947_v16 = vpop.permute.xlu0 %2343 }
 0x6d2   : > { %v2317_v60 = vsel %vm1211_vm13, %v2308_v34, %v2310_v46  ;;  %v2385_v34 = vmul.f32 %v5937_v57, %v2328_v19  ;;  %v2407_v46 = vmul.f32 %v2393_v5, %v5852_v63 }
 0x6d3   : > { %v2388_v41 = vmul.f32 %v2376_v59, %v2317_v60  ;;  %v2744_v60 = vld [vmem:[%s6999_s12] sm:$0xff] }
 0x6d4   : > { %v2415_v31 = vadd.f32 %v2407_v46, %v2383_v52  ;;  %v2417_v28 = vadd.f32 %v2409_v21, %v2385_v34 }
 0x6d5   : > { %v2342_v29 = vpop.permute.xlu1 %2341  ;;  %v2338_v49 = vpop.permute.xlu0 %2337  ;;  %v2420_v53 = vadd.f32 %v2412_v10, %v2388_v41  ;;  %v2808_v41 = vld [vmem:[%s7001_s14] sm:$0xff] }
 0x6d6   : > { %v2349_v7 = vsel %vm1380_vm7, %v2340_v38, %v2342_v29  ;;  %v2361_v30 = vsel %vm1380_vm7, %v2342_v29, 0.0  ;;  %v2360_v63 = vsel %vm1380_vm7, %v2338_v49, 0.0 }
 0x6d7   : > { %v2443_v47 = vmul.f32 %v2433_v48, %v2349_v7  ;;  %v2444_v2 = vmul.f32 %v2433_v48, %v2361_v30  ;;  %v2316_v7 = vsel %vm1211_vm13, %v2304_v45, %v2306_v32  ;;  %v2747_v30 = vld [vmem:[%s6999_s12 + $0x18] sm:$0xff] }
 0x6d8   : > { %v2386_v5 = vmul.f32 %v5937_v57, %v2316_v7  ;;  %v2745_v57 = vld [vmem:[%s6999_s12 + $0x8] sm:$0xff] }
 0x6d9   : > { %v2312_v58 = vpop.permute.xlu1 %2311  ;;  %v2334_v61 = vpop.permute.xlu0 %2333  ;;  %v5963_v17 = vadd.f32 %v2443_v47, %v2419_v25  ;;  %v5973_v56 = vadd.f32 %v2444_v2, %v2420_v53  ;;  %v2814_v47 = vld [vmem:[%s7002_s15 + $0x10] sm:$0xff]  ;;  %v2779_v25 = vld [vmem:[%s7000_s13 + $0x18] sm:$0xff]  ;;  %v2813_v2 = vld [vmem:[%s7002_s15 + $0x8] sm:$0xff] }
 0x6da   : > { %v2359_v9 = vsel %vm1380_vm7, %v2334_v61, 0.0 }
 0x6db   : > { %v2440_v0 = vmul.f32 %v2425_v22, %v2359_v9 }
 0x6dd   : > { %v5956_v33 = vadd.f32 %v2440_v0, %v2416_v50  ;;  %v2314_v44 = vpop.permute.xlu1 %2313  ;;  %v2778_v50 = vld [vmem:[%s7000_s13 + $0x10] sm:$0xff] }
 0x6de   : > { %v2318_v42 = vsel %vm1211_vm13, %v2312_v58, %v2314_v44  ;;  %v2776_v44 = vld [vmem:[%s7000_s13] sm:$0xff] }
 0x6df   : > { %2469 = vrot.lane.b32.xlu0 %v5956_v33, %s7299_s1  ;;  %v2390_v26 = vmul.f32 %v5935_v4, %v2318_v42 }
 0x6e1   : > { %v2346_v24 = vpop.permute.xlu1 %2345  ;;  %v2422_v38 = vadd.f32 %v2414_v40, %v2390_v26 }
 0x6e2   : > { %v2362_v37 = vsel %vm1380_vm7, %v2346_v24, 0.0 }
 0x6e3   : > { %2475 = vrot.lane.b32.xlu0 %v5963_v17, %s7299_s1  ;;  %v2446_v59 = vmul.f32 %v5941_v35, %v2362_v37 }
 0x6e5   : > { %v2336_v3 = vpop.permute.xlu1 %2335  ;;  %v5983_v11 = vadd.f32 %v2446_v59, %v2422_v38 }
 0x6e6   : > { %v2348_v48 = vsel %vm1380_vm7, %v2336_v3, %v2338_v49  ;;  %v2589_v10 = vpop.permute.xlu0 %2588 }
 0x6e7   : > { %2517 = vrot.lane.b32.xlu0 %v5973_v56, %s7300_s20  ;;  %v2441_v18 = vmul.f32 %v5945_v15, %v2348_v48  ;;  %v2598_v7 = vmul.f32 %v2589_v10, %v5983_v11 }
 0x6e9   : > { %v2332_v29 = vpop.permute.xlu1 %2331  ;;  %v5990_v9 = vadd.f32 %v2441_v18, %v2417_v28 }
 0x6ea   : > { %v2347_v20 = vsel %vm1380_vm7, %v2332_v29, %v2334_v61  ;;  %v2442_v61 = vmul.f32 %v5945_v15, %v2360_v63  ;;  %v2350_v15 = vsel %vm1380_vm7, %v5947_v16, %v2346_v24 }
 0x6eb   : > { %v2439_v55 = vmul.f32 %v2425_v22, %v2347_v20  ;;  %2521 = vrot.lane.b32.xlu0 %v5983_v11, %s7300_s20  ;;  %v2410_v22 = vmul.f32 %v5943_v8, %v5881_v54  ;;  %v2330_v54 = vsel %vm1211_vm13, 0.0, %v2312_v58  ;;  %v2777_v8 = vld [vmem:[%s7000_s13 + $0x8] sm:$0xff]  ;;  %v2413_v58 = vmul.f32 %v5939_v43, %v5889_v12  ;;  %v2810_v12 = vld [vmem:[%s7001_s14 + $0x10] sm:$0xff]  ;;  %v2811_v43 = vld [vmem:[%s7001_s14 + $0x18] sm:$0xff]  ;;  %v6084_v24 = vpop.permute.xlu0 %2620 }
 0x6ec   : > { %v2389_v49 = vmul.f32 %v5935_v4, %v2330_v54  ;;  %v2445_v27 = vmul.f32 %v5941_v35, %v2350_v15  ;;  %v2809_v4 = vld [vmem:[%s7001_s14 + $0x8] sm:$0xff]  ;;  %v2812_v35 = vld [vmem:[%s7002_s15] sm:$0xff] }
 0x6ed   : > { %v5992_v6 = vadd.f32 %v2439_v55, %v2415_v31  ;;  %v2418_v45 = vadd.f32 %v2410_v22, %v2386_v5 }
 0x6ee   : > { %v2421_v0 = vadd.f32 %v2413_v58, %v2389_v49 }
 0x6ef   : > { %2511 = vrot.lane.b32.xlu0 %v5990_v9, %s7300_s20  ;;  %2467 = vrot.lane.b32.xlu1 %v5992_v6, %s7299_s1  ;;  %v6010_v32 = vadd.f32 %v2442_v61, %v2418_v45  ;;  %v6087_v53 = vpop.permute.xlu0 %2612 }
 0x6f0   : > { %v6034_v16 = vadd.f32 %v2445_v27, %v2421_v0 }
 0x6f2   : > { %v2597_v55 = vmul.f32 %v2589_v10, %v6034_v16 }
 0x6f3   : > { %2507 = vrot.lane.b32.xlu0 %v5992_v6, %s7300_s20  ;;  %2471 = vrot.lane.b32.xlu1 %v5990_v9, %s7299_s1  ;;  %v6090_v62 = vpop.permute.xlu0 %2608 }
 0x6f6   : > { %v6078_v42 = vpop.permute.xlu1 %2564 }
 0x6f7   : > { %2755 = vperm.xlu0 %4166, %v2745_v57   ;;  %2473 = vrot.lane.b32.xlu1 %v6010_v32, %s7299_s1 }
 0x6f8   : > { %v2555_v59 = vpop.permute.xlu0 %2554 }
 0x6fa   : > { %v2560_v37 = vpop.permute.xlu1 %2559 }
 0x6fb   : > { %2787 = vperm.xlu0 %4166, %v2777_v8   ;;  %2515 = vrot.lane.b32.xlu1 %v5963_v17, %s7300_s20 }
 0x6fc   : > { %v6094_v48 = vpop.permute.xlu0 %2549 }
 0x6ff   : > { %2792 = vperm.xlu0 %4166, %v2778_v50   ;;  %2477 = vrot.lane.b32.xlu1 %v5973_v56, %s7299_s1  ;;  %v2585_v26 = vpop.permute.xlu1 %2584 }
 0x700   : > { %v2595_v63 = vmul.f32 %v2585_v26, %v5963_v17  ;;  %v2596_v5 = vmul.f32 %v2585_v26, %v5973_v56 }
 0x703   : > { %2855 = vperm.xlu0 %4166, %v2809_v4   ;;  %2479 = vrot.lane.b32.xlu1 %v6034_v16, %s7299_s1  ;;  %v2581_v19 = vpop.permute.xlu1 %2580 }
 0x704   : > { %v6102_v61 = vmul.f32 %v2581_v19, %v5990_v9  ;;  %v2594_v15 = vmul.f32 %v2581_v19, %v6010_v32 }
 0x707   : > { %2860 = vperm.xlu0 %4166, %v2810_v12   ;;  %2519 = vrot.lane.b32.xlu1 %v6034_v16, %s7300_s20 }
 0x708   : > { %v6092_v40 = vpop.permute.xlu1 %2616 }
 0x70b   : > { %2865 = vperm.xlu0 %4166, %v2811_v43   ;;  %2481 = vrot.lane.b32.xlu1 %v5983_v11, %s7299_s1 }
 0x70d   : > { %v2577_v3 = vpop.permute.xlu1 %2576 }
 0x70e   : > { %v6109_v11 = vmul.f32 %v2577_v3, %v5992_v6  ;;  %v2592_v49 = vmul.f32 %v2577_v3, %v5956_v33 }
 0x70f   : > { %2888 = vperm.xlu0 %4166, %v2812_v35   ;;  %2513 = vrot.lane.b32.xlu1 %v6010_v32, %s7300_s20 }
 0x713   : > { %2509 = vrot.lane.b32.xlu1 %v5956_v33, %s7300_s20  ;;  %4170 = vset.pattern.permute.xlu0 %v7273_v23 }
 0x714   : > { %2949 = vperm.xlu0 %4170, %v2812_v35  }
 0x717   : > { %2750 = vperm.xlu1 %4167, %v2744_v60  }
 0x718   : > { %2957 = vperm.xlu0 %4170, %v2814_v47  }
 0x71b   : > { %2760 = vperm.xlu1 %4167, %v2746_v14  }
 0x71f   : > { %2782 = vperm.xlu1 %4167, %v2776_v44  }
 0x723   : > { %2765 = vperm.xlu1 %4167, %v2747_v30  }
 0x727   : > { %2797 = vperm.xlu1 %4167, %v2779_v25  }
 0x72b   : > { %2850 = vperm.xlu1 %4167, %v2808_v41  }
 0x72f   : > { %4168 = vset.pattern.permute.xlu1 %v7273_v23 }
 0x730   : > { %2915 = vperm.xlu1 %4168, %v2808_v41  }
 0x734   : > { %2919 = vperm.xlu1 %4168, %v2809_v4  }
 0x738   : > { %2923 = vperm.xlu1 %4168, %v2810_v12  }
 0x73c   : > { %2927 = vperm.xlu1 %4168, %v2811_v43  }
 0x740   : > { %4169 = vset.pattern.permute.xlu1 %v7284_v39 }
 0x741   : > { %2893 = vperm.xlu1 %4169, %v2813_v2  }
 0x745   : > { %4171 = vset.pattern.permute.xlu1 %v7273_v23 }
 0x746   : > { %2953 = vperm.xlu1 %4171, %v2813_v2  }
 0x74a   : > { %4172 = vset.pattern.permute.xlu1 %v7284_v39 }
 0x74b   : > { %2898 = vperm.xlu1 %4172, %v2814_v47  }
 0x751   : > { %v2470_v34 = vpop.permute.xlu0 %2469 }
 0x755   : > { %v2476_v46 = vpop.permute.xlu0 %2475 }
 0x756   : > { %v2497_v45 = vsel %vm633_vm0, 0.0, %v2476_v46 }
 0x757   : > { %v2503_v27 = vsel %vm576_vm8, 0.0, %v2497_v45 }
 0x758   : > { %v2571_v44 = vmul.f32 %v2560_v37, %v2503_v27 }
 0x759   : > { %v2518_v29 = vpop.permute.xlu0 %2517 }
 0x75a   : > { %v2537_v32 = vsel %vm927_vm10, %v2518_v29, 0.0 }
 0x75b   : > { %v2544_v30 = vsel %vm583_vm12, 0.0, %v2537_v32 }
 0x75d   : > { %v2522_v28 = vpop.permute.xlu0 %2521 }
 0x75e   : > { %v2538_v57 = vsel %vm927_vm10, %v2522_v28, 0.0 }
 0x75f   : > { %v2546_v0 = vsel %vm583_vm12, 0.0, %v2538_v57 }
 0x760   : > { %v2630_v3 = vmul.f32 %v6084_v24, %v2546_v0 }
 0x761   : > { %v2468_v52 = vpop.permute.xlu1 %2467  ;;  %v2512_v25 = vpop.permute.xlu0 %2511 }
 0x762   : > { %v2483_v17 = vsel %vm633_vm0, %v2468_v52, %v2470_v34  ;;  %v2495_v33 = vsel %vm633_vm0, 0.0, %v2468_v52 }
 0x763   : > { %v2500_v4 = vsel %vm577_vm9, 0.0, %v2483_v17  ;;  %v2499_v2 = vsel %vm576_vm8, 0.0, %v2495_v33  ;;  %v2603_v17 = vadd.f32 %v2595_v63, %v2571_v44 }
 0x764   : > { %v2567_v45 = vmul.f32 %v6094_v48, %v2499_v2 }
 0x765   : > { %v2472_v38 = vpop.permute.xlu1 %2471  ;;  %v2508_v57 = vpop.permute.xlu0 %2507 }
 0x766   : > { %v2496_v56 = vsel %vm633_vm0, 0.0, %v2472_v38  ;;  %v2599_v32 = vadd.f32 %v6109_v11, %v2567_v45  ;;  %v2642_v11 = vld [vmem:[%s6998_s11 + $0x18] sm:$0xff] }
 0x767   : > { %v2501_v16 = vsel %vm576_vm8, 0.0, %v2496_v56 }
 0x768   : > { %v2569_v52 = vmul.f32 %v2555_v59, %v2501_v16 }
 0x769   : > { %v2474_v21 = vpop.permute.xlu1 %2473 }
 0x76a   : > { %v2484_v9 = vsel %vm633_vm0, %v2472_v38, %v2474_v21 }
 0x76b   : > { %v2502_v35 = vsel %vm577_vm9, 0.0, %v2484_v9 }
 0x76c   : > { %v2570_v34 = vmul.f32 %v2555_v59, %v2502_v35  ;;  %v2628_v59 = vmul.f32 %v6092_v40, %v2544_v30 }
 0x76d   : > { %v2516_v18 = vpop.permute.xlu1 %2515 }
 0x76e   : > { %v2525_v12 = vsel %vm927_vm10, %v2516_v18, %v2518_v29  ;;  %v2602_v9 = vadd.f32 %v2594_v15, %v2570_v34 }
 0x76f   : > { %v2543_v26 = vsel %vm582_vm11, 0.0, %v2525_v12 }
 0x771   : > { %v2478_v20 = vpop.permute.xlu1 %2477 }
 0x772   : > { %v2485_v22 = vsel %vm633_vm0, %v2476_v46, %v2478_v20 }
 0x773   : > { %v2504_v50 = vsel %vm577_vm9, 0.0, %v2485_v22 }
 0x774   : > { %v2572_v60 = vmul.f32 %v2560_v37, %v2504_v50  ;;  %v2568_v37 = vmul.f32 %v6094_v48, %v2500_v4  ;;  %v2639_v4 = vld [vmem:[%s6998_s11] sm:$0xff] }
 0x775   : > { %v2480_v31 = vpop.permute.xlu1 %2479 }
 0x776   : > { %v2498_v54 = vsel %vm633_vm0, 0.0, %v2480_v31  ;;  %v2604_v46 = vadd.f32 %v2596_v5, %v2572_v60  ;;  %v2600_v56 = vadd.f32 %v2592_v49, %v2568_v37 }
 0x777   : > { %v2505_v6 = vsel %vm576_vm8, 0.0, %v2498_v54 }
 0x778   : > { %v2573_v10 = vmul.f32 %v6078_v42, %v2505_v6 }
 0x779   : > { %v2520_v8 = vpop.permute.xlu1 %2519 }
 0x77a   : > { %v2526_v58 = vsel %vm927_vm10, %v2520_v8, %v2522_v28  ;;  %v2605_v22 = vadd.f32 %v2597_v55, %v2573_v10  ;;  %v2636_v55 = vadd.f32 %v2628_v59, %v2604_v46 }
 0x77b   : > { %v2545_v14 = vsel %vm582_vm11, 0.0, %v2526_v58 }
 0x77c   : > { %v2629_v21 = vmul.f32 %v6084_v24, %v2545_v14 }
 0x77d   : > { %v2482_v43 = vpop.permute.xlu1 %2481 }
 0x77e   : > { %v2486_v47 = vsel %vm633_vm0, %v2480_v31, %v2482_v43  ;;  %v2627_v31 = vmul.f32 %v6092_v40, %v2543_v26  ;;  %v2637_v8 = vadd.f32 %v2629_v21, %v2605_v22  ;;  %v2756_v43 = vpop.permute.xlu0 %2755 }
 0x77f   : > { %v2506_v41 = vsel %vm577_vm9, 0.0, %v2486_v47 }
 0x780   : > { %v2574_v19 = vmul.f32 %v6078_v42, %v2506_v41  ;;  %v2635_v27 = vadd.f32 %v2627_v31, %v2603_v17 }
 0x781   : > { %v2514_v38 = vpop.permute.xlu1 %2513 }
 0x782   : > { %v2524_v18 = vsel %vm927_vm10, %v2512_v25, %v2514_v38  ;;  %v2536_v29 = vsel %vm927_vm10, %v2514_v38, 0.0  ;;  %v2606_v20 = vadd.f32 %v2598_v7, %v2574_v19  ;;  %v2788_v10 = vpop.permute.xlu0 %2787 }
 0x783   : > { %v2541_v42 = vsel %vm582_vm11, 0.0, %v2524_v18  ;;  %v2542_v28 = vsel %vm583_vm12, 0.0, %v2536_v29 }
 0x784   : > { %v2626_v24 = vmul.f32 %v6087_v53, %v2542_v28  ;;  %v2638_v5 = vadd.f32 %v2630_v3, %v2606_v20  ;;  %v2625_v54 = vmul.f32 %v6087_v53, %v2541_v42  ;;  %v2601_v53 = vadd.f32 %v6102_v61, %v2569_v52  ;;  %v2641_v61 = vld [vmem:[%s6998_s11 + $0x10] sm:$0xff] }
 0x785   : > { %v2510_v7 = vpop.permute.xlu1 %2509 }
 0x786   : > { %v2523_v50 = vsel %vm927_vm10, %v2508_v57, %v2510_v7  ;;  %v2535_v58 = vsel %vm927_vm10, %v2510_v7, 0.0  ;;  %2679 = vmatprep.subr.mxu1 %v2638_v5  ;;  %v2634_v49 = vadd.f32 %v2626_v24, %v2602_v9  ;;  %v2633_v6 = vadd.f32 %v2625_v54, %v2601_v53  ;;  %v2793_v20 = vpop.permute.xlu0 %2792  ;;  %v2815_v9 = vld [vmem:[%s7002_s15 + $0x18] sm:$0xff] }
 0x787   : > { %v2539_v40 = vsel %vm582_vm11, 0.0, %v2523_v50  ;;  %v2540_v48 = vsel %vm583_vm12, 0.0, %v2535_v58  ;;  %2680 = vmatpush1.msra.mxu1 %v2637_v8  ;;  %v6227_v50 = vld [vmem:[%s7003_s16] sm:$0x3]  ;;  %v7301_v58 = vmov 3  }
 0x788   : > { %v2623_v63 = vmul.f32 %v6090_v62, %v2539_v40  ;;  %v2624_v15 = vmul.f32 %v6090_v62, %v2540_v48  ;;  %2681 = vmatprep.subr.mxu1 %v2636_v55  ;;  %v2640_v62 = vld [vmem:[%s6998_s11 + $0x8] sm:$0xff]  ;;  %v7302_v55 = vmov 4   ;;  %v7303_v40 = vmov 5  }
 0x789   : > { %2682 = vmatpush1.msra.mxu1 %v2635_v27  ;;  %v7305_v48 = vmov 7  }
 0x78a   : > { %2683 = vmatprep.subr.mxu1 %v2634_v49  ;;  %v2632_v0 = vadd.f32 %v2624_v15, %v2600_v56  ;;  %v2631_v33 = vadd.f32 %v2623_v63, %v2599_v32  ;;  %v2856_v53 = vpop.permute.xlu0 %2855 }
 0x78b   : > { %2684 = vmatpush1.msra.mxu1 %v2633_v6 }
 0x78c   : > { %2685 = vmatprep.subr.mxu1 %v2632_v0 }
 0x78d   : > { %2686 = vmatpush1.msra.mxu1 %v2631_v33 }
 0x78e   : > { %3998 = vmatmul.mubr.msk.f32.vlgmr.msra.gmra.mxu1 %vm1098_vm14, %v2639_v4  ;;  %v2861_v15 = vpop.permute.xlu0 %2860 }
 0x78f   : > { %2725 = vmatprep.mubr.f32.mxu1 %v4341_v51 }
 0x792   : > { %3999 = vmatmul.mubr.msk.f32.gmra.mxu1 %vm1098_vm14, %v2640_v62  ;;  %v2751_v16 = vpop.permute.xlu1 %2750  ;;  %v2866_v32 = vpop.permute.xlu0 %2865 }
 0x793   : > { %2731 = vmatprep.mubr.f32.mxu1 %v4341_v51 }
 0x796   : > { %4000 = vmatmul.mubr.msk.f32.gmra.mxu1 %vm1098_vm14, %v2641_v61  ;;  %v2761_v12 = vpop.permute.xlu1 %2760  ;;  %v2889_v0 = vpop.permute.xlu0 %2888 }
 0x797   : > { %2737 = vmatprep.mubr.f32.mxu1 %v4341_v51 }
 0x79a   : > { %4001 = vmatmul.mubr.msk.f32.gmra.mxu1 %vm1098_vm14, %v2642_v11  ;;  %v2783_v44 = vpop.permute.xlu1 %2782  ;;  %v2950_v4 = vpop.permute.xlu0 %2949 }
 0x79e   : > { %v2766_v38 = vpop.permute.xlu1 %2765  ;;  %v6243_v61 = vpop.permute.xlu0 %2957 }
 0x7a2   : > { %v2798_v57 = vpop.permute.xlu1 %2797 }
 0x84e   : > { %v2721_v35 = vpop.f32.mrf.mxu1 }
 0x84f   : > { %v2768_v60 = vmul.f32 %v2751_v16, %v2721_v35 }
 0x850   : > { %v2723_v14 = vpop.f32.mrf.mxu1 }
 0x851   : > { %v2769_v47 = vmul.f32 %v2751_v16, %v2723_v14  ;;  %v6189_v25 = vadd.f32 %v2783_v44, %v2768_v60 }
 0x852   : > { %v2727_v30 = vpop.f32.mrf.mxu1 }
 0x853   : > { %v6191_v41 = vadd.f32 %v2783_v44, %v2769_v47  ;;  %v2770_v51 = vmul.f32 %v2756_v43, %v2727_v30 }
 0x854   : > { %v2729_v2 = vpop.f32.mrf.mxu1 }
 0x855   : > { %v2771_v26 = vmul.f32 %v2756_v43, %v2729_v2  ;;  %v2816_v19 = vadd.f32 %v6191_v41, %v6189_v25  ;;  %v6195_v37 = vadd.f32 %v2788_v10, %v2770_v51  ;;  %v2832_v18 = vmax.f32 %v6189_v25, %v6191_v41 }
 0x856   : > { %v2733_v3 = vpop.f32.mrf.mxu1 }
 0x857   : > { %v6197_v52 = vadd.f32 %v2788_v10, %v2771_v26  ;;  %v2772_v34 = vmul.f32 %v2761_v12, %v2733_v3  ;;  %2817 = vadd.xlane.f32.xlu0 %v2816_v19 }
 0x858   : > { %v2735_v21 = vpop.f32.mrf.mxu1 }
 0x859   : > { %v2773_v46 = vmul.f32 %v2761_v12, %v2735_v21  ;;  %v2819_v29 = vadd.f32 %v6197_v52, %v6195_v37  ;;  %v6203_v42 = vadd.f32 %v2793_v20, %v2772_v34  ;;  %v2835_v24 = vmax.f32 %v6195_v37, %v6197_v52 }
 0x85a   : > { %v2739_v31 = vpop.f32.mrf.mxu1 }
 0x85b   : > { %v6205_v28 = vadd.f32 %v2793_v20, %v2773_v46  ;;  %v2774_v22 = vmul.f32 %v2766_v38, %v2739_v31  ;;  %2833 = vmax.xlane.f32.xlu0 %v2832_v18  ;;  %2820 = vadd.xlane.f32.xlu1 %v2819_v29 }
 0x85c   : > { %v2741_v59 = vpop.f32.mrf.mxu1 }
 0x85d   : > { %v2775_v45 = vmul.f32 %v2766_v38, %v2741_v59  ;;  %v2822_v5 = vadd.f32 %v6205_v28, %v6203_v42  ;;  %v6211_v54 = vadd.f32 %v2798_v57, %v2774_v22  ;;  %v2838_v8 = vmax.f32 %v6203_v42, %v6205_v28 }
 0x85f   : > { %v6213_v7 = vadd.f32 %v2798_v57, %v2775_v45  ;;  %2836 = vmax.xlane.f32.xlu1 %v2835_v24  ;;  %2823 = vadd.xlane.f32.xlu0 %v2822_v5 }
 0x861   : > { %v2825_v17 = vadd.f32 %v6213_v7, %v6211_v54  ;;  %v2841_v56 = vmax.f32 %v6211_v54, %v6213_v7 }
 0x863   : > { %2839 = vmax.xlane.f32.xlu1 %v2838_v8  ;;  %2826 = vadd.xlane.f32.xlu0 %v2825_v17 }
 0x867   : > { %2842 = vmax.xlane.f32.xlu0 %v2841_v56 }
 0x874   : > { %2903 = vperm.xlu1 %4172, %v2815_v9  }
 0x878   : > { %4173 = vset.pattern.permute.xlu1 %v7273_v23  ;;  %v7304_v23 = vmov 6  }
 0x879   : > { %3177 = vperm.xlu1 %4173, %v6227_v50  }
 0x87d   : > { %2961 = vperm.xlu0 %4170, %v2815_v9   ;;  %4191 = vset.pattern.permute.xlu1 %v7284_v39 }
 0x881   : > { %4174 = vset.pattern.permute.xlu0 %v7274_v36  ;;  %v2851_v36 = vpop.permute.xlu1 %2850 }
 0x882   : > { %3195 = vperm.xlu0 %4174, %v6227_v50  }
 0x885   : > { %v2916_v27 = vpop.permute.xlu1 %2915 }
 0x886   : > { %4175 = vset.pattern.permute.xlu0 %v7301_v58 }
 0x887   : > { %3211 = vperm.xlu0 %4175, %v6227_v50  }
 0x889   : > { %v2920_v63 = vpop.permute.xlu1 %2919 }
 0x88b   : > { %4176 = vset.pattern.permute.xlu0 %v7302_v55 }
 0x88c   : > { %3229 = vperm.xlu0 %4176, %v6227_v50  }
 0x88d   : > { %v2924_v49 = vpop.permute.xlu1 %2923 }
 0x890   : > { %4177 = vset.pattern.permute.xlu0 %v7303_v40 }
 0x891   : > { %3247 = vperm.xlu0 %4177, %v6227_v50   ;;  %v2928_v6 = vpop.permute.xlu1 %2927 }
 0x895   : > { %4178 = vset.pattern.permute.xlu0 %v7304_v23  ;;  %v2894_v33 = vpop.permute.xlu1 %2893 }
 0x896   : > { %3265 = vperm.xlu0 %4178, %v6227_v50  }
 0x899   : > { %v2954_v62 = vpop.permute.xlu1 %2953 }
 0x89a   : > { %4179 = vset.pattern.permute.xlu0 %v7305_v48 }
 0x89d   : > { %v6245_v11 = vpop.permute.xlu1 %2898 }
 0x8e0   : > { %v2818_v16 = vpop.xlane.xlu0 %2817 }
 0x8e1   : > { %v2828_v35 = vmul.f32 0.00390625, %v2818_v16 }
 0x8e4   : > { %v2821_v12 = vpop.xlane.xlu1 %2820  ;;  %v2834_v43 = vpop.xlane.xlu0 %2833 }
 0x8e5   : > { %v2829_v60 = vmul.f32 0.00390625, %v2821_v12  ;;  %v2844_v44 = vsel %vm633_vm0, %v2828_v35, %v2834_v43 }
 0x8e6   : > { %v2868_v26 = vmul.f32 %v2851_v36, %v2844_v44  ;;  %v2930_v19 = vmul.f32 %v2916_v27, %v2844_v44 }
 0x8e8   : > { %v2837_v14 = vpop.xlane.xlu1 %2836  ;;  %v2824_v47 = vpop.xlane.xlu0 %2823  ;;  %v2872_v31 = vsel %vm662_vm1, %v2868_v26, 0.0  ;;  %v2934_v22 = vsel %vm662_vm1, %v2930_v19, 0.0 }
 0x8e9   : > { %v2845_v30 = vsel %vm633_vm0, %v2829_v60, %v2837_v14  ;;  %v2830_v2 = vmul.f32 0.00390625, %v2824_v47 }
 0x8ea   : > { %v2869_v51 = vmul.f32 %v2856_v53, %v2845_v30  ;;  %v2931_v10 = vmul.f32 %v2920_v63, %v2845_v30 }
 0x8ec   : > { %v2840_v3 = vpop.xlane.xlu1 %2839  ;;  %v2827_v34 = vpop.xlane.xlu0 %2826  ;;  %v2873_v21 = vsel %vm662_vm1, %v2869_v51, 0.0  ;;  %v2935_v46 = vsel %vm662_vm1, %v2931_v10, 0.0 }
 0x8ed   : > { %v2846_v38 = vsel %vm633_vm0, %v2830_v2, %v2840_v3  ;;  %v2831_v20 = vmul.f32 0.00390625, %v2827_v34  ;;  %v2874_v5 = vadd.f32 %v2873_v21, %v2872_v31  ;;  %v2936_v57 = vadd.f32 %v2935_v46, %v2934_v22 }
 0x8ee   : > { %v2870_v18 = vmul.f32 %v2861_v15, %v2846_v38  ;;  %v2932_v29 = vmul.f32 %v2924_v49, %v2846_v38  ;;  %v7314_v31 = vmov 16   ;;  %v7315_v22 = vmov 17  }
 0x8f0   : > { %v2875_v59 = vsel %vm662_vm1, %v2870_v18, 0.0  ;;  %v2937_v45 = vsel %vm662_vm1, %v2932_v29, 0.0  ;;  %v2843_v24 = vpop.xlane.xlu0 %2842  ;;  %v2904_v30 = vpop.permute.xlu1 %2903  ;;  %v7312_v29 = vmov 14  }
 0x8f1   : > { %v2847_v8 = vsel %vm633_vm0, %v2831_v20, %v2843_v24  ;;  %v2876_v9 = vadd.f32 %v2875_v59, %v2874_v5  ;;  %v2938_v58 = vadd.f32 %v2937_v45, %v2936_v57  ;;  %v7313_v20 = vmov 15  }
 0x8f2   : > { %v2871_v17 = vmul.f32 %v2866_v32, %v2847_v8  ;;  %v2933_v56 = vmul.f32 %v2928_v6, %v2847_v8 }
 0x8f4   : > { %v2877_v55 = vsel %vm662_vm1, %v2871_v17, 0.0  ;;  %v2939_v40 = vsel %vm662_vm1, %v2933_v56, 0.0  ;;  %v6298_v8 = vpop.permute.xlu1 %3177 }
 0x8f5   : > { %v2878_v23 = vadd.f32 %v2877_v55, %v2876_v9  ;;  %v2940_v48 = vadd.f32 %v2939_v40, %v2938_v58 }
 0x8f7   : > { %v2879_v36 = vrot.slane %v2878_v23, 4  ;;  %v2941_v27 = vrot.slane %v2940_v48, 4 }
 0x8f8   : > { %v2962_v51 = vpop.permute.xlu0 %2961 }
 0x8f9   : > { %v2880_v53 = vadd.f32 %v2879_v36, %v2878_v23  ;;  %v2942_v63 = vadd.f32 %v2941_v27, %v2940_v48 }
 0x8fb   : > { %v2881_v15 = vrot.slane %v2880_v53, 2  ;;  %v2943_v49 = vrot.slane %v2942_v63, 2 }
 0x8fd   : > { %v2882_v16 = vadd.f32 %v2881_v15, %v2880_v53  ;;  %v2944_v12 = vadd.f32 %v2943_v49, %v2942_v63  ;;  %v6288_v59 = vpop.permute.xlu0 %3195 }
 0x8ff   : > { %v2883_v43 = vrot.slane %v2882_v16, 1  ;;  %v2945_v35 = vrot.slane %v2944_v12, 1 }
 0x901   : > { %v2884_v32 = vadd.f32 %v2883_v43, %v2882_v16  ;;  %v2946_v6 = vadd.f32 %v2945_v35, %v2944_v12 }
 0x902   : > { %v6290_v45 = vpop.permute.xlu0 %3211 }
 0x903   : > { %v2885_v60 = vmax.f32 %v2884_v32, 0.0  ;;  %v2947_v14 = vmax.f32 %v2946_v6, 0.0  ;;  %v7316_v6 = vmov 18  }
 0x905   : > { %v2907_v47 = vmul.f32 %v2894_v33, %v2885_v60  ;;  %v2965_v44 = vmul.f32 %v2954_v62, %v2947_v14  ;;  %v2906_v10 = vmul.f32 %v2889_v0, %v2885_v60  ;;  %v2964_v2 = vmul.f32 %v2950_v4, %v2947_v14 }
 0x906   : > { %v2909_v26 = vmul.f32 %v2904_v30, %v2885_v60  ;;  %v2967_v19 = vmul.f32 %v2962_v51, %v2947_v14  ;;  %v2908_v38 = vmul.f32 %v6245_v11, %v2885_v60  ;;  %v2966_v21 = vmul.f32 %v6243_v61, %v2947_v14 }
 0x907   : > { %v2969_v3 = vadd.f32 %v2965_v44, %v2907_v47  ;;  %v2968_v34 = vadd.f32 %v2964_v2, %v2906_v10  ;;  %v7306_v0 = vmov 8   ;;  %v7307_v33 = vmov 9   ;;  %v6292_v24 = vpop.permute.xlu0 %3229 }
 0x908   : > { %v2971_v46 = vadd.f32 %v2967_v19, %v2909_v26  ;;  %v2970_v18 = vadd.f32 %v2966_v21, %v2908_v38  ;;  %v7308_v4 = vmov 10   ;;  %v7309_v62 = vmov 11  }
 0x909   : > { %2978 = vrot.lane.b32.xlu0 %v2969_v3, %s7300_s20  ;;  %2976 = vrot.lane.b32.xlu1 %v2968_v34, %s7300_s20  ;;  %v7310_v61 = vmov 12   ;;  %v7311_v11 = vmov 13   ;;  %v7317_v60 = vmov 21   ;;  %v7318_v44 = vmov 19  }
 0x90a   : > { %v7319_v30 = vmov 22   ;;  %v7320_v10 = vmov 20   ;;  %v7321_v2 = vmov 24   ;;  %v7322_v26 = vmov 23  }
 0x90b   : > { %v7323_v19 = vmov 25   ;;  %v7325_v38 = vmov 27  }
 0x90c   : > { %v6294_v5 = vpop.permute.xlu0 %3247 }
 0x90d   : > { %2982 = vrot.lane.b32.xlu0 %v2971_v46, %s7300_s20  ;;  %2980 = vrot.lane.b32.xlu1 %v2970_v18, %s7300_s20 }
 0x911   : > { %3281 = vperm.xlu0 %4179, %v6227_v50   ;;  %v6296_v57 = vpop.permute.xlu0 %3265 }
 0x915   : > { %4180 = vset.pattern.permute.xlu0 %v7306_v0  ;;  %v7327_v0 = vmov 28  }
 0x916   : > { %3297 = vperm.xlu0 %4180, %v6227_v50  }
 0x91a   : > { %4181 = vset.pattern.permute.xlu0 %v7307_v33 }
 0x91b   : > { %3313 = vperm.xlu0 %4181, %v6227_v50  }
 0x91f   : > { %4182 = vset.pattern.permute.xlu0 %v7308_v4  ;;  %v7328_v4 = vmov 32  }
 0x920   : > { %3329 = vperm.xlu0 %4182, %v6227_v50  }
 0x924   : > { %4183 = vset.pattern.permute.xlu0 %v7309_v62  ;;  %v7329_v62 = vmov 30  }
 0x925   : > { %3345 = vperm.xlu0 %4183, %v6227_v50  }
 0x929   : > { %4184 = vset.pattern.permute.xlu0 %v7310_v61  ;;  %v7330_v61 = vmov 33  }
 0x92a   : > { %3361 = vperm.xlu0 %4184, %v6227_v50  }
 0x92e   : > { %4185 = vset.pattern.permute.xlu0 %v7311_v11  ;;  %v7331_v11 = vmov 31  }
 0x92f   : > { %3377 = vperm.xlu0 %4185, %v6227_v50  }
 0x933   : > { %4186 = vset.pattern.permute.xlu0 %v7312_v29  ;;  %v7332_v29 = vmov 34  }
 0x934   : > { %3393 = vperm.xlu0 %4186, %v6227_v50  }
 0x938   : > { %4187 = vset.pattern.permute.xlu0 %v7313_v20 }
 0x939   : > { %3409 = vperm.xlu0 %4187, %v6227_v50  }
 0x93d   : > { %4188 = vset.pattern.permute.xlu0 %v7314_v31 }
 0x93e   : > { %3425 = vperm.xlu0 %4188, %v6227_v50  }
 0x942   : > { %4189 = vset.pattern.permute.xlu0 %v7315_v22 }
 0x943   : > { %3441 = vperm.xlu0 %4189, %v6227_v50  }
 0x947   : > { %4190 = vset.pattern.permute.xlu0 %v7284_v39 }
 0x948   : > { %3159 = vperm.xlu0 %4190, %v6227_v50  }
 0x97b   : > { %v2979_v17 = vpop.permute.xlu0 %2978  ;;  %v2977_v56 = vpop.permute.xlu1 %2976 }
 0x97c   : > { %v2989_v9 = vadd.f32 %v2979_v17, %v2969_v3  ;;  %v2988_v58 = vadd.f32 %v2977_v56, %v2968_v34  ;;  %v7324_v3 = vmov 26  }
 0x97e   : > { %v2993_v55 = vsub.f32 0.0, %v2989_v9  ;;  %v2992_v40 = vsub.f32 0.0, %v2988_v58 }
 0x97f   : > { %v2981_v15 = vpop.permute.xlu1 %2980  ;;  %v2983_v43 = vpop.permute.xlu0 %2982 }
 0x980   : > { %v2998_v23 = vmul.f32 1.442695, %v2993_v55  ;;  %v2996_v48 = vmul.f32 1.442695, %v2992_v40  ;;  %v2990_v12 = vadd.f32 %v2981_v15, %v2970_v18  ;;  %v2991_v32 = vadd.f32 %v2983_v43, %v2971_v46 }
 0x981   : > { %v7326_v18 = vmov 29  }
 0x982   : > { %4248 = vpow2.f32 %v2998_v23  ;;  %v2994_v35 = vsub.f32 0.0, %v2990_v12  ;;  %v2995_v47 = vsub.f32 0.0, %v2991_v32 }
 0x983   : > { %4250 = vpow2.f32 %v2996_v48 }
 0x984   : > { %v3000_v14 = vmul.f32 1.442695, %v2994_v35  ;;  %v3002_v51 = vmul.f32 1.442695, %v2995_v47 }
 0x98c   : > { %v6334_v22 = vpop.permute.xlu0 %3281 }
 0x98f   : > { %v4249_v36 = vpop.eup %4248 }
 0x990   : > { %v4251_v27 = vpop.eup %4250  ;;  %v3005_v53 = vadd.f32 1.0, %v4249_v36 }
 0x991   : > { %v3004_v63 = vadd.f32 1.0, %v4251_v27  ;;  %v6336_v17 = vpop.permute.xlu0 %3297 }
 0x992   : > { %4252 = vrcp.f32 %v3005_v53 }
 0x993   : > { %4254 = vrcp.f32 %v3004_v63 }
 0x994   : > { %4256 = vpow2.f32 %v3000_v14 }
 0x995   : > { %4258 = vpow2.f32 %v3002_v51 }
 0x996   : > { %v6338_v56 = vpop.permute.xlu0 %3313 }
 0x99b   : > { %v6340_v9 = vpop.permute.xlu0 %3329 }
 0x99f   : > { %v4253_v49 = vpop.eup %4252 }
 0x9a0   : > { %v4255_v16 = vpop.eup %4254  ;;  %3023 = vperm.xlu0 %4190, %v4253_v49   ;;  %v6342_v58 = vpop.permute.xlu0 %3345 }
 0x9a1   : > { %3018 = vperm.xlu1 %4191, %v4255_v16   ;;  %v4257_v34 = vpop.eup %4256 }
 0x9a2   : > { %v3006_v21 = vadd.f32 1.0, %v4257_v34  ;;  %v4259_v46 = vpop.eup %4258 }
 0x9a3   : > { %v3007_v33 = vadd.f32 1.0, %v4259_v46 }
 0x9a4   : > { %4192 = vset.pattern.permute.xlu0 %v7316_v6  ;;  %4260 = vrcp.f32 %v3006_v21 }
 0x9a5   : > { %4195 = vset.pattern.permute.xlu1 %v7317_v60  ;;  %3457 = vperm.xlu0 %4192, %v6227_v50   ;;  %4262 = vrcp.f32 %v3007_v33  ;;  %v6344_v55 = vpop.permute.xlu0 %3361 }
 0x9a6   : > { %3497 = vperm.xlu1 %4195, %v6227_v50  }
 0x9a9   : > { %4193 = vset.pattern.permute.xlu0 %v7318_v44 }
 0x9aa   : > { %4196 = vset.pattern.permute.xlu1 %v7319_v30  ;;  %3473 = vperm.xlu0 %4193, %v6227_v50   ;;  %v6346_v23 = vpop.permute.xlu0 %3377 }
 0x9ab   : > { %3505 = vperm.xlu1 %4196, %v6227_v50  }
 0x9ae   : > { %4194 = vset.pattern.permute.xlu0 %v7320_v10 }
 0x9af   : > { %4198 = vset.pattern.permute.xlu1 %v7321_v2  ;;  %3489 = vperm.xlu0 %4194, %v6227_v50   ;;  %v6352_v36 = vpop.permute.xlu0 %3393 }
 0x9b0   : > { %3521 = vperm.xlu1 %4198, %v6227_v50  }
 0x9b1   : > { %v4261_v20 = vpop.eup %4260 }
 0x9b2   : > { %v4263_v31 = vpop.eup %4262 }
 0x9b3   : > { %4197 = vset.pattern.permute.xlu0 %v7322_v26 }
 0x9b4   : > { %4199 = vset.pattern.permute.xlu1 %v7323_v19  ;;  %3513 = vperm.xlu0 %4197, %v6227_v50   ;;  %v6356_v53 = vpop.permute.xlu0 %3409 }
 0x9b5   : > { %3529 = vperm.xlu1 %4199, %v6227_v50  }
 0x9b8   : > { %4200 = vset.pattern.permute.xlu0 %v7324_v3 }
 0x9b9   : > { %4201 = vset.pattern.permute.xlu1 %v7325_v38  ;;  %3537 = vperm.xlu0 %4200, %v6227_v50   ;;  %v6360_v15 = vpop.permute.xlu0 %3425 }
 0x9ba   : > { %3545 = vperm.xlu1 %4201, %v6227_v50  }
 0x9bd   : > { %4203 = vset.pattern.permute.xlu0 %v7326_v18 }
 0x9be   : > { %4202 = vset.pattern.permute.xlu1 %v7327_v0  ;;  %3577 = vperm.xlu0 %4203, %v6227_v50   ;;  %v6364_v16 = vpop.permute.xlu0 %3441 }
 0x9bf   : > { %3561 = vperm.xlu1 %4202, %v6227_v50  }
 0x9c2   : > { %4206 = vset.pattern.permute.xlu0 %v7328_v4 }
 0x9c3   : > { %4204 = vset.pattern.permute.xlu1 %v7329_v62  ;;  %3625 = vperm.xlu0 %4206, %v6227_v50   ;;  %v6368_v43 = vpop.permute.xlu0 %3159 }
 0x9c4   : > { %3593 = vperm.xlu1 %4204, %v6227_v50  }
 0x9c7   : > { %4207 = vset.pattern.permute.xlu0 %v7330_v61 }
 0x9c8   : > { %4205 = vset.pattern.permute.xlu1 %v7331_v11  ;;  %3641 = vperm.xlu0 %4207, %v6227_v50  }
 0x9c9   : > { %3609 = vperm.xlu1 %4205, %v6227_v50  }
 0x9cc   : > { %4209 = vset.pattern.permute.xlu0 %v7332_v29 }
 0x9cd   : > { %4208 = vset.pattern.permute.xlu1 %v7284_v39 }
 0x9ce   : > { %3028 = vperm.xlu1 %4208, %v4261_v20  }
 0x9d2   : > { %3033 = vperm.xlu1 %4208, %v4263_v31  }
 0xa1b   : > { %v3024_v6 = vpop.permute.xlu0 %3023 }
 0xa1c   : > { %v3019_v40 = vpop.permute.xlu1 %3018  ;;  %v6381_v47 = vmul.f32 %v3024_v6, %v6195_v37  ;;  %v6384_v44 = vmul.f32 %v3024_v6, %v6197_v52 }
 0xa1d   : > { %v6375_v60 = vmul.f32 %v3019_v40, %v6189_v25  ;;  %v6378_v14 = vmul.f32 %v3019_v40, %v6191_v41 }
 0xa1e   : > { %7343 = vst [vmem:[#allocation16_spill] sm:$0xff] %v6381_v47  ;;  %7344 = vst [vmem:[#allocation32_spill] sm:$0xff] %v6384_v44 }
 0xa1f   : > { %7341 = vst [vmem:[#allocation55_spill] sm:$0xff] %v6375_v60  ;;  %7342 = vst [vmem:[#allocation5_spill] sm:$0xff] %v6378_v14  ;;  %v3045_v25 = vadd.f32 %v6381_v47, %v6375_v60  ;;  %v3054_v41 = vadd.f32 %v6384_v44, %v6378_v14 }
 0xa21   : > { %v6348_v48 = vpop.permute.xlu1 %3497 }
 0xa22   : > { %7333 = vst [vmem:[#allocation2_spill] sm:$0xff] %v6348_v48 }
 0xa26   : > { %v6350_v39 = vpop.permute.xlu1 %3505 }
 0xa27   : > { %7334 = vst [vmem:[#allocation41_spill] sm:$0xff] %v6350_v39 }
 0xa2b   : > { %v6354_v27 = vpop.permute.xlu1 %3521 }
 0xa2c   : > { %7335 = vst [vmem:[#allocation40_spill] sm:$0xff] %v6354_v27 }
 0xa30   : > { %v6358_v63 = vpop.permute.xlu1 %3529 }
 0xa31   : > { %7336 = vst [vmem:[#allocation51_spill] sm:$0xff] %v6358_v63 }
 0xa35   : > { %v6362_v49 = vpop.permute.xlu1 %3545 }
 0xa36   : > { %7337 = vst [vmem:[#allocation53_spill] sm:$0xff] %v6362_v49 }
 0xa3a   : > { %v6366_v12 = vpop.permute.xlu1 %3561 }
 0xa3b   : > { %7338 = vst [vmem:[#allocation3_spill] sm:$0xff] %v6366_v12 }
 0xa3f   : > { %v6370_v35 = vpop.permute.xlu1 %3593 }
 0xa40   : > { %7339 = vst [vmem:[#allocation4_spill] sm:$0xff] %v6370_v35 }
 0xa44   : > { %v6372_v32 = vpop.permute.xlu1 %3609 }
 0xa45   : > { %7340 = vst [vmem:[#allocation56_spill] sm:$0xff] %v6372_v32 }
 0xa49   : > { %v3029_v30 = vpop.permute.xlu1 %3028 }
 0xa4a   : > { %v6387_v51 = vmul.f32 %v3029_v30, %v6203_v42  ;;  %v6390_v10 = vmul.f32 %v3029_v30, %v6205_v28 }
 0xa4c   : > { %7345 = vst [vmem:[#allocation17_spill] sm:$0xff] %v6387_v51  ;;  %7346 = vst [vmem:[#allocation34_spill] sm:$0xff] %v6390_v10  ;;  %v3046_v37 = vadd.f32 %v3045_v25, %v6387_v51  ;;  %v3055_v26 = vadd.f32 %v3054_v41, %v6390_v10  ;;  %v3065_v28 = vmax.f32 %v6375_v60, %v6387_v51 }
 0xa4d   : > { %v3034_v2 = vpop.permute.xlu1 %3033  ;;  %v3074_v19 = vmax.f32 %v6378_v14, %v6390_v10 }
 0xa4e   : > { %v6399_v52 = vmul.f32 %v3034_v2, %v6211_v54  ;;  %v6402_v42 = vmul.f32 %v3034_v2, %v6213_v7 }
 0xa50   : > { %7347 = vst [vmem:[#allocation18_spill] sm:$0xff] %v6399_v52  ;;  %7348 = vst [vmem:[#allocation31_spill] sm:$0xff] %v6402_v42  ;;  %v3047_v3 = vadd.f32 %v3046_v37, %v6399_v52  ;;  %v3056_v34 = vadd.f32 %v3055_v26, %v6402_v42  ;;  %v3066_v38 = vmax.f32 %v6381_v47, %v6399_v52 }
 0xa51   : > { %v3075_v54 = vmax.f32 %v6384_v44, %v6402_v42 }
 0xa52   : > { %v3048_v21 = vrot.slane %v3047_v3, 4  ;;  %v3057_v46 = vrot.slane %v3056_v34, 4  ;;  %v3067_v7 = vmax.f32 %v3065_v28, %v3066_v38 }
 0xa53   : > { %v3076_v18 = vmax.f32 %v3074_v19, %v3075_v54 }
 0xa54   : > { %v3049_v0 = vadd.f32 %v3048_v21, %v3047_v3  ;;  %v3058_v33 = vadd.f32 %v3057_v46, %v3056_v34  ;;  %v3068_v4 = vrot.slane %v3067_v7, 4 }
 0xa55   : > { %v3077_v62 = vrot.slane %v3076_v18, 4 }
 0xa56   : > { %v3050_v61 = vrot.slane %v3049_v0, 2  ;;  %v3059_v11 = vrot.slane %v3058_v33, 2  ;;  %v3069_v29 = vmax.f32 %v3067_v7, %v3068_v4  ;;  %v7358_v7 = vmov 36   ;;  %v6470_v4 = vpop.permute.xlu0 %3457 }
 0xa57   : > { %v3078_v20 = vmax.f32 %v3076_v18, %v3077_v62  ;;  %v7359_v18 = vmov 37  }
 0xa58   : > { %v3051_v31 = vadd.f32 %v3050_v61, %v3049_v0  ;;  %v3060_v40 = vadd.f32 %v3059_v11, %v3058_v33  ;;  %v3070_v6 = vrot.slane %v3069_v29, 2  ;;  %v7361_v0 = vmov 38  }
 0xa59   : > { %v3079_v30 = vrot.slane %v3078_v20, 2  ;;  %v7363_v33 = vmov 39  }
 0xa5a   : > { %v3052_v25 = vrot.slane %v3051_v31, 1  ;;  %v3061_v41 = vrot.slane %v3060_v40, 1  ;;  %v3071_v2 = vmax.f32 %v3069_v29, %v3070_v6  ;;  %v6472_v62 = vpop.permute.xlu0 %3473 }
 0xa5b   : > { %v3080_v37 = vmax.f32 %v3078_v20, %v3079_v30  ;;  %7364 = vst [vmem:[#allocation33_spill] sm:$0xff] %v6472_v62 }
 0xa5c   : > { %v3053_v26 = vadd.f32 %v3052_v25, %v3051_v31  ;;  %v3062_v42 = vadd.f32 %v3061_v41, %v3060_v40  ;;  %v3072_v28 = vrot.slane %v3071_v2, 1 }
 0xa5d   : > { %v3081_v19 = vrot.slane %v3080_v37, 1 }
 0xa5e   : > { %v3063_v3 = vmul.f32 0.03125, %v3053_v26  ;;  %v3064_v34 = vmul.f32 0.03125, %v3062_v42  ;;  %v3073_v38 = vmax.f32 %v3071_v2, %v3072_v28  ;;  %v7356_v42 = vmov 35   ;;  %v6474_v61 = vpop.permute.xlu0 %3489 }
 0xa5f   : > { %v3082_v54 = vmax.f32 %v3080_v37, %v3081_v19  ;;  %7365 = vst [vmem:[#allocation15_spill] sm:$0xff] %v6474_v61 }
 0xa60   : > { %v6415_v21 = vsel %vm875_vm2, %v3063_v3, %v3073_v38 }
 0xa61   : > { %7349 = vst [vmem:[#allocation36_spill] sm:$0xff] %v6415_v21  ;;  %v6418_v46 = vsel %vm875_vm2, %v3064_v34, %v3082_v54  ;;  %3087 = vrot.lane.b32.xlu0 %v6415_v21, %s7351_s26  ;;  %vm7371_vm2 = vcmp.lt.s32.totalorder %v7297_v13, 2 }
 0xa62   : > { %7350 = vst [vmem:[#allocation20_spill] sm:$0xff] %v6418_v46  ;;  %3089 = vrot.lane.b32.xlu1 %v6418_v46, %s7351_s26  ;;  %v6476_v11 = vpop.permute.xlu0 %3513 }
 0xa63   : > { %7366 = vst [vmem:[#allocation22_spill] sm:$0xff] %v6476_v11 }
 0xa65   : > { %3097 = vrot.lane.b32.xlu0 %v6415_v21, %s7352_s23 }
 0xa66   : > { %3099 = vrot.lane.b32.xlu1 %v6418_v46, %s7352_s23  ;;  %v6478_v29 = vpop.permute.xlu0 %3537  ;;  %s548_s23 = scalar_lea.vmem %s7004_s17, %s7455_s29 }
 0xa67   : > { %7367 = vst [vmem:[#allocation35_spill] sm:$0xff] %v6478_v29 }
 0xa69   : > { %3107 = vrot.lane.b32.xlu0 %v6415_v21, %s7299_s1 }
 0xa6a   : > { %3109 = vrot.lane.b32.xlu1 %v6418_v46, %s7299_s1  ;;  %s7357_s1 = smov 32   ;;  %v6480_v20 = vpop.permute.xlu0 %3577 }
 0xa6b   : > { %7368 = vst [vmem:[#allocation37_spill] sm:$0xff] %v6480_v20 }
 0xa6d   : > { %3117 = vrot.lane.b32.xlu0 %v6415_v21, %s7300_s20 }
 0xa6e   : > { %3119 = vrot.lane.b32.xlu1 %v6418_v46, %s7300_s20  ;;  %s7360_s20 = smov 16   ;;  %v6482_v31 = vpop.permute.xlu0 %3625 }
 0xa6f   : > { %7369 = vst [vmem:[#allocation19_spill] sm:$0xff] %v6482_v31 }
 0xa71   : > { %3127 = vrot.lane.b32.xlu0 %v6415_v21, %s7353_s30 }
 0xa72   : > { %3129 = vrot.lane.b32.xlu1 %v6418_v46, %s7353_s30  ;;  %v6484_v40 = vpop.permute.xlu0 %3641 }
 0xa73   : > { %7370 = vst [vmem:[#allocation14_spill] sm:$0xff] %v6484_v40 }
 0xa75   : > { %3137 = vrot.lane.b32.xlu0 %v6415_v21, %s7354_s18 }
 0xa76   : > { %3139 = vrot.lane.b32.xlu1 %v6418_v46, %s7354_s18 }
 0xa79   : > { %3657 = vperm.xlu0 %4209, %v6227_v50  }
 0xa7a   : > { %3202 = vrot.lane.b32.xlu1 %v6415_v21, %s7355_s27 }
 0xa7d   : > { %4210 = vset.pattern.permute.xlu0 %v7356_v42 }
 0xa7e   : > { %3204 = vrot.lane.b32.xlu1 %v6418_v46, %s7355_s27  ;;  %3673 = vperm.xlu0 %4210, %v6227_v50  }
 0xa82   : > { %3320 = vrot.lane.b32.xlu1 %v6415_v21, %s7357_s1  ;;  %4211 = vset.pattern.permute.xlu0 %v7358_v7 }
 0xa83   : > { %3689 = vperm.xlu0 %4211, %v6227_v50  }
 0xa86   : > { %3322 = vrot.lane.b32.xlu1 %v6418_v46, %s7357_s1 }
 0xa87   : > { %4212 = vset.pattern.permute.xlu0 %v7359_v18 }
 0xa88   : > { %3705 = vperm.xlu0 %4212, %v6227_v50  }
 0xa8a   : > { %3432 = vrot.lane.b32.xlu1 %v6415_v21, %s7360_s20 }
 0xa8c   : > { %4213 = vset.pattern.permute.xlu0 %v7361_v0 }
 0xa8d   : > { %3721 = vperm.xlu0 %4213, %v6227_v50  }
 0xa8e   : > { %3434 = vrot.lane.b32.xlu1 %v6418_v46, %s7360_s20 }
 0xa91   : > { %4214 = vset.pattern.permute.xlu0 %v7363_v33 }
 0xa92   : > { %3600 = vrot.lane.b32.xlu1 %v6415_v21, %s7362_s28 }
 0xa96   : > { %3602 = vrot.lane.b32.xlu1 %v6418_v46, %s7362_s28 }
 0xad3   : > { %v3088_v30 = vpop.permute.xlu0 %3087 }
 0xad4   : > { %v3090_v6 = vpop.permute.xlu1 %3089  ;;  %v3094_v41 = vsel %vm884_vm3, 0.0, %v3088_v30 }
 0xad5   : > { %v3091_v25 = vsel %vm884_vm3, %v3088_v30, %v3090_v6  ;;  %v6490_v2 = vsel %vm580_vm4, 0.0, %v3094_v41  ;;  %vm7372_vm3 = vcmp.lt.s32.totalorder %v7298_v1, 2  ;;  %v7374_v41 = vmov 40  }
 0xad6   : > { %v6494_v37 = vsel %vm581_vm5, 0.0, %v3091_v25  ;;  %3149 = vrot.lane.b32.xlu0 %v6490_v2, %s7355_s27  ;;  %vm7380_vm5 = vcmp.ge.s32.totalorder %v7298_v1, 14 }
 0xad7   : > { %3151 = vrot.lane.b32.xlu1 %v6494_v37, %s7355_s27  ;;  %v3098_v28 = vpop.permute.xlu0 %3097 }
 0xad8   : > { %v3100_v26 = vpop.permute.xlu1 %3099  ;;  %v3104_v3 = vsel %vm662_vm1, 0.0, %v3098_v28 }
 0xad9   : > { %v3101_v19 = vsel %vm662_vm1, %v3098_v28, %v3100_v26  ;;  %v6504_v34 = vsel %vm7371_vm2, 0.0, %v3104_v3  ;;  %vm7378_vm1 = vcmp.ge.s32.totalorder %v7297_v13, 14 }
 0xada   : > { %v6508_v38 = vsel %vm7372_vm3, 0.0, %v3101_v19 }
 0xadb   : > { %3168 = vrot.lane.b32.xlu1 %v6504_v34, %s7355_s27  ;;  %3170 = vrot.lane.b32.xlu0 %v6508_v38, %s7355_s27  ;;  %v3108_v54 = vpop.permute.xlu0 %3107 }
 0xadc   : > { %v3114_v42 = vsel %vm633_vm0, 0.0, %v3108_v54  ;;  %v3110_v7 = vpop.permute.xlu1 %3109 }
 0xadd   : > { %v6517_v18 = vsel %vm576_vm8, 0.0, %v3114_v42  ;;  %v3111_v0 = vsel %vm633_vm0, %v3108_v54, %v3110_v7  ;;  %v7375_v54 = vmov 41   ;;  %vm7376_vm0 = vcmask 1031168  }
 0xade   : > { %v6529_v30 = vsel %vm577_vm9, 0.0, %v3111_v0  ;;  %v7377_v0 = vmov 42   ;;  %vm7379_vm4 = vmmov %vm7376_vm0  ;;  %vm7382_vm8 = vcmask 1022976   ;;  %vm7383_vm9 = vcmp.ge.s32.totalorder %v7297_v13, 13 }
 0xadf   : > { %3712 = vrot.lane.b32.xlu1 %v6415_v21, %s7373_s21  ;;  %3186 = vrot.lane.b32.xlu0 %v6517_v18, %s7355_s27  ;;  %v3118_v6 = vpop.permute.xlu0 %3117  ;;  %v7387_v13 = vmov 45  }
 0xae0   : > { %v3120_v33 = vpop.permute.xlu1 %3119 }
 0xae1   : > { %v3121_v25 = vsel %vm927_vm10, %v3118_v6, %v3120_v33  ;;  %v3124_v28 = vsel %vm927_vm10, %v3120_v33, 0.0  ;;  %vm7384_vm10 = vmmov %vm7382_vm8 }
 0xae2   : > { %v6538_v26 = vsel %vm582_vm11, 0.0, %v3121_v25  ;;  %v6547_v42 = vsel %vm583_vm12, 0.0, %v3124_v28  ;;  %vm7386_vm11 = vcmp.ge.s32.totalorder %v7298_v1, 13  ;;  %v7388_v1 = vmov 46  }
 0xae3   : > { %3714 = vrot.lane.b32.xlu1 %v6418_v46, %s7373_s21  ;;  %3737 = vperm.xlu0 %4214, %v6227_v50   ;;  %v3128_v3 = vpop.permute.xlu0 %3127  ;;  %vm7401_vm12 = vcmask 392192  }
 0xae4   : > { %v3130_v19 = vpop.permute.xlu1 %3129  ;;  %vm7402_vm2 = vmmov %vm7401_vm12 }
 0xae5   : > { %v3131_v7 = vsel %vm7376_vm0, %v3128_v3, %v3130_v19  ;;  %v3134_v6 = vsel %vm7379_vm4, %v3130_v19, 0.0  ;;  %v7381_v3 = vmov 43   ;;  %vm7403_vm3 = vmmov %vm7402_vm2 }
 0xae6   : > { %v6555_v33 = vsel %vm7378_vm1, 0.0, %v3131_v7  ;;  %v6563_v28 = vsel %vm7380_vm5, 0.0, %v3134_v6  ;;  %vm7404_vm0 = vmmov %vm7402_vm2 }
 0xae7   : > { %4215 = vset.pattern.permute.xlu0 %v7374_v41  ;;  %3188 = vrot.lane.b32.xlu1 %v6529_v30, %s7355_s27  ;;  %v3138_v41 = vpop.permute.xlu0 %3137  ;;  %vm7405_vm1 = vmmov %vm7404_vm0 }
 0xae8   : > { %3753 = vperm.xlu0 %4215, %v6227_v50   ;;  %v3140_v25 = vpop.permute.xlu1 %3139  ;;  %vm7406_vm4 = vmmov %vm7404_vm0 }
 0xae9   : > { %v3144_v7 = vsel %vm7384_vm10, %v3140_v25, 0.0  ;;  %vm7407_vm5 = vmmov %vm7404_vm0 }
 0xaea   : > { %v6581_v6 = vsel %vm7386_vm11, 0.0, %v3144_v7  ;;  %vm7410_vm10 = vmmov %vm7404_vm0 }
 0xaeb   : > { %3220 = vrot.lane.b32.xlu1 %v6538_v26, %s7355_s27  ;;  %vm7411_vm11 = vmmov %vm7404_vm0 }
 0xaec   : > { %4216 = vset.pattern.permute.xlu0 %v7375_v54  ;;  %v3141_v54 = vsel %vm7382_vm8, %v3138_v41, %v3140_v25  ;;  %v7389_v25 = vmov 47   ;;  %v7390_v41 = vmov 48   ;;  %vm7408_vm8 = vmmov %vm7404_vm0 }
 0xaed   : > { %3769 = vperm.xlu0 %4216, %v6227_v50   ;;  %v6572_v19 = vsel %vm7383_vm9, 0.0, %v3141_v54  ;;  %vm7409_vm9 = vmmov %vm7404_vm0 }
 0xaef   : > { %3222 = vrot.lane.b32.xlu1 %v6547_v42, %s7355_s27 }
 0xaf1   : > { %4217 = vset.pattern.permute.xlu0 %v7377_v0  ;;  %v7385_v0 = vmov 44  }
 0xaf2   : > { %3785 = vperm.xlu0 %4217, %v6227_v50  }
 0xaf3   : > { %3238 = vrot.lane.b32.xlu1 %v6555_v33, %s7355_s27 }
 0xaf4   : > { %v6665_v52 = vpop.permute.xlu0 %3657 }
 0xaf5   : > { %7396 = vst [vmem:[#allocation21_spill] sm:$0xff] %v6665_v52 }
 0xaf6   : > { %4218 = vset.pattern.permute.xlu0 %v7381_v3  ;;  %v6610_v3 = vpop.permute.xlu1 %3202 }
 0xaf7   : > { %3801 = vperm.xlu0 %4218, %v6227_v50   ;;  %3240 = vrot.lane.b32.xlu1 %v6563_v28, %s7355_s27 }
 0xaf9   : > { %v6669_v60 = vpop.permute.xlu0 %3673 }
 0xafa   : > { %v6619_v54 = vpop.permute.xlu1 %3204  ;;  %7397 = vst [vmem:[#allocation39_spill] sm:$0xff] %v6669_v60 }
 0xafb   : > { %4219 = vset.pattern.permute.xlu0 %v7385_v0  ;;  %3256 = vrot.lane.b32.xlu1 %v6572_v19, %s7355_s27 }
 0xafc   : > { %3817 = vperm.xlu0 %4219, %v6227_v50  }
 0xafe   : > { %v6623_v7 = vpop.permute.xlu1 %3320 }
 0xaff   : > { %3258 = vrot.lane.b32.xlu1 %v6581_v6, %s7355_s27 }
 0xb00   : > { %3554 = vrot.lane.b32.xlu0 %v6494_v37, %s7362_s28 }
 0xb01   : > { %4220 = vset.pattern.permute.xlu0 %v7387_v13 }
 0xb03   : > { %3272 = vrot.lane.b32.xlu1 %v6490_v2, %s7357_s1 }
 0xb04   : > { %3568 = vrot.lane.b32.xlu0 %v6504_v34, %s7362_s28 }
 0xb07   : > { %3274 = vrot.lane.b32.xlu1 %v6494_v37, %s7357_s1 }
 0xb08   : > { %3584 = vrot.lane.b32.xlu0 %v6517_v18, %s7362_s28 }
 0xb0b   : > { %3288 = vrot.lane.b32.xlu1 %v6504_v34, %s7357_s1 }
 0xb0c   : > { %3833 = vperm.xlu0 %4220, %v6227_v50  }
 0xb0f   : > { %3290 = vrot.lane.b32.xlu1 %v6508_v38, %s7357_s1 }
 0xb10   : > { %4221 = vset.pattern.permute.xlu0 %v7388_v1 }
 0xb11   : > { %3849 = vperm.xlu0 %4221, %v6227_v50  }
 0xb13   : > { %3304 = vrot.lane.b32.xlu1 %v6517_v18, %s7357_s1 }
 0xb15   : > { %4222 = vset.pattern.permute.xlu0 %v7389_v25 }
 0xb16   : > { %3865 = vperm.xlu0 %4222, %v6227_v50  }
 0xb17   : > { %3306 = vrot.lane.b32.xlu1 %v6529_v30, %s7357_s1 }
 0xb1a   : > { %4223 = vset.pattern.permute.xlu0 %v7390_v41 }
 0xb1b   : > { %3881 = vperm.xlu0 %4223, %v6227_v50   ;;  %3336 = vrot.lane.b32.xlu1 %v6538_v26, %s7357_s1  ;;  %v6629_v50 = vpop.permute.xlu1 %3322 }
 0xb1f   : > { %3872 = vrot.lane.b32.xlu0 %v6572_v19, %s7391_s22  ;;  %3338 = vrot.lane.b32.xlu1 %v6547_v42, %s7357_s1  ;;  %v6633_v0 = vpop.permute.xlu1 %3432 }
 0xb23   : > { %3352 = vrot.lane.b32.xlu1 %v6555_v33, %s7357_s1  ;;  %v6639_v13 = vpop.permute.xlu1 %3434 }
 0xb27   : > { %3354 = vrot.lane.b32.xlu1 %v6563_v28, %s7357_s1  ;;  %v6643_v1 = vpop.permute.xlu1 %3600 }
 0xb28   : > { %7392 = vst [vmem:[#allocation23_spill] sm:$0xff] %v6643_v1 }
 0xb2b   : > { %3368 = vrot.lane.b32.xlu1 %v6572_v19, %s7357_s1  ;;  %v6649_v25 = vpop.permute.xlu1 %3602 }
 0xb2c   : > { %7393 = vst [vmem:[#allocation25_spill] sm:$0xff] %v6649_v25 }
 0xb2f   : > { %3370 = vrot.lane.b32.xlu1 %v6581_v6, %s7357_s1 }
 0xb33   : > { %3384 = vrot.lane.b32.xlu1 %v6490_v2, %s7360_s20 }
 0xb37   : > { %3386 = vrot.lane.b32.xlu1 %v6494_v37, %s7360_s20 }
 0xb3b   : > { %3400 = vrot.lane.b32.xlu1 %v6504_v34, %s7360_s20 }
 0xb3f   : > { %3402 = vrot.lane.b32.xlu1 %v6508_v38, %s7360_s20 }
 0xb43   : > { %3416 = vrot.lane.b32.xlu1 %v6517_v18, %s7360_s20 }
 0xb47   : > { %3418 = vrot.lane.b32.xlu1 %v6529_v30, %s7360_s20 }
 0xb49   : > { %v3152_v41 = vpop.permute.xlu1 %3151 }
 0xb4b   : > { %3448 = vrot.lane.b32.xlu1 %v6538_v26, %s7360_s20 }
 0xb4d   : > { %v3169_v10 = vpop.permute.xlu1 %3168 }
 0xb4f   : > { %3450 = vrot.lane.b32.xlu1 %v6547_v42, %s7360_s20 }
 0xb51   : > { %v6657_v44 = vpop.permute.xlu1 %3712 }
 0xb52   : > { %7394 = vst [vmem:[#allocation57_spill] sm:$0xff] %v6657_v44 }
 0xb53   : > { %3464 = vrot.lane.b32.xlu1 %v6555_v33, %s7360_s20 }
 0xb55   : > { %v6661_v14 = vpop.permute.xlu1 %3714 }
 0xb56   : > { %7395 = vst [vmem:[#allocation38_spill] sm:$0xff] %v6661_v14  ;;  %v6675_v14 = vpop.permute.xlu0 %3689 }
 0xb57   : > { %3466 = vrot.lane.b32.xlu1 %v6563_v28, %s7360_s20  ;;  %7398 = vst [vmem:[#allocation58_spill] sm:$0xff] %v6675_v14 }
 0xb59   : > { %v3189_v51 = vpop.permute.xlu1 %3188 }
 0xb5a   : > { %v6679_v31 = vpop.permute.xlu0 %3705 }
 0xb5b   : > { %3480 = vrot.lane.b32.xlu1 %v6572_v19, %s7360_s20  ;;  %7399 = vst [vmem:[#allocation27_spill] sm:$0xff] %v6679_v31 }
 0xb5d   : > { %v3221_v47 = vpop.permute.xlu1 %3220 }
 0xb5e   : > { %v6685_v32 = vpop.permute.xlu0 %3721 }
 0xb5f   : > { %3482 = vrot.lane.b32.xlu1 %v6581_v6, %s7360_s20  ;;  %7400 = vst [vmem:[#allocation24_spill] sm:$0xff] %v6685_v32 }
 0xb61   : > { %v3223_v44 = vpop.permute.xlu1 %3222 }
 0xb62   : > { %v3150_v25 = vpop.permute.xlu0 %3149 }
 0xb63   : > { %3552 = vrot.lane.b32.xlu1 %v6490_v2, %s7362_s28  ;;  %v3153_v29 = vsel %vm7402_vm2, %v3150_v25, %v3152_v41  ;;  %v3156_v11 = vsel %vm7405_vm1, 0.0, %v3150_v25  ;;  %v3206_v25 = vsel %vm7407_vm5, %v6610_v3, %v6619_v54  ;;  %vm7413_vm2 = vmmov %vm7404_vm0 }
 0xb64   : > { %v3163_v48 = vmul.f32 %v6368_v43, %v3153_v29 }
 0xb65   : > { %v3239_v40 = vpop.permute.xlu1 %3238 }
 0xb66   : > { %v3171_v31 = vpop.permute.xlu0 %3170 }
 0xb67   : > { %3570 = vrot.lane.b32.xlu1 %v6508_v38, %s7362_s28  ;;  %v3172_v32 = vsel %vm7401_vm12, %v3169_v10, %v3171_v31  ;;  %vm7412_vm12 = vmmov %vm7404_vm0 }
 0xb68   : > { %v3181_v27 = vmul.f32 %v6298_v8, %v3172_v32 }
 0xb69   : > { %v3241_v52 = vpop.permute.xlu1 %3240 }
 0xb6a   : > { %v3187_v49 = vpop.permute.xlu0 %3186  ;;  %v3183_v41 = vadd.f32 %v3181_v27, %v3163_v48  ;;  %v3242_v48 = vsel %vm7411_vm11, %v3239_v40, %v3241_v52 }
 0xb6b   : > { %3824 = vrot.lane.b32.xlu1 %v6415_v21, %s7391_s22  ;;  %v3190_v63 = vsel %vm7404_vm0, %v3187_v49, %v3189_v51  ;;  %v3193_v39 = vsel %vm7406_vm4, 0.0, %v3187_v49  ;;  %v3224_v49 = vsel %vm7408_vm8, %v3221_v47, %v3223_v44  ;;  %v3245_v44 = vsel %vm7412_vm12, 0.0, %v3239_v40 }
 0xb6c   : > { %v3199_v61 = vmul.f32 %v6288_v59, %v3190_v63  ;;  %v3198_v51 = vmul.f32 %v6288_v59, %v3193_v39  ;;  %v3227_v63 = vsel %vm7410_vm10, 0.0, %v3221_v47  ;;  %v3215_v59 = vmul.f32 %v6290_v45, %v3206_v25 }
 0xb6d   : > { %v3257_v60 = vpop.permute.xlu1 %3256  ;;  %v3233_v27 = vmul.f32 %v6292_v24, %v3224_v49  ;;  %v3232_v54 = vmul.f32 %v6292_v24, %v3227_v63  ;;  %v3250_v40 = vmul.f32 %v6294_v5, %v3245_v44 }
 0xb6e   : > { %v3201_v62 = vadd.f32 %v3199_v61, %v3183_v41 }
 0xb6f   : > { %3826 = vrot.lane.b32.xlu1 %v6418_v46, %s7391_s22  ;;  %v3175_v46 = vsel %vm7403_vm3, 0.0, %v3169_v10  ;;  %v3162_v10 = vmul.f32 %v6368_v43, %v3156_v11  ;;  %vm7414_vm3 = vmmov %vm7404_vm0 }
 0xb70   : > { %v3180_v31 = vmul.f32 %v6298_v8, %v3175_v46  ;;  %v3209_v8 = vsel %vm7409_vm9, 0.0, %v6610_v3  ;;  %v3217_v11 = vadd.f32 %v3215_v59, %v3201_v62  ;;  %v3251_v3 = vmul.f32 %v6294_v5, %v3242_v48 }
 0xb71   : > { %v3259_v1 = vpop.permute.xlu1 %3258  ;;  %v3214_v61 = vmul.f32 %v6290_v45, %v3209_v8  ;;  %v3263_v47 = vsel %vm7414_vm3, 0.0, %v3257_v60 }
 0xb72   : > { %v3182_v29 = vadd.f32 %v3180_v31, %v3162_v10  ;;  %v3260_v46 = vsel %vm7413_vm2, %v3257_v60, %v3259_v1  ;;  %v3235_v10 = vadd.f32 %v3233_v27, %v3217_v11  ;;  %v3268_v25 = vmul.f32 %v6296_v57, %v3263_v47 }
 0xb73   : > { %3586 = vrot.lane.b32.xlu1 %v6529_v30, %s7362_s28  ;;  %v3269_v1 = vmul.f32 %v6296_v57, %v3260_v46 }
 0xb74   : > { %v3200_v39 = vadd.f32 %v3198_v51, %v3182_v29  ;;  %v3253_v51 = vadd.f32 %v3251_v3, %v3235_v10 }
 0xb75   : > { %v3273_v14 = vpop.permute.xlu1 %3272 }
 0xb76   : > { %v3216_v31 = vadd.f32 %v3214_v61, %v3200_v39  ;;  %v3279_v45 = vsel %vm1098_vm14, 0.0, %v3273_v14  ;;  %v3271_v29 = vadd.f32 %v3269_v1, %v3253_v51 }
 0xb77   : > { %3616 = vrot.lane.b32.xlu1 %v6538_v26, %s7362_s28  ;;  %v3284_v8 = vmul.f32 %v6334_v22, %v3279_v45 }
 0xb78   : > { %v3234_v62 = vadd.f32 %v3232_v54, %v3216_v31 }
 0xb79   : > { %v3275_v35 = vpop.permute.xlu1 %3274 }
 0xb7a   : > { %v3276_v52 = vsel %vm1098_vm14, %v3273_v14, %v3275_v35  ;;  %v3252_v60 = vadd.f32 %v3250_v40, %v3234_v62 }
 0xb7b   : > { %3618 = vrot.lane.b32.xlu1 %v6547_v42, %s7362_s28  ;;  %v3285_v49 = vmul.f32 %v6334_v22, %v3276_v52  ;;  %v3324_v22 = vsel %vm1098_vm14, %v6623_v7, %v6629_v50 }
 0xb7c   : > { %v3270_v48 = vadd.f32 %v3268_v25, %v3252_v60 }
 0xb7d   : > { %v3289_v20 = vpop.permute.xlu1 %3288  ;;  %v3287_v57 = vadd.f32 %v3285_v49, %v3271_v29 }
 0xb7e   : > { %v3295_v35 = vsel %vm1098_vm14, 0.0, %v3289_v20 }
 0xb7f   : > { %3632 = vrot.lane.b32.xlu1 %v6555_v33, %s7362_s28  ;;  %v3300_v59 = vmul.f32 %v6336_v17, %v3295_v35 }
 0xb81   : > { %v3291_v12 = vpop.permute.xlu1 %3290 }
 0xb82   : > { %v3292_v24 = vsel %vm1098_vm14, %v3289_v20, %v3291_v12  ;;  %v3286_v20 = vadd.f32 %v3284_v8, %v3270_v48 }
 0xb83   : > { %3634 = vrot.lane.b32.xlu1 %v6563_v28, %s7362_s28  ;;  %v3301_v14 = vmul.f32 %v6336_v17, %v3292_v24  ;;  %v3327_v17 = vsel %vm1098_vm14, 0.0, %v6623_v7 }
 0xb84   : > { %v3302_v46 = vadd.f32 %v3300_v59, %v3286_v20  ;;  %v3332_v31 = vmul.f32 %v6340_v9, %v3327_v17 }
 0xb85   : > { %v3305_v21 = vpop.permute.xlu1 %3304 }
 0xb86   : > { %v3311_v63 = vsel %vm1098_vm14, 0.0, %v3305_v21 }
 0xb87   : > { %3648 = vrot.lane.b32.xlu1 %v6572_v19, %s7362_s28  ;;  %v3316_v27 = vmul.f32 %v6338_v56, %v3311_v63 }
 0xb89   : > { %v3307_v32 = vpop.permute.xlu1 %3306  ;;  %v3318_v3 = vadd.f32 %v3316_v27, %v3302_v46  ;;  %v6788_v27 = vpop.permute.xlu0 %3737 }
 0xb8a   : > { %v3308_v5 = vsel %vm1098_vm14, %v3305_v21, %v3307_v32  ;;  %v3303_v32 = vadd.f32 %v3301_v14, %v3287_v57 }
 0xb8b   : > { %3650 = vrot.lane.b32.xlu1 %v6581_v6, %s7362_s28  ;;  %v3317_v39 = vmul.f32 %v6338_v56, %v3308_v5  ;;  %v3333_v56 = vmul.f32 %v6340_v9, %v3324_v22 }
 0xb8d   : > { %v3337_v43 = vpop.permute.xlu1 %3336  ;;  %v3319_v61 = vadd.f32 %v3317_v39, %v3303_v32 }
 0xb8e   : > { %v3343_v11 = vsel %vm1098_vm14, 0.0, %v3337_v43 }
 0xb8f   : > { %3664 = vrot.lane.b32.xlu1 %v6490_v2, %s7373_s21  ;;  %v3348_v10 = vmul.f32 %v6342_v58, %v3343_v11  ;;  %v3335_v40 = vadd.f32 %v3333_v56, %v3319_v61  ;;  %v6797_v61 = vpop.permute.xlu0 %3753 }
 0xb91   : > { %v3339_v41 = vpop.permute.xlu1 %3338 }
 0xb92   : > { %v3340_v21 = vsel %vm1098_vm14, %v3337_v43, %v3339_v41  ;;  %v3334_v43 = vadd.f32 %v3332_v31, %v3318_v3 }
 0xb93   : > { %3666 = vrot.lane.b32.xlu1 %v6494_v37, %s7373_s21  ;;  %v3349_v47 = vmul.f32 %v6342_v58, %v3340_v21 }
 0xb94   : > { %v3350_v51 = vadd.f32 %v3348_v10, %v3334_v43  ;;  %v6810_v10 = vpop.permute.xlu0 %3769 }
 0xb95   : > { %v3353_v12 = vpop.permute.xlu1 %3352  ;;  %v3351_v41 = vadd.f32 %v3349_v47, %v3335_v40 }
 0xb96   : > { %v3359_v52 = vsel %vm1098_vm14, 0.0, %v3353_v12 }
 0xb97   : > { %3680 = vrot.lane.b32.xlu1 %v6504_v34, %s7373_s21  ;;  %v3364_v45 = vmul.f32 %v6344_v55, %v3359_v52  ;;  %v3436_v52 = vsel %vm1211_vm13, %v6633_v0, %v6639_v13 }
 0xb99   : > { %v3355_v44 = vpop.permute.xlu1 %3354  ;;  %v3366_v49 = vadd.f32 %v3364_v45, %v3350_v51 }
 0xb9a   : > { %v3356_v54 = vsel %vm1098_vm14, %v3353_v12, %v3355_v44 }
 0xb9b   : > { %3682 = vrot.lane.b32.xlu1 %v6508_v38, %s7373_s21  ;;  %v3365_v1 = vmul.f32 %v6344_v55, %v3356_v54  ;;  %v3439_v54 = vsel %vm1211_vm13, 0.0, %v6633_v0  ;;  %v6820_v0 = vpop.permute.xlu0 %3785 }
 0xb9c   : > { %v3444_v3 = vmul.f32 %v6364_v16, %v3439_v54 }
 0xb9d   : > { %v3369_v50 = vpop.permute.xlu1 %3368  ;;  %v3367_v25 = vadd.f32 %v3365_v1, %v3351_v41 }
 0xb9e   : > { %v3375_v7 = vsel %vm1098_vm14, 0.0, %v3369_v50 }
 0xb9f   : > { %3696 = vrot.lane.b32.xlu1 %v6517_v18, %s7373_s21  ;;  %v3380_v9 = vmul.f32 %v6346_v23, %v3375_v7 }
 0xba1   : > { %v3371_v24 = vpop.permute.xlu1 %3370  ;;  %v3382_v29 = vadd.f32 %v3380_v9, %v3366_v49 }
 0xba2   : > { %v3372_v62 = vsel %vm1098_vm14, %v3369_v50, %v3371_v24 }
 0xba3   : > { %v3381_v58 = vmul.f32 %v6346_v23, %v3372_v62  ;;  %3698 = vrot.lane.b32.xlu1 %v6529_v30, %s7373_s21 }
 0xba5   : > { %v3383_v35 = vadd.f32 %v3381_v58, %v3367_v25  ;;  %v3385_v5 = vpop.permute.xlu1 %3384  ;;  %v7415_v25 = vld [vmem:[#allocation33_spill] sm:$0xff] }
 0xba6   : > { %v3391_v60 = vsel %vm1211_vm13, 0.0, %v3385_v5 }
 0xba7   : > { %v3396_v55 = vmul.f32 %v6352_v36, %v3391_v60  ;;  %3728 = vrot.lane.b32.xlu1 %v6538_v26, %s7373_s21 }
 0xba9   : > { %v3398_v8 = vadd.f32 %v3396_v55, %v3382_v29  ;;  %v3387_v14 = vpop.permute.xlu1 %3386  ;;  %v7416_v55 = vld [vmem:[#allocation15_spill] sm:$0xff] }
 0xbaa   : > { %v3388_v12 = vsel %vm1211_vm13, %v3385_v5, %v3387_v14 }
 0xbab   : > { %v3397_v23 = vmul.f32 %v6352_v36, %v3388_v12  ;;  %3730 = vrot.lane.b32.xlu1 %v6547_v42, %s7373_s21  ;;  %v7417_v12 = vld [vmem:[#allocation2_spill] sm:$0xff] }
 0xbad   : > { %v3399_v63 = vadd.f32 %v3397_v23, %v3383_v35  ;;  %v3401_v48 = vpop.permute.xlu1 %3400  ;;  %v6827_v35 = vpop.permute.xlu0 %3801  ;;  %v3500_v23 = vmul.f32 %v7417_v12, %v6490_v2 }
 0xbae   : > { %v3407_v57 = vsel %vm1211_vm13, 0.0, %v3401_v48 }
 0xbaf   : > { %v3412_v59 = vmul.f32 %v6356_v53, %v3407_v57  ;;  %3744 = vrot.lane.b32.xlu1 %v6555_v33, %s7373_s21 }
 0xbb1   : > { %v3414_v39 = vadd.f32 %v3412_v59, %v3398_v8  ;;  %v3403_v20 = vpop.permute.xlu1 %3402  ;;  %v6836_v14 = vpop.permute.xlu0 %3817  ;;  %v7418_v59 = vld [vmem:[#allocation41_spill] sm:$0xff] }
 0xbb2   : > { %v3404_v32 = vsel %vm1211_vm13, %v3401_v48, %v3403_v20 }
 0xbb3   : > { %v3413_v36 = vmul.f32 %v6356_v53, %v3404_v32  ;;  %3746 = vrot.lane.b32.xlu1 %v6563_v28, %s7373_s21 }
 0xbb5   : > { %v3415_v44 = vadd.f32 %v3413_v36, %v3399_v63  ;;  %v3417_v22 = vpop.permute.xlu1 %3416  ;;  %v7419_v36 = vld [vmem:[#allocation22_spill] sm:$0xff] }
 0xbb6   : > { %v3423_v21 = vsel %vm1211_vm13, 0.0, %v3417_v22 }
 0xbb7   : > { %v3428_v46 = vmul.f32 %v6360_v15, %v3423_v21  ;;  %3760 = vrot.lane.b32.xlu1 %v6572_v19, %s7373_s21 }
 0xbb9   : > { %v3430_v17 = vadd.f32 %v3428_v46, %v3414_v39  ;;  %v3419_v11 = vpop.permute.xlu1 %3418  ;;  %v3508_v39 = vmul.f32 %v7418_v59, %v6504_v34 }
 0xbba   : > { %v3420_v53 = vsel %vm1211_vm13, %v3417_v22, %v3419_v11 }
 0xbbb   : > { %v3429_v56 = vmul.f32 %v6360_v15, %v3420_v53  ;;  %3762 = vrot.lane.b32.xlu1 %v6581_v6, %s7373_s21  ;;  %v3446_v40 = vadd.f32 %v3444_v3, %v3430_v17  ;;  %v3445_v15 = vmul.f32 %v6364_v16, %v3436_v52  ;;  %v3555_v17 = vpop.permute.xlu0 %3554  ;;  %v7420_v53 = vld [vmem:[#allocation36_spill] sm:$0xff] }
 0xbbd   : > { %v3431_v47 = vadd.f32 %v3429_v56, %v3415_v44  ;;  %v3449_v50 = vpop.permute.xlu1 %3448  ;;  %v3516_v44 = vmul.f32 %v7419_v36, %v6517_v18  ;;  %v7421_v56 = vld [vmem:[#allocation40_spill] sm:$0xff] }
 0xbbe   : > { %v3455_v31 = vsel %vm1211_vm13, 0.0, %v3449_v50  ;;  %v3524_v3 = vmul.f32 %v7421_v56, %v7420_v53 }
 0xbbf   : > { %v3460_v1 = vmul.f32 %v6470_v4, %v3455_v31  ;;  %3776 = vrot.lane.b32.xlu1 %v6490_v2, %s7391_s22  ;;  %v3447_v45 = vadd.f32 %v3445_v15, %v3431_v47  ;;  %v3501_v2 = vmul.f32 %v7417_v12, %v6494_v37  ;;  %v7424_v15 = vld [vmem:[#allocation35_spill] sm:$0xff] }
 0xbc1   : > { %v3462_v7 = vadd.f32 %v3460_v1, %v3446_v40  ;;  %v3451_v43 = vpop.permute.xlu1 %3450  ;;  %v7423_v40 = vld [vmem:[#allocation20_spill] sm:$0xff] }
 0xbc2   : > { %v3452_v41 = vsel %vm1211_vm13, %v3449_v50, %v3451_v43  ;;  %v3525_v1 = vmul.f32 %v7421_v56, %v7423_v40  ;;  %v7431_v56 = vld [vmem:[#allocation56_spill] sm:$0xff] }
 0xbc3   : > { %v3461_v24 = vmul.f32 %v6470_v4, %v3452_v41  ;;  %3778 = vrot.lane.b32.xlu1 %v6494_v37, %s7391_s22  ;;  %v7422_v37 = vld [vmem:[#allocation51_spill] sm:$0xff] }
 0xbc4   : > { %v3532_v50 = vmul.f32 %v7422_v37, %v6538_v26 }
 0xbc5   : > { %v3463_v13 = vadd.f32 %v3461_v24, %v3447_v45  ;;  %v3465_v62 = vpop.permute.xlu1 %3464 }
 0xbc6   : > { %v3471_v51 = vsel %vm1211_vm13, 0.0, %v3465_v62 }
 0xbc7   : > { %v3476_v9 = vmul.f32 %v7415_v25, %v3471_v51  ;;  %3792 = vrot.lane.b32.xlu1 %v6504_v34, %s7391_s22  ;;  %v3509_v34 = vmul.f32 %v7418_v59, %v6508_v38 }
 0xbc9   : > { %v3478_v16 = vadd.f32 %v3476_v9, %v3462_v7  ;;  %v3467_v58 = vpop.permute.xlu1 %3466  ;;  %v3540_v7 = vmul.f32 %v7424_v15, %v6555_v33 }
 0xbca   : > { %v3468_v49 = vsel %vm1211_vm13, %v3465_v62, %v3467_v58  ;;  %v3533_v62 = vmul.f32 %v7422_v37, %v6547_v42 }
 0xbcb   : > { %v3477_v4 = vmul.f32 %v7415_v25, %v3468_v49  ;;  %3794 = vrot.lane.b32.xlu1 %v6508_v38, %s7391_s22  ;;  %v3541_v49 = vmul.f32 %v7424_v15, %v6563_v28 }
 0xbcd   : > { %v3479_v5 = vadd.f32 %v3477_v4, %v3463_v13  ;;  %v3481_v60 = vpop.permute.xlu1 %3480 }
 0xbce   : > { %v3487_v29 = vsel %vm1211_vm13, 0.0, %v3481_v60 }
 0xbcf   : > { %v3492_v8 = vmul.f32 %v7416_v55, %v3487_v29  ;;  %3808 = vrot.lane.b32.xlu1 %v6517_v18, %s7391_s22  ;;  %v3517_v18 = vmul.f32 %v7419_v36, %v6529_v30  ;;  %v7427_v29 = vld [vmem:[#allocation37_spill] sm:$0xff] }
 0xbd1   : > { %v3494_v63 = vadd.f32 %v3492_v8, %v3478_v16  ;;  %v3483_v48 = vpop.permute.xlu1 %3482  ;;  %v7426_v16 = vld [vmem:[#allocation3_spill] sm:$0xff] }
 0xbd2   : > { %v3484_v57 = vsel %vm1211_vm13, %v3481_v60, %v3483_v48  ;;  %vm7435_vm13 = vcmask 785408  }
 0xbd3   : > { %v3502_v20 = vadd.f32 %v3500_v23, %v3494_v63  ;;  %v3493_v32 = vmul.f32 %v7416_v55, %v3484_v57  ;;  %3810 = vrot.lane.b32.xlu1 %v6529_v30, %s7391_s22  ;;  %v3569_v30 = vpop.permute.xlu0 %3568  ;;  %vm7436_vm14 = vmmov %vm7435_vm13 }
 0xbd4   : > { %vm7437_vm0 = vmmov %vm7435_vm13 }
 0xbd5   : > { %v3510_v22 = vadd.f32 %v3508_v39, %v3502_v20  ;;  %v3495_v21 = vadd.f32 %v3493_v32, %v3479_v5  ;;  %v3553_v46 = vpop.permute.xlu1 %3552  ;;  %v3559_v5 = vsel %vm1380_vm7, %v3555_v17, 0.0  ;;  %vm7438_vm1 = vmmov %vm7437_vm0 }
 0xbd6   : > { %v3556_v41 = vsel %vm1380_vm7, %v3553_v46, %v3555_v17  ;;  %v3565_v63 = vmul.f32 %v7426_v16, %v3559_v5  ;;  %vm7444_vm4 = vmmov %vm7437_vm0 }
 0xbd7   : > { %v3518_v11 = vadd.f32 %v3516_v44, %v3510_v22  ;;  %v3503_v54 = vadd.f32 %v3501_v2, %v3495_v21  ;;  %3840 = vrot.lane.b32.xlu1 %v6538_v26, %s7391_s22  ;;  %v7425_v26 = vld [vmem:[#allocation53_spill] sm:$0xff]  ;;  %v3564_v58 = vmul.f32 %v7426_v16, %v3556_v41  ;;  %v3585_v57 = vpop.permute.xlu0 %3584  ;;  %v7428_v22 = vld [vmem:[#allocation4_spill] sm:$0xff]  ;;  %vm7445_vm5 = vmmov %vm7437_vm0 }
 0xbd8   : > { %v3548_v13 = vmul.f32 %v7425_v26, %v6572_v19  ;;  %v3549_v19 = vmul.f32 %v7425_v26, %v6581_v6  ;;  %vm7446_vm8 = vmmov %vm7437_vm0 }
 0xbd9   : > { %v3511_v47 = vadd.f32 %v3509_v34, %v3503_v54  ;;  %v3526_v52 = vadd.f32 %v3524_v3, %v3518_v11  ;;  %v3571_v31 = vpop.permute.xlu1 %3570  ;;  %v7429_v11 = vld [vmem:[#allocation25_spill] sm:$0xff]  ;;  %v7430_v34 = vld [vmem:[#allocation23_spill] sm:$0xff]  ;;  %vm7449_vm9 = vmmov %vm7437_vm0 }
 0xbda   : > { %v3572_v25 = vsel %vm1380_vm7, %v3569_v30, %v3571_v31  ;;  %v3575_v12 = vsel %vm1380_vm7, %v3571_v31, 0.0  ;;  %v3604_v54 = vsel %vm1380_vm7, %v7430_v34, %v7429_v11  ;;  %v3607_v53 = vsel %vm1380_vm7, %v7429_v11, 0.0  ;;  %v7432_v31 = vld [vmem:[#allocation19_spill] sm:$0xff]  ;;  %vm7450_vm10 = vmmov %vm7437_vm0 }
 0xbdb   : > { %v3519_v38 = vadd.f32 %v3517_v18, %v3511_v47  ;;  %v3534_v43 = vadd.f32 %v3532_v50, %v3526_v52  ;;  %3842 = vrot.lane.b32.xlu1 %v6547_v42, %s7391_s22  ;;  %v3580_v55 = vmul.f32 %v7427_v29, %v3572_v25  ;;  %v3581_v39 = vmul.f32 %v7427_v29, %v3575_v12  ;;  %vm7451_vm11 = vmmov %vm7437_vm0 }
 0xbdc   : > { %v3612_v3 = vmul.f32 %v7431_v56, %v3604_v54  ;;  %v3613_v18 = vmul.f32 %v7431_v56, %v3607_v53  ;;  %vm7452_vm12 = vmmov %vm7437_vm0 }
 0xbdd   : > { %v3527_v45 = vadd.f32 %v3525_v1, %v3519_v38  ;;  %v3542_v24 = vadd.f32 %v3540_v7, %v3534_v43  ;;  %v3825_v51 = vpop.permute.xlu1 %3824  ;;  %vm7453_vm2 = vmmov %vm7437_vm0 }
 0xbde   : > { %vm7454_vm3 = vmmov %vm7437_vm0 }
 0xbdf   : > { %v3550_v9 = vadd.f32 %v3548_v13, %v3542_v24  ;;  %v3535_v4 = vadd.f32 %v3533_v62, %v3527_v45  ;;  %3856 = vrot.lane.b32.xlu1 %v6555_v33, %s7391_s22  ;;  %v7433_v45 = vld [vmem:[#allocation14_spill] sm:$0xff] }
 0xbe1   : > { %v3566_v60 = vadd.f32 %v3564_v58, %v3550_v9  ;;  %v3543_v42 = vadd.f32 %v3541_v49, %v3535_v4  ;;  %v6881_v8 = vpop.permute.xlu1 %3826  ;;  %v7434_v58 = vld [vmem:[#allocation21_spill] sm:$0xff] }
 0xbe2   : > { %v6886_v23 = vsel %vm1606_vm6, %v3825_v51, %v6881_v8 }
 0xbe3   : > { %v3551_v33 = vadd.f32 %v3549_v19, %v3543_v42  ;;  %v3582_v48 = vadd.f32 %v3580_v55, %v3566_v60  ;;  %3858 = vrot.lane.b32.xlu1 %v6563_v28, %s7391_s22 }
 0xbe5   : > { %v3567_v59 = vadd.f32 %v3565_v63, %v3551_v33  ;;  %v3587_v20 = vpop.permute.xlu1 %3586 }
 0xbe6   : > { %v3588_v32 = vsel %vm1380_vm7, %v3585_v57, %v3587_v20  ;;  %v3591_v36 = vsel %vm1380_vm7, %v3587_v20, 0.0  ;;  %v7439_v57 = vld [vmem:[#allocation39_spill] sm:$0xff] }
 0xbe7   : > { %v3583_v44 = vadd.f32 %v3581_v39, %v3567_v59  ;;  %v3596_v2 = vmul.f32 %v7428_v22, %v3588_v32  ;;  %v3597_v21 = vmul.f32 %v7428_v22, %v3591_v36  ;;  %3874 = vrot.lane.b32.xlu1 %v6581_v6, %s7391_s22  ;;  %v7440_v32 = vld [vmem:[#allocation58_spill] sm:$0xff] }
 0xbe9   : > { %v3598_v46 = vadd.f32 %v3596_v2, %v3582_v48  ;;  %v3599_v17 = vadd.f32 %v3597_v21, %v3583_v44  ;;  %v3617_v28 = vpop.permute.xlu1 %3616 }
 0xbeb   : > { %v3614_v6 = vadd.f32 %v3612_v3, %v3598_v46  ;;  %v3615_v52 = vadd.f32 %v3613_v18, %v3599_v17  ;;  %v7441_v46 = vld [vmem:[#allocation38_spill] sm:$0xff]  ;;  %v7442_v17 = vld [vmem:[#allocation57_spill] sm:$0xff]  ;;  %v7447_v3 = vld [vmem:[#allocation27_spill] sm:$0xff] }
 0xbec   : > { %v3719_v11 = vsel %vm7444_vm4, %v7441_v46, 0.0 }
 0xbed   : > { %v3619_v47 = vpop.permute.xlu1 %3618 }
 0xbee   : > { %v3620_v37 = vsel %vm1380_vm7, %v3617_v28, %v3619_v47  ;;  %v3623_v50 = vsel %vm1380_vm7, %v3619_v47, 0.0 }
 0xbef   : > { %v3628_v40 = vmul.f32 %v7432_v31, %v3620_v37  ;;  %v3629_v1 = vmul.f32 %v7432_v31, %v3623_v50  ;;  %v7448_v37 = vld [vmem:[#allocation24_spill] sm:$0xff] }
 0xbf1   : > { %v3630_v38 = vadd.f32 %v3628_v40, %v3614_v6  ;;  %v3631_v15 = vadd.f32 %v3629_v1, %v3615_v52  ;;  %v3633_v7 = vpop.permute.xlu1 %3632  ;;  %v3725_v6 = vmul.f32 %v7448_v37, %v3719_v11 }
 0xbf5   : > { %v3635_v43 = vpop.permute.xlu1 %3634 }
 0xbf6   : > { %v3636_v41 = vsel %vm1380_vm7, %v3633_v7, %v3635_v43  ;;  %v3639_v30 = vsel %vm1380_vm7, %v3635_v43, 0.0 }
 0xbf7   : > { %v3644_v24 = vmul.f32 %v7433_v45, %v3636_v41  ;;  %v3645_v26 = vmul.f32 %v7433_v45, %v3639_v30 }
 0xbf9   : > { %v3646_v13 = vadd.f32 %v3644_v24, %v3630_v38  ;;  %v3647_v62 = vadd.f32 %v3645_v26, %v3631_v15  ;;  %v3649_v51 = vpop.permute.xlu1 %3648 }
 0xbfd   : > { %v3651_v25 = vpop.permute.xlu1 %3650 }
 0xbfe   : > { %v3652_v9 = vsel %vm1380_vm7, %v3649_v51, %v3651_v25  ;;  %v3655_v16 = vsel %vm1380_vm7, %v3651_v25, 0.0  ;;  %vm7443_vm7 = vmmov %vm7437_vm0 }
 0xbff   : > { %v3660_v49 = vmul.f32 %v7434_v58, %v3652_v9  ;;  %v3661_v4 = vmul.f32 %v7434_v58, %v3655_v16  ;;  %v3716_v28 = vsel %vm7443_vm7, %v7442_v17, %v7441_v46  ;;  %v3831_v46 = vsel %vm1606_vm6, %v6881_v8, 0.0 }
 0xc00   : > { %v3724_v50 = vmul.f32 %v7448_v37, %v3716_v28 }
 0xc01   : > { %v3662_v5 = vadd.f32 %v3660_v49, %v3646_v13  ;;  %v3663_v60 = vadd.f32 %v3661_v4, %v3647_v62  ;;  %v3665_v19 = vpop.permute.xlu1 %3664 }
 0xc05   : > { %v3667_v42 = vpop.permute.xlu1 %3666 }
 0xc06   : > { %v3668_v12 = vsel %vm7435_vm13, %v3665_v19, %v3667_v42  ;;  %v3671_v63 = vsel %vm7436_vm14, %v3667_v42, 0.0 }
 0xc07   : > { %v3676_v59 = vmul.f32 %v7439_v57, %v3668_v12  ;;  %v3677_v39 = vmul.f32 %v7439_v57, %v3671_v63 }
 0xc09   : > { %v3681_v29 = vpop.permute.xlu1 %3680  ;;  %v3678_v22 = vadd.f32 %v3676_v59, %v3662_v5  ;;  %v3679_v2 = vadd.f32 %v3677_v39, %v3663_v60 }
 0xc0d   : > { %v3683_v55 = vpop.permute.xlu1 %3682 }
 0xc0e   : > { %v3684_v33 = vsel %vm7437_vm0, %v3681_v29, %v3683_v55  ;;  %v3687_v48 = vsel %vm7438_vm1, %v3683_v55, 0.0 }
 0xc0f   : > { %v3692_v36 = vmul.f32 %v7440_v32, %v3684_v33  ;;  %v3693_v44 = vmul.f32 %v7440_v32, %v3687_v48  ;;  %v3834_v48 = vpop.permute.xlu0 %3833 }
 0xc11   : > { %v3697_v20 = vpop.permute.xlu1 %3696  ;;  %v3694_v53 = vadd.f32 %v3692_v36, %v3678_v22  ;;  %v3695_v56 = vadd.f32 %v3693_v44, %v3679_v2 }
 0xc13   : > { %v3850_v11 = vpop.permute.xlu0 %3849 }
 0xc15   : > { %v3699_v21 = vpop.permute.xlu1 %3698 }
 0xc16   : > { %v3700_v34 = vsel %vm7445_vm5, %v3697_v20, %v3699_v21  ;;  %v3703_v54 = vsel %vm7446_vm8, %v3699_v21, 0.0 }
 0xc17   : > { %v3708_v18 = vmul.f32 %v7447_v3, %v3700_v34  ;;  %v3709_v47 = vmul.f32 %v7447_v3, %v3703_v54  ;;  %v3866_v8 = vpop.permute.xlu0 %3865 }
 0xc19   : > { %v3710_v52 = vadd.f32 %v3708_v18, %v3694_v53  ;;  %v3711_v31 = vadd.f32 %v3709_v47, %v3695_v56  ;;  %v3729_v40 = vpop.permute.xlu1 %3728  ;;  %v3836_v56 = vmul.f32 %v3834_v48, %v6886_v23 }
 0xc1b   : > { %v3726_v1 = vadd.f32 %v3724_v50, %v3710_v52  ;;  %v3727_v38 = vadd.f32 %v3725_v6, %v3711_v31 }
 0xc1d   : > { %v3731_v15 = vpop.permute.xlu1 %3730 }
 0xc1e   : > { %v3732_v26 = vsel %vm7449_vm9, %v3729_v40, %v3731_v15  ;;  %v3735_v13 = vsel %vm7450_vm10, %v3731_v15, 0.0 }
 0xc1f   : > { %v3740_v9 = vmul.f32 %v6788_v27, %v3732_v26  ;;  %v3741_v16 = vmul.f32 %v6788_v27, %v3735_v13 }
 0xc21   : > { %v3745_v7 = vpop.permute.xlu1 %3744  ;;  %v3742_v29 = vadd.f32 %v3740_v9, %v3726_v1  ;;  %v3743_v55 = vadd.f32 %v3741_v16, %v3727_v38  ;;  %v3882_v1 = vpop.permute.xlu0 %3881 }
 0xc25   : > { %v3747_v43 = vpop.permute.xlu1 %3746 }
 0xc26   : > { %v3748_v51 = vsel %vm7451_vm11, %v3745_v7, %v3747_v43  ;;  %v3751_v25 = vsel %vm7452_vm12, %v3747_v43, 0.0 }
 0xc27   : > { %v3756_v4 = vmul.f32 %v6797_v61, %v3748_v51  ;;  %v3757_v5 = vmul.f32 %v6797_v61, %v3751_v25 }
 0xc29   : > { %v3761_v41 = vpop.permute.xlu1 %3760  ;;  %v3758_v57 = vadd.f32 %v3756_v4, %v3742_v29  ;;  %v3759_v59 = vadd.f32 %v3757_v5, %v3743_v55 }
 0xc2d   : > { %v3763_v30 = vpop.permute.xlu1 %3762 }
 0xc2e   : > { %v3764_v58 = vsel %vm7453_vm2, %v3761_v41, %v3763_v30  ;;  %v3767_v49 = vsel %vm7454_vm3, %v3763_v30, 0.0  ;;  %v3873_v30 = vpop.permute.xlu0 %3872 }
 0xc2f   : > { %v3772_v12 = vmul.f32 %v6810_v10, %v3764_v58  ;;  %v3773_v63 = vmul.f32 %v6810_v10, %v3767_v49 }
 0xc31   : > { %v3777_v45 = vpop.permute.xlu1 %3776  ;;  %v3774_v32 = vadd.f32 %v3772_v12, %v3758_v57  ;;  %v3775_v36 = vadd.f32 %v3773_v63, %v3759_v59 }
 0xc35   : > { %v3779_v24 = vpop.permute.xlu1 %3778 }
 0xc36   : > { %v3780_v19 = vsel %vm1606_vm6, %v3777_v45, %v3779_v24  ;;  %v3783_v42 = vsel %vm1606_vm6, %v3779_v24, 0.0 }
 0xc37   : > { %v3788_v61 = vmul.f32 %v6820_v0, %v3780_v19  ;;  %v3789_v39 = vmul.f32 %v6820_v0, %v3783_v42 }
 0xc39   : > { %v3793_v62 = vpop.permute.xlu1 %3792  ;;  %v3790_v2 = vadd.f32 %v3788_v61, %v3774_v32  ;;  %v3791_v10 = vadd.f32 %v3789_v39, %v3775_v36 }
 0xc3d   : > { %v3795_v60 = vpop.permute.xlu1 %3794 }
 0xc3e   : > { %v3796_v27 = vsel %vm1606_vm6, %v3793_v62, %v3795_v60  ;;  %v3799_v33 = vsel %vm1606_vm6, %v3795_v60, 0.0 }
 0xc3f   : > { %v3804_v44 = vmul.f32 %v6827_v35, %v3796_v27  ;;  %v3805_v22 = vmul.f32 %v6827_v35, %v3799_v33  ;;  %v3837_v35 = vmul.f32 %v3834_v48, %v3831_v46  ;;  %v7456_v46 = vld [vmem:[#allocation55_spill] sm:$0xff] }
 0xc41   : > { %v3809_v20 = vpop.permute.xlu1 %3808  ;;  %v3806_v34 = vadd.f32 %v3804_v44, %v3790_v2  ;;  %v3807_v0 = vadd.f32 %v3805_v22, %v3791_v10 }
 0xc45   : > { %v3811_v21 = vpop.permute.xlu1 %3810 }
 0xc46   : > { %v3812_v17 = vsel %vm1606_vm6, %v3809_v20, %v3811_v21  ;;  %v3815_v28 = vsel %vm1606_vm6, %v3811_v21, 0.0 }
 0xc47   : > { %v3820_v54 = vmul.f32 %v6836_v14, %v3812_v17  ;;  %v3821_v53 = vmul.f32 %v6836_v14, %v3815_v28  ;;  %v7457_v28 = vld [vmem:[#allocation16_spill] sm:$0xff] }
 0xc49   : > { %v3822_v3 = vadd.f32 %v3820_v54, %v3806_v34  ;;  %v3823_v18 = vadd.f32 %v3821_v53, %v3807_v0  ;;  %v3841_v47 = vpop.permute.xlu1 %3840  ;;  %v7458_v34 = vld [vmem:[#allocation17_spill] sm:$0xff]  ;;  %v7459_v54 = vld [vmem:[#allocation18_spill] sm:$0xff] }
 0xc4b   : > { %v3838_v37 = vadd.f32 %v3836_v56, %v3822_v3  ;;  %v3839_v50 = vadd.f32 %v3837_v35, %v3823_v18  ;;  %v7460_v56 = vld [vmem:[#allocation5_spill] sm:$0xff]  ;;  %v7461_v3 = vld [vmem:[#allocation32_spill] sm:$0xff] }
 0xc4d   : > { %v3843_v6 = vpop.permute.xlu1 %3842 }
 0xc4e   : > { %v3844_v31 = vsel %vm1606_vm6, %v3841_v47, %v3843_v6  ;;  %v3847_v40 = vsel %vm1606_vm6, %v3843_v6, 0.0  ;;  %v7462_v47 = vld [vmem:[#allocation34_spill] sm:$0xff] }
 0xc4f   : > { %v3852_v38 = vmul.f32 %v3850_v11, %v3844_v31  ;;  %v3853_v15 = vmul.f32 %v3850_v11, %v3847_v40 }
 0xc51   : > { %v3857_v52 = vpop.permute.xlu1 %3856  ;;  %v3854_v45 = vadd.f32 %v3852_v38, %v3838_v37  ;;  %v3855_v24 = vadd.f32 %v3853_v15, %v3839_v50  ;;  %v7463_v50 = vld [vmem:[#allocation31_spill] sm:$0xff] }
 0xc55   : > { %v3859_v7 = vpop.permute.xlu1 %3858 }
 0xc56   : > { %v3860_v14 = vsel %vm1606_vm6, %v3857_v52, %v3859_v7  ;;  %v3863_v23 = vsel %vm1606_vm6, %v3859_v7, 0.0 }
 0xc57   : > { %v3868_v43 = vmul.f32 %v3866_v8, %v3860_v14  ;;  %v3869_v41 = vmul.f32 %v3866_v8, %v3863_v23 }
 0xc59   : > { %v3875_v26 = vpop.permute.xlu1 %3874  ;;  %v3870_v51 = vadd.f32 %v3868_v43, %v3854_v45  ;;  %v3871_v25 = vadd.f32 %v3869_v41, %v3855_v24 }
 0xc5a   : > { %v3876_v13 = vsel %vm1606_vm6, %v3873_v30, %v3875_v26  ;;  %v3879_v62 = vsel %vm1606_vm6, %v3875_v26, 0.0 }
 0xc5b   : > { %v3884_v9 = vmul.f32 %v3882_v1, %v3876_v13  ;;  %v3885_v16 = vmul.f32 %v3882_v1, %v3879_v62 }
 0xc5d   : > { %v3886_v58 = vadd.f32 %v3884_v9, %v3870_v51  ;;  %v3887_v49 = vadd.f32 %v3885_v16, %v3871_v25 }
 0xc5f   : > { %v3888_v4 = vsel %vm1715_vm15, %v3886_v58, 0.0  ;;  %v3895_v5 = vsel %vm1715_vm15, %v3887_v49, 0.0 }
 0xc60   : > { %v3889_v60 = vrot.slane %v3888_v4, 4  ;;  %v3896_v19 = vrot.slane %v3895_v5, 4 }
 0xc62   : > { %v3890_v42 = vadd.f32 %v3889_v60, %v3888_v4  ;;  %v3897_v29 = vadd.f32 %v3896_v19, %v3895_v5 }
 0xc64   : > { %v3891_v55 = vrot.slane %v3890_v42, 2  ;;  %v3898_v12 = vrot.slane %v3897_v29, 2 }
 0xc66   : > { %v3892_v63 = vadd.f32 %v3891_v55, %v3890_v42  ;;  %v3899_v27 = vadd.f32 %v3898_v12, %v3897_v29 }
 0xc68   : > { %v3893_v33 = vrot.slane %v3892_v63, 1  ;;  %v3900_v48 = vrot.slane %v3899_v27, 1 }
 0xc6a   : > { %v3894_v57 = vadd.f32 %v3893_v33, %v3892_v63  ;;  %v3901_v59 = vadd.f32 %v3900_v48, %v3899_v27 }
 0xc6c   : > { %v3902_v61 = vsub.f32 0.0, %v3894_v57  ;;  %v3903_v39 = vsub.f32 0.0, %v3901_v59 }
 0xc6e   : > { %v3904_v20 = vmul.f32 1.442695, %v3902_v61  ;;  %v3906_v32 = vmul.f32 1.442695, %v3903_v39 }
 0xc70   : > { %4264 = vpow2.f32 %v3904_v20 }
 0xc71   : > { %4266 = vpow2.f32 %v3906_v32 }
 0xc7d   : > { %v4265_v36 = vpop.eup %4264 }
 0xc7e   : > { %v4267_v44 = vpop.eup %4266  ;;  %v3908_v22 = vadd.f32 1.0, %v4265_v36 }
 0xc7f   : > { %v3909_v2 = vadd.f32 1.0, %v4267_v44 }
 0xc80   : > { %4268 = vrcp.f32 %v3908_v22 }
 0xc81   : > { %4270 = vrcp.f32 %v3909_v2 }
 0xc8d   : > { %v4269_v10 = vpop.eup %4268 }
 0xc8e   : > { %v4271_v21 = vpop.eup %4270  ;;  %v3914_v17 = vmul.f32 %v4269_v10, %v7456_v46  ;;  %v3916_v11 = vmul.f32 %v4269_v10, %v7457_v28  ;;  %v3918_v0 = vmul.f32 %v4269_v10, %v7458_v34  ;;  %v3920_v53 = vmul.f32 %v4269_v10, %v7459_v54 }
 0xc8f   : > { %v3915_v35 = vmul.f32 %v4271_v21, %v7460_v56  ;;  %v3917_v18 = vmul.f32 %v4271_v21, %v7461_v3  ;;  %v3919_v37 = vmul.f32 %v4271_v21, %v7462_v47  ;;  %v3921_v8 = vmul.f32 %v4271_v21, %v7463_v50 }
 0xc90   : > { %3922 = vst [vmem:[%s548_s23] sm:$0xff] %v3914_v17  ;;  %3924 = vst [vmem:[%s548_s23 + $0x10] sm:$0xff] %v3916_v11 }
 0xc91   : > { %3926 = vst [vmem:[%s548_s23 + $0x20] sm:$0xff] %v3918_v0  ;;  %3928 = vst [vmem:[%s548_s23 + $0x30] sm:$0xff] %v3920_v53 }
 0xc92   : > { %3923 = vst [vmem:[%s548_s23 + $0x8] sm:$0xff] %v3915_v35  ;;  %3925 = vst [vmem:[%s548_s23 + $0x18] sm:$0xff] %v3917_v18 }
 0xc93   : > { %3927 = vst [vmem:[%s548_s23 + $0x28] sm:$0xff] %v3919_v37  ;;  %3929 = vst [vmem:[%s548_s23 + $0x38] sm:$0xff] %v3921_v8 }
 0xc94 PF: > { %s27_s24 = sadd.s32 1, %s4278_s24  }
 0xc95   : > { %p24_p4 = scmp.ge.s32.totalorder %s27_s24, 4  }
 0xc97   :  { %26 = sbr.rel (!%p24_p4) target bundleno = 3 (0x3), region = 118 }

</bundles_post_ra>
